<compile_context>
chip_gen: v7x
topology: tpu7x:2x2x1
jax: 0.10.0
libtpu: 0.0.40
codegen_flags: <defaults>
</compile_context>

<pallas_src>
import functools

import jax
import jax.numpy as jnp
import numpy as np
from jax.experimental import pallas as pl
from jax.experimental.pallas import tpu as pltpu


def _round_up(x, m):
    return -(-x // m) * m


def _inception_aux_kernel(x_ref, pm_ref, w0_ref, b0_ref, w1_ref, b1_ref,
                          wfc_ref, bfc_ref, o_ref):
    # x_ref:   (TB, Cin, HW)   bf16   batch tile of NCHW activations (flattened HW)
    # pm_ref:  (TB, P0P, HW)   bf16   0/1 pooling-window membership (pad rows zero)
    # w0_ref:  (Cin, 128)      bf16   conv0 weight, BN0 scale and 1/25 mean folded
    # b0_ref:  (1, 128)        f32    folded BN0 bias
    # w1_ref:  (P0P*128, 768)  bf16   conv1 weight (tap-major, cin-minor), BN1 folded
    # b1_ref:  (1, 768)        f32    folded BN1 bias
    # wfc_ref: (768, NCP)      bf16   fc weight (transposed, zero-padded lanes)
    # bfc_ref: (1, NCP)        f32    fc bias (zero-padded lanes)
    # o_ref:   (TB, NCP)       f32
    tb, c_in, _ = x_ref.shape
    p0p = pm_ref.shape[1]
    c0 = w0_ref.shape[1]

    # 1) avg_pool2d(5, stride 3) fused with the NCHW -> (sample, position, chan)
    #    transpose as one batched bf16 MXU matmul ('bps,bcs->bpc'), f32 accum.
    #    (exact 1/25 mean + BN0 scale are folded into w0 in the wrapper)
    pooled = jax.lax.dot_general(
        pm_ref[...], x_ref[...],
        dimension_numbers=(((2,), (2,)), ((0,), (0,))),
        preferred_element_type=jnp.float32)                      # (TB, P0P, Cin)

    # 2) conv0 (1x1) + BN0 + ReLU: one flat lane-dense matmul, M = TB*P0P.
    a0 = jax.lax.dot_general(
        pooled.astype(jnp.bfloat16).reshape(tb * p0p, c_in), w0_ref[...],
        dimension_numbers=(((1,), (0,)), ((), ())),
        preferred_element_type=jnp.float32)
    a0 = jnp.maximum(a0 + b0_ref[...], 0.0)                      # (TB*P0P, 128)

    # 3) conv1 (5x5 VALID on the 5x5 pooled map -> 1x1 output) + BN1 + ReLU as
    #    ONE long-K bf16 matmul: im2col is a per-sample flatten of the pooled
    #    activation (pad positions hit zero weight rows).  K = P0P*128.
    im2col = a0.astype(jnp.bfloat16).reshape(tb, p0p * c0)       # (TB, P0P*128)
    a1 = jax.lax.dot_general(
        im2col, w1_ref[...],
        dimension_numbers=(((1,), (0,)), ((), ())),
        preferred_element_type=jnp.float32)
    a1 = jnp.maximum(a1 + b1_ref[...], 0.0)                      # (TB, 768) f32

    # 4) adaptive_avg_pool2d((1,1)) + flatten: conv1 output is 1x1 -> identity.

    # 5) fc, lane-dense (num_classes zero-padded to NCP lanes in the wrapper).
    logits = jax.lax.dot_general(
        a1.astype(jnp.bfloat16), wfc_ref[...],
        dimension_numbers=(((1,), (0,)), ((), ())),
        preferred_element_type=jnp.float32) + bfc_ref[...]
    o_ref[...] = logits.astype(o_ref.dtype)


@functools.partial(jax.jit, static_argnames=("eps", "tile_b"))
def inception_aux_forward(x, conv0_w, bn0_g, bn0_b, bn0_m, bn0_v,
                          conv1_w, bn1_g, bn1_b, bn1_m, bn1_v,
                          fc_w, fc_b, eps=1e-3, tile_b=None):
    """InceptionAux forward (eval-mode BN).  x is NCHW; returns (N, num_classes)."""
    n, c_in, h, w = x.shape
    hw = h * w
    c0 = conv0_w.shape[0]                           # 128
    c1, c0_chk, kh, kw = conv1_w.shape              # 768, 128, 5, 5
    nc = fc_w.shape[0]
    assert c0_chk == c0

    ph, pw = (h - 5) // 3 + 1, (w - 5) // 3 + 1     # F.avg_pool2d(5, stride=3)
    oh, ow = ph - kh + 1, pw - kw + 1               # conv1 VALID output
    if oh < 1 or ow < 1:
        raise ValueError(f"spatial input {h}x{w} too small for InceptionAux")
    if oh != 1 or ow != 1:
        # TODO(synk): generic im2col path for pooled maps larger than 5x5
        #             (conv1 output > 1x1) is not implemented in this kernel.
        raise NotImplementedError("fused kernel expects a 5x5 pooled map "
                                  "(17..19 px spatial input)")

    p0 = ph * pw                                    # 25 pooled positions
    kflat = kh * kw                                 # == p0 since oh == ow == 1
    p0p = _round_up(p0, 8)                          # pad -> aligned reshapes
    ncp = _round_up(max(nc, 128), 128)              # lane-dense logits

    if tile_b is None:
        tile_b = min(128, n)
    tb = _round_up(max(tile_b, 1), 8)               # batch tile, multiple of 8
    n_pad = _round_up(n, tb)

    # ---- constant 0/1 pooling-membership matrix (trace-time, tiny) ----
    pm = np.zeros((p0p, hw), np.float32)
    for i in range(ph):
        for j in range(pw):
            for dh in range(5):
                for dw in range(5):
                    pm[i * pw + j, (3 * i + dh) * w + (3 * j + dw)] = 1.0
    pm_b = jnp.broadcast_to(jnp.asarray(pm, dtype=jnp.bfloat16)[None],
                            (tb, p0p, hw))

    # ---- fold eval-mode BN (and the exact 1/25 pool mean) into conv weights ----
    s0 = bn0_g * jax.lax.rsqrt(bn0_v + eps)
    w0f = (conv0_w.reshape(c0, c_in).T * (s0 / 25.0)[None, :]).astype(jnp.bfloat16)
    b0f = (bn0_b - bn0_m * s0).reshape(1, c0).astype(jnp.float32)

    s1 = bn1_g * jax.lax.rsqrt(bn1_v + eps)
    w1s = (jnp.transpose(conv1_w, (2, 3, 1, 0)).reshape(kflat * c0, c1)
           * s1[None, :])
    w1f = jnp.zeros((p0p * c0, c1), jnp.float32).at[:kflat * c0, :].set(w1s)
    w1f = w1f.astype(jnp.bfloat16)
    b1f = (bn1_b - bn1_m * s1).reshape(1, c1).astype(jnp.float32)

    wfc = jnp.zeros((c1, ncp), jnp.float32).at[:, :nc].set(fc_w.T)
    wfc = wfc.astype(jnp.bfloat16)
    bfc = jnp.zeros((1, ncp), jnp.float32).at[:, :nc].set(fc_b.reshape(1, nc))

    # ---- activations: bf16 halves the only per-sample HBM read ----
    x_flat = x.reshape(n, c_in, hw).astype(jnp.bfloat16)
    if n_pad > n:
        x_flat = jnp.pad(x_flat, ((0, n_pad - n), (0, 0), (0, 0)))

    def _resident(shape):
        """Constant-index operand: DMA'd once; single-buffered to halve VMEM."""
        index_map = lambda b, _nd=len(shape): (0,) * _nd
        try:
            return pl.BlockSpec(shape, index_map, pipeline_mode=pl.Buffered(1))
        except Exception:   # older jax: no pipeline_mode -> default double-buffer
            return pl.BlockSpec(shape, index_map)

    # rough VMEM footprint: streamed x/out (double-buffered), resident constants,
    # plus the in-kernel f32/bf16 intermediates; capped for v7x's 64 MiB/TC.
    vmem_est = (2 * tb * c_in * hw * 2
                + tb * p0p * hw * 2
                + (c_in * c0 + p0p * c0 * c1 + c1 * ncp) * 2
                + (c0 + c1 + ncp) * 4
                + 2 * tb * ncp * 4
                + tb * p0p * (c_in + c0) * 6
                + tb * (c1 + ncp) * 8)
    vmem_limit = int(min(max(2 * vmem_est, 32 << 20), 48 << 20))

    out = pl.pallas_call(
        _inception_aux_kernel,
        out_shape=jax.ShapeDtypeStruct((n_pad, ncp), jnp.float32),
        grid_spec=pltpu.PrefetchScalarGridSpec(
            num_scalar_prefetch=0,
            grid=(n_pad // tb,),
            in_specs=[
                pl.BlockSpec((tb, c_in, hw), lambda b: (b, 0, 0)),   # x (streamed)
                _resident((tb, p0p, hw)),                            # pool membership
                _resident((c_in, c0)),                               # conv0 weight
                _resident((1, c0)),                                  # conv0/BN0 bias
                _resident((p0p * c0, c1)),                           # conv1 weight
                _resident((1, c1)),                                  # conv1/BN1 bias
                _resident((c1, ncp)),                                # fc weight
                _resident((1, ncp)),                                 # fc bias
            ],
            out_specs=pl.BlockSpec((tb, ncp), lambda b: (b, 0)),
        ),
        compiler_params=pltpu.CompilerParams(
            dimension_semantics=("parallel",),
            vmem_limit_bytes=vmem_limit),
    )(x_flat, pm_b, w0f, b0f, w1f, b1f, wfc, bfc)

    return out[:n, :nc]


def _reference(x, conv0_w, bn0_g, bn0_b, bn0_m, bn0_v,
               conv1_w, bn1_g, bn1_b, bn1_m, bn1_v, fc_w, fc_b, eps=1e-3):
    """Pure-JAX f32 reference mirroring the PyTorch module (eval-mode BN)."""
    y = jax.lax.reduce_window(x, 0.0, jax.lax.add,
                              (1, 1, 5, 5), (1, 1, 3, 3), "VALID") / 25.0

    def conv_bn_relu(z, wgt, g, b, m, v):
        z = jax.lax.conv_general_dilated(
            z, wgt, window_strides=(1, 1), padding="VALID",
            dimension_numbers=("NCHW", "OIHW", "NCHW"))
        s = g / jnp.sqrt(v + eps)
        z = z * s[None, :, None, None] + (b - m * s)[None, :, None, None]
        return jnp.maximum(z, 0.0)

    y = conv_bn_relu(y, conv0_w, bn0_g, bn0_b, bn0_m, bn0_v)
    y = conv_bn_relu(y, conv1_w, bn1_g, bn1_b, bn1_m, bn1_v)
    y = jnp.mean(y, axis=(2, 3))                   # adaptive_avg_pool2d + flatten
    return y @ fc_w.T + fc_b[None, :]


if __name__ == "__main__":
    # InceptionAux hardcodes the 128/768 channel structure; the canonical aux
    # input is 17x17 spatial (pooled map 5x5 -> conv1 output 1x1).
    N, C_IN, H, W = 16, 32, 17, 17
    C0, C1, K = 128, 768, 5
    NUM_CLASSES = 10

    keys = jax.random.split(jax.random.PRNGKey(0), 13)
    x = jax.random.normal(keys[0], (N, C_IN, H, W), jnp.float32)

    conv0_w = jax.random.normal(keys[1], (C0, C_IN, 1, 1), jnp.float32) * 0.1
    bn0_g = 1.0 + 0.1 * jax.random.normal(keys[2], (C0,), jnp.float32)
    bn0_b = 0.1 * jax.random.normal(keys[3], (C0,), jnp.float32)
    bn0_m = 0.1 * jax.random.normal(keys[4], (C0,), jnp.float32)
    bn0_v = jax.random.uniform(keys[5], (C0,), jnp.float32, 0.5, 1.5)

    conv1_w = jax.random.normal(keys[6], (C1, C0, K, K), jnp.float32) * 0.02
    bn1_g = 1.0 + 0.1 * jax.random.normal(keys[7], (C1,), jnp.float32)
    bn1_b = 0.1 * jax.random.normal(keys[8], (C1,), jnp.float32)
    bn1_m = 0.1 * jax.random.normal(keys[9], (C1,), jnp.float32)
    bn1_v = jax.random.uniform(keys[10], (C1,), jnp.float32, 0.5, 1.5)

    fc_w = jax.random.normal(keys[11], (NUM_CLASSES, C1), jnp.float32) * 0.05
    fc_b = 0.1 * jax.random.normal(keys[12], (NUM_CLASSES,), jnp.float32)

    out = inception_aux_forward(x, conv0_w, bn0_g, bn0_b, bn0_m, bn0_v,
                                conv1_w, bn1_g, bn1_b, bn1_m, bn1_v,
                                fc_w, fc_b, tile_b=8)   # 2 batch tiles -> grid of 2
    out = jax.block_until_ready(out)
    assert out.shape == (N, NUM_CLASSES)

    ref = _reference(x, conv0_w, bn0_g, bn0_b, bn0_m, bn0_v,
                     conv1_w, bn1_g, bn1_b, bn1_m, bn1_v, fc_w, fc_b)
    # bf16 MXU inputs with f32 accumulation vs. pure-f32 reference.
    np.testing.assert_allclose(np.asarray(out), np.asarray(ref),
                               rtol=2e-2, atol=2e-2)

    print("KERNEL_OK")
</pallas_src>

<mosaic_0001>
module attributes {stable_mosaic.version = 11 : i64} {
  func.func @_inception_aux_kernel(%arg0: i32, %arg1: memref<8x32x289xbf16, #tpu.memory_space<vmem>>, %arg2: memref<8x32x289xbf16, #tpu.memory_space<vmem>>, %arg3: memref<32x128xbf16, #tpu.memory_space<vmem>>, %arg4: memref<1x128xf32, #tpu.memory_space<vmem>>, %arg5: memref<4096x768xbf16, #tpu.memory_space<vmem>>, %arg6: memref<1x768xf32, #tpu.memory_space<vmem>>, %arg7: memref<768x128xbf16, #tpu.memory_space<vmem>>, %arg8: memref<1x128xf32, #tpu.memory_space<vmem>>, %arg9: memref<8x128xf32, #tpu.memory_space<vmem>>) attributes {dimension_semantics = [#tpu.dimension_semantics<parallel>], iteration_bounds = array<i64: 2>, scalar_prefetch = 0 : i64, scratch_operands = 0 : i64, tpu.core_type = #tpu.core_type<tc>, window_params = [{transform_indices = @transform_0, window_bounds = array<i64: 8, 32, 289>}, {pipeline_mode = #tpu.pipeline_mode<synchronous>, transform_indices = @transform_1, window_bounds = array<i64: 8, 32, 289>}, {pipeline_mode = #tpu.pipeline_mode<synchronous>, transform_indices = @transform_2, window_bounds = array<i64: 32, 128>}, {pipeline_mode = #tpu.pipeline_mode<synchronous>, transform_indices = @transform_3, window_bounds = array<i64: 1, 128>}, {pipeline_mode = #tpu.pipeline_mode<synchronous>, transform_indices = @transform_4, window_bounds = array<i64: 4096, 768>}, {pipeline_mode = #tpu.pipeline_mode<synchronous>, transform_indices = @transform_5, window_bounds = array<i64: 1, 768>}, {pipeline_mode = #tpu.pipeline_mode<synchronous>, transform_indices = @transform_6, window_bounds = array<i64: 768, 128>}, {pipeline_mode = #tpu.pipeline_mode<synchronous>, transform_indices = @transform_7, window_bounds = array<i64: 1, 128>}, {transform_indices = @transform_8, window_bounds = array<i64: 8, 128>}]} {
    %c0 = arith.constant 0 : index
    %c0_0 = arith.constant 0 : index
    %c0_1 = arith.constant 0 : index
    %0 = vector.load %arg2[%c0, %c0_0, %c0_1] : memref<8x32x289xbf16, #tpu.memory_space<vmem>>, vector<8x32x289xbf16>
    %c0_2 = arith.constant 0 : index
    %c0_3 = arith.constant 0 : index
    %c0_4 = arith.constant 0 : index
    %1 = vector.load %arg1[%c0_2, %c0_3, %c0_4] : memref<8x32x289xbf16, #tpu.memory_space<vmem>>, vector<8x32x289xbf16>
    %cst = arith.constant dense<0.000000e+00> : vector<8x32x32xf32>
    %2 = tpu.matmul %0, %1, %cst {dimension_numbers = #tpu.dot_dimension_numbers<[2], [2], [1], [1], [0, 0, 0, 1, 1, 1], [0], [0]>} : vector<8x32x289xbf16>, vector<8x32x289xbf16>, vector<8x32x32xf32> -> vector<8x32x32xf32>
    %3 = arith.truncf %2 : vector<8x32x32xf32> to vector<8x32x32xbf16>
    %4 = vector.shape_cast %3 : vector<8x32x32xbf16> to vector<256x32xbf16>
    %c0_5 = arith.constant 0 : index
    %c0_6 = arith.constant 0 : index
    %5 = vector.load %arg3[%c0_5, %c0_6] : memref<32x128xbf16, #tpu.memory_space<vmem>>, vector<32x128xbf16>
    %cst_7 = arith.constant dense<0.000000e+00> : vector<256x128xf32>
    %6 = tpu.matmul %4, %5, %cst_7 {dimension_numbers = #tpu.dot_dimension_numbers<[1], [0], [0], [1], [0, 0, 1, 1], [], []>} : vector<256x32xbf16>, vector<32x128xbf16>, vector<256x128xf32> -> vector<256x128xf32>
    %c0_8 = arith.constant 0 : index
    %c0_9 = arith.constant 0 : index
    %7 = vector.load %arg4[%c0_8, %c0_9] : memref<1x128xf32, #tpu.memory_space<vmem>>, vector<1x128xf32>
    %8 = vector.broadcast %7 : vector<1x128xf32> to vector<256x128xf32>
    %9 = arith.addf %6, %8 : vector<256x128xf32>
    %cst_10 = arith.constant 0.000000e+00 : f32
    %10 = vector.broadcast %cst_10 : f32 to vector<256x128xf32>
    %11 = arith.maximumf %9, %10 : vector<256x128xf32>
    %12 = arith.truncf %11 : vector<256x128xf32> to vector<256x128xbf16>
    %13 = vector.shape_cast %12 : vector<256x128xbf16> to vector<8x4096xbf16>
    %c0_11 = arith.constant 0 : index
    %c0_12 = arith.constant 0 : index
    %14 = vector.load %arg5[%c0_11, %c0_12] : memref<4096x768xbf16, #tpu.memory_space<vmem>>, vector<4096x768xbf16>
    %cst_13 = arith.constant dense<0.000000e+00> : vector<8x768xf32>
    %15 = tpu.matmul %13, %14, %cst_13 {dimension_numbers = #tpu.dot_dimension_numbers<[1], [0], [0], [1], [0, 0, 1, 1], [], []>} : vector<8x4096xbf16>, vector<4096x768xbf16>, vector<8x768xf32> -> vector<8x768xf32>
    %c0_14 = arith.constant 0 : index
    %c0_15 = arith.constant 0 : index
    %16 = vector.load %arg6[%c0_14, %c0_15] : memref<1x768xf32, #tpu.memory_space<vmem>>, vector<1x768xf32>
    %17 = vector.broadcast %16 : vector<1x768xf32> to vector<8x768xf32>
    %18 = arith.addf %15, %17 : vector<8x768xf32>
    %cst_16 = arith.constant 0.000000e+00 : f32
    %19 = vector.broadcast %cst_16 : f32 to vector<8x768xf32>
    %20 = arith.maximumf %18, %19 : vector<8x768xf32>
    %21 = arith.truncf %20 : vector<8x768xf32> to vector<8x768xbf16>
    %c0_17 = arith.constant 0 : index
    %c0_18 = arith.constant 0 : index
    %22 = vector.load %arg7[%c0_17, %c0_18] : memref<768x128xbf16, #tpu.memory_space<vmem>>, vector<768x128xbf16>
    %cst_19 = arith.constant dense<0.000000e+00> : vector<8x128xf32>
    %23 = tpu.matmul %21, %22, %cst_19 {dimension_numbers = #tpu.dot_dimension_numbers<[1], [0], [0], [1], [0, 0, 1, 1], [], []>} : vector<8x768xbf16>, vector<768x128xbf16>, vector<8x128xf32> -> vector<8x128xf32>
    %c0_20 = arith.constant 0 : index
    %c0_21 = arith.constant 0 : index
    %24 = vector.load %arg8[%c0_20, %c0_21] : memref<1x128xf32, #tpu.memory_space<vmem>>, vector<1x128xf32>
    %25 = vector.broadcast %24 : vector<1x128xf32> to vector<8x128xf32>
    %26 = arith.addf %23, %25 : vector<8x128xf32>
    %c0_22 = arith.constant 0 : index
    %c0_23 = arith.constant 0 : index
    %27 = vector.load %arg9[%c0_22, %c0_23] : memref<8x128xf32, #tpu.memory_space<vmem>>, vector<8x128xf32>
    tpu.vector_store %arg9[%c0_22, %c0_23], %26 {strides = array<i32>} : memref<8x128xf32, #tpu.memory_space<vmem>>, vector<8x128xf32>,
    return
  }
  func.func @transform_0(%arg0: i32) -> (i32, i32, i32) {
    %c0_i32 = arith.constant 0 : i32
    %c0_i32_0 = arith.constant 0 : i32
    %c0_i32_1 = arith.constant 0 : i32
    return %arg0, %c0_i32, %c0_i32_0 : i32, i32, i32
  }
  func.func @transform_1(%arg0: i32) -> (i32, i32, i32) {
    %c0_i32 = arith.constant 0 : i32
    %c0_i32_0 = arith.constant 0 : i32
    %c0_i32_1 = arith.constant 0 : i32
    %c0_i32_2 = arith.constant 0 : i32
    return %c0_i32, %c0_i32_0, %c0_i32_1 : i32, i32, i32
  }
  func.func @transform_2(%arg0: i32) -> (i32, i32) {
    %c0_i32 = arith.constant 0 : i32
    %c0_i32_0 = arith.constant 0 : i32
    %c0_i32_1 = arith.constant 0 : i32
    return %c0_i32, %c0_i32_0 : i32, i32
  }
  func.func @transform_3(%arg0: i32) -> (i32, i32) {
    %c0_i32 = arith.constant 0 : i32
    %c0_i32_0 = arith.constant 0 : i32
    %c0_i32_1 = arith.constant 0 : i32
    return %c0_i32, %c0_i32_0 : i32, i32
  }
  func.func @transform_4(%arg0: i32) -> (i32, i32) {
    %c0_i32 = arith.constant 0 : i32
    %c0_i32_0 = arith.constant 0 : i32
    %c0_i32_1 = arith.constant 0 : i32
    return %c0_i32, %c0_i32_0 : i32, i32
  }
  func.func @transform_5(%arg0: i32) -> (i32, i32) {
    %c0_i32 = arith.constant 0 : i32
    %c0_i32_0 = arith.constant 0 : i32
    %c0_i32_1 = arith.constant 0 : i32
    return %c0_i32, %c0_i32_0 : i32, i32
  }
  func.func @transform_6(%arg0: i32) -> (i32, i32) {
    %c0_i32 = arith.constant 0 : i32
    %c0_i32_0 = arith.constant 0 : i32
    %c0_i32_1 = arith.constant 0 : i32
    return %c0_i32, %c0_i32_0 : i32, i32
  }
  func.func @transform_7(%arg0: i32) -> (i32, i32) {
    %c0_i32 = arith.constant 0 : i32
    %c0_i32_0 = arith.constant 0 : i32
    %c0_i32_1 = arith.constant 0 : i32
    return %c0_i32, %c0_i32_0 : i32, i32
  }
  func.func @transform_8(%arg0: i32) -> (i32, i32) {
    %c0_i32 = arith.constant 0 : i32
    %c0_i32_0 = arith.constant 0 : i32
    return %arg0, %c0_i32 : i32, i32
  }
}

</mosaic_0001>

<bundles_post_ra>
// kernel: inception_aux_forward.1
= control target key start
LH: loop header
LB: loop body
LE: loop exit
PB: predicated region body
PF: predicated region fallthrough
CT: control target
= control target key end

     0   :  { %13 = vsyncpa [#allocation3], 0  ;;  %s24618_s0 = inlined_call_operand.vmem [shape: bf16[16,32,289], index: 0, kind: input, shape index: {}]   ;;  %s24619_s1 = inlined_call_operand.vmem [shape: bf16[8,32,289], index: 1, kind: input, shape index: {}]   ;;  %s24620_s2 = inlined_call_operand.vmem [shape: bf16[32,128], index: 2, kind: input, shape index: {}]   ;;  %s24621_s3 = inlined_call_operand.vmem [shape: f32[1,128], index: 3, kind: input, shape index: {}]   ;;  %s24622_s4 = inlined_call_operand.vmem [shape: bf16[4096,768], index: 4, kind: input, shape index: {}]   ;;  %s24623_s5 = inlined_call_operand.vmem [shape: f32[1,768], index: 5, kind: input, shape index: {}]   ;;  %s24624_s6 = inlined_call_operand.vmem [shape: bf16[768,128], index: 6, kind: input, shape index: {}]   ;;  %s24625_s7 = inlined_call_operand.vmem [shape: f32[1,128], index: 7, kind: input, shape index: {}]   ;;  %s24626_s8 = inlined_call_operand.hbm [shape: f32[16,128], index: 8, kind: output, shape index: {}]  }
   0x1   :  { %15 = vsyncpa [#allocation3 + $0x1], 0  ;;  %s19071_s27 = smov 0   ;;  %s19073_s28 = smov 0  }
   0x2   :  { %s19075_s29 = smov 0   ;;  %s19077_s30 = smov 0  }
   0x3 LB: > { %s19092_s9 = sadd.s32 4294967295, %s19022_s30   ;;  %s14277_s10 = sadd.s32 4294967294, %s19022_s30   ;;  %s19022_s30 = sphi %s19077_s30, %s24632_s30   ;;  %s19018_s29 = sphi %s19075_s29, %s24631_s29   ;;  %s19014_s28 = sphi %s19073_s28, %s24630_s28   ;;  %s19010_s27 = sphi %s19071_s27, %s24629_s27  }
   0x4   : > { %s19096_s11 = sadd.s32 1, %s19022_s30   ;;  %s201_s12 = sadd.s32 1, %s19018_s29 }
   0x5   : > { %s198_s13 = ssub.s32 %s19022_s30, %s19096_s11  ;;  %p211_p0 = scmp.ne.s32.totalorder %s19018_s29, %s19014_s28 }
   0x6   : > { %p199_p1 = scmp.eq.s32.totalorder %s198_s13, 0  ;;  %p212_p2 = scmp.eq.s32.totalorder %s19092_s9, 1 }
   0x7   : > { %p217_p3 = scmp.ne.s32.totalorder %s19014_s28, %s19010_s27  ;;  %p218_p4 = scmp.eq.s32.totalorder %s14277_s10, 1 }
   0x8   : > { %s19107_s14 = scalar_select %p199_p1, %s19018_s29, %s201_s12  }
   0x9   : > { %p19109_p5 = por %p212_p2, %p211_p0  ;;  %p19113_p6 = por %p218_p4, %p217_p3 }
   0xa   : > { %p14280_p7 = scmp.ge.s32.totalorder %s19022_s30, 1  ;;  %p267_p8 = scmp.lt.s32.totalorder %s19022_s30, 3 }
   0xc   : > { %p268_p9 = pnand %p14280_p7, %p267_p8 }
   0xd   : > { %s14282_s17 = sshll.u32 (!%p268_p9), %s19092_s9, 3  ;;  %v16485_v0 = vld [vmem:[%s24619_s1 + $0x4] ss:$12 sps:$4 sm:$0xff] (!%p268_p9)   ;;  %v16502_v1 = vld [vmem:[%s24619_s1 + $0x34] ss:$12 sps:$4 sm:$0xff] (!%p268_p9)   ;;  %vm498_vm0 = vcmask (!%p268_p9), 269312  }
   0xe   : > { %271 = sbr.rel (%p268_p9) target bundleno = 2611 (0xa33), region = 52  ;;  %p303_p10 = scmp.lt.s32.totalorder (!%p268_p9), %s14282_s17, 15  ;;  %543 = vmatprep.mubr.bf16.mxu1 (!%p268_p9), %v16485_v0  ;;  %713 = vmatprep.mubr.bf16.mxu0 (!%p268_p9), %v16502_v1  ;;  %v16483_v12 = vld [vmem:[%s24619_s1] ss:$12 sps:$4 sm:$0xff] (!%p268_p9)   ;;  %v16487_v13 = vld [vmem:[%s24619_s1 + $0x1c] ss:$12 sps:$4 sm:$0xff] (!%p268_p9)  }
   0xf   : > { %v16500_v16 = vld [vmem:[%s24619_s1 + $0x30] ss:$12 sps:$4 sm:$0xff] (!%p268_p9)   ;;  %v16507_v17 = vld [vmem:[%s24619_s1 + $0x4c] ss:$12 sps:$4 sm:$0xff] (!%p268_p9)   ;;  %v16494_v21 = vld [vmem:[%s24619_s1 + $0x8] ss:$12 sps:$4 sm:$0xff] (!%p268_p9)  }
  0x10   : > { %v16491_v20 = vld [vmem:[%s24619_s1 + $0x18] ss:$12 sps:$4 sm:$0xff] (!%p268_p9)   ;;  %v16509_v24 = vld [vmem:[%s24619_s1 + $0x48] ss:$12 sps:$4 sm:$0xff] (!%p268_p9)   ;;  %v16497_v28 = vld [vmem:[%s24619_s1 + $0x20] ss:$12 sps:$4 sm:$0xff] (!%p268_p9)  }
  0x11   : > { %v16518_v26 = vld [vmem:[%s24619_s1 + $0x64] ss:$12 sps:$4 sm:$0xff] (!%p268_p9)   ;;  %v16516_v32 = vld [vmem:[%s24619_s1 + $0x60] ss:$12 sps:$4 sm:$0xff] (!%p268_p9)   ;;  %v16523_v34 = vld [vmem:[%s24619_s1 + $0x7c] ss:$12 sps:$4 sm:$0xff] (!%p268_p9)  }
  0x12   : > { %v16510_v30 = vld [vmem:[%s24619_s1 + $0x38] ss:$12 sps:$4 sm:$0xff] (!%p268_p9)   ;;  %v16534_v40 = vld [vmem:[%s24619_s1 + $0x94] ss:$12 sps:$4 sm:$0xff] (!%p268_p9)   ;;  %v16514_v42 = vld [vmem:[%s24619_s1 + $0x50] ss:$12 sps:$4 sm:$0xff] (!%p268_p9)  }
  0x13   : > { %v16525_v38 = vld [vmem:[%s24619_s1 + $0x78] ss:$12 sps:$4 sm:$0xff] (!%p268_p9)   ;;  %v16526_v43 = vld [vmem:[%s24619_s1 + $0x68] ss:$12 sps:$4 sm:$0xff] (!%p268_p9)   ;;  %v16532_v46 = vld [vmem:[%s24619_s1 + $0x90] ss:$12 sps:$4 sm:$0xff] (!%p268_p9)  }
  0x14   : > { %v16539_v48 = vld [vmem:[%s24619_s1 + $0xac] ss:$12 sps:$4 sm:$0xff] (!%p268_p9)   ;;  %v16541_v52 = vld [vmem:[%s24619_s1 + $0xa8] ss:$12 sps:$4 sm:$0xff] (!%p268_p9)   ;;  %v16550_v54 = vld [vmem:[%s24619_s1 + $0xc4] ss:$12 sps:$4 sm:$0xff] (!%p268_p9)  }
  0x15   : > { %s24634_s17 = smov (!%p303_p10, %s14282_s17), 15  ;;  %v16530_v56 = vld [vmem:[%s24619_s1 + $0x80] ss:$12 sps:$4 sm:$0xff]   ;;  %v16542_v57 = vld [vmem:[%s24619_s1 + $0x98] ss:$12 sps:$4 sm:$0xff]   ;;  %vm1838_vm1 = vcmask 261120  }
  0x16   : > { %s16436_s20 = smul.u32 48, %s24634_s17  ;;  %v16548_v60 = vld [vmem:[%s24619_s1 + $0xc0] ss:$12 sps:$4 sm:$0xff]   ;;  %v16555_v62 = vld [vmem:[%s24619_s1 + $0xdc] ss:$12 sps:$4 sm:$0xff]   ;;  %s299_s13 = sand.u32 1, %s19014_s28  }
  0x17   : > { %s14281_s17 = sshll.u32 %s299_s13, 3  ;;  %s16017_s18 = sshll.u32 %s19092_s9, 7 }
  0x18   : > { %s19129_s25 = scalar_lea.vmem %s24618_s0, %s16436_s20  ;;  %s301_s19 = scalar_lea.vmem [#allocation2], %s14281_s17 }
  0x19   : > { %v16477_v2 = vld [vmem:[%s19129_s25 + $0x4] ss:$12 sps:$4 sm:$0xff]   ;;  %v16479_v3 = vld [vmem:[%s19129_s25] ss:$12 sps:$4 sm:$0xff]   ;;  %v16480_v4 = vld [vmem:[%s19129_s25 + $0x1c] ss:$12 sps:$4 sm:$0xff]  }
  0x1a   : > { %511 = vmatprep.subr.bf16.mxu1 %v16477_v2  ;;  %v16489_v5 = vld [vmem:[%s19129_s25 + $0x34] ss:$12 sps:$4 sm:$0xff]   ;;  %v16493_v6 = vld [vmem:[%s19129_s25 + $0x30] ss:$12 sps:$4 sm:$0xff]   ;;  %v16495_v7 = vld [vmem:[%s19129_s25 + $0x4c] ss:$12 sps:$4 sm:$0xff]  }
  0x1b   : > { %512 = vmatpush1.bf16.xpose.msra.mxu1 %v16479_v3  ;;  %681 = vmatprep.subr.bf16.mxu0 %v16489_v5  ;;  %v16482_v8 = vld [vmem:[%s19129_s25 + $0x18] ss:$12 sps:$4 sm:$0xff]   ;;  %v16486_v9 = vld [vmem:[%s19129_s25 + $0x8] ss:$12 sps:$4 sm:$0xff]   ;;  %v16492_v15 = vld [vmem:[%s19129_s25 + $0x20] ss:$12 sps:$4 sm:$0xff]  }
  0x1c   : > { %513 = vmatprep.subr.bf16.mxu1 %v16480_v4  ;;  %682 = vmatpush1.bf16.xpose.msra.mxu0 %v16493_v6  ;;  %v16498_v10 = vld [vmem:[%s19129_s25 + $0x48] ss:$12 sps:$4 sm:$0xff]   ;;  %v16505_v11 = vld [vmem:[%s19129_s25 + $0x64] ss:$12 sps:$4 sm:$0xff]   ;;  %v506_v14 = vsel %vm498_vm0, %v16486_v9, 0  ;;  %v509_v22 = vsel %vm498_vm0, %v16492_v15, 0 }
  0x1d   : > { %683 = vmatprep.subr.bf16.mxu0 %v16495_v7  ;;  %v16503_v18 = vld [vmem:[%s19129_s25 + $0x60] ss:$12 sps:$4 sm:$0xff]   ;;  %v16513_v19 = vld [vmem:[%s19129_s25 + $0x7c] ss:$12 sps:$4 sm:$0xff]   ;;  %v16499_v23 = vld [vmem:[%s19129_s25 + $0x38] ss:$12 sps:$4 sm:$0xff]  }
  0x1e   : > { %v16511_v25 = vld [vmem:[%s19129_s25 + $0x78] ss:$12 sps:$4 sm:$0xff]   ;;  %v16521_v27 = vld [vmem:[%s19129_s25 + $0x94] ss:$12 sps:$4 sm:$0xff]   ;;  %v676_v29 = vsel %vm498_vm0, %v16499_v23, 0  ;;  %s14218_s20 = sshll.u32 %s301_s19, 4  ;;  %s24578_s20 = int_to_ptr.vmem [resolvable:$true] %s14218_s20 }
  0x1f   : > { %v16506_v31 = vld [vmem:[%s19129_s25 + $0x50] ss:$12 sps:$4 sm:$0xff]   ;;  %v16529_v35 = vld [vmem:[%s19129_s25 + $0xac] ss:$12 sps:$4 sm:$0xff]   ;;  %v16515_v37 = vld [vmem:[%s19129_s25 + $0x68] ss:$12 sps:$4 sm:$0xff]  }
  0x20   : > { %v16519_v33 = vld [vmem:[%s19129_s25 + $0x90] ss:$12 sps:$4 sm:$0xff]   ;;  %v679_v36 = vsel %vm498_vm0, %v16506_v31, 0  ;;  %v16527_v39 = vld [vmem:[%s19129_s25 + $0xa8] ss:$12 sps:$4 sm:$0xff]   ;;  %v846_v44 = vsel %vm498_vm0, %v16515_v37, 0 }
  0x21   : > { %v16537_v41 = vld [vmem:[%s19129_s25 + $0xc4] ss:$12 sps:$4 sm:$0xff]   ;;  %v16522_v45 = vld [vmem:[%s19129_s25 + $0x80] ss:$12 sps:$4 sm:$0xff]   ;;  %v16545_v49 = vld [vmem:[%s19129_s25 + $0xdc] ss:$12 sps:$4 sm:$0xff]  }
  0x22   : > { %v16535_v47 = vld [vmem:[%s19129_s25 + $0xc0] ss:$12 sps:$4 sm:$0xff]   ;;  %v849_v50 = vsel %vm498_vm0, %v16522_v45, 0  ;;  %v16531_v51 = vld [vmem:[%s19129_s25 + $0x98] ss:$12 sps:$4 sm:$0xff]   ;;  %s14205_s23 = scalar_lea.sflag [#allocation3], %s299_s13 }
  0x23   : > { %514 = vmatpush1.bf16.xpose.msra.mxu1 %v16482_v8  ;;  %v16543_v53 = vld [vmem:[%s19129_s25 + $0xd8] ss:$12 sps:$4 sm:$0xff]   ;;  %v16553_v55 = vld [vmem:[%s19129_s25 + $0xf4] ss:$12 sps:$4 sm:$0xff]   ;;  %v1016_v58 = vsel %vm498_vm0, %v16531_v51, 0  ;;  %s18960_s24 = scalar_lea.vmem %s24578_s20, 128 }
  0x24   : > { %16420 = vmatprep.subr.msk.bf16.mxu1 %vm498_vm0, %v16486_v9  ;;  %684 = vmatpush1.bf16.xpose.msra.mxu0 %v16498_v10  ;;  %v16538_v59 = vld [vmem:[%s19129_s25 + $0xb0] ss:$12 sps:$4 sm:$0xff]   ;;  %v16561_v63 = vld [vmem:[%s19129_s25 + $0x10c] ss:$12 sps:$4 sm:$0xff]   ;;  %v16547_v0 = vld [vmem:[%s19129_s25 + $0xc8] ss:$12 sps:$4 sm:$0xff]   ;;  %p18961_p11 = scmp.ne.s32.totalorder %s24578_s20, %s18960_s24 }
  0x25   : > { %851 = vmatprep.subr.bf16.mxu0 %v16505_v11  ;;  %v16551_v61 = vld [vmem:[%s19129_s25 + $0xf0] ss:$12 sps:$4 sm:$0xff]   ;;  %v1019_v1 = vsel %vm498_vm0, %v16538_v59, 0  ;;  %v16557_v2 = vld [vmem:[%s24619_s1 + $0xd8] ss:$12 sps:$4 sm:$0xff]   ;;  %v1186_v9 = vsel %vm498_vm0, %v16547_v0, 0 }
  0x26   : > { %v16559_v3 = vld [vmem:[%s19129_s25 + $0x108] ss:$12 sps:$4 sm:$0xff]   ;;  %v16569_v5 = vld [vmem:[%s19129_s25 + $0x124] ss:$12 sps:$4 sm:$0xff]   ;;  %v16554_v8 = vld [vmem:[%s19129_s25 + $0xe0] ss:$12 sps:$4 sm:$0xff]   ;;  %p18962_p12 = pnand %p18961_p11, %p19109_p5 }
  0x27   : > { %v16566_v4 = vld [vmem:[%s24619_s1 + $0xf4] ss:$12 sps:$4 sm:$0xff]   ;;  %v16546_v6 = vld [vmem:[%s24619_s1 + $0xb0] ss:$12 sps:$4 sm:$0xff]   ;;  %s19025_s9 = smov [#allocation2]  }
  0x28   : > { %v16558_v7 = vld [vmem:[%s24619_s1 + $0xc8] ss:$12 sps:$4 sm:$0xff]   ;;  %v16564_v10 = vld [vmem:[%s24619_s1 + $0xf0] ss:$12 sps:$4 sm:$0xff]   ;;  %v16567_v11 = vld [vmem:[%s19129_s25 + $0x120] ss:$12 sps:$4 sm:$0xff]   ;;  %p18963_p13 = pneg %p18962_p12 }
  0x29   : > { %s18964_s26 = sshll.u32 %s19025_s9, 4  ;;  %s18965_s26 = int_to_ptr.vmem [resolvable:$false] %s18964_s26 }
  0x2a   : > { %544 = vmatmul.mubr.bf16.vlgmr.msra.gmra.mrb[0].mxu1 %v16483_v12  ;;  %v16571_v12 = vld [vmem:[%s24619_s1 + $0x10c] ss:$12 sps:$4 sm:$0xff]   ;;  %s18966_s10 = scalar_lea.vmem %s18965_s26, 256  ;;  %p18967_p0 = scmp.lt.s32.totalorder %s24578_s20, %s18965_s26 }
  0x2b   : > { %16137 = vmatpush3.bf16.xpose.msra.mxu1 %v506_v14  ;;  %551 = vmatprep.mubr.bf16.mxu1 %v16487_v13  ;;  %v16577_v13 = vld [vmem:[%s19129_s25 + $0x13c] ss:$12 sps:$4 sm:$0xff]   ;;  %v16563_v14 = vld [vmem:[%s19129_s25 + $0xf8] ss:$12 sps:$4 sm:$0xff]   ;;  %p18968_p1 = scmp.lt.s32.totalorder %s18966_s10, %s18960_s24 }
  0x2c   : > { %16421 = vmatprep.subr.msk.bf16.mxu1 %vm498_vm0, %v16492_v15  ;;  %714 = vmatmul.mubr.bf16.vlgmr.msra.gmra.mrb[0].mxu0 %v16500_v16  ;;  %v1189_v15 = vsel %vm498_vm0, %v16554_v8, 0  ;;  %v16573_v16 = vld [vmem:[%s24619_s1 + $0x108] ss:$12 sps:$4 sm:$0xff]  }
  0x2d   : > { %852 = vmatpush1.bf16.xpose.msra.mxu0 %v16503_v18  ;;  %721 = vmatprep.mubr.bf16.mxu0 %v16507_v17  ;;  %v16575_v17 = vld [vmem:[%s19129_s25 + $0x138] ss:$12 sps:$4 sm:$0xff]   ;;  %p18969_p2 = por %p18968_p1, %p18967_p0 }
  0x2e   : > { %853 = vmatprep.subr.bf16.mxu0 %v16513_v19  ;;  %v16582_v18 = vld [vmem:[%s24619_s1 + $0x124] ss:$12 sps:$4 sm:$0xff]   ;;  %v16585_v19 = vld [vmem:[%s19129_s25 + $0x154] ss:$12 sps:$4 sm:$0xff]  }
  0x2f   : > { %p18970_p3 = pnand %p18969_p2, %p18963_p13 }
  0x32   : > { %552 = vmatmul.mubr.bf16.gmra.mrb[4].mxu1 %v16491_v20  ;;  %v16562_v20 = vld [vmem:[%s24619_s1 + $0xe0] ss:$12 sps:$4 sm:$0xff]  }
  0x33   : > { %16139 = vmatpush3.bf16.xpose.msra.mxu1 %v509_v22  ;;  %16140 = vmatprep.mubr.msk.bf16.mxu1 %vm498_vm0, %v16494_v21  ;;  %v16574_v21 = vld [vmem:[%s24619_s1 + $0xf8] ss:$12 sps:$4 sm:$0xff]   ;;  %v16570_v22 = vld [vmem:[%s19129_s25 + $0x110] ss:$12 sps:$4 sm:$0xff]  }
  0x34   : > { %16422 = vmatprep.subr.msk.bf16.mxu1 %vm498_vm0, %v16499_v23  ;;  %722 = vmatmul.mubr.bf16.gmra.mrb[4].mxu0 %v16509_v24  ;;  %v1356_v23 = vsel %vm498_vm0, %v16563_v14, 0  ;;  %v16580_v24 = vld [vmem:[%s24619_s1 + $0x120] ss:$12 sps:$4 sm:$0xff]  }
  0x35   : > { %854 = vmatpush1.bf16.xpose.msra.mxu0 %v16511_v25  ;;  %883 = vmatprep.mubr.bf16.mxu0 %v16518_v26  ;;  %v16583_v25 = vld [vmem:[%s19129_s25 + $0x150] ss:$12 sps:$4 sm:$0xff]  }
  0x36   : > { %1021 = vmatprep.subr.bf16.mxu0 %v16521_v27  ;;  %v16587_v26 = vld [vmem:[%s24619_s1 + $0x13c] ss:$12 sps:$4 sm:$0xff]   ;;  %v16593_v27 = vld [vmem:[%s19129_s25 + $0x16c] ss:$12 sps:$4 sm:$0xff]  }
  0x3a   : > { %16141 = vmatmul.mubr.msk.bf16.vlgmr.msra.gmra.mrb[8].mxu1 %vm498_vm0, %v16497_v28  ;;  %v16579_v28 = vld [vmem:[%s19129_s25 + $0x128] ss:$12 sps:$4 sm:$0xff]  }
  0x3b   : > { %16145 = vmatpush3.bf16.xpose.msra.mxu1 %v676_v29  ;;  %16148 = vmatprep.mubr.msk.bf16.mxu1 %vm498_vm0, %v16510_v30  ;;  %v1359_v29 = vsel %vm498_vm0, %v16570_v22, 0  ;;  %v16589_v30 = vld [vmem:[%s24619_s1 + $0x138] ss:$12 sps:$4 sm:$0xff]  }
  0x3c   : > { %16423 = vmatprep.subr.msk.bf16.mxu1 %vm498_vm0, %v16506_v31  ;;  %884 = vmatmul.mubr.bf16.vlgmr.msra.gmra.mrb[8].mxu0 %v16516_v32  ;;  %v16591_v31 = vld [vmem:[%s19129_s25 + $0x168] ss:$12 sps:$4 sm:$0xff]  }
  0x3d   : > { %1022 = vmatpush1.bf16.xpose.msra.mxu0 %v16519_v33  ;;  %891 = vmatprep.mubr.bf16.mxu0 %v16523_v34  ;;  %v16598_v32 = vld [vmem:[%s24619_s1 + $0x154] ss:$12 sps:$4 sm:$0xff]   ;;  %v16578_v33 = vld [vmem:[%s24619_s1 + $0x110] ss:$12 sps:$4 sm:$0xff]  }
  0x3e   : > { %1023 = vmatprep.subr.bf16.mxu0 %v16529_v35  ;;  %v16590_v34 = vld [vmem:[%s24619_s1 + $0x128] ss:$12 sps:$4 sm:$0xff]   ;;  %v16586_v35 = vld [vmem:[%s19129_s25 + $0x140] ss:$12 sps:$4 sm:$0xff]  }
  0x43   : > { %16147 = vmatpush3.bf16.xpose.msra.mxu1 %v679_v36  ;;  %v1526_v36 = vsel %vm498_vm0, %v16579_v28, 0 }
  0x44   : > { %16424 = vmatprep.subr.msk.bf16.mxu1 %vm498_vm0, %v16515_v37  ;;  %892 = vmatmul.mubr.bf16.gmra.mrb[12].mxu0 %v16525_v38  ;;  %v16596_v37 = vld [vmem:[%s24619_s1 + $0x150] ss:$12 sps:$4 sm:$0xff]   ;;  %v16600_v38 = vld [vmem:[%s24619_s1 + $0x16c] ss:$12 sps:$4 sm:$0xff]  }
  0x45   : > { %1024 = vmatpush1.bf16.xpose.msra.mxu0 %v16527_v39  ;;  %1053 = vmatprep.mubr.bf16.mxu0 %v16534_v40  ;;  %v1529_v39 = vsel %vm498_vm0, %v16586_v35, 0  ;;  %v16595_v40 = vld [vmem:[%s19129_s25 + $0x158] ss:$12 sps:$4 sm:$0xff]  }
  0x46   : > { %1191 = vmatprep.subr.bf16.mxu0 %v16537_v41  ;;  %v16602_v41 = vld [vmem:[%s24619_s1 + $0x168] ss:$12 sps:$4 sm:$0xff]  }
  0x4a   : > { %16149 = vmatmul.mubr.msk.bf16.vlgmr.msra.gmra.mrb[12].mxu1 %vm498_vm0, %v16514_v42  ;;  %v16594_v42 = vld [vmem:[%s24619_s1 + $0x140] ss:$12 sps:$4 sm:$0xff]  }
  0x4b   : > { %16153 = vmatpush3.bf16.xpose.msra.mxu1 %v846_v44  ;;  %16156 = vmatprep.mubr.msk.bf16.mxu1 %vm498_vm0, %v16526_v43  ;;  %v16603_v43 = vld [vmem:[%s24619_s1 + $0x158] ss:$12 sps:$4 sm:$0xff]   ;;  %v16599_v44 = vld [vmem:[%s19129_s25 + $0x170] ss:$12 sps:$4 sm:$0xff]   ;;  %s24576_s25 = scalar_lea.hbm %s24626_s8, %s16017_s18 }
  0x4c   : > { %16425 = vmatprep.subr.msk.bf16.mxu1 %vm498_vm0, %v16522_v45  ;;  %1054 = vmatmul.mubr.bf16.vlgmr.msra.gmra.mrb[16].mxu0 %v16532_v46  ;;  %v1696_v45 = vsel %vm498_vm0, %v16595_v40, 0  ;;  %v16605_v46 = vld [vmem:[%s24620_s2] sm:$0xff]  }
  0x4d   : > { %1192 = vmatpush1.bf16.xpose.msra.mxu0 %v16535_v47  ;;  %1061 = vmatprep.mubr.bf16.mxu0 %v16539_v48  ;;  %v1699_v47 = vsel %vm498_vm0, %v16599_v44, 0  ;;  %v16604_v48 = vld [vmem:[%s24619_s1 + $0x170] ss:$12 sps:$4 sm:$0xff]  }
  0x4e   : > { %1193 = vmatprep.subr.bf16.mxu0 %v16545_v49  ;;  %v16606_v49 = vld [vmem:[%s24620_s2 + $0x8] sm:$0xff]  }
  0x53   : > { %16155 = vmatpush3.bf16.xpose.msra.mxu1 %v849_v50 }
  0x54   : > { %16426 = vmatprep.subr.msk.bf16.mxu1 %vm498_vm0, %v16531_v51  ;;  %1062 = vmatmul.mubr.bf16.gmra.mrb[20].mxu0 %v16541_v52 }
  0x55   : > { %1194 = vmatpush1.bf16.xpose.msra.mxu0 %v16543_v53  ;;  %1223 = vmatprep.mubr.bf16.mxu0 %v16550_v54 }
  0x56   : > { %1361 = vmatprep.subr.bf16.mxu0 %v16553_v55 }
  0x5a   : > { %16157 = vmatmul.mubr.msk.bf16.vlgmr.msra.gmra.mrb[16].mxu1 %vm498_vm0, %v16530_v56 }
  0x5b   : > { %16161 = vmatpush3.bf16.xpose.msra.mxu1 %v1016_v58  ;;  %16164 = vmatprep.mubr.msk.bf16.mxu1 %vm498_vm0, %v16542_v57 }
  0x5c   : > { %16427 = vmatprep.subr.msk.bf16.mxu1 %vm498_vm0, %v16538_v59  ;;  %1224 = vmatmul.mubr.bf16.vlgmr.msra.gmra.mrb[24].mxu0 %v16548_v60 }
  0x5d   : > { %1362 = vmatpush1.bf16.xpose.msra.mxu0 %v16551_v61  ;;  %1231 = vmatprep.mubr.bf16.mxu0 %v16555_v62 }
  0x5e   : > { %1363 = vmatprep.subr.bf16.mxu0 %v16561_v63 }
  0x63   : > { %16163 = vmatpush3.bf16.xpose.msra.mxu1 %v1019_v1 }
  0x64   : > { %16428 = vmatprep.subr.msk.bf16.mxu1 %vm498_vm0, %v16547_v0  ;;  %1232 = vmatmul.mubr.bf16.gmra.mrb[28].mxu0 %v16557_v2 }
  0x65   : > { %1364 = vmatpush1.bf16.xpose.msra.mxu0 %v16559_v3  ;;  %1393 = vmatprep.mubr.bf16.mxu0 %v16566_v4 }
  0x66   : > { %1531 = vmatprep.subr.bf16.mxu0 %v16569_v5 }
  0x6a   : > { %16165 = vmatmul.mubr.msk.bf16.vlgmr.msra.gmra.mrb[20].mxu1 %vm498_vm0, %v16546_v6 }
  0x6b   : > { %16169 = vmatpush3.bf16.xpose.msra.mxu1 %v1186_v9  ;;  %16172 = vmatprep.mubr.msk.bf16.mxu1 %vm498_vm0, %v16558_v7 }
  0x6c   : > { %16429 = vmatprep.subr.msk.bf16.mxu1 %vm498_vm0, %v16554_v8  ;;  %1394 = vmatmul.mubr.bf16.vlgmr.msra.gmra.mrb[32].mxu0 %v16564_v10 }
  0x6d   : > { %1532 = vmatpush1.bf16.xpose.msra.mxu0 %v16567_v11  ;;  %1401 = vmatprep.mubr.bf16.mxu0 %v16571_v12 }
  0x6e   : > { %1533 = vmatprep.subr.bf16.mxu0 %v16577_v13 }
  0x73   : > { %16171 = vmatpush3.bf16.xpose.msra.mxu1 %v1189_v15 }
  0x74   : > { %16430 = vmatprep.subr.msk.bf16.mxu1 %vm498_vm0, %v16563_v14  ;;  %1402 = vmatmul.mubr.bf16.gmra.mrb[36].mxu0 %v16573_v16 }
  0x75   : > { %1534 = vmatpush1.bf16.xpose.msra.mxu0 %v16575_v17  ;;  %1563 = vmatprep.mubr.bf16.mxu0 %v16582_v18 }
  0x76   : > { %1701 = vmatprep.subr.bf16.mxu0 %v16585_v19 }
  0x7a   : > { %16173 = vmatmul.mubr.msk.bf16.vlgmr.msra.gmra.mrb[24].mxu1 %vm498_vm0, %v16562_v20 }
  0x7b   : > { %16177 = vmatpush3.bf16.xpose.msra.mxu1 %v1356_v23  ;;  %16180 = vmatprep.mubr.msk.bf16.mxu1 %vm498_vm0, %v16574_v21 }
  0x7c   : > { %16431 = vmatprep.subr.msk.bf16.mxu1 %vm498_vm0, %v16570_v22  ;;  %1564 = vmatmul.mubr.bf16.vlgmr.msra.gmra.mrb[40].mxu0 %v16580_v24 }
  0x7d   : > { %1702 = vmatpush1.bf16.xpose.msra.mxu0 %v16583_v25  ;;  %1571 = vmatprep.mubr.bf16.mxu0 %v16587_v26 }
  0x7e   : > { %1703 = vmatprep.subr.bf16.mxu0 %v16593_v27 }
  0x83   : > { %16179 = vmatpush3.bf16.xpose.msra.mxu1 %v1359_v29 }
  0x84   : > { %16432 = vmatprep.subr.msk.bf16.mxu1 %vm498_vm0, %v16579_v28  ;;  %1572 = vmatmul.mubr.bf16.gmra.mrb[44].mxu0 %v16589_v30 }
  0x85   : > { %1704 = vmatpush1.bf16.xpose.msra.mxu0 %v16591_v31  ;;  %1733 = vmatprep.mubr.bf16.mxu0 %v16598_v32 }
  0x8a   : > { %16181 = vmatmul.mubr.msk.bf16.vlgmr.msra.gmra.mrb[28].mxu1 %vm498_vm0, %v16578_v33 }
  0x8b   : > { %16185 = vmatpush3.bf16.xpose.msra.mxu1 %v1526_v36  ;;  %16188 = vmatprep.mubr.msk.bf16.mxu1 %vm498_vm0, %v16590_v34 }
  0x8c   : > { %16433 = vmatprep.subr.msk.bf16.mxu1 %vm498_vm0, %v16586_v35  ;;  %1734 = vmatmul.mubr.bf16.vlgmr.msra.gmra.mrb[48].mxu0 %v16596_v37 }
  0x8d   : > { %1741 = vmatprep.mubr.bf16.mxu0 %v16600_v38 }
  0x93   : > { %16187 = vmatpush3.bf16.xpose.msra.mxu1 %v1529_v39 }
  0x94   : > { %16434 = vmatprep.subr.msk.bf16.mxu1 %vm498_vm0, %v16595_v40  ;;  %1742 = vmatmul.mubr.bf16.gmra.mrb[52].mxu0 %v16602_v41 }
  0x9a   : > { %16189 = vmatmul.mubr.msk.bf16.vlgmr.msra.gmra.mrb[32].mxu1 %vm498_vm0, %v16594_v42 }
  0x9b   : > { %16193 = vmatpush3.bf16.xpose.msra.mxu1 %v1696_v45  ;;  %16196 = vmatprep.mubr.msk.bf16.mxu1 %vm498_vm0, %v16603_v43 }
  0x9c   : > { %16435 = vmatprep.subr.msk.bf16.mxu1 %vm498_vm0, %v16599_v44 }
  0xa3   : > { %16195 = vmatpush3.bf16.xpose.msra.mxu1 %v1699_v47 }
  0xa4   : > { %16200 = vmatprep.subr.bf16.mxu1 %v16605_v46 }
  0xaa   : > { %16197 = vmatmul.mubr.msk.bf16.vlgmr.msra.gmra.mrb[36].mxu1 %vm498_vm0, %v16604_v48 }
  0xab   : > { %16201 = vmatpush3.bf16.msra.mxu1 %v16605_v46 }
  0xac   : > { %16202 = vmatprep.subr.bf16.mxu1 %v16606_v49 }
  0xaf   : > { %16203 = vmatpush3.bf16.msra.mxu1 %v16606_v49 }
  0xfd   : > { %v545_v50 = vpop.f32.mrb[0].mxu1 }
  0xfe   : > { %v547_v51 = vpop.f32.mrb[1].mxu1 }
  0xff   : > { %v548_v52 = vpop.f32.mrb[2].mxu1  ;;  %v715_v54 = vpop.f32.mrb[0].mxu0 }
 0x100   : > { %v550_v53 = vpop.f32.mrb[3].mxu1  ;;  %v717_v55 = vpop.f32.mrb[1].mxu0 }
 0x101   : > { %v718_v56 = vpop.f32.mrb[2].mxu0 }
 0x102   : > { %v720_v58 = vpop.f32.mrb[3].mxu0 }
 0x105   : > { %v553_v57 = vpop.f32.mrb[4].mxu1 }
 0x106   : > { %v555_v59 = vpop.f32.mrb[5].mxu1 }
 0x107   : > { %v556_v60 = vpop.f32.mrb[6].mxu1  ;;  %v723_v62 = vpop.f32.mrb[4].mxu0 }
 0x108   : > { %v558_v61 = vpop.f32.mrb[7].mxu1  ;;  %v725_v63 = vpop.f32.mrb[5].mxu0 }
 0x109   : > { %v726_v0 = vpop.f32.mrb[6].mxu0 }
 0x10a   : > { %v728_v2 = vpop.f32.mrb[7].mxu0 }
 0x10d   : > { %v16142_v1 = vpop.f32.mrb[8].mxu1 }
 0x10e   : > { %v603_v3 = vadd.f32 %v16142_v1, %v553_v57  ;;  %v594_v4 = vpop.f32.mrb[9].mxu1 }
 0x10f   : > { %v595_v5 = vadd.f32 %v594_v4, %v545_v50  ;;  %v16143_v6 = vpop.f32.mrb[10].mxu1  ;;  %v885_v11 = vpop.f32.mrb[8].mxu0 }
 0x110   : > { %v606_v7 = vadd.f32 %v16143_v6, %v556_v60  ;;  %v597_v8 = vpop.f32.mrb[11].mxu1  ;;  %v887_v13 = vpop.f32.mrb[9].mxu0 }
 0x111   : > { %v598_v9 = vadd.f32 %v597_v8, %v548_v52  ;;  %v888_v14 = vpop.f32.mrb[10].mxu0 }
 0x112   : > { %v1800_v10 = vpack.c.bf16 %v606_v7, %v603_v3  ;;  %v890_v15 = vpop.f32.mrb[11].mxu0 }
 0x113   : > { %v1799_v12 = vpack.c.bf16 %v598_v9, %v595_v5 }
 0x115   : > { %16204 = vmatprep.mubr.msk.bf16.mxu1 %vm1838_vm1, %v1799_v12 }
 0x116   : > { %16205 = vmatmul.mubr.msk.bf16.vlgmr.msra.gmra.mrb[40].mxu1 %vm1838_vm1, %v1800_v10 }
 0x117   : > { %v893_v16 = vpop.f32.mrb[12].mxu0 }
 0x118   : > { %v895_v17 = vpop.f32.mrb[13].mxu0 }
 0x119   : > { %v896_v18 = vpop.f32.mrb[14].mxu0 }
 0x11a   : > { %v898_v20 = vpop.f32.mrb[15].mxu0 }
 0x11d   : > { %v16150_v19 = vpop.f32.mrb[12].mxu1 }
 0x11e   : > { %v773_v21 = vadd.f32 %v16150_v19, %v723_v62  ;;  %v764_v22 = vpop.f32.mrb[13].mxu1 }
 0x11f   : > { %v765_v23 = vadd.f32 %v764_v22, %v715_v54  ;;  %v16151_v24 = vpop.f32.mrb[14].mxu1  ;;  %v1055_v29 = vpop.f32.mrb[16].mxu0 }
 0x120   : > { %v776_v25 = vadd.f32 %v16151_v24, %v726_v0  ;;  %v767_v26 = vpop.f32.mrb[15].mxu1  ;;  %v1057_v31 = vpop.f32.mrb[17].mxu0 }
 0x121   : > { %v768_v27 = vadd.f32 %v767_v26, %v718_v56  ;;  %v1058_v32 = vpop.f32.mrb[18].mxu0 }
 0x122   : > { %v1802_v28 = vpack.c.bf16 %v776_v25, %v773_v21  ;;  %v1060_v33 = vpop.f32.mrb[19].mxu0 }
 0x123   : > { %v1801_v30 = vpack.c.bf16 %v768_v27, %v765_v23 }
 0x125   : > { %16208 = vmatprep.mubr.msk.bf16.mxu1 %vm1838_vm1, %v1801_v30 }
 0x126   : > { %16209 = vmatmul.mubr.msk.bf16.gmra.mrb[44].mxu1 %vm1838_vm1, %v1802_v28 }
 0x127   : > { %v1063_v34 = vpop.f32.mrb[20].mxu0 }
 0x128   : > { %v1065_v35 = vpop.f32.mrb[21].mxu0 }
 0x129   : > { %v1066_v36 = vpop.f32.mrb[22].mxu0 }
 0x12a   : > { %v1068_v38 = vpop.f32.mrb[23].mxu0 }
 0x12d   : > { %v16158_v37 = vpop.f32.mrb[16].mxu1 }
 0x12e   : > { %v943_v39 = vadd.f32 %v16158_v37, %v893_v16  ;;  %v934_v40 = vpop.f32.mrb[17].mxu1 }
 0x12f   : > { %v935_v41 = vadd.f32 %v934_v40, %v885_v11  ;;  %v16159_v42 = vpop.f32.mrb[18].mxu1  ;;  %v1225_v47 = vpop.f32.mrb[24].mxu0 }
 0x130   : > { %v946_v43 = vadd.f32 %v16159_v42, %v896_v18  ;;  %v937_v44 = vpop.f32.mrb[19].mxu1  ;;  %v1227_v49 = vpop.f32.mrb[25].mxu0 }
 0x131   : > { %v938_v45 = vadd.f32 %v937_v44, %v888_v14  ;;  %v1228_v50 = vpop.f32.mrb[26].mxu0 }
 0x132   : > { %v1804_v46 = vpack.c.bf16 %v946_v43, %v943_v39  ;;  %v1230_v51 = vpop.f32.mrb[27].mxu0 }
 0x133   : > { %v1803_v48 = vpack.c.bf16 %v938_v45, %v935_v41 }
 0x135   : > { %16212 = vmatprep.mubr.msk.bf16.mxu1 %vm1838_vm1, %v1803_v48 }
 0x136   : > { %16213 = vmatmul.mubr.msk.bf16.gmra.mrb[48].mxu1 %vm1838_vm1, %v1804_v46 }
 0x137   : > { %v1233_v52 = vpop.f32.mrb[28].mxu0 }
 0x138   : > { %v1235_v53 = vpop.f32.mrb[29].mxu0 }
 0x139   : > { %v1236_v54 = vpop.f32.mrb[30].mxu0 }
 0x13a   : > { %v1238_v56 = vpop.f32.mrb[31].mxu0 }
 0x13d   : > { %v16166_v55 = vpop.f32.mrb[20].mxu1 }
 0x13e   : > { %v1113_v57 = vadd.f32 %v16166_v55, %v1063_v34  ;;  %v1104_v58 = vpop.f32.mrb[21].mxu1 }
 0x13f   : > { %v1105_v59 = vadd.f32 %v1104_v58, %v1055_v29  ;;  %v16167_v60 = vpop.f32.mrb[22].mxu1  ;;  %v1395_v1 = vpop.f32.mrb[32].mxu0 }
 0x140   : > { %v1116_v61 = vadd.f32 %v16167_v60, %v1066_v36  ;;  %v1107_v62 = vpop.f32.mrb[23].mxu1  ;;  %v1397_v3 = vpop.f32.mrb[33].mxu0 }
 0x141   : > { %v1108_v63 = vadd.f32 %v1107_v62, %v1058_v32  ;;  %v1398_v4 = vpop.f32.mrb[34].mxu0  ;;  %v16607_v3 = vld [vmem:[%s24622_s4] ss:$24 sps:$4 sm:$0xff]  }
 0x142   : > { %v1806_v0 = vpack.c.bf16 %v1116_v61, %v1113_v57  ;;  %v1400_v5 = vpop.f32.mrb[35].mxu0 }
 0x143   : > { %v1805_v2 = vpack.c.bf16 %v1108_v63, %v1105_v59  ;;  %v16615_v5 = vld [vmem:[%s24622_s4 + $0x1504] ss:$24 sps:$4 sm:$0xff]  }
 0x144   : > { %11999 = vmatprep.subr.bf16.mxu0 %v16615_v5 }
 0x145   : > { %16216 = vmatprep.mubr.msk.bf16.mxu1 %vm1838_vm1, %v1805_v2  ;;  %v16609_v2 = vld [vmem:[%s24622_s4 + $0x4] ss:$24 sps:$4 sm:$0xff]  }
 0x146   : > { %16217 = vmatmul.mubr.msk.bf16.gmra.mrb[52].mxu1 %vm1838_vm1, %v1806_v0  ;;  %11712 = vmatprep.subr.bf16.mxu1 %v16609_v2  ;;  %v16705_v2 = vld [vmem:[%s24622_s4 + $0x17d4] ss:$24 sps:$4 sm:$0xff]  }
 0x147   : > { %v1403_v6 = vpop.f32.mrb[36].mxu0  ;;  %11713 = vmatpush1.bf16.msra.mxu1 %v16607_v3 }
 0x148   : > { %v1405_v7 = vpop.f32.mrb[37].mxu0 }
 0x149   : > { %v1406_v8 = vpop.f32.mrb[38].mxu0  ;;  %v16613_v7 = vld [vmem:[%s24622_s4 + $0x1500] ss:$24 sps:$4 sm:$0xff]  }
 0x14a   : > { %v1408_v10 = vpop.f32.mrb[39].mxu0  ;;  %12000 = vmatpush1.bf16.msra.mxu0 %v16613_v7  ;;  %v16711_v7 = vld [vmem:[%s24622_s4 + $0x1804] ss:$24 sps:$4 sm:$0xff]  }
 0x14b   : > { %v16619_v10 = vld [vmem:[%s24622_s4 + $0x1530] ss:$24 sps:$4 sm:$0xff]  }
 0x14d   : > { %v16174_v9 = vpop.f32.mrb[24].mxu1 }
 0x14e   : > { %v1283_v11 = vadd.f32 %v16174_v9, %v1233_v52  ;;  %v1274_v12 = vpop.f32.mrb[25].mxu1  ;;  %v16618_v9 = vld [vmem:[%s24622_s4 + $0x64] ss:$24 sps:$4 sm:$0xff]  }
 0x14f   : > { %v1275_v13 = vadd.f32 %v1274_v12, %v1225_v47  ;;  %v16175_v14 = vpop.f32.mrb[26].mxu1  ;;  %v1565_v19 = vpop.f32.mrb[40].mxu0  ;;  %v16622_v12 = vld [vmem:[%s24622_s4 + $0x90] ss:$24 sps:$4 sm:$0xff]  }
 0x150   : > { %v1286_v15 = vadd.f32 %v16175_v14, %v1236_v54  ;;  %v1277_v16 = vpop.f32.mrb[27].mxu1  ;;  %v1567_v21 = vpop.f32.mrb[41].mxu0  ;;  %v16625_v14 = vld [vmem:[%s24622_s4 + $0x1560] ss:$24 sps:$4 sm:$0xff]  }
 0x151   : > { %v1278_v17 = vadd.f32 %v1277_v16, %v1228_v50  ;;  %v1568_v22 = vpop.f32.mrb[42].mxu0  ;;  %v16630_v16 = vld [vmem:[%s24622_s4 + $0xc4] ss:$24 sps:$4 sm:$0xff]  }
 0x152   : > { %v1808_v18 = vpack.c.bf16 %v1286_v15, %v1283_v11  ;;  %v1570_v23 = vpop.f32.mrb[43].mxu0  ;;  %v16621_v11 = vld [vmem:[%s24622_s4 + $0x1534] ss:$24 sps:$4 sm:$0xff]   ;;  %v16627_v15 = vld [vmem:[%s24622_s4 + $0x1564] ss:$24 sps:$4 sm:$0xff]  }
 0x153   : > { %v1807_v20 = vpack.c.bf16 %v1278_v17, %v1275_v13  ;;  %v16624_v13 = vld [vmem:[%s24622_s4 + $0x94] ss:$24 sps:$4 sm:$0xff]   ;;  %12001 = vmatprep.subr.bf16.mxu0 %v16621_v11  ;;  %v16639_v21 = vld [vmem:[%s24622_s4 + $0x15c4] ss:$24 sps:$4 sm:$0xff]   ;;  %v16637_v23 = vld [vmem:[%s24622_s4 + $0x15c0] ss:$24 sps:$4 sm:$0xff]  }
 0x154   : > { %12002 = vmatpush1.bf16.msra.mxu0 %v16619_v10  ;;  %v16633_v17 = vld [vmem:[%s24622_s4 + $0x1594] ss:$24 sps:$4 sm:$0xff]  }
 0x155   : > { %16220 = vmatprep.mubr.msk.bf16.mxu1 %vm1838_vm1, %v1807_v20  ;;  %12003 = vmatprep.subr.bf16.mxu0 %v16627_v15  ;;  %v16636_v20 = vld [vmem:[%s24622_s4 + $0xf4] ss:$24 sps:$4 sm:$0xff]  }
 0x156   : > { %16221 = vmatmul.mubr.msk.bf16.gmra.mrb[56].mxu1 %vm1838_vm1, %v1808_v18  ;;  %v16628_v18 = vld [vmem:[%s24622_s4 + $0xc0] ss:$24 sps:$4 sm:$0xff]  }
 0x157   : > { %v1573_v24 = vpop.f32.mrb[44].mxu0 }
 0x158   : > { %v1575_v25 = vpop.f32.mrb[45].mxu0  ;;  %12004 = vmatpush1.bf16.msra.mxu0 %v16625_v14 }
 0x159   : > { %v1576_v26 = vpop.f32.mrb[46].mxu0  ;;  %12005 = vmatprep.subr.bf16.mxu0 %v16633_v17  ;;  %v16645_v25 = vld [vmem:[%s24622_s4 + $0x15f4] ss:$24 sps:$4 sm:$0xff]  }
 0x15a   : > { %v1578_v28 = vpop.f32.mrb[47].mxu0 }
 0x15b   : > { %v16646_v28 = vld [vmem:[%s24622_s4 + $0x150] ss:$24 sps:$4 sm:$0xff]  }
 0x15d   : > { %v16182_v27 = vpop.f32.mrb[28].mxu1 }
 0x15e   : > { %v1453_v29 = vadd.f32 %v16182_v27, %v1403_v6  ;;  %v1444_v30 = vpop.f32.mrb[29].mxu1  ;;  %v16610_v6 = vld [vmem:[%s24622_s4 + $0x30] ss:$24 sps:$4 sm:$0xff]  }
 0x15f   : > { %v1445_v31 = vadd.f32 %v1444_v30, %v1395_v1  ;;  %v16183_v32 = vpop.f32.mrb[30].mxu1  ;;  %v1735_v37 = vpop.f32.mrb[48].mxu0  ;;  %v16643_v27 = vld [vmem:[%s24622_s4 + $0x15f0] ss:$24 sps:$4 sm:$0xff]   ;;  %v16649_v30 = vld [vmem:[%s24622_s4 + $0x1620] ss:$24 sps:$4 sm:$0xff]  }
 0x160   : > { %v1456_v33 = vadd.f32 %v16183_v32, %v1406_v8  ;;  %v1447_v34 = vpop.f32.mrb[31].mxu1  ;;  %v1737_v39 = vpop.f32.mrb[49].mxu0  ;;  %v16616_v8 = vld [vmem:[%s24622_s4 + $0x60] ss:$24 sps:$4 sm:$0xff]   ;;  %v16654_v32 = vld [vmem:[%s24622_s4 + $0x184] ss:$24 sps:$4 sm:$0xff]  }
 0x161   : > { %v1448_v35 = vadd.f32 %v1447_v34, %v1398_v4  ;;  %v1738_v40 = vpop.f32.mrb[50].mxu0  ;;  %v16612_v4 = vld [vmem:[%s24622_s4 + $0x34] ss:$24 sps:$4 sm:$0xff]   ;;  %v16652_v34 = vld [vmem:[%s24622_s4 + $0x180] ss:$24 sps:$4 sm:$0xff]  }
 0x162   : > { %v1810_v36 = vpack.c.bf16 %v1456_v33, %v1453_v29  ;;  %v1740_v41 = vpop.f32.mrb[51].mxu0  ;;  %11714 = vmatprep.subr.bf16.mxu1 %v16612_v4  ;;  %v16648_v29 = vld [vmem:[%s24622_s4 + $0x154] ss:$24 sps:$4 sm:$0xff]   ;;  %v16661_v39 = vld [vmem:[%s24622_s4 + $0x1680] ss:$24 sps:$4 sm:$0xff]  }
 0x163   : > { %v1809_v38 = vpack.c.bf16 %v1448_v35, %v1445_v31  ;;  %11715 = vmatpush1.bf16.msra.mxu1 %v16610_v6  ;;  %v16651_v31 = vld [vmem:[%s24622_s4 + $0x1624] ss:$24 sps:$4 sm:$0xff]   ;;  %v16657_v33 = vld [vmem:[%s24622_s4 + $0x1654] ss:$24 sps:$4 sm:$0xff]   ;;  %v16655_v35 = vld [vmem:[%s24622_s4 + $0x1650] ss:$24 sps:$4 sm:$0xff]  }
 0x164   : > { %11716 = vmatprep.subr.bf16.mxu1 %v16618_v9  ;;  %v16666_v41 = vld [vmem:[%s24622_s4 + $0x1e4] ss:$24 sps:$4 sm:$0xff]   ;;  %v16703_v4 = vld [vmem:[%s24622_s4 + $0x17d0] ss:$24 sps:$4 sm:$0xff]  }
 0x165   : > { %16224 = vmatprep.mubr.msk.bf16.mxu1 %vm1838_vm1, %v1809_v38  ;;  %v16658_v38 = vld [vmem:[%s24622_s4 + $0x1b0] ss:$24 sps:$4 sm:$0xff]  }
 0x166   : > { %16225 = vmatmul.mubr.msk.bf16.gmra.mrb[60].mxu1 %vm1838_vm1, %v1810_v36  ;;  %v16660_v36 = vld [vmem:[%s24622_s4 + $0x1b4] ss:$24 sps:$4 sm:$0xff]  }
 0x167   : > { %v1743_v42 = vpop.f32.mrb[52].mxu0  ;;  %11717 = vmatpush1.bf16.msra.mxu1 %v16616_v8  ;;  %v19588_v8 = vld [vmem:[%s24621_s3] ss:$0 sm:$0xff] }
 0x168   : > { %v1745_v43 = vpop.f32.mrb[53].mxu0  ;;  %11718 = vmatprep.subr.bf16.mxu1 %v16624_v13 }
 0x169   : > { %v1746_v44 = vpop.f32.mrb[54].mxu0  ;;  %v16669_v43 = vld [vmem:[%s24622_s4 + $0x16b4] ss:$24 sps:$4 sm:$0xff]  }
 0x16a   : > { %v1748_v46 = vpop.f32.mrb[55].mxu0 }
 0x16b   : > { %11719 = vmatpush1.bf16.msra.mxu1 %v16622_v12  ;;  %v16673_v46 = vld [vmem:[%s24622_s4 + $0x16e0] ss:$24 sps:$4 sm:$0xff]  }
 0x16c   : > { %11720 = vmatprep.subr.bf16.mxu1 %v16630_v16 }
 0x16d   : > { %v16190_v45 = vpop.f32.mrb[32].mxu1 }
 0x16e   : > { %v1623_v47 = vadd.f32 %v16190_v45, %v1573_v24  ;;  %v1614_v48 = vpop.f32.mrb[33].mxu1  ;;  %v16642_v24 = vld [vmem:[%s24622_s4 + $0x124] ss:$24 sps:$4 sm:$0xff]   ;;  %v16672_v45 = vld [vmem:[%s24622_s4 + $0x214] ss:$24 sps:$4 sm:$0xff]  }
 0x16f   : > { %v1615_v49 = vadd.f32 %v1614_v48, %v1565_v19  ;;  %v16191_v50 = vpop.f32.mrb[34].mxu1  ;;  %v16631_v19 = vld [vmem:[%s24622_s4 + $0x1590] ss:$24 sps:$4 sm:$0xff]   ;;  %11721 = vmatpush1.bf16.msra.mxu1 %v16628_v18  ;;  %v16678_v48 = vld [vmem:[%s24622_s4 + $0x244] ss:$24 sps:$4 sm:$0xff]  }
 0x170   : > { %v1626_v51 = vadd.f32 %v16191_v50, %v1576_v26  ;;  %v1617_v52 = vpop.f32.mrb[35].mxu1  ;;  %12006 = vmatpush1.bf16.msra.mxu0 %v16631_v19  ;;  %11722 = vmatprep.subr.bf16.mxu1 %v16636_v20  ;;  %v16640_v26 = vld [vmem:[%s24622_s4 + $0x120] ss:$24 sps:$4 sm:$0xff]  }
 0x171   : > { %v1618_v53 = vadd.f32 %v1617_v52, %v1568_v22  ;;  %v16634_v22 = vld [vmem:[%s24622_s4 + $0xf0] ss:$24 sps:$4 sm:$0xff]   ;;  %12007 = vmatprep.subr.bf16.mxu0 %v16639_v21  ;;  %v16676_v50 = vld [vmem:[%s24622_s4 + $0x240] ss:$24 sps:$4 sm:$0xff]   ;;  %v16684_v52 = vld [vmem:[%s24622_s4 + $0x274] ss:$24 sps:$4 sm:$0xff]  }
 0x172   : > { %v1812_v54 = vpack.c.bf16 %v1626_v51, %v1623_v47  ;;  %v16675_v47 = vld [vmem:[%s24622_s4 + $0x16e4] ss:$24 sps:$4 sm:$0xff]   ;;  %v16679_v51 = vld [vmem:[%s24622_s4 + $0x1710] ss:$24 sps:$4 sm:$0xff]  }
 0x173   : > { %v1811_v55 = vpack.c.bf16 %v1618_v53, %v1615_v49  ;;  %11723 = vmatpush1.bf16.msra.mxu1 %v16634_v22  ;;  %v16681_v49 = vld [vmem:[%s24622_s4 + $0x1714] ss:$24 sps:$4 sm:$0xff]   ;;  %v16687_v53 = vld [vmem:[%s24622_s4 + $0x1744] ss:$24 sps:$4 sm:$0xff]  }
 0x174   : > { %12008 = vmatpush1.bf16.msra.mxu0 %v16637_v23  ;;  %11724 = vmatprep.subr.bf16.mxu1 %v16642_v24 }
 0x175   : > { %16228 = vmatprep.mubr.msk.bf16.mxu1 %vm1838_vm1, %v1811_v55  ;;  %12009 = vmatprep.subr.bf16.mxu0 %v16645_v25  ;;  %v16685_v55 = vld [vmem:[%s24622_s4 + $0x1740] ss:$24 sps:$4 sm:$0xff]  }
 0x176   : > { %16229 = vmatmul.mubr.msk.bf16.gmra.mrb[64].mxu1 %vm1838_vm1, %v1812_v54  ;;  %v16682_v54 = vld [vmem:[%s24622_s4 + $0x270] ss:$24 sps:$4 sm:$0xff]  }
 0x177   : > { %11725 = vmatpush1.bf16.msra.mxu1 %v16640_v26 }
 0x178   : > { %12010 = vmatpush1.bf16.msra.mxu0 %v16643_v27  ;;  %11726 = vmatprep.subr.bf16.mxu1 %v16648_v29 }
 0x179   : > { %12011 = vmatprep.subr.bf16.mxu0 %v16651_v31 }
 0x17b   : > { %11727 = vmatpush1.bf16.msra.mxu1 %v16646_v28 }
 0x17c   : > { %12012 = vmatpush1.bf16.msra.mxu0 %v16649_v30  ;;  %11728 = vmatprep.subr.bf16.mxu1 %v16654_v32 }
 0x17d   : > { %v16198_v56 = vpop.f32.mrb[36].mxu1  ;;  %12013 = vmatprep.subr.bf16.mxu0 %v16657_v33 }
 0x17e   : > { %v1793_v57 = vadd.f32 %v16198_v56, %v1743_v42  ;;  %v1784_v58 = vpop.f32.mrb[37].mxu1  ;;  %v16667_v42 = vld [vmem:[%s24622_s4 + $0x16b0] ss:$24 sps:$4 sm:$0xff]   ;;  %v16690_v56 = vld [vmem:[%s24622_s4 + $0x2a4] ss:$24 sps:$4 sm:$0xff]  }
 0x17f   : > { %v1785_v59 = vadd.f32 %v1784_v58, %v1735_v37  ;;  %v16199_v60 = vpop.f32.mrb[38].mxu1  ;;  %11729 = vmatpush1.bf16.msra.mxu1 %v16652_v34  ;;  %v16663_v37 = vld [vmem:[%s24622_s4 + $0x1684] ss:$24 sps:$4 sm:$0xff]   ;;  %v16688_v58 = vld [vmem:[%s24622_s4 + $0x2a0] ss:$24 sps:$4 sm:$0xff]  }
 0x180   : > { %v1796_v61 = vadd.f32 %v16199_v60, %v1746_v44  ;;  %v1787_v62 = vpop.f32.mrb[39].mxu1  ;;  %12014 = vmatpush1.bf16.msra.mxu0 %v16655_v35  ;;  %11730 = vmatprep.subr.bf16.mxu1 %v16660_v36  ;;  %v16670_v44 = vld [vmem:[%s24622_s4 + $0x210] ss:$24 sps:$4 sm:$0xff]   ;;  %v16696_v60 = vld [vmem:[%s24622_s4 + $0x2d4] ss:$24 sps:$4 sm:$0xff]  }
 0x181   : > { %v1788_v63 = vadd.f32 %v1787_v62, %v1738_v40  ;;  %12015 = vmatprep.subr.bf16.mxu0 %v16663_v37  ;;  %v16664_v40 = vld [vmem:[%s24622_s4 + $0x1e0] ss:$24 sps:$4 sm:$0xff]   ;;  %v16694_v62 = vld [vmem:[%s24622_s4 + $0x2d0] ss:$24 sps:$4 sm:$0xff]  }
 0x182   : > { %v1814_v0 = vpack.c.bf16 %v1796_v61, %v1793_v57  ;;  %v16693_v57 = vld [vmem:[%s24622_s4 + $0x1774] ss:$24 sps:$4 sm:$0xff]   ;;  %v16699_v61 = vld [vmem:[%s24622_s4 + $0x17a4] ss:$24 sps:$4 sm:$0xff]  }
 0x183   : > { %v1813_v1 = vpack.c.bf16 %v1788_v63, %v1785_v59  ;;  %11731 = vmatpush1.bf16.msra.mxu1 %v16658_v38  ;;  %v16691_v59 = vld [vmem:[%s24622_s4 + $0x1770] ss:$24 sps:$4 sm:$0xff]   ;;  %v16697_v63 = vld [vmem:[%s24622_s4 + $0x17a0] ss:$24 sps:$4 sm:$0xff]  }
 0x184   : > { %12016 = vmatpush1.bf16.msra.mxu0 %v16661_v39  ;;  %11732 = vmatprep.subr.bf16.mxu1 %v16666_v41 }
 0x185   : > { %16232 = vmatprep.mubr.msk.bf16.mxu1 %vm1838_vm1, %v1813_v1  ;;  %12017 = vmatprep.subr.bf16.mxu0 %v16669_v43  ;;  %v16702_v1 = vld [vmem:[%s24622_s4 + $0x304] ss:$24 sps:$4 sm:$0xff]  }
 0x186   : > { %16233 = vmatmul.mubr.msk.bf16.gmra.mrb[68].mxu1 %vm1838_vm1, %v1814_v0 }
 0x187   : > { %11733 = vmatpush1.bf16.msra.mxu1 %v16664_v40 }
 0x188   : > { %12018 = vmatpush1.bf16.msra.mxu0 %v16667_v42  ;;  %11734 = vmatprep.subr.bf16.mxu1 %v16672_v45 }
 0x189   : > { %12019 = vmatprep.subr.bf16.mxu0 %v16675_v47 }
 0x18b   : > { %11735 = vmatpush1.bf16.msra.mxu1 %v16670_v44 }
 0x18c   : > { %12020 = vmatpush1.bf16.msra.mxu0 %v16673_v46  ;;  %11736 = vmatprep.subr.bf16.mxu1 %v16678_v48 }
 0x18d   : > { %12021 = vmatprep.subr.bf16.mxu0 %v16681_v49 }
 0x18f   : > { %11737 = vmatpush1.bf16.msra.mxu1 %v16676_v50 }
 0x190   : > { %12022 = vmatpush1.bf16.msra.mxu0 %v16679_v51  ;;  %11738 = vmatprep.subr.bf16.mxu1 %v16684_v52 }
 0x191   : > { %12023 = vmatprep.subr.bf16.mxu0 %v16687_v53 }
 0x193   : > { %11739 = vmatpush1.bf16.msra.mxu1 %v16682_v54 }
 0x194   : > { %12024 = vmatpush1.bf16.msra.mxu0 %v16685_v55  ;;  %11740 = vmatprep.subr.bf16.mxu1 %v16690_v56 }
 0x195   : > { %12025 = vmatprep.subr.bf16.mxu0 %v16693_v57 }
 0x197   : > { %11741 = vmatpush1.bf16.msra.mxu1 %v16688_v58 }
 0x198   : > { %12026 = vmatpush1.bf16.msra.mxu0 %v16691_v59  ;;  %11742 = vmatprep.subr.bf16.mxu1 %v16696_v60 }
 0x199   : > { %12027 = vmatprep.subr.bf16.mxu0 %v16699_v61 }
 0x19b   : > { %11743 = vmatpush1.bf16.msra.mxu1 %v16694_v62 }
 0x19c   : > { %12028 = vmatpush1.bf16.msra.mxu0 %v16697_v63  ;;  %11753 = vmatprep.subr.bf16.mxu1 %v16702_v1 }
 0x19d   : > { %12029 = vmatprep.subr.bf16.mxu0 %v16705_v2 }
 0x1a0   : > { %12030 = vmatpush1.bf16.msra.mxu0 %v16703_v4 }
 0x1a1   : > { %12040 = vmatprep.subr.bf16.mxu0 %v16711_v7 }
 0x1e9   : > { %v16206_v0 = vpop.f32.mrb[40].mxu1 }
 0x1ea   : > { %v1921_v3 = vpop.f32.mrb[41].mxu1  ;;  %v1930_v9 = vadd.f32 %v16206_v0, %v19588_v8 }
 0x1eb   : > { %v16207_v5 = vpop.f32.mrb[42].mxu1  ;;  %v1922_v10 = vadd.f32 %v19588_v8, %v1921_v3 }
 0x1ec   : > { %v1924_v6 = vpop.f32.mrb[43].mxu1  ;;  %v1933_v12 = vadd.f32 %v16207_v5, %v19588_v8  ;;  %v2050_v18 = vmax.f32 %v1930_v9, 0.0 }
 0x1ed   : > { %v1925_v15 = vadd.f32 %v19588_v8, %v1924_v6  ;;  %v2048_v22 = vmax.f32 %v1922_v10, 0.0 }
 0x1ee   : > { %v2051_v25 = vmax.f32 %v1933_v12, 0.0 }
 0x1ef   : > { %v2049_v28 = vmax.f32 %v1925_v15, 0.0 }
 0x1f9   : > { %v16210_v11 = vpop.f32.mrb[44].mxu1 }
 0x1fa   : > { %v1946_v13 = vadd.f32 %v16210_v11, %v19588_v8  ;;  %v1937_v14 = vpop.f32.mrb[45].mxu1 }
 0x1fb   : > { %v1938_v16 = vadd.f32 %v19588_v8, %v1937_v14  ;;  %v16211_v17 = vpop.f32.mrb[46].mxu1 }
 0x1fc   : > { %v2054_v19 = vmax.f32 %v1946_v13, 0.0  ;;  %v1949_v20 = vadd.f32 %v16211_v17, %v19588_v8  ;;  %v1940_v21 = vpop.f32.mrb[47].mxu1 }
 0x1fd   : > { %v2052_v23 = vmax.f32 %v1938_v16, 0.0  ;;  %v1941_v24 = vadd.f32 %v19588_v8, %v1940_v21 }
 0x1fe   : > { %v19598_v26 = vpack.i.bf16 %v2054_v19, %v2050_v18  ;;  %v2055_v27 = vmax.f32 %v1949_v20, 0.0 }
 0x1ff   : > { %v19600_v29 = vpack.i.bf16 %v2052_v23, %v2048_v22  ;;  %v2053_v30 = vmax.f32 %v1941_v24, 0.0 }
 0x200   : > { %v19602_v31 = vpack.i.bf16 %v2055_v27, %v2051_v25 }
 0x201   : > { %v19604_v32 = vpack.i.bf16 %v2053_v30, %v2049_v28 }
 0x209   : > { %v16214_v33 = vpop.f32.mrb[48].mxu1 }
 0x20a   : > { %v1953_v34 = vpop.f32.mrb[49].mxu1  ;;  %v1962_v37 = vadd.f32 %v16214_v33, %v19588_v8 }
 0x20b   : > { %v16215_v35 = vpop.f32.mrb[50].mxu1  ;;  %v1954_v38 = vadd.f32 %v19588_v8, %v1953_v34 }
 0x20c   : > { %v1956_v36 = vpop.f32.mrb[51].mxu1  ;;  %v1965_v40 = vadd.f32 %v16215_v35, %v19588_v8  ;;  %v2058_v46 = vmax.f32 %v1962_v37, 0.0 }
 0x20d   : > { %v1957_v43 = vadd.f32 %v19588_v8, %v1956_v36  ;;  %v2056_v50 = vmax.f32 %v1954_v38, 0.0 }
 0x20e   : > { %v2059_v53 = vmax.f32 %v1965_v40, 0.0 }
 0x20f   : > { %v2057_v56 = vmax.f32 %v1957_v43, 0.0 }
 0x219   : > { %v16218_v39 = vpop.f32.mrb[52].mxu1 }
 0x21a   : > { %v1978_v41 = vadd.f32 %v16218_v39, %v19588_v8  ;;  %v1969_v42 = vpop.f32.mrb[53].mxu1 }
 0x21b   : > { %v1970_v44 = vadd.f32 %v19588_v8, %v1969_v42  ;;  %v16219_v45 = vpop.f32.mrb[54].mxu1  ;;  %v19024_v42 = vmov 1966171168  }
 0x21c   : > { %v2062_v47 = vmax.f32 %v1978_v41, 0.0  ;;  %v1981_v48 = vadd.f32 %v16219_v45, %v19588_v8  ;;  %v1972_v49 = vpop.f32.mrb[55].mxu1  ;;  %v3634_v41 = vlaneseq  ;;  %v3733_v43 = vunpack.c.l.s4 %v19024_v42  ;;  %v16708_v42 = vld [vmem:[%s24622_s4 + $0x334] ss:$24 sps:$4 sm:$0xff]  }
 0x21d   : > { %v2060_v51 = vmax.f32 %v1970_v44, 0.0  ;;  %v1973_v52 = vadd.f32 %v19588_v8, %v1972_v49 }
 0x21e   : > { %v19614_v54 = vpack.i.bf16 %v2062_v47, %v2058_v46  ;;  %v2063_v55 = vmax.f32 %v1981_v48, 0.0  ;;  %v19650_v44 = vshrl.u32 %v3634_v41, 7  ;;  %v3734_v45 = vunpack.c.0.s8 %v3733_v43 }
 0x21f   : > { %v19616_v57 = vpack.i.bf16 %v2060_v51, %v2056_v50  ;;  %v2061_v58 = vmax.f32 %v1973_v52, 0.0 }
 0x220   : > { %v3864_v59 = vcombine.low %v19598_v26, %v19614_v54  ;;  %v3865_v60 = vcombine.high %v19598_v26, %v19614_v54  ;;  %v19622_v61 = vpack.i.bf16 %v2063_v55, %v2059_v53  ;;  %v19653_v46 = vsub.s32 %v3734_v45, %v19650_v44 }
 0x221   : > { %v3728_v62 = vcombine.low %v19600_v29, %v19616_v57  ;;  %v3729_v63 = vcombine.high %v19600_v29, %v19616_v57  ;;  %v19628_v0 = vpack.i.bf16 %v2061_v58, %v2057_v56 }
 0x222   : > { %v3932_v1 = vcombine.low %v19602_v31, %v19622_v61  ;;  %v3933_v2 = vcombine.high %v19602_v31, %v19622_v61  ;;  %v19662_v56 = vrot.slane %v3864_v59, %v19653_v46 }
 0x223   : > { %v3796_v3 = vcombine.low %v19604_v32, %v19628_v0  ;;  %v3797_v4 = vcombine.high %v19604_v32, %v19628_v0 }
 0x225   : > { %v19737_v43 = vrot.slane %v3796_v3, %v19653_v46  ;;  %v3813_v45 = vrot.slane %v3797_v4, %v19653_v46 }
 0x229   : > { %v16222_v5 = vpop.f32.mrb[56].mxu1 }
 0x22a   : > { %v1985_v6 = vpop.f32.mrb[57].mxu1  ;;  %v1994_v10 = vadd.f32 %v16222_v5, %v19588_v8 }
 0x22b   : > { %v16223_v7 = vpop.f32.mrb[58].mxu1  ;;  %v1986_v11 = vadd.f32 %v19588_v8, %v1985_v6 }
 0x22c   : > { %v1988_v9 = vpop.f32.mrb[59].mxu1  ;;  %v1997_v13 = vadd.f32 %v16223_v7, %v19588_v8  ;;  %v2066_v19 = vmax.f32 %v1994_v10, 0.0 }
 0x22d   : > { %v1989_v16 = vadd.f32 %v19588_v8, %v1988_v9  ;;  %v2064_v23 = vmax.f32 %v1986_v11, 0.0  ;;  %v19666_v9 = vrot.slane %v3865_v60, %v19653_v46 }
 0x22e   : > { %v2067_v26 = vmax.f32 %v1997_v13, 0.0  ;;  %v3738_v13 = vrot.slane %v3728_v62, %v19653_v46 }
 0x22f   : > { %v2065_v30 = vmax.f32 %v1989_v16, 0.0  ;;  %v19677_v16 = vrot.slane %v3729_v63, %v19653_v46 }
 0x239   : > { %v16226_v12 = vpop.f32.mrb[60].mxu1 }
 0x23a   : > { %v2010_v14 = vadd.f32 %v16226_v12, %v19588_v8  ;;  %v2001_v15 = vpop.f32.mrb[61].mxu1 }
 0x23b   : > { %v2002_v17 = vadd.f32 %v19588_v8, %v2001_v15  ;;  %v16227_v18 = vpop.f32.mrb[62].mxu1 }
 0x23c   : > { %v2070_v20 = vmax.f32 %v2010_v14, 0.0  ;;  %v2013_v21 = vadd.f32 %v16227_v18, %v19588_v8  ;;  %v2004_v22 = vpop.f32.mrb[63].mxu1 }
 0x23d   : > { %v2068_v24 = vmax.f32 %v2002_v17, 0.0  ;;  %v2005_v25 = vadd.f32 %v19588_v8, %v2004_v22 }
 0x23e   : > { %v14425_v27 = vpack.i.bf16 %v2070_v20, %v2066_v19  ;;  %v2071_v28 = vmax.f32 %v2013_v21, 0.0  ;;  %v19689_v21 = vrot.slane %v3933_v2, %v19653_v46 }
 0x23f   : > { %v14423_v33 = vpack.i.bf16 %v2068_v24, %v2064_v23  ;;  %v2069_v34 = vmax.f32 %v2005_v25, 0.0 }
 0x240   : > { %v19646_v35 = vpack.i.bf16 %v2071_v28, %v2067_v26 }
 0x241   : > { %v19648_v36 = vpack.i.bf16 %v2069_v34, %v2065_v30 }
 0x249   : > { %v16230_v37 = vpop.f32.mrb[64].mxu1 }
 0x24a   : > { %v2017_v38 = vpop.f32.mrb[65].mxu1  ;;  %v2026_v47 = vadd.f32 %v16230_v37, %v19588_v8  ;;  %v16700_v37 = vld [vmem:[%s24622_s4 + $0x300] ss:$24 sps:$4 sm:$0xff]  }
 0x24b   : > { %v16231_v39 = vpop.f32.mrb[66].mxu1  ;;  %v2018_v48 = vadd.f32 %v19588_v8, %v2017_v38 }
 0x24c   : > { %v2020_v40 = vpop.f32.mrb[67].mxu1  ;;  %v2029_v50 = vadd.f32 %v16231_v39, %v19588_v8  ;;  %v2074_v58 = vmax.f32 %v2026_v47, 0.0 }
 0x24d   : > { %v2021_v53 = vadd.f32 %v19588_v8, %v2020_v40  ;;  %v2072_v10 = vmax.f32 %v2018_v48, 0.0 }
 0x24e   : > { %v2075_v14 = vmax.f32 %v2029_v50, 0.0 }
 0x24f   : > { %v2073_v60 = vmax.f32 %v2021_v53, 0.0 }
 0x259   : > { %v16234_v49 = vpop.f32.mrb[68].mxu1 }
 0x25a   : > { %v2042_v51 = vadd.f32 %v16234_v49, %v19588_v8  ;;  %v2033_v52 = vpop.f32.mrb[69].mxu1 }
 0x25b   : > { %v2034_v54 = vadd.f32 %v19588_v8, %v2033_v52  ;;  %v16235_v55 = vpop.f32.mrb[70].mxu1 }
 0x25c   : > { %v2078_v5 = vmax.f32 %v2042_v51, 0.0  ;;  %v2045_v6 = vadd.f32 %v16235_v55, %v19588_v8  ;;  %v2036_v7 = vpop.f32.mrb[71].mxu1 }
 0x25d   : > { %v2076_v11 = vmax.f32 %v2034_v54, 0.0  ;;  %v2037_v12 = vadd.f32 %v19588_v8, %v2036_v7  ;;  %v19683_v8 = vrot.slane %v3932_v1, %v19653_v46  ;;  %v16706_v54 = vld [vmem:[%s24622_s4 + $0x330] ss:$24 sps:$4 sm:$0xff]   ;;  %v16709_v7 = vld [vmem:[%s24622_s4 + $0x1800] ss:$24 sps:$4 sm:$0xff]  }
 0x25e   : > { %v14429_v59 = vpack.i.bf16 %v2078_v5, %v2074_v58  ;;  %v2079_v15 = vmax.f32 %v2045_v6, 0.0  ;;  %v16714_v5 = vld [vmem:[%s24622_s4 + $0x364] ss:$24 sps:$4 sm:$0xff]  }
 0x25f   : > { %v14427_v17 = vpack.i.bf16 %v2076_v11, %v2072_v10  ;;  %v2077_v18 = vmax.f32 %v2037_v12, 0.0  ;;  %v16717_v11 = vld [vmem:[%s24622_s4 + $0x1834] ss:$24 sps:$4 sm:$0xff]  }
 0x260   : > { %v3866_v19 = vcombine.low %v14425_v27, %v14429_v59  ;;  %v3867_v62 = vcombine.high %v14425_v27, %v14429_v59  ;;  %v14430_v20 = vpack.i.bf16 %v2079_v15, %v2075_v14  ;;  %v16720_v14 = vld [vmem:[%s24622_s4 + $0x394] ss:$24 sps:$4 sm:$0xff]   ;;  %v16715_v59 = vld [vmem:[%s24622_s4 + $0x1830] ss:$24 sps:$4 sm:$0xff]  }
 0x261   : > { %v3730_v29 = vcombine.low %v14423_v33, %v14427_v17  ;;  %v3731_v57 = vcombine.high %v14423_v33, %v14427_v17  ;;  %v14428_v63 = vpack.i.bf16 %v2077_v18, %v2073_v60  ;;  %v16718_v15 = vld [vmem:[%s24622_s4 + $0x390] ss:$24 sps:$4 sm:$0xff]   ;;  %v16723_v60 = vld [vmem:[%s24622_s4 + $0x1864] ss:$24 sps:$4 sm:$0xff]   ;;  %v16721_v18 = vld [vmem:[%s24622_s4 + $0x1860] ss:$24 sps:$4 sm:$0xff]  }
 0x262   : > { %v19692_v22 = vrot.slane %v3866_v19, %v19653_v46  ;;  %v19695_v23 = vrot.slane %v3867_v62, %v19653_v46  ;;  %v3934_v1 = vcombine.low %v19646_v35, %v14430_v20  ;;  %v3935_v24 = vcombine.high %v19646_v35, %v14430_v20  ;;  %v16726_v17 = vld [vmem:[%s24622_s4 + $0x3c4] ss:$24 sps:$4 sm:$0xff]   ;;  %v16724_v19 = vld [vmem:[%s24622_s4 + $0x3c0] ss:$24 sps:$4 sm:$0xff]   ;;  %v16729_v62 = vld [vmem:[%s24622_s4 + $0x1894] ss:$24 sps:$4 sm:$0xff]  }
 0x263   : > { %v3752_v25 = vrot.slane %v3730_v29, %v19653_v46  ;;  %v19701_v26 = vrot.slane %v3731_v57, %v19653_v46  ;;  %v3798_v31 = vcombine.low %v19648_v36, %v14428_v63  ;;  %v3799_v61 = vcombine.high %v19648_v36, %v14428_v63  ;;  %v16732_v20 = vld [vmem:[%s24622_s4 + $0x3f4] ss:$24 sps:$4 sm:$0xff]   ;;  %v16727_v29 = vld [vmem:[%s24622_s4 + $0x1890] ss:$24 sps:$4 sm:$0xff]   ;;  %v16735_v63 = vld [vmem:[%s24622_s4 + $0x18c4] ss:$24 sps:$4 sm:$0xff]  }
 0x264   : > { %v3896_v2 = vcombine.low %v19662_v56, %v19692_v22  ;;  %v3897_v27 = vcombine.high %v19662_v56, %v19692_v22  ;;  %v3898_v28 = vcombine.low %v19666_v9, %v19695_v23  ;;  %v3899_v30 = vcombine.high %v19666_v9, %v19695_v23  ;;  %v16730_v57 = vld [vmem:[%s24622_s4 + $0x3f0] ss:$24 sps:$4 sm:$0xff]   ;;  %v17008_v9 = vld [vmem:[%s24622_s4 + $0xc94] ss:$24 sps:$4 sm:$0xff]  }
 0x265   : > { %v3760_v33 = vcombine.low %v3738_v13, %v3752_v25  ;;  %v3761_v34 = vcombine.high %v3738_v13, %v3752_v25  ;;  %v3762_v35 = vcombine.low %v19677_v16, %v19701_v26  ;;  %v3763_v36 = vcombine.high %v19677_v16, %v19701_v26  ;;  %v16712_v13 = vld [vmem:[%s24622_s4 + $0x360] ss:$24 sps:$4 sm:$0xff]   ;;  %v16811_v56 = vld [vmem:[%s24622_s4 + $0x1b30] ss:$24 sps:$4 sm:$0xff]   ;;  %v16903_v16 = vld [vmem:[%s24622_s4 + $0x1e04] ss:$24 sps:$4 sm:$0xff]  }
 0x266   : > { %v19721_v38 = vrot.slane %v3934_v1, %v19653_v46  ;;  %v19724_v39 = vrot.slane %v3935_v24, %v19653_v46  ;;  %v19727_v40 = vrot.slane %v3798_v31, %v19653_v46  ;;  %v3827_v41 = vrot.slane %v3799_v61, %v19653_v46  ;;  %v16738_v1 = vld [vmem:[%s24622_s4 + $0x424] ss:$24 sps:$4 sm:$0xff]   ;;  %v16733_v24 = vld [vmem:[%s24622_s4 + $0x18c0] ss:$24 sps:$4 sm:$0xff]   ;;  %v16741_v31 = vld [vmem:[%s24622_s4 + $0x18f4] ss:$24 sps:$4 sm:$0xff]  }
 0x267   : > { %v19744_v47 = vrot.slane %v3760_v33, %v19653_v46  ;;  %v19747_v48 = vrot.slane %v3761_v34, %v19653_v46  ;;  %v19796_v12 = vrot.slane %v3897_v27, %v19653_v46  ;;  %v16736_v25 = vld [vmem:[%s24622_s4 + $0x420] ss:$24 sps:$4 sm:$0xff]   ;;  %v16744_v61 = vld [vmem:[%s24622_s4 + $0x454] ss:$24 sps:$4 sm:$0xff]   ;;  %v16739_v27 = vld [vmem:[%s24622_s4 + $0x18f0] ss:$24 sps:$4 sm:$0xff]  }
 0x268   : > { %v3964_v49 = vcombine.low %v19683_v8, %v19721_v38  ;;  %v3965_v50 = vcombine.high %v19683_v8, %v19721_v38  ;;  %v3966_v3 = vcombine.low %v19689_v21, %v19724_v39  ;;  %v3967_v51 = vcombine.high %v19689_v21, %v19724_v39  ;;  %v16742_v33 = vld [vmem:[%s24622_s4 + $0x450] ss:$24 sps:$4 sm:$0xff]   ;;  %v16747_v34 = vld [vmem:[%s24622_s4 + $0x1924] ss:$24 sps:$4 sm:$0xff]   ;;  %v17200_v8 = vld [vmem:[%s24622_s4 + $0x1294] ss:$24 sps:$4 sm:$0xff]  }
 0x269   : > { %v3828_v32 = vcombine.low %v19737_v43, %v19727_v40  ;;  %v3829_v0 = vcombine.high %v19737_v43, %v19727_v40  ;;  %v3830_v4 = vcombine.low %v3813_v45, %v3827_v41  ;;  %v3831_v52 = vcombine.high %v3813_v45, %v3827_v41  ;;  %11744 = vmatprep.mubr.bf16.mxu1 %v19747_v48  ;;  %v16745_v41 = vld [vmem:[%s24622_s4 + $0x1920] ss:$24 sps:$4 sm:$0xff]   ;;  %v16753_v45 = vld [vmem:[%s24622_s4 + $0x1954] ss:$24 sps:$4 sm:$0xff]   ;;  %v16814_v22 = vld [vmem:[%s24622_s4 + $0x690] ss:$24 sps:$4 sm:$0xff]  }
 0x26a   : > { %11745 = vmatmul.mubr.bf16.vlgmr.msra.gmra.mrb[72].mxu1 %v19744_v47  ;;  %v19765_v53 = vcombine.high %v19747_v48, %v19747_v48  ;;  %v16898_v26 = vld [vmem:[%s24622_s4 + $0x930] ss:$24 sps:$4 sm:$0xff]   ;;  %v17095_v40 = vld [vmem:[%s24622_s4 + $0x2404] ss:$24 sps:$4 sm:$0xff]  }
 0x26b   : > { %v19771_v55 = vrot.slane %v3830_v4, %v19653_v46  ;;  %v19774_v58 = vrot.slane %v3831_v52, %v19653_v46  ;;  %11754 = vmatpush1.bf16.msra.mxu1 %v16700_v37  ;;  %v16750_v37 = vld [vmem:[%s24622_s4 + $0x484] ss:$24 sps:$4 sm:$0xff]   ;;  %v16756_v4 = vld [vmem:[%s24622_s4 + $0x4b4] ss:$24 sps:$4 sm:$0xff]   ;;  %v16751_v52 = vld [vmem:[%s24622_s4 + $0x1950] ss:$24 sps:$4 sm:$0xff]  }
 0x26c   : > { %11785 = vmatprep.mubr.bf16.mxu1 %v19765_v53  ;;  %11755 = vmatprep.subr.bf16.mxu1 %v16708_v42  ;;  %v16748_v42 = vld [vmem:[%s24622_s4 + $0x480] ss:$24 sps:$4 sm:$0xff]   ;;  %v17003_v23 = vld [vmem:[%s24622_s4 + $0x2130] ss:$24 sps:$4 sm:$0xff]   ;;  %v17392_v39 = vld [vmem:[%s24622_s4 + $0x2d64] ss:$24 sps:$4 sm:$0xff]  }
 0x26d   : > { %v19782_v6 = vcombine.high %v19774_v58, %v19774_v58  ;;  %v19789_v10 = vcombine.high %v19771_v55, %v19771_v55  ;;  %v17090_v43 = vld [vmem:[%s24622_s4 + $0xf30] ss:$24 sps:$4 sm:$0xff]  }
 0x26e   : > { %v17195_v38 = vld [vmem:[%s24622_s4 + $0x2730] ss:$24 sps:$4 sm:$0xff]  }
 0x26f   : > { %12031 = vmatprep.mubr.bf16.mxu0 %v19782_v6  ;;  %11756 = vmatpush1.bf16.msra.mxu1 %v16706_v54  ;;  %v16754_v54 = vld [vmem:[%s24622_s4 + $0x4b0] ss:$24 sps:$4 sm:$0xff]  }
 0x270   : > { %12032 = vmatmul.mubr.bf16.vlgmr.msra.gmra.mrb[56].mxu0 %v19789_v10  ;;  %11757 = vmatprep.subr.bf16.mxu1 %v16714_v5  ;;  %v16759_v5 = vld [vmem:[%s24622_s4 + $0x1984] ss:$24 sps:$4 sm:$0xff]   ;;  %v17384_v21 = vld [vmem:[%s24622_s4 + $0x2d30] ss:$24 sps:$4 sm:$0xff]  }
 0x271   : > { %12041 = vmatpush1.bf16.msra.mxu0 %v16709_v7  ;;  %12072 = vmatprep.mubr.bf16.mxu0 %v19796_v12  ;;  %v16762_v7 = vld [vmem:[%s24622_s4 + $0x4e4] ss:$24 sps:$4 sm:$0xff]  }
 0x272   : > { %12042 = vmatprep.subr.bf16.mxu0 %v16717_v11  ;;  %v16757_v11 = vld [vmem:[%s24622_s4 + $0x1980] ss:$24 sps:$4 sm:$0xff]  }
 0x273   : > { %11758 = vmatpush1.bf16.msra.mxu1 %v16712_v13  ;;  %v16760_v13 = vld [vmem:[%s24622_s4 + $0x4e0] ss:$24 sps:$4 sm:$0xff]  }
 0x274   : > { %11759 = vmatprep.subr.bf16.mxu1 %v16720_v14  ;;  %v16765_v14 = vld [vmem:[%s24622_s4 + $0x19b4] ss:$24 sps:$4 sm:$0xff]  }
 0x275   : > { %12043 = vmatpush1.bf16.msra.mxu0 %v16715_v59  ;;  %v16768_v59 = vld [vmem:[%s24622_s4 + $0x514] ss:$24 sps:$4 sm:$0xff]  }
 0x276   : > { %12044 = vmatprep.subr.bf16.mxu0 %v16723_v60  ;;  %v16766_v60 = vld [vmem:[%s24622_s4 + $0x510] ss:$24 sps:$4 sm:$0xff]  }
 0x277   : > { %11760 = vmatpush1.bf16.msra.mxu1 %v16718_v15  ;;  %v16763_v15 = vld [vmem:[%s24622_s4 + $0x19b0] ss:$24 sps:$4 sm:$0xff]  }
 0x278   : > { %11761 = vmatprep.subr.bf16.mxu1 %v16726_v17  ;;  %v16771_v17 = vld [vmem:[%s24622_s4 + $0x19e4] ss:$24 sps:$4 sm:$0xff]  }
 0x279   : > { %12045 = vmatpush1.bf16.msra.mxu0 %v16721_v18  ;;  %v16774_v18 = vld [vmem:[%s24622_s4 + $0x544] ss:$24 sps:$4 sm:$0xff]  }
 0x27a   : > { %12046 = vmatprep.subr.bf16.mxu0 %v16729_v62  ;;  %v16772_v62 = vld [vmem:[%s24622_s4 + $0x540] ss:$24 sps:$4 sm:$0xff]  }
 0x27b   : > { %11762 = vmatpush1.bf16.msra.mxu1 %v16724_v19  ;;  %v16769_v19 = vld [vmem:[%s24622_s4 + $0x19e0] ss:$24 sps:$4 sm:$0xff]  }
 0x27c   : > { %11763 = vmatprep.subr.bf16.mxu1 %v16732_v20  ;;  %v16777_v20 = vld [vmem:[%s24622_s4 + $0x1a14] ss:$24 sps:$4 sm:$0xff]  }
 0x27d   : > { %12047 = vmatpush1.bf16.msra.mxu0 %v16727_v29  ;;  %v16780_v29 = vld [vmem:[%s24622_s4 + $0x574] ss:$24 sps:$4 sm:$0xff]  }
 0x27e   : > { %12048 = vmatprep.subr.bf16.mxu0 %v16735_v63  ;;  %v16778_v63 = vld [vmem:[%s24622_s4 + $0x570] ss:$24 sps:$4 sm:$0xff]  }
 0x27f   : > { %11764 = vmatpush1.bf16.msra.mxu1 %v16730_v57  ;;  %v16775_v57 = vld [vmem:[%s24622_s4 + $0x1a10] ss:$24 sps:$4 sm:$0xff]  }
 0x280   : > { %11765 = vmatprep.subr.bf16.mxu1 %v16738_v1  ;;  %v16783_v1 = vld [vmem:[%s24622_s4 + $0x1a44] ss:$24 sps:$4 sm:$0xff]  }
 0x281   : > { %12049 = vmatpush1.bf16.msra.mxu0 %v16733_v24  ;;  %v16786_v24 = vld [vmem:[%s24622_s4 + $0x5a4] ss:$24 sps:$4 sm:$0xff]  }
 0x282   : > { %12050 = vmatprep.subr.bf16.mxu0 %v16741_v31  ;;  %v16784_v31 = vld [vmem:[%s24622_s4 + $0x5a0] ss:$24 sps:$4 sm:$0xff]  }
 0x283   : > { %11766 = vmatpush1.bf16.msra.mxu1 %v16736_v25  ;;  %v16781_v25 = vld [vmem:[%s24622_s4 + $0x1a40] ss:$24 sps:$4 sm:$0xff]  }
 0x284   : > { %11767 = vmatprep.subr.bf16.mxu1 %v16744_v61  ;;  %v16789_v61 = vld [vmem:[%s24622_s4 + $0x1a74] ss:$24 sps:$4 sm:$0xff]  }
 0x285   : > { %12051 = vmatpush1.bf16.msra.mxu0 %v16739_v27  ;;  %v16792_v27 = vld [vmem:[%s24622_s4 + $0x5d4] ss:$24 sps:$4 sm:$0xff]  }
 0x286   : > { %12052 = vmatprep.subr.bf16.mxu0 %v16747_v34  ;;  %v16790_v34 = vld [vmem:[%s24622_s4 + $0x5d0] ss:$24 sps:$4 sm:$0xff]  }
 0x287   : > { %11768 = vmatpush1.bf16.msra.mxu1 %v16742_v33  ;;  %v16787_v33 = vld [vmem:[%s24622_s4 + $0x1a70] ss:$24 sps:$4 sm:$0xff]  }
 0x288   : > { %11769 = vmatprep.subr.bf16.mxu1 %v16750_v37  ;;  %v16795_v37 = vld [vmem:[%s24622_s4 + $0x1aa4] ss:$24 sps:$4 sm:$0xff]  }
 0x289   : > { %12053 = vmatpush1.bf16.msra.mxu0 %v16745_v41  ;;  %v16798_v41 = vld [vmem:[%s24622_s4 + $0x604] ss:$24 sps:$4 sm:$0xff]  }
 0x28a   : > { %12054 = vmatprep.subr.bf16.mxu0 %v16753_v45  ;;  %v16796_v45 = vld [vmem:[%s24622_s4 + $0x600] ss:$24 sps:$4 sm:$0xff]  }
 0x28b   : > { %11770 = vmatpush1.bf16.msra.mxu1 %v16748_v42  ;;  %v16793_v42 = vld [vmem:[%s24622_s4 + $0x1aa0] ss:$24 sps:$4 sm:$0xff]  }
 0x28c   : > { %11771 = vmatprep.subr.bf16.mxu1 %v16756_v4  ;;  %v16801_v4 = vld [vmem:[%s24622_s4 + $0x1ad4] ss:$24 sps:$4 sm:$0xff]  }
 0x28d   : > { %12055 = vmatpush1.bf16.msra.mxu0 %v16751_v52  ;;  %v16804_v52 = vld [vmem:[%s24622_s4 + $0x634] ss:$24 sps:$4 sm:$0xff]  }
 0x28e   : > { %12056 = vmatprep.subr.bf16.mxu0 %v16759_v5  ;;  %v19979_v5 = vcombine.high %v19744_v47, %v19744_v47 }
 0x28f   : > { %11772 = vmatpush1.bf16.msra.mxu1 %v16754_v54  ;;  %v16799_v54 = vld [vmem:[%s24622_s4 + $0x1ad0] ss:$24 sps:$4 sm:$0xff]  }
 0x290   : > { %11773 = vmatprep.subr.bf16.mxu1 %v16762_v7  ;;  %v19985_v7 = vrot.slane %v3763_v36, %v19653_v46  ;;  %v16810_v36 = vld [vmem:[%s24622_s4 + $0x664] ss:$24 sps:$4 sm:$0xff]  }
 0x291   : > { %12057 = vmatpush1.bf16.msra.mxu0 %v16757_v11  ;;  %v16802_v11 = vld [vmem:[%s24622_s4 + $0x630] ss:$24 sps:$4 sm:$0xff]  }
 0x292   : > { %12058 = vmatprep.subr.bf16.mxu0 %v16765_v14  ;;  %v16805_v14 = vld [vmem:[%s24622_s4 + $0x1b00] ss:$24 sps:$4 sm:$0xff]  }
 0x293   : > { %11774 = vmatpush1.bf16.msra.mxu1 %v16760_v13  ;;  %v16807_v13 = vld [vmem:[%s24622_s4 + $0x1b04] ss:$24 sps:$4 sm:$0xff]  }
 0x294   : > { %11775 = vmatprep.subr.bf16.mxu1 %v16768_v59  ;;  %v16808_v59 = vld [vmem:[%s24622_s4 + $0x660] ss:$24 sps:$4 sm:$0xff]  }
 0x295   : > { %12059 = vmatpush1.bf16.msra.mxu0 %v16763_v15  ;;  %v16813_v15 = vld [vmem:[%s24622_s4 + $0x1b34] ss:$24 sps:$4 sm:$0xff]  }
 0x296   : > { %12060 = vmatprep.subr.bf16.mxu0 %v16771_v17  ;;  %v20015_v17 = vcombine.high %v19796_v12, %v19796_v12 }
 0x297   : > { %11776 = vmatpush1.bf16.msra.mxu1 %v16766_v60  ;;  %v20011_v60 = vrot.slane %v3896_v2, %v19653_v46  ;;  %v16819_v2 = vld [vmem:[%s24622_s4 + $0x1b64] ss:$24 sps:$4 sm:$0xff]  }
 0x298   : > { %11777 = vmatprep.subr.bf16.mxu1 %v16774_v18  ;;  %v16816_v18 = vld [vmem:[%s24622_s4 + $0x694] ss:$24 sps:$4 sm:$0xff]  }
 0x299   : > { %12061 = vmatpush1.bf16.msra.mxu0 %v16769_v19  ;;  %v16822_v19 = vld [vmem:[%s24622_s4 + $0x6c4] ss:$24 sps:$4 sm:$0xff]  }
 0x29a   : > { %12062 = vmatprep.subr.bf16.mxu0 %v16777_v20  ;;  %v16820_v20 = vld [vmem:[%s24622_s4 + $0x6c0] ss:$24 sps:$4 sm:$0xff]  }
 0x29b   : > { %11778 = vmatpush1.bf16.msra.mxu1 %v16772_v62  ;;  %v16817_v62 = vld [vmem:[%s24622_s4 + $0x1b60] ss:$24 sps:$4 sm:$0xff]  }
 0x29c   : > { %11779 = vmatprep.subr.bf16.mxu1 %v16780_v29  ;;  %v16825_v29 = vld [vmem:[%s24622_s4 + $0x1b94] ss:$24 sps:$4 sm:$0xff]  }
 0x29d   : > { %12063 = vmatpush1.bf16.msra.mxu0 %v16775_v57  ;;  %v16828_v57 = vld [vmem:[%s24622_s4 + $0x6f4] ss:$24 sps:$4 sm:$0xff]  }
 0x29e   : > { %12064 = vmatprep.subr.bf16.mxu0 %v16783_v1  ;;  %v16826_v1 = vld [vmem:[%s24622_s4 + $0x6f0] ss:$24 sps:$4 sm:$0xff]  }
 0x29f   : > { %11780 = vmatpush1.bf16.msra.mxu1 %v16778_v63  ;;  %v16823_v63 = vld [vmem:[%s24622_s4 + $0x1b90] ss:$24 sps:$4 sm:$0xff]  }
 0x2a0   : > { %11781 = vmatprep.subr.bf16.mxu1 %v16786_v24  ;;  %v16831_v24 = vld [vmem:[%s24622_s4 + $0x1bc4] ss:$24 sps:$4 sm:$0xff]  }
 0x2a1   : > { %12065 = vmatpush1.bf16.msra.mxu0 %v16781_v25  ;;  %v16834_v25 = vld [vmem:[%s24622_s4 + $0x724] ss:$24 sps:$4 sm:$0xff]  }
 0x2a2   : > { %12066 = vmatprep.subr.bf16.mxu0 %v16789_v61  ;;  %v16832_v61 = vld [vmem:[%s24622_s4 + $0x720] ss:$24 sps:$4 sm:$0xff]  }
 0x2a3   : > { %11782 = vmatpush1.bf16.msra.mxu1 %v16784_v31  ;;  %v16829_v31 = vld [vmem:[%s24622_s4 + $0x1bc0] ss:$24 sps:$4 sm:$0xff]  }
 0x2a4   : > { %11783 = vmatprep.subr.bf16.mxu1 %v16792_v27  ;;  %v16837_v27 = vld [vmem:[%s24622_s4 + $0x1bf4] ss:$24 sps:$4 sm:$0xff]  }
 0x2a5   : > { %12067 = vmatpush1.bf16.msra.mxu0 %v16787_v33  ;;  %v16840_v33 = vld [vmem:[%s24622_s4 + $0x754] ss:$24 sps:$4 sm:$0xff]  }
 0x2a6   : > { %12068 = vmatprep.subr.bf16.mxu0 %v16795_v37  ;;  %v16838_v37 = vld [vmem:[%s24622_s4 + $0x750] ss:$24 sps:$4 sm:$0xff]  }
 0x2a7   : > { %11784 = vmatpush1.bf16.msra.mxu1 %v16790_v34  ;;  %v16835_v34 = vld [vmem:[%s24622_s4 + $0x1bf0] ss:$24 sps:$4 sm:$0xff]  }
 0x2a8   : > { %11794 = vmatprep.subr.bf16.mxu1 %v16798_v41  ;;  %v16843_v41 = vld [vmem:[%s24622_s4 + $0x1c24] ss:$24 sps:$4 sm:$0xff]  }
 0x2a9   : > { %12069 = vmatpush1.bf16.msra.mxu0 %v16793_v42  ;;  %v16846_v42 = vld [vmem:[%s24622_s4 + $0x784] ss:$24 sps:$4 sm:$0xff]  }
 0x2aa   : > { %11786 = vmatmul.mubr.bf16.vlgmr.msra.gmra.mrb[72].mxu1 %v19979_v5  ;;  %12070 = vmatprep.subr.bf16.mxu0 %v16801_v4  ;;  %v16844_v4 = vld [vmem:[%s24622_s4 + $0x780] ss:$24 sps:$4 sm:$0xff]  }
 0x2ab   : > { %11795 = vmatpush1.bf16.msra.mxu1 %v16796_v45  ;;  %11826 = vmatprep.mubr.bf16.mxu1 %v19985_v7  ;;  %v16841_v45 = vld [vmem:[%s24622_s4 + $0x1c20] ss:$24 sps:$4 sm:$0xff]  }
 0x2ac   : > { %11796 = vmatprep.subr.bf16.mxu1 %v16804_v52  ;;  %v16849_v52 = vld [vmem:[%s24622_s4 + $0x1c54] ss:$24 sps:$4 sm:$0xff]  }
 0x2ad   : > { %12071 = vmatpush1.bf16.msra.mxu0 %v16799_v54  ;;  %v16852_v54 = vld [vmem:[%s24622_s4 + $0x7b4] ss:$24 sps:$4 sm:$0xff]  }
 0x2ae   : > { %12081 = vmatprep.subr.bf16.mxu0 %v16807_v13  ;;  %v16850_v13 = vld [vmem:[%s24622_s4 + $0x7b0] ss:$24 sps:$4 sm:$0xff]  }
 0x2af   : > { %11797 = vmatpush1.bf16.msra.mxu1 %v16802_v11  ;;  %v16847_v11 = vld [vmem:[%s24622_s4 + $0x1c50] ss:$24 sps:$4 sm:$0xff]  }
 0x2b0   : > { %12073 = vmatmul.mubr.bf16.vlgmr.msra.gmra.mrb[56].mxu0 %v20011_v60  ;;  %11798 = vmatprep.subr.bf16.mxu1 %v16810_v36  ;;  %v16858_v36 = vld [vmem:[%s24622_s4 + $0x7e4] ss:$24 sps:$4 sm:$0xff]  }
 0x2b1   : > { %12082 = vmatpush1.bf16.msra.mxu0 %v16805_v14  ;;  %12113 = vmatprep.mubr.bf16.mxu0 %v20015_v17  ;;  %v16855_v14 = vld [vmem:[%s24622_s4 + $0x1c84] ss:$24 sps:$4 sm:$0xff]  }
 0x2b2   : > { %12083 = vmatprep.subr.bf16.mxu0 %v16813_v15  ;;  %v16856_v15 = vld [vmem:[%s24622_s4 + $0x7e0] ss:$24 sps:$4 sm:$0xff]  }
 0x2b3   : > { %11799 = vmatpush1.bf16.msra.mxu1 %v16808_v59  ;;  %v16853_v59 = vld [vmem:[%s24622_s4 + $0x1c80] ss:$24 sps:$4 sm:$0xff]  }
 0x2b4   : > { %11800 = vmatprep.subr.bf16.mxu1 %v16816_v18  ;;  %v16861_v18 = vld [vmem:[%s24622_s4 + $0x1cb4] ss:$24 sps:$4 sm:$0xff]  }
 0x2b5   : > { %12084 = vmatpush1.bf16.msra.mxu0 %v16811_v56  ;;  %v16864_v56 = vld [vmem:[%s24622_s4 + $0x814] ss:$24 sps:$4 sm:$0xff]  }
 0x2b6   : > { %12085 = vmatprep.subr.bf16.mxu0 %v16819_v2  ;;  %v16862_v2 = vld [vmem:[%s24622_s4 + $0x810] ss:$24 sps:$4 sm:$0xff]  }
 0x2b7   : > { %11801 = vmatpush1.bf16.msra.mxu1 %v16814_v22  ;;  %v16859_v22 = vld [vmem:[%s24622_s4 + $0x1cb0] ss:$24 sps:$4 sm:$0xff]  }
 0x2b8   : > { %11802 = vmatprep.subr.bf16.mxu1 %v16822_v19  ;;  %v16867_v19 = vld [vmem:[%s24622_s4 + $0x1ce4] ss:$24 sps:$4 sm:$0xff]  }
 0x2b9   : > { %12086 = vmatpush1.bf16.msra.mxu0 %v16817_v62  ;;  %v16870_v62 = vld [vmem:[%s24622_s4 + $0x844] ss:$24 sps:$4 sm:$0xff]  }
 0x2ba   : > { %12087 = vmatprep.subr.bf16.mxu0 %v16825_v29  ;;  %v16868_v29 = vld [vmem:[%s24622_s4 + $0x840] ss:$24 sps:$4 sm:$0xff]  }
 0x2bb   : > { %11803 = vmatpush1.bf16.msra.mxu1 %v16820_v20  ;;  %v16865_v20 = vld [vmem:[%s24622_s4 + $0x1ce0] ss:$24 sps:$4 sm:$0xff]  }
 0x2bc   : > { %11804 = vmatprep.subr.bf16.mxu1 %v16828_v57  ;;  %v16873_v57 = vld [vmem:[%s24622_s4 + $0x1d14] ss:$24 sps:$4 sm:$0xff]  }
 0x2bd   : > { %12088 = vmatpush1.bf16.msra.mxu0 %v16823_v63  ;;  %v16876_v63 = vld [vmem:[%s24622_s4 + $0x874] ss:$24 sps:$4 sm:$0xff]  }
 0x2be   : > { %12089 = vmatprep.subr.bf16.mxu0 %v16831_v24  ;;  %v16874_v24 = vld [vmem:[%s24622_s4 + $0x870] ss:$24 sps:$4 sm:$0xff]  }
 0x2bf   : > { %11805 = vmatpush1.bf16.msra.mxu1 %v16826_v1  ;;  %v16871_v1 = vld [vmem:[%s24622_s4 + $0x1d10] ss:$24 sps:$4 sm:$0xff]  }
 0x2c0   : > { %11806 = vmatprep.subr.bf16.mxu1 %v16834_v25  ;;  %v16879_v25 = vld [vmem:[%s24622_s4 + $0x1d44] ss:$24 sps:$4 sm:$0xff]  }
 0x2c1   : > { %12090 = vmatpush1.bf16.msra.mxu0 %v16829_v31  ;;  %v16882_v31 = vld [vmem:[%s24622_s4 + $0x8a4] ss:$24 sps:$4 sm:$0xff]  }
 0x2c2   : > { %12091 = vmatprep.subr.bf16.mxu0 %v16837_v27  ;;  %v16880_v27 = vld [vmem:[%s24622_s4 + $0x8a0] ss:$24 sps:$4 sm:$0xff]  }
 0x2c3   : > { %11807 = vmatpush1.bf16.msra.mxu1 %v16832_v61  ;;  %v16877_v61 = vld [vmem:[%s24622_s4 + $0x1d40] ss:$24 sps:$4 sm:$0xff]  }
 0x2c4   : > { %11808 = vmatprep.subr.bf16.mxu1 %v16840_v33  ;;  %v16885_v33 = vld [vmem:[%s24622_s4 + $0x1d74] ss:$24 sps:$4 sm:$0xff]  }
 0x2c5   : > { %12092 = vmatpush1.bf16.msra.mxu0 %v16835_v34  ;;  %v16888_v34 = vld [vmem:[%s24622_s4 + $0x8d4] ss:$24 sps:$4 sm:$0xff]  }
 0x2c6   : > { %12093 = vmatprep.subr.bf16.mxu0 %v16843_v41  ;;  %v16886_v41 = vld [vmem:[%s24622_s4 + $0x8d0] ss:$24 sps:$4 sm:$0xff]  }
 0x2c7   : > { %11809 = vmatpush1.bf16.msra.mxu1 %v16838_v37  ;;  %v16883_v37 = vld [vmem:[%s24622_s4 + $0x1d70] ss:$24 sps:$4 sm:$0xff]  }
 0x2c8   : > { %11810 = vmatprep.subr.bf16.mxu1 %v16846_v42  ;;  %v16891_v42 = vld [vmem:[%s24622_s4 + $0x1da4] ss:$24 sps:$4 sm:$0xff]  }
 0x2c9   : > { %12094 = vmatpush1.bf16.msra.mxu0 %v16841_v45  ;;  %v16894_v45 = vld [vmem:[%s24622_s4 + $0x904] ss:$24 sps:$4 sm:$0xff]  }
 0x2ca   : > { %12095 = vmatprep.subr.bf16.mxu0 %v16849_v52  ;;  %v16897_v52 = vld [vmem:[%s24622_s4 + $0x1dd4] ss:$24 sps:$4 sm:$0xff]  }
 0x2cb   : > { %11811 = vmatpush1.bf16.msra.mxu1 %v16844_v4  ;;  %v16889_v4 = vld [vmem:[%s24622_s4 + $0x1da0] ss:$24 sps:$4 sm:$0xff]  }
 0x2cc   : > { %11812 = vmatprep.subr.bf16.mxu1 %v16852_v54  ;;  %v16892_v54 = vld [vmem:[%s24622_s4 + $0x900] ss:$24 sps:$4 sm:$0xff]  }
 0x2cd   : > { %12096 = vmatpush1.bf16.msra.mxu0 %v16847_v11  ;;  %v20191_v11 = vrot.slane %v3762_v35, %v19653_v46  ;;  %v16906_v35 = vld [vmem:[%s24622_s4 + $0x964] ss:$24 sps:$4 sm:$0xff]  }
 0x2ce   : > { %12097 = vmatprep.subr.bf16.mxu0 %v16855_v14  ;;  %v16895_v14 = vld [vmem:[%s24622_s4 + $0x1dd0] ss:$24 sps:$4 sm:$0xff]  }
 0x2cf   : > { %11813 = vmatpush1.bf16.msra.mxu1 %v16850_v13  ;;  %v16900_v13 = vld [vmem:[%s24622_s4 + $0x934] ss:$24 sps:$4 sm:$0xff]  }
 0x2d0   : > { %11814 = vmatprep.subr.bf16.mxu1 %v16858_v36  ;;  %v20201_v36 = vcombine.high %v19985_v7, %v19985_v7 }
 0x2d1   : > { %12098 = vmatpush1.bf16.msra.mxu0 %v16853_v59  ;;  %v16901_v59 = vld [vmem:[%s24622_s4 + $0x1e00] ss:$24 sps:$4 sm:$0xff]  }
 0x2d2   : > { %12099 = vmatprep.subr.bf16.mxu0 %v16861_v18  ;;  %v16909_v18 = vld [vmem:[%s24622_s4 + $0x1e34] ss:$24 sps:$4 sm:$0xff]  }
 0x2d3   : > { %11815 = vmatpush1.bf16.msra.mxu1 %v16856_v15  ;;  %v20219_v15 = vcombine.high %v20011_v60, %v20011_v60 }
 0x2d4   : > { %11816 = vmatprep.subr.bf16.mxu1 %v16864_v56  ;;  %v20228_v56 = vrot.slane %v3899_v30, %v19653_v46  ;;  %v16915_v30 = vld [vmem:[%s24622_s4 + $0x1e64] ss:$24 sps:$4 sm:$0xff]  }
 0x2d5   : > { %12100 = vmatpush1.bf16.msra.mxu0 %v16859_v22  ;;  %v16904_v22 = vld [vmem:[%s24622_s4 + $0x960] ss:$24 sps:$4 sm:$0xff]  }
 0x2d6   : > { %12101 = vmatprep.subr.bf16.mxu0 %v16867_v19  ;;  %v16907_v19 = vld [vmem:[%s24622_s4 + $0x1e30] ss:$24 sps:$4 sm:$0xff]  }
 0x2d7   : > { %11817 = vmatpush1.bf16.msra.mxu1 %v16862_v2  ;;  %v16912_v2 = vld [vmem:[%s24622_s4 + $0x994] ss:$24 sps:$4 sm:$0xff]  }
 0x2d8   : > { %11818 = vmatprep.subr.bf16.mxu1 %v16870_v62  ;;  %v16910_v62 = vld [vmem:[%s24622_s4 + $0x990] ss:$24 sps:$4 sm:$0xff]  }
 0x2d9   : > { %12102 = vmatpush1.bf16.msra.mxu0 %v16865_v20  ;;  %v16918_v20 = vld [vmem:[%s24622_s4 + $0x9c4] ss:$24 sps:$4 sm:$0xff]  }
 0x2da   : > { %12103 = vmatprep.subr.bf16.mxu0 %v16873_v57  ;;  %v16921_v57 = vld [vmem:[%s24622_s4 + $0x1e94] ss:$24 sps:$4 sm:$0xff]  }
 0x2db   : > { %11819 = vmatpush1.bf16.msra.mxu1 %v16868_v29  ;;  %v16913_v29 = vld [vmem:[%s24622_s4 + $0x1e60] ss:$24 sps:$4 sm:$0xff]  }
 0x2dc   : > { %11820 = vmatprep.subr.bf16.mxu1 %v16876_v63  ;;  %v16916_v63 = vld [vmem:[%s24622_s4 + $0x9c0] ss:$24 sps:$4 sm:$0xff]  }
 0x2dd   : > { %12104 = vmatpush1.bf16.msra.mxu0 %v16871_v1  ;;  %v16924_v1 = vld [vmem:[%s24622_s4 + $0x9f4] ss:$24 sps:$4 sm:$0xff]  }
 0x2de   : > { %12105 = vmatprep.subr.bf16.mxu0 %v16879_v25  ;;  %v16927_v25 = vld [vmem:[%s24622_s4 + $0x1ec4] ss:$24 sps:$4 sm:$0xff]  }
 0x2df   : > { %11821 = vmatpush1.bf16.msra.mxu1 %v16874_v24  ;;  %v16919_v24 = vld [vmem:[%s24622_s4 + $0x1e90] ss:$24 sps:$4 sm:$0xff]  }
 0x2e0   : > { %11822 = vmatprep.subr.bf16.mxu1 %v16882_v31  ;;  %v16922_v31 = vld [vmem:[%s24622_s4 + $0x9f0] ss:$24 sps:$4 sm:$0xff]  }
 0x2e1   : > { %12106 = vmatpush1.bf16.msra.mxu0 %v16877_v61  ;;  %v16930_v61 = vld [vmem:[%s24622_s4 + $0xa24] ss:$24 sps:$4 sm:$0xff]  }
 0x2e2   : > { %12107 = vmatprep.subr.bf16.mxu0 %v16885_v33  ;;  %v16933_v33 = vld [vmem:[%s24622_s4 + $0x1ef4] ss:$24 sps:$4 sm:$0xff]  }
 0x2e3   : > { %11823 = vmatpush1.bf16.msra.mxu1 %v16880_v27  ;;  %v16925_v27 = vld [vmem:[%s24622_s4 + $0x1ec0] ss:$24 sps:$4 sm:$0xff]  }
 0x2e4   : > { %11824 = vmatprep.subr.bf16.mxu1 %v16888_v34  ;;  %v16928_v34 = vld [vmem:[%s24622_s4 + $0xa20] ss:$24 sps:$4 sm:$0xff]  }
 0x2e5   : > { %12108 = vmatpush1.bf16.msra.mxu0 %v16883_v37  ;;  %v16936_v37 = vld [vmem:[%s24622_s4 + $0xa54] ss:$24 sps:$4 sm:$0xff]  }
 0x2e6   : > { %12109 = vmatprep.subr.bf16.mxu0 %v16891_v42  ;;  %v16939_v42 = vld [vmem:[%s24622_s4 + $0x1f24] ss:$24 sps:$4 sm:$0xff]  }
 0x2e7   : > { %11825 = vmatpush1.bf16.msra.mxu1 %v16886_v41  ;;  %v16931_v41 = vld [vmem:[%s24622_s4 + $0x1ef0] ss:$24 sps:$4 sm:$0xff]  }
 0x2e8   : > { %11835 = vmatprep.subr.bf16.mxu1 %v16894_v45  ;;  %v16934_v45 = vld [vmem:[%s24622_s4 + $0xa50] ss:$24 sps:$4 sm:$0xff]  }
 0x2e9   : > { %12110 = vmatpush1.bf16.msra.mxu0 %v16889_v4  ;;  %v16942_v4 = vld [vmem:[%s24622_s4 + $0xa84] ss:$24 sps:$4 sm:$0xff]  }
 0x2ea   : > { %11827 = vmatmul.mubr.bf16.vlgmr.msra.gmra.mrb[72].mxu1 %v20191_v11  ;;  %12111 = vmatprep.subr.bf16.mxu0 %v16897_v52  ;;  %v16937_v52 = vld [vmem:[%s24622_s4 + $0x1f20] ss:$24 sps:$4 sm:$0xff]  }
 0x2eb   : > { %11836 = vmatpush1.bf16.msra.mxu1 %v16892_v54  ;;  %11867 = vmatprep.mubr.bf16.mxu1 %v20201_v36  ;;  %v16945_v54 = vld [vmem:[%s24622_s4 + $0x1f54] ss:$24 sps:$4 sm:$0xff]  }
 0x2ec   : > { %11837 = vmatprep.subr.bf16.mxu1 %v16900_v13  ;;  %v16940_v13 = vld [vmem:[%s24622_s4 + $0xa80] ss:$24 sps:$4 sm:$0xff]  }
 0x2ed   : > { %12112 = vmatpush1.bf16.msra.mxu0 %v16895_v14  ;;  %v16948_v14 = vld [vmem:[%s24622_s4 + $0xab4] ss:$24 sps:$4 sm:$0xff]  }
 0x2ee   : > { %12122 = vmatprep.subr.bf16.mxu0 %v16903_v16  ;;  %v16943_v16 = vld [vmem:[%s24622_s4 + $0x1f50] ss:$24 sps:$4 sm:$0xff]  }
 0x2ef   : > { %11838 = vmatpush1.bf16.msra.mxu1 %v16898_v26  ;;  %v16951_v26 = vld [vmem:[%s24622_s4 + $0x1f84] ss:$24 sps:$4 sm:$0xff]  }
 0x2f0   : > { %12114 = vmatmul.mubr.bf16.vlgmr.msra.gmra.mrb[56].mxu0 %v20219_v15  ;;  %11839 = vmatprep.subr.bf16.mxu1 %v16906_v35  ;;  %v16946_v35 = vld [vmem:[%s24622_s4 + $0xab0] ss:$24 sps:$4 sm:$0xff]  }
 0x2f1   : > { %12123 = vmatpush1.bf16.msra.mxu0 %v16901_v59  ;;  %12154 = vmatprep.mubr.bf16.mxu0 %v20228_v56  ;;  %v16954_v59 = vld [vmem:[%s24622_s4 + $0xae4] ss:$24 sps:$4 sm:$0xff]  }
 0x2f2   : > { %12124 = vmatprep.subr.bf16.mxu0 %v16909_v18  ;;  %v16949_v18 = vld [vmem:[%s24622_s4 + $0x1f80] ss:$24 sps:$4 sm:$0xff]  }
 0x2f3   : > { %11840 = vmatpush1.bf16.msra.mxu1 %v16904_v22  ;;  %v16957_v22 = vld [vmem:[%s24622_s4 + $0x1fb4] ss:$24 sps:$4 sm:$0xff]  }
 0x2f4   : > { %11841 = vmatprep.subr.bf16.mxu1 %v16912_v2  ;;  %v16952_v2 = vld [vmem:[%s24622_s4 + $0xae0] ss:$24 sps:$4 sm:$0xff]  }
 0x2f5   : > { %12125 = vmatpush1.bf16.msra.mxu0 %v16907_v19  ;;  %v16960_v19 = vld [vmem:[%s24622_s4 + $0xb14] ss:$24 sps:$4 sm:$0xff]  }
 0x2f6   : > { %12126 = vmatprep.subr.bf16.mxu0 %v16915_v30  ;;  %v16955_v30 = vld [vmem:[%s24622_s4 + $0x1fb0] ss:$24 sps:$4 sm:$0xff]  }
 0x2f7   : > { %11842 = vmatpush1.bf16.msra.mxu1 %v16910_v62  ;;  %v16963_v62 = vld [vmem:[%s24622_s4 + $0x1fe4] ss:$24 sps:$4 sm:$0xff]  }
 0x2f8   : > { %11843 = vmatprep.subr.bf16.mxu1 %v16918_v20  ;;  %v16958_v20 = vld [vmem:[%s24622_s4 + $0xb10] ss:$24 sps:$4 sm:$0xff]  }
 0x2f9   : > { %12127 = vmatpush1.bf16.msra.mxu0 %v16913_v29  ;;  %v16966_v29 = vld [vmem:[%s24622_s4 + $0xb44] ss:$24 sps:$4 sm:$0xff]  }
 0x2fa   : > { %12128 = vmatprep.subr.bf16.mxu0 %v16921_v57  ;;  %v16961_v57 = vld [vmem:[%s24622_s4 + $0x1fe0] ss:$24 sps:$4 sm:$0xff]  }
 0x2fb   : > { %11844 = vmatpush1.bf16.msra.mxu1 %v16916_v63  ;;  %v16969_v63 = vld [vmem:[%s24622_s4 + $0x2014] ss:$24 sps:$4 sm:$0xff]  }
 0x2fc   : > { %11845 = vmatprep.subr.bf16.mxu1 %v16924_v1  ;;  %v16964_v1 = vld [vmem:[%s24622_s4 + $0xb40] ss:$24 sps:$4 sm:$0xff]  }
 0x2fd   : > { %12129 = vmatpush1.bf16.msra.mxu0 %v16919_v24  ;;  %v16972_v24 = vld [vmem:[%s24622_s4 + $0xb74] ss:$24 sps:$4 sm:$0xff]  }
 0x2fe   : > { %12130 = vmatprep.subr.bf16.mxu0 %v16927_v25  ;;  %v16967_v25 = vld [vmem:[%s24622_s4 + $0x2010] ss:$24 sps:$4 sm:$0xff]  }
 0x2ff   : > { %11846 = vmatpush1.bf16.msra.mxu1 %v16922_v31  ;;  %v16975_v31 = vld [vmem:[%s24622_s4 + $0x2044] ss:$24 sps:$4 sm:$0xff]  }
 0x300   : > { %11847 = vmatprep.subr.bf16.mxu1 %v16930_v61  ;;  %v16970_v61 = vld [vmem:[%s24622_s4 + $0xb70] ss:$24 sps:$4 sm:$0xff]  }
 0x301   : > { %12131 = vmatpush1.bf16.msra.mxu0 %v16925_v27  ;;  %v16978_v27 = vld [vmem:[%s24622_s4 + $0xba4] ss:$24 sps:$4 sm:$0xff]  }
 0x302   : > { %12132 = vmatprep.subr.bf16.mxu0 %v16933_v33  ;;  %v16973_v33 = vld [vmem:[%s24622_s4 + $0x2040] ss:$24 sps:$4 sm:$0xff]  }
 0x303   : > { %11848 = vmatpush1.bf16.msra.mxu1 %v16928_v34  ;;  %v16981_v34 = vld [vmem:[%s24622_s4 + $0x2074] ss:$24 sps:$4 sm:$0xff]  }
 0x304   : > { %11849 = vmatprep.subr.bf16.mxu1 %v16936_v37  ;;  %v16976_v37 = vld [vmem:[%s24622_s4 + $0xba0] ss:$24 sps:$4 sm:$0xff]  }
 0x305   : > { %12133 = vmatpush1.bf16.msra.mxu0 %v16931_v41  ;;  %v16984_v41 = vld [vmem:[%s24622_s4 + $0xbd4] ss:$24 sps:$4 sm:$0xff]  }
 0x306   : > { %12134 = vmatprep.subr.bf16.mxu0 %v16939_v42  ;;  %v16979_v42 = vld [vmem:[%s24622_s4 + $0x2070] ss:$24 sps:$4 sm:$0xff]  }
 0x307   : > { %11850 = vmatpush1.bf16.msra.mxu1 %v16934_v45  ;;  %v16987_v45 = vld [vmem:[%s24622_s4 + $0x20a4] ss:$24 sps:$4 sm:$0xff]  }
 0x308   : > { %11851 = vmatprep.subr.bf16.mxu1 %v16942_v4  ;;  %v16982_v4 = vld [vmem:[%s24622_s4 + $0xbd0] ss:$24 sps:$4 sm:$0xff]  }
 0x309   : > { %12135 = vmatpush1.bf16.msra.mxu0 %v16937_v52  ;;  %v16990_v52 = vld [vmem:[%s24622_s4 + $0xc04] ss:$24 sps:$4 sm:$0xff]  }
 0x30a   : > { %12136 = vmatprep.subr.bf16.mxu0 %v16945_v54  ;;  %v16985_v54 = vld [vmem:[%s24622_s4 + $0x20a0] ss:$24 sps:$4 sm:$0xff]  }
 0x30b   : > { %11852 = vmatpush1.bf16.msra.mxu1 %v16940_v13  ;;  %v16993_v13 = vld [vmem:[%s24622_s4 + $0x20d4] ss:$24 sps:$4 sm:$0xff]  }
 0x30c   : > { %11853 = vmatprep.subr.bf16.mxu1 %v16948_v14  ;;  %v16988_v14 = vld [vmem:[%s24622_s4 + $0xc00] ss:$24 sps:$4 sm:$0xff]  }
 0x30d   : > { %12137 = vmatpush1.bf16.msra.mxu0 %v16943_v16  ;;  %v20405_v16 = vcombine.high %v20191_v11, %v20191_v11 }
 0x30e   : > { %12138 = vmatprep.subr.bf16.mxu0 %v16951_v26  ;;  %v16996_v26 = vld [vmem:[%s24622_s4 + $0xc34] ss:$24 sps:$4 sm:$0xff]  }
 0x30f   : > { %11854 = vmatpush1.bf16.msra.mxu1 %v16946_v35  ;;  %v16991_v35 = vld [vmem:[%s24622_s4 + $0x20d0] ss:$24 sps:$4 sm:$0xff]  }
 0x310   : > { %11855 = vmatprep.subr.bf16.mxu1 %v16954_v59  ;;  %v20417_v59 = vrot.slane %v3829_v0, %v19653_v46  ;;  %v17002_v0 = vld [vmem:[%s24622_s4 + $0xc64] ss:$24 sps:$4 sm:$0xff]  }
 0x311   : > { %12139 = vmatpush1.bf16.msra.mxu0 %v16949_v18  ;;  %v16999_v18 = vld [vmem:[%s24622_s4 + $0x2104] ss:$24 sps:$4 sm:$0xff]  }
 0x312   : > { %12140 = vmatprep.subr.bf16.mxu0 %v16957_v22  ;;  %v16994_v22 = vld [vmem:[%s24622_s4 + $0xc30] ss:$24 sps:$4 sm:$0xff]  }
 0x313   : > { %11856 = vmatpush1.bf16.msra.mxu1 %v16952_v2  ;;  %v16997_v2 = vld [vmem:[%s24622_s4 + $0x2100] ss:$24 sps:$4 sm:$0xff]  }
 0x314   : > { %11857 = vmatprep.subr.bf16.mxu1 %v16960_v19  ;;  %v20437_v19 = vrot.slane %v3898_v28, %v19653_v46  ;;  %v17011_v28 = vld [vmem:[%s24622_s4 + $0x2164] ss:$24 sps:$4 sm:$0xff]  }
 0x315   : > { %12141 = vmatpush1.bf16.msra.mxu0 %v16955_v30  ;;  %v17005_v30 = vld [vmem:[%s24622_s4 + $0x2134] ss:$24 sps:$4 sm:$0xff]  }
 0x316   : > { %12142 = vmatprep.subr.bf16.mxu0 %v16963_v62  ;;  %v20444_v62 = vcombine.high %v20228_v56, %v20228_v56 }
 0x317   : > { %11858 = vmatpush1.bf16.msra.mxu1 %v16958_v20  ;;  %v17000_v20 = vld [vmem:[%s24622_s4 + $0xc60] ss:$24 sps:$4 sm:$0xff]  }
 0x318   : > { %11859 = vmatprep.subr.bf16.mxu1 %v16966_v29  ;;  %v17006_v29 = vld [vmem:[%s24622_s4 + $0xc90] ss:$24 sps:$4 sm:$0xff]  }
 0x319   : > { %12143 = vmatpush1.bf16.msra.mxu0 %v16961_v57  ;;  %v17014_v57 = vld [vmem:[%s24622_s4 + $0xcc4] ss:$24 sps:$4 sm:$0xff]  }
 0x31a   : > { %12144 = vmatprep.subr.bf16.mxu0 %v16969_v63  ;;  %v17009_v63 = vld [vmem:[%s24622_s4 + $0x2160] ss:$24 sps:$4 sm:$0xff]  }
 0x31b   : > { %11860 = vmatpush1.bf16.msra.mxu1 %v16964_v1  ;;  %v17017_v1 = vld [vmem:[%s24622_s4 + $0x2194] ss:$24 sps:$4 sm:$0xff]  }
 0x31c   : > { %11861 = vmatprep.subr.bf16.mxu1 %v16972_v24  ;;  %v17012_v24 = vld [vmem:[%s24622_s4 + $0xcc0] ss:$24 sps:$4 sm:$0xff]  }
 0x31d   : > { %12145 = vmatpush1.bf16.msra.mxu0 %v16967_v25  ;;  %v17020_v25 = vld [vmem:[%s24622_s4 + $0xcf4] ss:$24 sps:$4 sm:$0xff]  }
 0x31e   : > { %12146 = vmatprep.subr.bf16.mxu0 %v16975_v31  ;;  %v17015_v31 = vld [vmem:[%s24622_s4 + $0x2190] ss:$24 sps:$4 sm:$0xff]  }
 0x31f   : > { %11862 = vmatpush1.bf16.msra.mxu1 %v16970_v61  ;;  %v17023_v61 = vld [vmem:[%s24622_s4 + $0x21c4] ss:$24 sps:$4 sm:$0xff]  }
 0x320   : > { %11863 = vmatprep.subr.bf16.mxu1 %v16978_v27  ;;  %v17018_v27 = vld [vmem:[%s24622_s4 + $0xcf0] ss:$24 sps:$4 sm:$0xff]  }
 0x321   : > { %12147 = vmatpush1.bf16.msra.mxu0 %v16973_v33  ;;  %v17026_v33 = vld [vmem:[%s24622_s4 + $0xd24] ss:$24 sps:$4 sm:$0xff]  }
 0x322   : > { %12148 = vmatprep.subr.bf16.mxu0 %v16981_v34  ;;  %v17021_v34 = vld [vmem:[%s24622_s4 + $0x21c0] ss:$24 sps:$4 sm:$0xff]  }
 0x323   : > { %11864 = vmatpush1.bf16.msra.mxu1 %v16976_v37  ;;  %v17029_v37 = vld [vmem:[%s24622_s4 + $0x21f4] ss:$24 sps:$4 sm:$0xff]  }
 0x324   : > { %11865 = vmatprep.subr.bf16.mxu1 %v16984_v41  ;;  %v17024_v41 = vld [vmem:[%s24622_s4 + $0xd20] ss:$24 sps:$4 sm:$0xff]  }
 0x325   : > { %12149 = vmatpush1.bf16.msra.mxu0 %v16979_v42  ;;  %v17032_v42 = vld [vmem:[%s24622_s4 + $0xd54] ss:$24 sps:$4 sm:$0xff]  }
 0x326   : > { %12150 = vmatprep.subr.bf16.mxu0 %v16987_v45  ;;  %v17027_v45 = vld [vmem:[%s24622_s4 + $0x21f0] ss:$24 sps:$4 sm:$0xff]  }
 0x327   : > { %11866 = vmatpush1.bf16.msra.mxu1 %v16982_v4  ;;  %v17035_v4 = vld [vmem:[%s24622_s4 + $0x2224] ss:$24 sps:$4 sm:$0xff]  }
 0x328   : > { %11876 = vmatprep.subr.bf16.mxu1 %v16990_v52  ;;  %v17030_v52 = vld [vmem:[%s24622_s4 + $0xd50] ss:$24 sps:$4 sm:$0xff]  }
 0x329   : > { %12151 = vmatpush1.bf16.msra.mxu0 %v16985_v54  ;;  %v17038_v54 = vld [vmem:[%s24622_s4 + $0xd84] ss:$24 sps:$4 sm:$0xff]  }
 0x32a   : > { %11868 = vmatmul.mubr.bf16.vlgmr.msra.gmra.mrb[72].mxu1 %v20405_v16  ;;  %12152 = vmatprep.subr.bf16.mxu0 %v16993_v13  ;;  %v17033_v13 = vld [vmem:[%s24622_s4 + $0x2220] ss:$24 sps:$4 sm:$0xff]  }
 0x32b   : > { %11877 = vmatpush1.bf16.msra.mxu1 %v16988_v14  ;;  %11908 = vmatprep.mubr.bf16.mxu1 %v20417_v59  ;;  %v17041_v14 = vld [vmem:[%s24622_s4 + $0x2254] ss:$24 sps:$4 sm:$0xff]  }
 0x32c   : > { %11878 = vmatprep.subr.bf16.mxu1 %v16996_v26  ;;  %v17036_v26 = vld [vmem:[%s24622_s4 + $0xd80] ss:$24 sps:$4 sm:$0xff]  }
 0x32d   : > { %12153 = vmatpush1.bf16.msra.mxu0 %v16991_v35  ;;  %v17044_v35 = vld [vmem:[%s24622_s4 + $0xdb4] ss:$24 sps:$4 sm:$0xff]  }
 0x32e   : > { %12163 = vmatprep.subr.bf16.mxu0 %v16999_v18  ;;  %v17039_v18 = vld [vmem:[%s24622_s4 + $0x2250] ss:$24 sps:$4 sm:$0xff]  }
 0x32f   : > { %11879 = vmatpush1.bf16.msra.mxu1 %v16994_v22  ;;  %v17047_v22 = vld [vmem:[%s24622_s4 + $0x2284] ss:$24 sps:$4 sm:$0xff]  }
 0x330   : > { %12155 = vmatmul.mubr.bf16.vlgmr.msra.gmra.mrb[56].mxu0 %v20437_v19  ;;  %11880 = vmatprep.subr.bf16.mxu1 %v17002_v0  ;;  %v17042_v0 = vld [vmem:[%s24622_s4 + $0xdb0] ss:$24 sps:$4 sm:$0xff]  }
 0x331   : > { %12164 = vmatpush1.bf16.msra.mxu0 %v16997_v2  ;;  %12195 = vmatprep.mubr.bf16.mxu0 %v20444_v62  ;;  %v17050_v2 = vld [vmem:[%s24622_s4 + $0xde4] ss:$24 sps:$4 sm:$0xff]  }
 0x332   : > { %12165 = vmatprep.subr.bf16.mxu0 %v17005_v30  ;;  %v17045_v30 = vld [vmem:[%s24622_s4 + $0x2280] ss:$24 sps:$4 sm:$0xff]  }
 0x333   : > { %11881 = vmatpush1.bf16.msra.mxu1 %v17000_v20  ;;  %v17053_v20 = vld [vmem:[%s24622_s4 + $0x22b4] ss:$24 sps:$4 sm:$0xff]  }
 0x334   : > { %11882 = vmatprep.subr.bf16.mxu1 %v17008_v9  ;;  %v17048_v9 = vld [vmem:[%s24622_s4 + $0xde0] ss:$24 sps:$4 sm:$0xff]  }
 0x335   : > { %12166 = vmatpush1.bf16.msra.mxu0 %v17003_v23  ;;  %v17056_v23 = vld [vmem:[%s24622_s4 + $0xe14] ss:$24 sps:$4 sm:$0xff]  }
 0x336   : > { %12167 = vmatprep.subr.bf16.mxu0 %v17011_v28  ;;  %v17051_v28 = vld [vmem:[%s24622_s4 + $0x22b0] ss:$24 sps:$4 sm:$0xff]  }
 0x337   : > { %11883 = vmatpush1.bf16.msra.mxu1 %v17006_v29  ;;  %v17059_v29 = vld [vmem:[%s24622_s4 + $0x22e4] ss:$24 sps:$4 sm:$0xff]  }
 0x338   : > { %11884 = vmatprep.subr.bf16.mxu1 %v17014_v57  ;;  %v17054_v57 = vld [vmem:[%s24622_s4 + $0xe10] ss:$24 sps:$4 sm:$0xff]  }
 0x339   : > { %12168 = vmatpush1.bf16.msra.mxu0 %v17009_v63  ;;  %v17062_v63 = vld [vmem:[%s24622_s4 + $0xe44] ss:$24 sps:$4 sm:$0xff]  }
 0x33a   : > { %12169 = vmatprep.subr.bf16.mxu0 %v17017_v1  ;;  %v17057_v1 = vld [vmem:[%s24622_s4 + $0x22e0] ss:$24 sps:$4 sm:$0xff]  }
 0x33b   : > { %11885 = vmatpush1.bf16.msra.mxu1 %v17012_v24  ;;  %v17065_v24 = vld [vmem:[%s24622_s4 + $0x2314] ss:$24 sps:$4 sm:$0xff]  }
 0x33c   : > { %11886 = vmatprep.subr.bf16.mxu1 %v17020_v25  ;;  %v17060_v25 = vld [vmem:[%s24622_s4 + $0xe40] ss:$24 sps:$4 sm:$0xff]  }
 0x33d   : > { %12170 = vmatpush1.bf16.msra.mxu0 %v17015_v31  ;;  %v17068_v31 = vld [vmem:[%s24622_s4 + $0xe74] ss:$24 sps:$4 sm:$0xff]  }
 0x33e   : > { %12171 = vmatprep.subr.bf16.mxu0 %v17023_v61  ;;  %v17063_v61 = vld [vmem:[%s24622_s4 + $0x2310] ss:$24 sps:$4 sm:$0xff]  }
 0x33f   : > { %11887 = vmatpush1.bf16.msra.mxu1 %v17018_v27  ;;  %v17071_v27 = vld [vmem:[%s24622_s4 + $0x2344] ss:$24 sps:$4 sm:$0xff]  }
 0x340   : > { %11888 = vmatprep.subr.bf16.mxu1 %v17026_v33  ;;  %v17066_v33 = vld [vmem:[%s24622_s4 + $0xe70] ss:$24 sps:$4 sm:$0xff]  }
 0x341   : > { %12172 = vmatpush1.bf16.msra.mxu0 %v17021_v34  ;;  %v17074_v34 = vld [vmem:[%s24622_s4 + $0xea4] ss:$24 sps:$4 sm:$0xff]  }
 0x342   : > { %12173 = vmatprep.subr.bf16.mxu0 %v17029_v37  ;;  %v17069_v37 = vld [vmem:[%s24622_s4 + $0x2340] ss:$24 sps:$4 sm:$0xff]  }
 0x343   : > { %11889 = vmatpush1.bf16.msra.mxu1 %v17024_v41  ;;  %v17077_v41 = vld [vmem:[%s24622_s4 + $0x2374] ss:$24 sps:$4 sm:$0xff]  }
 0x344   : > { %11890 = vmatprep.subr.bf16.mxu1 %v17032_v42  ;;  %v17072_v42 = vld [vmem:[%s24622_s4 + $0xea0] ss:$24 sps:$4 sm:$0xff]  }
 0x345   : > { %12174 = vmatpush1.bf16.msra.mxu0 %v17027_v45  ;;  %v17080_v45 = vld [vmem:[%s24622_s4 + $0xed4] ss:$24 sps:$4 sm:$0xff]  }
 0x346   : > { %12175 = vmatprep.subr.bf16.mxu0 %v17035_v4  ;;  %v17075_v4 = vld [vmem:[%s24622_s4 + $0x2370] ss:$24 sps:$4 sm:$0xff]  }
 0x347   : > { %11891 = vmatpush1.bf16.msra.mxu1 %v17030_v52  ;;  %v17083_v52 = vld [vmem:[%s24622_s4 + $0x23a4] ss:$24 sps:$4 sm:$0xff]  }
 0x348   : > { %11892 = vmatprep.subr.bf16.mxu1 %v17038_v54  ;;  %v17078_v54 = vld [vmem:[%s24622_s4 + $0xed0] ss:$24 sps:$4 sm:$0xff]  }
 0x349   : > { %12176 = vmatpush1.bf16.msra.mxu0 %v17033_v13  ;;  %v17086_v13 = vld [vmem:[%s24622_s4 + $0xf04] ss:$24 sps:$4 sm:$0xff]  }
 0x34a   : > { %12177 = vmatprep.subr.bf16.mxu0 %v17041_v14  ;;  %v17081_v14 = vld [vmem:[%s24622_s4 + $0x23a0] ss:$24 sps:$4 sm:$0xff]  }
 0x34b   : > { %11893 = vmatpush1.bf16.msra.mxu1 %v17036_v26  ;;  %v17089_v26 = vld [vmem:[%s24622_s4 + $0x23d4] ss:$24 sps:$4 sm:$0xff]  }
 0x34c   : > { %11894 = vmatprep.subr.bf16.mxu1 %v17044_v35  ;;  %v17084_v35 = vld [vmem:[%s24622_s4 + $0xf00] ss:$24 sps:$4 sm:$0xff]  }
 0x34d   : > { %12178 = vmatpush1.bf16.msra.mxu0 %v17039_v18  ;;  %v20623_v18 = vrot.slane %v3828_v32, %v19653_v46  ;;  %v17098_v32 = vld [vmem:[%s24622_s4 + $0xf64] ss:$24 sps:$4 sm:$0xff]  }
 0x34e   : > { %12179 = vmatprep.subr.bf16.mxu0 %v17047_v22  ;;  %v17092_v22 = vld [vmem:[%s24622_s4 + $0xf34] ss:$24 sps:$4 sm:$0xff]  }
 0x34f   : > { %11895 = vmatpush1.bf16.msra.mxu1 %v17042_v0  ;;  %v17087_v0 = vld [vmem:[%s24622_s4 + $0x23d0] ss:$24 sps:$4 sm:$0xff]  }
 0x350   : > { %11896 = vmatprep.subr.bf16.mxu1 %v17050_v2  ;;  %v20633_v2 = vcombine.high %v20417_v59, %v20417_v59 }
 0x351   : > { %12180 = vmatpush1.bf16.msra.mxu0 %v17045_v30  ;;  %v17093_v30 = vld [vmem:[%s24622_s4 + $0x2400] ss:$24 sps:$4 sm:$0xff]  }
 0x352   : > { %12181 = vmatprep.subr.bf16.mxu0 %v17053_v20  ;;  %v20651_v20 = vcombine.high %v20437_v19, %v20437_v19 }
 0x353   : > { %11897 = vmatpush1.bf16.msra.mxu1 %v17048_v9  ;;  %v17101_v9 = vld [vmem:[%s24622_s4 + $0x2434] ss:$24 sps:$4 sm:$0xff]  }
 0x354   : > { %11898 = vmatprep.subr.bf16.mxu1 %v17056_v23  ;;  %v20660_v23 = vrot.slane %v3965_v50, %v19653_v46  ;;  %v17107_v50 = vld [vmem:[%s24622_s4 + $0x2464] ss:$24 sps:$4 sm:$0xff]  }
 0x355   : > { %12182 = vmatpush1.bf16.msra.mxu0 %v17051_v28  ;;  %v17096_v28 = vld [vmem:[%s24622_s4 + $0xf60] ss:$24 sps:$4 sm:$0xff]  }
 0x356   : > { %12183 = vmatprep.subr.bf16.mxu0 %v17059_v29  ;;  %v17104_v29 = vld [vmem:[%s24622_s4 + $0xf94] ss:$24 sps:$4 sm:$0xff]  }
 0x357   : > { %11899 = vmatpush1.bf16.msra.mxu1 %v17054_v57  ;;  %v17099_v57 = vld [vmem:[%s24622_s4 + $0x2430] ss:$24 sps:$4 sm:$0xff]  }
 0x358   : > { %11900 = vmatprep.subr.bf16.mxu1 %v17062_v63  ;;  %v17102_v63 = vld [vmem:[%s24622_s4 + $0xf90] ss:$24 sps:$4 sm:$0xff]  }
 0x359   : > { %12184 = vmatpush1.bf16.msra.mxu0 %v17057_v1  ;;  %v17110_v1 = vld [vmem:[%s24622_s4 + $0xfc4] ss:$24 sps:$4 sm:$0xff]  }
 0x35a   : > { %12185 = vmatprep.subr.bf16.mxu0 %v17065_v24  ;;  %v17105_v24 = vld [vmem:[%s24622_s4 + $0x2460] ss:$24 sps:$4 sm:$0xff]  }
 0x35b   : > { %11901 = vmatpush1.bf16.msra.mxu1 %v17060_v25  ;;  %v17113_v25 = vld [vmem:[%s24622_s4 + $0x2494] ss:$24 sps:$4 sm:$0xff]  }
 0x35c   : > { %11902 = vmatprep.subr.bf16.mxu1 %v17068_v31  ;;  %v17108_v31 = vld [vmem:[%s24622_s4 + $0xfc0] ss:$24 sps:$4 sm:$0xff]  }
 0x35d   : > { %12186 = vmatpush1.bf16.msra.mxu0 %v17063_v61  ;;  %v17116_v61 = vld [vmem:[%s24622_s4 + $0xff4] ss:$24 sps:$4 sm:$0xff]  }
 0x35e   : > { %12187 = vmatprep.subr.bf16.mxu0 %v17071_v27  ;;  %v17111_v27 = vld [vmem:[%s24622_s4 + $0x2490] ss:$24 sps:$4 sm:$0xff]  }
 0x35f   : > { %11903 = vmatpush1.bf16.msra.mxu1 %v17066_v33  ;;  %v17119_v33 = vld [vmem:[%s24622_s4 + $0x24c4] ss:$24 sps:$4 sm:$0xff]  }
 0x360   : > { %11904 = vmatprep.subr.bf16.mxu1 %v17074_v34  ;;  %v17114_v34 = vld [vmem:[%s24622_s4 + $0xff0] ss:$24 sps:$4 sm:$0xff]  }
 0x361   : > { %12188 = vmatpush1.bf16.msra.mxu0 %v17069_v37  ;;  %v17122_v37 = vld [vmem:[%s24622_s4 + $0x1024] ss:$24 sps:$4 sm:$0xff]  }
 0x362   : > { %12189 = vmatprep.subr.bf16.mxu0 %v17077_v41  ;;  %v17117_v41 = vld [vmem:[%s24622_s4 + $0x24c0] ss:$24 sps:$4 sm:$0xff]  }
 0x363   : > { %11905 = vmatpush1.bf16.msra.mxu1 %v17072_v42  ;;  %v17125_v42 = vld [vmem:[%s24622_s4 + $0x24f4] ss:$24 sps:$4 sm:$0xff]  }
 0x364   : > { %11906 = vmatprep.subr.bf16.mxu1 %v17080_v45  ;;  %v17120_v45 = vld [vmem:[%s24622_s4 + $0x1020] ss:$24 sps:$4 sm:$0xff]  }
 0x365   : > { %12190 = vmatpush1.bf16.msra.mxu0 %v17075_v4  ;;  %v17128_v4 = vld [vmem:[%s24622_s4 + $0x1054] ss:$24 sps:$4 sm:$0xff]  }
 0x366   : > { %12191 = vmatprep.subr.bf16.mxu0 %v17083_v52  ;;  %v17123_v52 = vld [vmem:[%s24622_s4 + $0x24f0] ss:$24 sps:$4 sm:$0xff]  }
 0x367   : > { %11907 = vmatpush1.bf16.msra.mxu1 %v17078_v54  ;;  %v17131_v54 = vld [vmem:[%s24622_s4 + $0x2524] ss:$24 sps:$4 sm:$0xff]  }
 0x368   : > { %11917 = vmatprep.subr.bf16.mxu1 %v17086_v13  ;;  %v17126_v13 = vld [vmem:[%s24622_s4 + $0x1050] ss:$24 sps:$4 sm:$0xff]  }
 0x369   : > { %12192 = vmatpush1.bf16.msra.mxu0 %v17081_v14  ;;  %v17134_v14 = vld [vmem:[%s24622_s4 + $0x1084] ss:$24 sps:$4 sm:$0xff]  }
 0x36a   : > { %11909 = vmatmul.mubr.bf16.vlgmr.msra.gmra.mrb[72].mxu1 %v20623_v18  ;;  %12193 = vmatprep.subr.bf16.mxu0 %v17089_v26  ;;  %v17129_v26 = vld [vmem:[%s24622_s4 + $0x2520] ss:$24 sps:$4 sm:$0xff]  }
 0x36b   : > { %11918 = vmatpush1.bf16.msra.mxu1 %v17084_v35  ;;  %11949 = vmatprep.mubr.bf16.mxu1 %v20633_v2  ;;  %v17137_v35 = vld [vmem:[%s24622_s4 + $0x2554] ss:$24 sps:$4 sm:$0xff]  }
 0x36c   : > { %11919 = vmatprep.subr.bf16.mxu1 %v17092_v22  ;;  %v17132_v22 = vld [vmem:[%s24622_s4 + $0x1080] ss:$24 sps:$4 sm:$0xff]  }
 0x36d   : > { %12194 = vmatpush1.bf16.msra.mxu0 %v17087_v0  ;;  %v17140_v0 = vld [vmem:[%s24622_s4 + $0x10b4] ss:$24 sps:$4 sm:$0xff]  }
 0x36e   : > { %12204 = vmatprep.subr.bf16.mxu0 %v17095_v40  ;;  %v17135_v40 = vld [vmem:[%s24622_s4 + $0x2550] ss:$24 sps:$4 sm:$0xff]  }
 0x36f   : > { %11920 = vmatpush1.bf16.msra.mxu1 %v17090_v43  ;;  %v17143_v43 = vld [vmem:[%s24622_s4 + $0x2584] ss:$24 sps:$4 sm:$0xff]  }
 0x370   : > { %12196 = vmatmul.mubr.bf16.vlgmr.msra.gmra.mrb[56].mxu0 %v20651_v20  ;;  %11921 = vmatprep.subr.bf16.mxu1 %v17098_v32  ;;  %v17138_v32 = vld [vmem:[%s24622_s4 + $0x10b0] ss:$24 sps:$4 sm:$0xff]  }
 0x371   : > { %12205 = vmatpush1.bf16.msra.mxu0 %v17093_v30  ;;  %12236 = vmatprep.mubr.bf16.mxu0 %v20660_v23  ;;  %v17146_v30 = vld [vmem:[%s24622_s4 + $0x10e4] ss:$24 sps:$4 sm:$0xff]  }
 0x372   : > { %12206 = vmatprep.subr.bf16.mxu0 %v17101_v9  ;;  %v17141_v9 = vld [vmem:[%s24622_s4 + $0x2580] ss:$24 sps:$4 sm:$0xff]  }
 0x373   : > { %11922 = vmatpush1.bf16.msra.mxu1 %v17096_v28  ;;  %v17149_v28 = vld [vmem:[%s24622_s4 + $0x25b4] ss:$24 sps:$4 sm:$0xff]  }
 0x374   : > { %11923 = vmatprep.subr.bf16.mxu1 %v17104_v29  ;;  %v17144_v29 = vld [vmem:[%s24622_s4 + $0x10e0] ss:$24 sps:$4 sm:$0xff]  }
 0x375   : > { %12207 = vmatpush1.bf16.msra.mxu0 %v17099_v57  ;;  %v17152_v57 = vld [vmem:[%s24622_s4 + $0x1114] ss:$24 sps:$4 sm:$0xff]  }
 0x376   : > { %12208 = vmatprep.subr.bf16.mxu0 %v17107_v50  ;;  %v17147_v50 = vld [vmem:[%s24622_s4 + $0x25b0] ss:$24 sps:$4 sm:$0xff]  }
 0x377   : > { %11924 = vmatpush1.bf16.msra.mxu1 %v17102_v63  ;;  %v17155_v63 = vld [vmem:[%s24622_s4 + $0x25e4] ss:$24 sps:$4 sm:$0xff]  }
 0x378   : > { %11925 = vmatprep.subr.bf16.mxu1 %v17110_v1  ;;  %v17150_v1 = vld [vmem:[%s24622_s4 + $0x1110] ss:$24 sps:$4 sm:$0xff]  }
 0x379   : > { %12209 = vmatpush1.bf16.msra.mxu0 %v17105_v24  ;;  %v17158_v24 = vld [vmem:[%s24622_s4 + $0x1144] ss:$24 sps:$4 sm:$0xff]  }
 0x37a   : > { %12210 = vmatprep.subr.bf16.mxu0 %v17113_v25  ;;  %v17153_v25 = vld [vmem:[%s24622_s4 + $0x25e0] ss:$24 sps:$4 sm:$0xff]  }
 0x37b   : > { %11926 = vmatpush1.bf16.msra.mxu1 %v17108_v31  ;;  %v17161_v31 = vld [vmem:[%s24622_s4 + $0x2614] ss:$24 sps:$4 sm:$0xff]  }
 0x37c   : > { %11927 = vmatprep.subr.bf16.mxu1 %v17116_v61  ;;  %v17156_v61 = vld [vmem:[%s24622_s4 + $0x1140] ss:$24 sps:$4 sm:$0xff]  }
 0x37d   : > { %12211 = vmatpush1.bf16.msra.mxu0 %v17111_v27  ;;  %v17164_v27 = vld [vmem:[%s24622_s4 + $0x1174] ss:$24 sps:$4 sm:$0xff]  }
 0x37e   : > { %12212 = vmatprep.subr.bf16.mxu0 %v17119_v33  ;;  %v17159_v33 = vld [vmem:[%s24622_s4 + $0x2610] ss:$24 sps:$4 sm:$0xff]  }
 0x37f   : > { %11928 = vmatpush1.bf16.msra.mxu1 %v17114_v34  ;;  %v17167_v34 = vld [vmem:[%s24622_s4 + $0x2644] ss:$24 sps:$4 sm:$0xff]  }
 0x380   : > { %11929 = vmatprep.subr.bf16.mxu1 %v17122_v37  ;;  %v17162_v37 = vld [vmem:[%s24622_s4 + $0x1170] ss:$24 sps:$4 sm:$0xff]  }
 0x381   : > { %12213 = vmatpush1.bf16.msra.mxu0 %v17117_v41  ;;  %v17170_v41 = vld [vmem:[%s24622_s4 + $0x11a4] ss:$24 sps:$4 sm:$0xff]  }
 0x382   : > { %12214 = vmatprep.subr.bf16.mxu0 %v17125_v42  ;;  %v17165_v42 = vld [vmem:[%s24622_s4 + $0x2640] ss:$24 sps:$4 sm:$0xff]  }
 0x383   : > { %11930 = vmatpush1.bf16.msra.mxu1 %v17120_v45  ;;  %v17173_v45 = vld [vmem:[%s24622_s4 + $0x2674] ss:$24 sps:$4 sm:$0xff]  }
 0x384   : > { %11931 = vmatprep.subr.bf16.mxu1 %v17128_v4  ;;  %v17168_v4 = vld [vmem:[%s24622_s4 + $0x11a0] ss:$24 sps:$4 sm:$0xff]  }
 0x385   : > { %12215 = vmatpush1.bf16.msra.mxu0 %v17123_v52  ;;  %v17176_v52 = vld [vmem:[%s24622_s4 + $0x11d4] ss:$24 sps:$4 sm:$0xff]  }
 0x386   : > { %12216 = vmatprep.subr.bf16.mxu0 %v17131_v54  ;;  %v17171_v54 = vld [vmem:[%s24622_s4 + $0x2670] ss:$24 sps:$4 sm:$0xff]  }
 0x387   : > { %11932 = vmatpush1.bf16.msra.mxu1 %v17126_v13  ;;  %v17179_v13 = vld [vmem:[%s24622_s4 + $0x26a4] ss:$24 sps:$4 sm:$0xff]  }
 0x388   : > { %11933 = vmatprep.subr.bf16.mxu1 %v17134_v14  ;;  %v17174_v14 = vld [vmem:[%s24622_s4 + $0x11d0] ss:$24 sps:$4 sm:$0xff]  }
 0x389   : > { %12217 = vmatpush1.bf16.msra.mxu0 %v17129_v26  ;;  %v17182_v26 = vld [vmem:[%s24622_s4 + $0x1204] ss:$24 sps:$4 sm:$0xff]  }
 0x38a   : > { %12218 = vmatprep.subr.bf16.mxu0 %v17137_v35  ;;  %v17177_v35 = vld [vmem:[%s24622_s4 + $0x26a0] ss:$24 sps:$4 sm:$0xff]  }
 0x38b   : > { %11934 = vmatpush1.bf16.msra.mxu1 %v17132_v22  ;;  %v17185_v22 = vld [vmem:[%s24622_s4 + $0x26d4] ss:$24 sps:$4 sm:$0xff]  }
 0x38c   : > { %11935 = vmatprep.subr.bf16.mxu1 %v17140_v0  ;;  %v17180_v0 = vld [vmem:[%s24622_s4 + $0x1200] ss:$24 sps:$4 sm:$0xff]  }
 0x38d   : > { %12219 = vmatpush1.bf16.msra.mxu0 %v17135_v40  ;;  %v20837_v40 = vcombine.high %v20623_v18, %v20623_v18 }
 0x38e   : > { %12220 = vmatprep.subr.bf16.mxu0 %v17143_v43  ;;  %v17188_v43 = vld [vmem:[%s24622_s4 + $0x1234] ss:$24 sps:$4 sm:$0xff]  }
 0x38f   : > { %11936 = vmatpush1.bf16.msra.mxu1 %v17138_v32  ;;  %v17183_v32 = vld [vmem:[%s24622_s4 + $0x26d0] ss:$24 sps:$4 sm:$0xff]  }
 0x390   : > { %11937 = vmatprep.subr.bf16.mxu1 %v17146_v30  ;;  %v17191_v30 = vld [vmem:[%s24622_s4 + $0x2704] ss:$24 sps:$4 sm:$0xff]  }
 0x391   : > { %12221 = vmatpush1.bf16.msra.mxu0 %v17141_v9  ;;  %v17186_v9 = vld [vmem:[%s24622_s4 + $0x1230] ss:$24 sps:$4 sm:$0xff]  }
 0x392   : > { %12222 = vmatprep.subr.bf16.mxu0 %v17149_v28  ;;  %v17194_v28 = vld [vmem:[%s24622_s4 + $0x1264] ss:$24 sps:$4 sm:$0xff]  }
 0x393   : > { %11938 = vmatpush1.bf16.msra.mxu1 %v17144_v29  ;;  %v17189_v29 = vld [vmem:[%s24622_s4 + $0x2700] ss:$24 sps:$4 sm:$0xff]  }
 0x394   : > { %11939 = vmatprep.subr.bf16.mxu1 %v17152_v57  ;;  %v20863_v57 = vrot.slane %v3964_v49, %v19653_v46  ;;  %v17203_v49 = vld [vmem:[%s24622_s4 + $0x2764] ss:$24 sps:$4 sm:$0xff]  }
 0x395   : > { %12223 = vmatpush1.bf16.msra.mxu0 %v17147_v50  ;;  %v17197_v50 = vld [vmem:[%s24622_s4 + $0x2734] ss:$24 sps:$4 sm:$0xff]  }
 0x396   : > { %12224 = vmatprep.subr.bf16.mxu0 %v17155_v63  ;;  %v20870_v63 = vcombine.high %v20660_v23, %v20660_v23 }
 0x397   : > { %11940 = vmatpush1.bf16.msra.mxu1 %v17150_v1  ;;  %v17192_v1 = vld [vmem:[%s24622_s4 + $0x1260] ss:$24 sps:$4 sm:$0xff]  }
 0x398   : > { %11941 = vmatprep.subr.bf16.mxu1 %v17158_v24  ;;  %v17198_v24 = vld [vmem:[%s24622_s4 + $0x1290] ss:$24 sps:$4 sm:$0xff]  }
 0x399   : > { %12225 = vmatpush1.bf16.msra.mxu0 %v17153_v25  ;;  %v17206_v25 = vld [vmem:[%s24622_s4 + $0x12c4] ss:$24 sps:$4 sm:$0xff]  }
 0x39a   : > { %12226 = vmatprep.subr.bf16.mxu0 %v17161_v31  ;;  %v17201_v31 = vld [vmem:[%s24622_s4 + $0x2760] ss:$24 sps:$4 sm:$0xff]  }
 0x39b   : > { %11942 = vmatpush1.bf16.msra.mxu1 %v17156_v61  ;;  %v17209_v61 = vld [vmem:[%s24622_s4 + $0x2794] ss:$24 sps:$4 sm:$0xff]  }
 0x39c   : > { %11943 = vmatprep.subr.bf16.mxu1 %v17164_v27  ;;  %v17204_v27 = vld [vmem:[%s24622_s4 + $0x12c0] ss:$24 sps:$4 sm:$0xff]  }
 0x39d   : > { %12227 = vmatpush1.bf16.msra.mxu0 %v17159_v33  ;;  %v17212_v33 = vld [vmem:[%s24622_s4 + $0x12f4] ss:$24 sps:$4 sm:$0xff]  }
 0x39e   : > { %12228 = vmatprep.subr.bf16.mxu0 %v17167_v34  ;;  %v17207_v34 = vld [vmem:[%s24622_s4 + $0x2790] ss:$24 sps:$4 sm:$0xff]  }
 0x39f   : > { %11944 = vmatpush1.bf16.msra.mxu1 %v17162_v37  ;;  %v17215_v37 = vld [vmem:[%s24622_s4 + $0x27c4] ss:$24 sps:$4 sm:$0xff]  }
 0x3a0   : > { %11945 = vmatprep.subr.bf16.mxu1 %v17170_v41  ;;  %v17210_v41 = vld [vmem:[%s24622_s4 + $0x12f0] ss:$24 sps:$4 sm:$0xff]  }
 0x3a1   : > { %12229 = vmatpush1.bf16.msra.mxu0 %v17165_v42  ;;  %v17218_v42 = vld [vmem:[%s24622_s4 + $0x1324] ss:$24 sps:$4 sm:$0xff]  }
 0x3a2   : > { %12230 = vmatprep.subr.bf16.mxu0 %v17173_v45  ;;  %v17213_v45 = vld [vmem:[%s24622_s4 + $0x27c0] ss:$24 sps:$4 sm:$0xff]  }
 0x3a3   : > { %11946 = vmatpush1.bf16.msra.mxu1 %v17168_v4  ;;  %v17221_v4 = vld [vmem:[%s24622_s4 + $0x27f4] ss:$24 sps:$4 sm:$0xff]  }
 0x3a4   : > { %11947 = vmatprep.subr.bf16.mxu1 %v17176_v52  ;;  %v17216_v52 = vld [vmem:[%s24622_s4 + $0x1320] ss:$24 sps:$4 sm:$0xff]  }
 0x3a5   : > { %12231 = vmatpush1.bf16.msra.mxu0 %v17171_v54  ;;  %v17224_v54 = vld [vmem:[%s24622_s4 + $0x1354] ss:$24 sps:$4 sm:$0xff]  }
 0x3a6   : > { %12232 = vmatprep.subr.bf16.mxu0 %v17179_v13  ;;  %v17219_v13 = vld [vmem:[%s24622_s4 + $0x27f0] ss:$24 sps:$4 sm:$0xff]  }
 0x3a7   : > { %11948 = vmatpush1.bf16.msra.mxu1 %v17174_v14  ;;  %v17227_v14 = vld [vmem:[%s24622_s4 + $0x2824] ss:$24 sps:$4 sm:$0xff]  }
 0x3a8   : > { %11958 = vmatprep.subr.bf16.mxu1 %v17182_v26  ;;  %v17222_v26 = vld [vmem:[%s24622_s4 + $0x1350] ss:$24 sps:$4 sm:$0xff]  }
 0x3a9   : > { %12233 = vmatpush1.bf16.msra.mxu0 %v17177_v35  ;;  %v17230_v35 = vld [vmem:[%s24622_s4 + $0x1384] ss:$24 sps:$4 sm:$0xff]  }
 0x3aa   : > { %11950 = vmatmul.mubr.bf16.vlgmr.msra.gmra.mrb[72].mxu1 %v20837_v40  ;;  %12234 = vmatprep.subr.bf16.mxu0 %v17185_v22  ;;  %v17225_v22 = vld [vmem:[%s24622_s4 + $0x2820] ss:$24 sps:$4 sm:$0xff]  }
 0x3ab   : > { %11959 = vmatpush1.bf16.msra.mxu1 %v17180_v0  ;;  %11990 = vmatprep.mubr.bf16.mxu1 %v19774_v58  ;;  %v17233_v0 = vld [vmem:[%s24622_s4 + $0x2854] ss:$24 sps:$4 sm:$0xff]  }
 0x3ac   : > { %11960 = vmatprep.subr.bf16.mxu1 %v17188_v43  ;;  %v17228_v43 = vld [vmem:[%s24622_s4 + $0x1380] ss:$24 sps:$4 sm:$0xff]  }
 0x3ad   : > { %12235 = vmatpush1.bf16.msra.mxu0 %v17183_v32  ;;  %v17236_v32 = vld [vmem:[%s24622_s4 + $0x13b4] ss:$24 sps:$4 sm:$0xff]  }
 0x3ae   : > { %12245 = vmatprep.subr.bf16.mxu0 %v17191_v30  ;;  %v17231_v30 = vld [vmem:[%s24622_s4 + $0x2850] ss:$24 sps:$4 sm:$0xff]  }
 0x3af   : > { %11961 = vmatpush1.bf16.msra.mxu1 %v17186_v9  ;;  %v17239_v9 = vld [vmem:[%s24622_s4 + $0x2884] ss:$24 sps:$4 sm:$0xff]  }
 0x3b0   : > { %12237 = vmatmul.mubr.bf16.vlgmr.msra.gmra.mrb[56].mxu0 %v20863_v57  ;;  %11962 = vmatprep.subr.bf16.mxu1 %v17194_v28  ;;  %v17234_v28 = vld [vmem:[%s24622_s4 + $0x13b0] ss:$24 sps:$4 sm:$0xff]  }
 0x3b1   : > { %12246 = vmatpush1.bf16.msra.mxu0 %v17189_v29  ;;  %12277 = vmatprep.mubr.bf16.mxu0 %v20870_v63  ;;  %v17242_v29 = vld [vmem:[%s24622_s4 + $0x13e4] ss:$24 sps:$4 sm:$0xff]  }
 0x3b2   : > { %12247 = vmatprep.subr.bf16.mxu0 %v17197_v50  ;;  %v17237_v50 = vld [vmem:[%s24622_s4 + $0x2880] ss:$24 sps:$4 sm:$0xff]  }
 0x3b3   : > { %11963 = vmatpush1.bf16.msra.mxu1 %v17192_v1  ;;  %v17245_v1 = vld [vmem:[%s24622_s4 + $0x28b4] ss:$24 sps:$4 sm:$0xff]  }
 0x3b4   : > { %11964 = vmatprep.subr.bf16.mxu1 %v17200_v8  ;;  %v17240_v8 = vld [vmem:[%s24622_s4 + $0x13e0] ss:$24 sps:$4 sm:$0xff]  }
 0x3b5   : > { %12248 = vmatpush1.bf16.msra.mxu0 %v17195_v38  ;;  %v17248_v38 = vld [vmem:[%s24622_s4 + $0x1414] ss:$24 sps:$4 sm:$0xff]  }
 0x3b6   : > { %12249 = vmatprep.subr.bf16.mxu0 %v17203_v49  ;;  %v17243_v49 = vld [vmem:[%s24622_s4 + $0x28b0] ss:$24 sps:$4 sm:$0xff]  }
 0x3b7   : > { %11965 = vmatpush1.bf16.msra.mxu1 %v17198_v24  ;;  %v17251_v24 = vld [vmem:[%s24622_s4 + $0x28e4] ss:$24 sps:$4 sm:$0xff]  }
 0x3b8   : > { %11966 = vmatprep.subr.bf16.mxu1 %v17206_v25  ;;  %v17246_v25 = vld [vmem:[%s24622_s4 + $0x1410] ss:$24 sps:$4 sm:$0xff]  }
 0x3b9   : > { %12250 = vmatpush1.bf16.msra.mxu0 %v17201_v31  ;;  %v17254_v31 = vld [vmem:[%s24622_s4 + $0x1444] ss:$24 sps:$4 sm:$0xff]  }
 0x3ba   : > { %12251 = vmatprep.subr.bf16.mxu0 %v17209_v61  ;;  %v17249_v61 = vld [vmem:[%s24622_s4 + $0x28e0] ss:$24 sps:$4 sm:$0xff]  }
 0x3bb   : > { %11967 = vmatpush1.bf16.msra.mxu1 %v17204_v27  ;;  %v17257_v27 = vld [vmem:[%s24622_s4 + $0x2914] ss:$24 sps:$4 sm:$0xff]  }
 0x3bc   : > { %11968 = vmatprep.subr.bf16.mxu1 %v17212_v33  ;;  %v17252_v33 = vld [vmem:[%s24622_s4 + $0x1440] ss:$24 sps:$4 sm:$0xff]  }
 0x3bd   : > { %12252 = vmatpush1.bf16.msra.mxu0 %v17207_v34  ;;  %v17260_v34 = vld [vmem:[%s24622_s4 + $0x1474] ss:$24 sps:$4 sm:$0xff]  }
 0x3be   : > { %12253 = vmatprep.subr.bf16.mxu0 %v17215_v37  ;;  %v17255_v37 = vld [vmem:[%s24622_s4 + $0x2910] ss:$24 sps:$4 sm:$0xff]  }
 0x3bf   : > { %11969 = vmatpush1.bf16.msra.mxu1 %v17210_v41  ;;  %v17263_v41 = vld [vmem:[%s24622_s4 + $0x2944] ss:$24 sps:$4 sm:$0xff]  }
 0x3c0   : > { %11970 = vmatprep.subr.bf16.mxu1 %v17218_v42  ;;  %v17258_v42 = vld [vmem:[%s24622_s4 + $0x1470] ss:$24 sps:$4 sm:$0xff]  }
 0x3c1   : > { %12254 = vmatpush1.bf16.msra.mxu0 %v17213_v45  ;;  %v17266_v45 = vld [vmem:[%s24622_s4 + $0x14a4] ss:$24 sps:$4 sm:$0xff]  }
 0x3c2   : > { %12255 = vmatprep.subr.bf16.mxu0 %v17221_v4  ;;  %v17261_v4 = vld [vmem:[%s24622_s4 + $0x2940] ss:$24 sps:$4 sm:$0xff]  }
 0x3c3   : > { %11971 = vmatpush1.bf16.msra.mxu1 %v17216_v52  ;;  %v17269_v52 = vld [vmem:[%s24622_s4 + $0x2974] ss:$24 sps:$4 sm:$0xff]  }
 0x3c4   : > { %11972 = vmatprep.subr.bf16.mxu1 %v17224_v54  ;;  %v17264_v54 = vld [vmem:[%s24622_s4 + $0x14a0] ss:$24 sps:$4 sm:$0xff]  }
 0x3c5   : > { %12256 = vmatpush1.bf16.msra.mxu0 %v17219_v13  ;;  %v17272_v13 = vld [vmem:[%s24622_s4 + $0x14d4] ss:$24 sps:$4 sm:$0xff]  }
 0x3c6   : > { %12257 = vmatprep.subr.bf16.mxu0 %v17227_v14  ;;  %v17267_v14 = vld [vmem:[%s24622_s4 + $0x2970] ss:$24 sps:$4 sm:$0xff]  }
 0x3c7   : > { %11973 = vmatpush1.bf16.msra.mxu1 %v17222_v26  ;;  %v17275_v26 = vld [vmem:[%s24622_s4 + $0x29a4] ss:$24 sps:$4 sm:$0xff]  }
 0x3c8   : > { %11974 = vmatprep.subr.bf16.mxu1 %v17230_v35  ;;  %v17270_v35 = vld [vmem:[%s24622_s4 + $0x14d0] ss:$24 sps:$4 sm:$0xff]  }
 0x3c9   : > { %12258 = vmatpush1.bf16.msra.mxu0 %v17225_v22  ;;  %v17281_v22 = vld [vmem:[%s24622_s4 + $0xc] ss:$24 sps:$4 sm:$0xff]  }
 0x3ca   : > { %12259 = vmatprep.subr.bf16.mxu0 %v17233_v0  ;;  %v17273_v0 = vld [vmem:[%s24622_s4 + $0x29a0] ss:$24 sps:$4 sm:$0xff]  }
 0x3cb   : > { %11975 = vmatpush1.bf16.msra.mxu1 %v17228_v43  ;;  %v17278_v43 = vld [vmem:[%s24622_s4 + $0x29d4] ss:$24 sps:$4 sm:$0xff]  }
 0x3cc   : > { %11976 = vmatprep.subr.bf16.mxu1 %v17236_v32  ;;  %v17279_v32 = vld [vmem:[%s24622_s4 + $0x8] ss:$24 sps:$4 sm:$0xff]  }
 0x3cd   : > { %12260 = vmatpush1.bf16.msra.mxu0 %v17231_v30  ;;  %v17287_v30 = vld [vmem:[%s24622_s4 + $0x3c] ss:$24 sps:$4 sm:$0xff]  }
 0x3ce   : > { %12261 = vmatprep.subr.bf16.mxu0 %v17239_v9  ;;  %v17276_v9 = vld [vmem:[%s24622_s4 + $0x29d0] ss:$24 sps:$4 sm:$0xff]  }
 0x3cf   : > { %11977 = vmatpush1.bf16.msra.mxu1 %v17234_v28  ;;  %v17284_v28 = vld [vmem:[%s24622_s4 + $0x2a04] ss:$24 sps:$4 sm:$0xff]  }
 0x3d0   : > { %11978 = vmatprep.subr.bf16.mxu1 %v17242_v29  ;;  %v17285_v29 = vld [vmem:[%s24622_s4 + $0x38] ss:$24 sps:$4 sm:$0xff]  }
 0x3d1   : > { %12262 = vmatpush1.bf16.msra.mxu0 %v17237_v50  ;;  %v17293_v50 = vld [vmem:[%s24622_s4 + $0x6c] ss:$24 sps:$4 sm:$0xff]  }
 0x3d2   : > { %12263 = vmatprep.subr.bf16.mxu0 %v17245_v1  ;;  %v17282_v1 = vld [vmem:[%s24622_s4 + $0x2a00] ss:$24 sps:$4 sm:$0xff]  }
 0x3d3   : > { %11979 = vmatpush1.bf16.msra.mxu1 %v17240_v8  ;;  %v21067_v8 = vcombine.high %v20863_v57, %v20863_v57 }
 0x3d4   : > { %11980 = vmatprep.subr.bf16.mxu1 %v17248_v38  ;;  %v17290_v38 = vld [vmem:[%s24622_s4 + $0x2a34] ss:$24 sps:$4 sm:$0xff]  }
 0x3d5   : > { %12264 = vmatpush1.bf16.msra.mxu0 %v17243_v49  ;;  %v21076_v49 = vrot.slane %v3967_v51, %v19653_v46  ;;  %v17288_v51 = vld [vmem:[%s24622_s4 + $0x2a30] ss:$24 sps:$4 sm:$0xff]  }
 0x3d6   : > { %12265 = vmatprep.subr.bf16.mxu0 %v17251_v24  ;;  %v17291_v24 = vld [vmem:[%s24622_s4 + $0x68] ss:$24 sps:$4 sm:$0xff]  }
 0x3d7   : > { %11981 = vmatpush1.bf16.msra.mxu1 %v17246_v25  ;;  %v17299_v25 = vld [vmem:[%s24622_s4 + $0x9c] ss:$24 sps:$4 sm:$0xff]  }
 0x3d8   : > { %11982 = vmatprep.subr.bf16.mxu1 %v17254_v31  ;;  %v17296_v31 = vld [vmem:[%s24622_s4 + $0x2a64] ss:$24 sps:$4 sm:$0xff]  }
 0x3d9   : > { %12266 = vmatpush1.bf16.msra.mxu0 %v17249_v61  ;;  %v17297_v61 = vld [vmem:[%s24622_s4 + $0x98] ss:$24 sps:$4 sm:$0xff]  }
 0x3da   : > { %12267 = vmatprep.subr.bf16.mxu0 %v17257_v27  ;;  %v17305_v27 = vld [vmem:[%s24622_s4 + $0xcc] ss:$24 sps:$4 sm:$0xff]  }
 0x3db   : > { %11983 = vmatpush1.bf16.msra.mxu1 %v17252_v33  ;;  %v17294_v33 = vld [vmem:[%s24622_s4 + $0x2a60] ss:$24 sps:$4 sm:$0xff]  }
 0x3dc   : > { %11984 = vmatprep.subr.bf16.mxu1 %v17260_v34  ;;  %v17302_v34 = vld [vmem:[%s24622_s4 + $0x2a94] ss:$24 sps:$4 sm:$0xff]  }
 0x3dd   : > { %12268 = vmatpush1.bf16.msra.mxu0 %v17255_v37  ;;  %v17303_v37 = vld [vmem:[%s24622_s4 + $0xc8] ss:$24 sps:$4 sm:$0xff]  }
 0x3de   : > { %12269 = vmatprep.subr.bf16.mxu0 %v17263_v41  ;;  %v17311_v41 = vld [vmem:[%s24622_s4 + $0xfc] ss:$24 sps:$4 sm:$0xff]  }
 0x3df   : > { %11985 = vmatpush1.bf16.msra.mxu1 %v17258_v42  ;;  %v17300_v42 = vld [vmem:[%s24622_s4 + $0x2a90] ss:$24 sps:$4 sm:$0xff]  }
 0x3e0   : > { %11986 = vmatprep.subr.bf16.mxu1 %v17266_v45  ;;  %v17308_v45 = vld [vmem:[%s24622_s4 + $0x2ac4] ss:$24 sps:$4 sm:$0xff]  }
 0x3e1   : > { %12270 = vmatpush1.bf16.msra.mxu0 %v17261_v4  ;;  %v17309_v4 = vld [vmem:[%s24622_s4 + $0xf8] ss:$24 sps:$4 sm:$0xff]  }
 0x3e2   : > { %12271 = vmatprep.subr.bf16.mxu0 %v17269_v52  ;;  %v17317_v52 = vld [vmem:[%s24622_s4 + $0x12c] ss:$24 sps:$4 sm:$0xff]  }
 0x3e3   : > { %11987 = vmatpush1.bf16.msra.mxu1 %v17264_v54  ;;  %v17306_v54 = vld [vmem:[%s24622_s4 + $0x2ac0] ss:$24 sps:$4 sm:$0xff]  }
 0x3e4   : > { %11988 = vmatprep.subr.bf16.mxu1 %v17272_v13  ;;  %v17314_v13 = vld [vmem:[%s24622_s4 + $0x2af4] ss:$24 sps:$4 sm:$0xff]  }
 0x3e5   : > { %12272 = vmatpush1.bf16.msra.mxu0 %v17267_v14  ;;  %v17315_v14 = vld [vmem:[%s24622_s4 + $0x128] ss:$24 sps:$4 sm:$0xff]  }
 0x3e6   : > { %12273 = vmatprep.subr.bf16.mxu0 %v17275_v26  ;;  %v17323_v26 = vld [vmem:[%s24622_s4 + $0x15c] ss:$24 sps:$4 sm:$0xff]  }
 0x3e7   : > { %11989 = vmatpush1.bf16.msra.mxu1 %v17270_v35  ;;  %v17312_v35 = vld [vmem:[%s24622_s4 + $0x2af0] ss:$24 sps:$4 sm:$0xff]  }
 0x3e8   : > { %12368 = vmatprep.subr.bf16.mxu1 %v17281_v22  ;;  %v17320_v22 = vld [vmem:[%s24622_s4 + $0x2b24] ss:$24 sps:$4 sm:$0xff]  }
 0x3e9   : > { %12274 = vmatpush1.bf16.msra.mxu0 %v17273_v0  ;;  %v17321_v0 = vld [vmem:[%s24622_s4 + $0x158] ss:$24 sps:$4 sm:$0xff]  }
 0x3ea   : > { %11991 = vmatmul.mubr.bf16.vlgmr.msra.gmra.mrb[72].mxu1 %v19771_v55  ;;  %12275 = vmatprep.subr.bf16.mxu0 %v17278_v43  ;;  %v17329_v43 = vld [vmem:[%s24622_s4 + $0x18c] ss:$24 sps:$4 sm:$0xff]  }
 0x3eb   : > { %12369 = vmatpush1.bf16.msra.mxu1 %v17279_v32  ;;  %12400 = vmatprep.mubr.bf16.mxu1 %v19747_v48  ;;  %v17318_v32 = vld [vmem:[%s24622_s4 + $0x2b20] ss:$24 sps:$4 sm:$0xff]  }
 0x3ec   : > { %12370 = vmatprep.subr.bf16.mxu1 %v17287_v30  ;;  %v17326_v30 = vld [vmem:[%s24622_s4 + $0x2b54] ss:$24 sps:$4 sm:$0xff]  }
 0x3ed   : > { %12276 = vmatpush1.bf16.msra.mxu0 %v17276_v9  ;;  %v17327_v9 = vld [vmem:[%s24622_s4 + $0x188] ss:$24 sps:$4 sm:$0xff]  }
 0x3ee   : > { %12286 = vmatprep.subr.bf16.mxu0 %v17284_v28  ;;  %v17335_v28 = vld [vmem:[%s24622_s4 + $0x1bc] ss:$24 sps:$4 sm:$0xff]  }
 0x3ef   : > { %12371 = vmatpush1.bf16.msra.mxu1 %v17285_v29  ;;  %v17324_v29 = vld [vmem:[%s24622_s4 + $0x2b50] ss:$24 sps:$4 sm:$0xff]  }
 0x3f0   : > { %12278 = vmatmul.mubr.bf16.vlgmr.msra.gmra.mrb[56].mxu0 %v21067_v8  ;;  %12372 = vmatprep.subr.bf16.mxu1 %v17293_v50  ;;  %v17332_v50 = vld [vmem:[%s24622_s4 + $0x2b84] ss:$24 sps:$4 sm:$0xff]  }
 0x3f1   : > { %12287 = vmatpush1.bf16.msra.mxu0 %v17282_v1  ;;  %12318 = vmatprep.mubr.bf16.mxu0 %v21076_v49  ;;  %v17333_v1 = vld [vmem:[%s24622_s4 + $0x1b8] ss:$24 sps:$4 sm:$0xff]  }
 0x3f2   : > { %12288 = vmatprep.subr.bf16.mxu0 %v17290_v38  ;;  %v17341_v38 = vld [vmem:[%s24622_s4 + $0x1ec] ss:$24 sps:$4 sm:$0xff]  }
 0x3f3   : > { %12373 = vmatpush1.bf16.msra.mxu1 %v17291_v24  ;;  %v17330_v24 = vld [vmem:[%s24622_s4 + $0x2b80] ss:$24 sps:$4 sm:$0xff]  }
 0x3f4   : > { %12374 = vmatprep.subr.bf16.mxu1 %v17299_v25  ;;  %v17338_v25 = vld [vmem:[%s24622_s4 + $0x2bb4] ss:$24 sps:$4 sm:$0xff]  }
 0x3f5   : > { %12289 = vmatpush1.bf16.msra.mxu0 %v17288_v51  ;;  %v17339_v51 = vld [vmem:[%s24622_s4 + $0x1e8] ss:$24 sps:$4 sm:$0xff]  }
 0x3f6   : > { %12290 = vmatprep.subr.bf16.mxu0 %v17296_v31  ;;  %v17347_v31 = vld [vmem:[%s24622_s4 + $0x21c] ss:$24 sps:$4 sm:$0xff]  }
 0x3f7   : > { %12375 = vmatpush1.bf16.msra.mxu1 %v17297_v61  ;;  %v17336_v61 = vld [vmem:[%s24622_s4 + $0x2bb0] ss:$24 sps:$4 sm:$0xff]  }
 0x3f8   : > { %12376 = vmatprep.subr.bf16.mxu1 %v17305_v27  ;;  %v17344_v27 = vld [vmem:[%s24622_s4 + $0x2be4] ss:$24 sps:$4 sm:$0xff]  }
 0x3f9   : > { %12291 = vmatpush1.bf16.msra.mxu0 %v17294_v33  ;;  %v17345_v33 = vld [vmem:[%s24622_s4 + $0x218] ss:$24 sps:$4 sm:$0xff]  }
 0x3fa   : > { %12292 = vmatprep.subr.bf16.mxu0 %v17302_v34  ;;  %v17353_v34 = vld [vmem:[%s24622_s4 + $0x24c] ss:$24 sps:$4 sm:$0xff]  }
 0x3fb   : > { %12377 = vmatpush1.bf16.msra.mxu1 %v17303_v37  ;;  %v17342_v37 = vld [vmem:[%s24622_s4 + $0x2be0] ss:$24 sps:$4 sm:$0xff]  }
 0x3fc   : > { %12378 = vmatprep.subr.bf16.mxu1 %v17311_v41  ;;  %v17350_v41 = vld [vmem:[%s24622_s4 + $0x2c14] ss:$24 sps:$4 sm:$0xff]  }
 0x3fd   : > { %12293 = vmatpush1.bf16.msra.mxu0 %v17300_v42  ;;  %v17351_v42 = vld [vmem:[%s24622_s4 + $0x248] ss:$24 sps:$4 sm:$0xff]  }
 0x3fe   : > { %12294 = vmatprep.subr.bf16.mxu0 %v17308_v45  ;;  %v17359_v45 = vld [vmem:[%s24622_s4 + $0x27c] ss:$24 sps:$4 sm:$0xff]  }
 0x3ff   : > { %12379 = vmatpush1.bf16.msra.mxu1 %v17309_v4  ;;  %v17348_v4 = vld [vmem:[%s24622_s4 + $0x2c10] ss:$24 sps:$4 sm:$0xff]  }
 0x400   : > { %12380 = vmatprep.subr.bf16.mxu1 %v17317_v52  ;;  %v17356_v52 = vld [vmem:[%s24622_s4 + $0x2c44] ss:$24 sps:$4 sm:$0xff]  }
 0x401   : > { %12295 = vmatpush1.bf16.msra.mxu0 %v17306_v54  ;;  %v17357_v54 = vld [vmem:[%s24622_s4 + $0x278] ss:$24 sps:$4 sm:$0xff]  }
 0x402   : > { %12296 = vmatprep.subr.bf16.mxu0 %v17314_v13  ;;  %v17365_v13 = vld [vmem:[%s24622_s4 + $0x2ac] ss:$24 sps:$4 sm:$0xff]  }
 0x403   : > { %12381 = vmatpush1.bf16.msra.mxu1 %v17315_v14  ;;  %v17354_v14 = vld [vmem:[%s24622_s4 + $0x2c40] ss:$24 sps:$4 sm:$0xff]  }
 0x404   : > { %12382 = vmatprep.subr.bf16.mxu1 %v17323_v26  ;;  %v17362_v26 = vld [vmem:[%s24622_s4 + $0x2c74] ss:$24 sps:$4 sm:$0xff]  }
 0x405   : > { %12297 = vmatpush1.bf16.msra.mxu0 %v17312_v35  ;;  %v17363_v35 = vld [vmem:[%s24622_s4 + $0x2a8] ss:$24 sps:$4 sm:$0xff]  }
 0x406   : > { %12298 = vmatprep.subr.bf16.mxu0 %v17320_v22  ;;  %v17371_v22 = vld [vmem:[%s24622_s4 + $0x2dc] ss:$24 sps:$4 sm:$0xff]  }
 0x407   : > { %12383 = vmatpush1.bf16.msra.mxu1 %v17321_v0  ;;  %v17360_v0 = vld [vmem:[%s24622_s4 + $0x2c70] ss:$24 sps:$4 sm:$0xff]  }
 0x408   : > { %12384 = vmatprep.subr.bf16.mxu1 %v17329_v43  ;;  %v17368_v43 = vld [vmem:[%s24622_s4 + $0x2ca4] ss:$24 sps:$4 sm:$0xff]  }
 0x409   : > { %12299 = vmatpush1.bf16.msra.mxu0 %v17318_v32  ;;  %v17369_v32 = vld [vmem:[%s24622_s4 + $0x2d8] ss:$24 sps:$4 sm:$0xff]  }
 0x40a   : > { %12300 = vmatprep.subr.bf16.mxu0 %v17326_v30  ;;  %v17377_v30 = vld [vmem:[%s24622_s4 + $0x30c] ss:$24 sps:$4 sm:$0xff]  }
 0x40b   : > { %12385 = vmatpush1.bf16.msra.mxu1 %v17327_v9  ;;  %v17366_v9 = vld [vmem:[%s24622_s4 + $0x2ca0] ss:$24 sps:$4 sm:$0xff]  }
 0x40c   : > { %12386 = vmatprep.subr.bf16.mxu1 %v17335_v28  ;;  %v17374_v28 = vld [vmem:[%s24622_s4 + $0x2cd4] ss:$24 sps:$4 sm:$0xff]  }
 0x40d   : > { %12301 = vmatpush1.bf16.msra.mxu0 %v17324_v29  ;;  %v17375_v29 = vld [vmem:[%s24622_s4 + $0x308] ss:$24 sps:$4 sm:$0xff]  }
 0x40e   : > { %12302 = vmatprep.subr.bf16.mxu0 %v17332_v50  ;;  %v17383_v50 = vld [vmem:[%s24622_s4 + $0x33c] ss:$24 sps:$4 sm:$0xff]  }
 0x40f   : > { %12387 = vmatpush1.bf16.msra.mxu1 %v17333_v1  ;;  %v17372_v1 = vld [vmem:[%s24622_s4 + $0x2cd0] ss:$24 sps:$4 sm:$0xff]  }
 0x410   : > { %12388 = vmatprep.subr.bf16.mxu1 %v17341_v38  ;;  %v17380_v38 = vld [vmem:[%s24622_s4 + $0x2d04] ss:$24 sps:$4 sm:$0xff]  }
 0x411   : > { %12303 = vmatpush1.bf16.msra.mxu0 %v17330_v24  ;;  %v17381_v24 = vld [vmem:[%s24622_s4 + $0x338] ss:$24 sps:$4 sm:$0xff]  }
 0x412   : > { %12304 = vmatprep.subr.bf16.mxu0 %v17338_v25  ;;  %v17389_v25 = vld [vmem:[%s24622_s4 + $0x36c] ss:$24 sps:$4 sm:$0xff]  }
 0x413   : > { %12389 = vmatpush1.bf16.msra.mxu1 %v17339_v51  ;;  %v17378_v51 = vld [vmem:[%s24622_s4 + $0x2d00] ss:$24 sps:$4 sm:$0xff]  }
 0x414   : > { %12390 = vmatprep.subr.bf16.mxu1 %v17347_v31  ;;  %v21275_v31 = vrot.slane %v3966_v3, %v19653_v46  ;;  %v17395_v46 = vld [vmem:[%s24622_s4 + $0x39c] ss:$24 sps:$4 sm:$0xff]   ;;  %v17393_v3 = vld [vmem:[%s24622_s4 + $0x398] ss:$24 sps:$4 sm:$0xff]  }
 0x415   : > { %12305 = vmatpush1.bf16.msra.mxu0 %v17336_v61  ;;  %v17386_v61 = vld [vmem:[%s24622_s4 + $0x2d34] ss:$24 sps:$4 sm:$0xff]  }
 0x416   : > { %12306 = vmatprep.subr.bf16.mxu0 %v17344_v27  ;;  %v21282_v27 = vcombine.high %v21076_v49, %v21076_v49 }
 0x417   : > { %12391 = vmatpush1.bf16.msra.mxu1 %v17345_v33  ;;  %v17387_v33 = vld [vmem:[%s24622_s4 + $0x368] ss:$24 sps:$4 sm:$0xff]  }
 0x418   : > { %12392 = vmatprep.subr.bf16.mxu1 %v17353_v34  ;;  %v17401_v34 = vld [vmem:[%s24622_s4 + $0x3cc] ss:$24 sps:$4 sm:$0xff]  }
 0x419   : > { %12307 = vmatpush1.bf16.msra.mxu0 %v17342_v37  ;;  %v17390_v37 = vld [vmem:[%s24622_s4 + $0x2d60] ss:$24 sps:$4 sm:$0xff]  }
 0x41a   : > { %12308 = vmatprep.subr.bf16.mxu0 %v17350_v41  ;;  %v17398_v41 = vld [vmem:[%s24622_s4 + $0x2d94] ss:$24 sps:$4 sm:$0xff]  }
 0x41b   : > { %12393 = vmatpush1.bf16.msra.mxu1 %v17351_v42  ;;  %v17399_v42 = vld [vmem:[%s24622_s4 + $0x3c8] ss:$24 sps:$4 sm:$0xff]  }
 0x41c   : > { %12394 = vmatprep.subr.bf16.mxu1 %v17359_v45  ;;  %v17407_v45 = vld [vmem:[%s24622_s4 + $0x3fc] ss:$24 sps:$4 sm:$0xff]  }
 0x41d   : > { %12309 = vmatpush1.bf16.msra.mxu0 %v17348_v4  ;;  %v17396_v4 = vld [vmem:[%s24622_s4 + $0x2d90] ss:$24 sps:$4 sm:$0xff]  }
 0x41e   : > { %12310 = vmatprep.subr.bf16.mxu0 %v17356_v52  ;;  %v17404_v52 = vld [vmem:[%s24622_s4 + $0x2dc4] ss:$24 sps:$4 sm:$0xff]  }
 0x41f   : > { %12395 = vmatpush1.bf16.msra.mxu1 %v17357_v54  ;;  %v17405_v54 = vld [vmem:[%s24622_s4 + $0x3f8] ss:$24 sps:$4 sm:$0xff]  }
 0x420   : > { %12396 = vmatprep.subr.bf16.mxu1 %v17365_v13  ;;  %v17413_v13 = vld [vmem:[%s24622_s4 + $0x42c] ss:$24 sps:$4 sm:$0xff]  }
 0x421   : > { %12311 = vmatpush1.bf16.msra.mxu0 %v17354_v14  ;;  %v17402_v14 = vld [vmem:[%s24622_s4 + $0x2dc0] ss:$24 sps:$4 sm:$0xff]  }
 0x422   : > { %12312 = vmatprep.subr.bf16.mxu0 %v17362_v26  ;;  %v17410_v26 = vld [vmem:[%s24622_s4 + $0x2df4] ss:$24 sps:$4 sm:$0xff]  }
 0x423   : > { %12397 = vmatpush1.bf16.msra.mxu1 %v17363_v35  ;;  %v17411_v35 = vld [vmem:[%s24622_s4 + $0x428] ss:$24 sps:$4 sm:$0xff]  }
 0x424   : > { %12398 = vmatprep.subr.bf16.mxu1 %v17371_v22  ;;  %v17419_v22 = vld [vmem:[%s24622_s4 + $0x45c] ss:$24 sps:$4 sm:$0xff]  }
 0x425   : > { %12313 = vmatpush1.bf16.msra.mxu0 %v17360_v0  ;;  %v17408_v0 = vld [vmem:[%s24622_s4 + $0x2df0] ss:$24 sps:$4 sm:$0xff]  }
 0x426   : > { %12314 = vmatprep.subr.bf16.mxu0 %v17368_v43  ;;  %v17416_v43 = vld [vmem:[%s24622_s4 + $0x2e24] ss:$24 sps:$4 sm:$0xff]  }
 0x427   : > { %12399 = vmatpush1.bf16.msra.mxu1 %v17369_v32  ;;  %v17417_v32 = vld [vmem:[%s24622_s4 + $0x458] ss:$24 sps:$4 sm:$0xff]  }
 0x428   : > { %12409 = vmatprep.subr.bf16.mxu1 %v17377_v30  ;;  %v17425_v30 = vld [vmem:[%s24622_s4 + $0x48c] ss:$24 sps:$4 sm:$0xff]  }
 0x429   : > { %12315 = vmatpush1.bf16.msra.mxu0 %v17366_v9  ;;  %v17414_v9 = vld [vmem:[%s24622_s4 + $0x2e20] ss:$24 sps:$4 sm:$0xff]  }
 0x42a   : > { %12316 = vmatprep.subr.bf16.mxu0 %v17374_v28  ;;  %12401 = vmatmul.mubr.bf16.vlgmr.msra.gmra.mrb[76].mxu1 %v19744_v47  ;;  %v17422_v28 = vld [vmem:[%s24622_s4 + $0x2e54] ss:$24 sps:$4 sm:$0xff]  }
 0x42b   : > { %12410 = vmatpush1.bf16.msra.mxu1 %v17375_v29  ;;  %12441 = vmatprep.mubr.bf16.mxu1 %v19765_v53  ;;  %v17423_v29 = vld [vmem:[%s24622_s4 + $0x488] ss:$24 sps:$4 sm:$0xff]  }
 0x42c   : > { %12411 = vmatprep.subr.bf16.mxu1 %v17383_v50  ;;  %v17431_v50 = vld [vmem:[%s24622_s4 + $0x4bc] ss:$24 sps:$4 sm:$0xff]  }
 0x42d   : > { %12317 = vmatpush1.bf16.msra.mxu0 %v17372_v1  ;;  %v17420_v1 = vld [vmem:[%s24622_s4 + $0x2e50] ss:$24 sps:$4 sm:$0xff]  }
 0x42e   : > { %12327 = vmatprep.subr.bf16.mxu0 %v17380_v38  ;;  %v17428_v38 = vld [vmem:[%s24622_s4 + $0x2e84] ss:$24 sps:$4 sm:$0xff]  }
 0x42f   : > { %12412 = vmatpush1.bf16.msra.mxu1 %v17381_v24  ;;  %v17429_v24 = vld [vmem:[%s24622_s4 + $0x4b8] ss:$24 sps:$4 sm:$0xff]  }
 0x430   : > { %12319 = vmatmul.mubr.bf16.vlgmr.msra.gmra.mrb[56].mxu0 %v21275_v31  ;;  %12413 = vmatprep.subr.bf16.mxu1 %v17389_v25  ;;  %v17437_v25 = vld [vmem:[%s24622_s4 + $0x4ec] ss:$24 sps:$4 sm:$0xff]  }
 0x431   : > { %12328 = vmatpush1.bf16.msra.mxu0 %v17378_v51  ;;  %12359 = vmatprep.mubr.bf16.mxu0 %v21282_v27  ;;  %v17426_v51 = vld [vmem:[%s24622_s4 + $0x2e80] ss:$24 sps:$4 sm:$0xff]  }
 0x432   : > { %12329 = vmatprep.subr.bf16.mxu0 %v17386_v61  ;;  %v17434_v61 = vld [vmem:[%s24622_s4 + $0x2eb4] ss:$24 sps:$4 sm:$0xff]  }
 0x433   : > { %12414 = vmatpush1.bf16.msra.mxu1 %v17387_v33  ;;  %v17435_v33 = vld [vmem:[%s24622_s4 + $0x4e8] ss:$24 sps:$4 sm:$0xff]  }
 0x434   : > { %12415 = vmatprep.subr.bf16.mxu1 %v17395_v46  ;;  %v17443_v46 = vld [vmem:[%s24622_s4 + $0x51c] ss:$24 sps:$4 sm:$0xff]  }
 0x435   : > { %12330 = vmatpush1.bf16.msra.mxu0 %v17384_v21  ;;  %v17432_v21 = vld [vmem:[%s24622_s4 + $0x2eb0] ss:$24 sps:$4 sm:$0xff]  }
 0x436   : > { %12331 = vmatprep.subr.bf16.mxu0 %v17392_v39  ;;  %v17440_v39 = vld [vmem:[%s24622_s4 + $0x2ee4] ss:$24 sps:$4 sm:$0xff]  }
 0x437   : > { %12416 = vmatpush1.bf16.msra.mxu1 %v17393_v3  ;;  %v17441_v3 = vld [vmem:[%s24622_s4 + $0x518] ss:$24 sps:$4 sm:$0xff]  }
 0x438   : > { %12417 = vmatprep.subr.bf16.mxu1 %v17401_v34  ;;  %v17449_v34 = vld [vmem:[%s24622_s4 + $0x54c] ss:$24 sps:$4 sm:$0xff]  }
 0x439   : > { %12332 = vmatpush1.bf16.msra.mxu0 %v17390_v37  ;;  %v17438_v37 = vld [vmem:[%s24622_s4 + $0x2ee0] ss:$24 sps:$4 sm:$0xff]  }
 0x43a   : > { %12333 = vmatprep.subr.bf16.mxu0 %v17398_v41  ;;  %v17446_v41 = vld [vmem:[%s24622_s4 + $0x2f14] ss:$24 sps:$4 sm:$0xff]  }
 0x43b   : > { %12418 = vmatpush1.bf16.msra.mxu1 %v17399_v42  ;;  %v17447_v42 = vld [vmem:[%s24622_s4 + $0x548] ss:$24 sps:$4 sm:$0xff]  }
 0x43c   : > { %12419 = vmatprep.subr.bf16.mxu1 %v17407_v45  ;;  %v17455_v45 = vld [vmem:[%s24622_s4 + $0x57c] ss:$24 sps:$4 sm:$0xff]  }
 0x43d   : > { %12334 = vmatpush1.bf16.msra.mxu0 %v17396_v4  ;;  %v17444_v4 = vld [vmem:[%s24622_s4 + $0x2f10] ss:$24 sps:$4 sm:$0xff]  }
 0x43e   : > { %12335 = vmatprep.subr.bf16.mxu0 %v17404_v52  ;;  %v17452_v52 = vld [vmem:[%s24622_s4 + $0x2f44] ss:$24 sps:$4 sm:$0xff]  }
 0x43f   : > { %12420 = vmatpush1.bf16.msra.mxu1 %v17405_v54  ;;  %v17453_v54 = vld [vmem:[%s24622_s4 + $0x578] ss:$24 sps:$4 sm:$0xff]  }
 0x440   : > { %12421 = vmatprep.subr.bf16.mxu1 %v17413_v13  ;;  %v17461_v13 = vld [vmem:[%s24622_s4 + $0x5ac] ss:$24 sps:$4 sm:$0xff]  }
 0x441   : > { %12336 = vmatpush1.bf16.msra.mxu0 %v17402_v14  ;;  %v17450_v14 = vld [vmem:[%s24622_s4 + $0x2f40] ss:$24 sps:$4 sm:$0xff]  }
 0x442   : > { %12337 = vmatprep.subr.bf16.mxu0 %v17410_v26  ;;  %v17458_v26 = vld [vmem:[%s24622_s4 + $0x2f74] ss:$24 sps:$4 sm:$0xff]  }
 0x443   : > { %12422 = vmatpush1.bf16.msra.mxu1 %v17411_v35  ;;  %v17459_v35 = vld [vmem:[%s24622_s4 + $0x5a8] ss:$24 sps:$4 sm:$0xff]  }
 0x444   : > { %12423 = vmatprep.subr.bf16.mxu1 %v17419_v22  ;;  %v17467_v22 = vld [vmem:[%s24622_s4 + $0x5dc] ss:$24 sps:$4 sm:$0xff]  }
 0x445   : > { %12338 = vmatpush1.bf16.msra.mxu0 %v17408_v0  ;;  %v17456_v0 = vld [vmem:[%s24622_s4 + $0x2f70] ss:$24 sps:$4 sm:$0xff]  }
 0x446   : > { %12339 = vmatprep.subr.bf16.mxu0 %v17416_v43  ;;  %v17464_v43 = vld [vmem:[%s24622_s4 + $0x2fa4] ss:$24 sps:$4 sm:$0xff]  }
 0x447   : > { %12424 = vmatpush1.bf16.msra.mxu1 %v17417_v32  ;;  %v17465_v32 = vld [vmem:[%s24622_s4 + $0x5d8] ss:$24 sps:$4 sm:$0xff]  }
 0x448   : > { %12425 = vmatprep.subr.bf16.mxu1 %v17425_v30  ;;  %v17473_v30 = vld [vmem:[%s24622_s4 + $0x60c] ss:$24 sps:$4 sm:$0xff]  }
 0x449   : > { %12340 = vmatpush1.bf16.msra.mxu0 %v17414_v9  ;;  %v17462_v9 = vld [vmem:[%s24622_s4 + $0x2fa0] ss:$24 sps:$4 sm:$0xff]  }
 0x44a   : > { %12341 = vmatprep.subr.bf16.mxu0 %v17422_v28  ;;  %v17470_v28 = vld [vmem:[%s24622_s4 + $0x2fd4] ss:$24 sps:$4 sm:$0xff]  }
 0x44b   : > { %12426 = vmatpush1.bf16.msra.mxu1 %v17423_v29  ;;  %v17471_v29 = vld [vmem:[%s24622_s4 + $0x608] ss:$24 sps:$4 sm:$0xff]  }
 0x44c   : > { %12427 = vmatprep.subr.bf16.mxu1 %v17431_v50  ;;  %v17476_v50 = vld [vmem:[%s24622_s4 + $0x63c] ss:$24 sps:$4 sm:$0xff]  }
 0x44d   : > { %12342 = vmatpush1.bf16.msra.mxu0 %v17420_v1  ;;  %v17468_v1 = vld [vmem:[%s24622_s4 + $0x2fd0] ss:$24 sps:$4 sm:$0xff]  }
 0x44e   : > { %12343 = vmatprep.subr.bf16.mxu0 %v17428_v38  ;;  %v17479_v38 = vld [vmem:[%s24622_s4 + $0x14] ss:$24 sps:$4 sm:$0xff]  }
 0x44f   : > { %12428 = vmatpush1.bf16.msra.mxu1 %v17429_v24  ;;  %v17474_v24 = vld [vmem:[%s24622_s4 + $0x638] ss:$24 sps:$4 sm:$0xff]  }
 0x450   : > { %12429 = vmatprep.subr.bf16.mxu1 %v17437_v25  ;;  %v17482_v25 = vld [vmem:[%s24622_s4 + $0x66c] ss:$24 sps:$4 sm:$0xff]  }
 0x451   : > { %12344 = vmatpush1.bf16.msra.mxu0 %v17426_v51  ;;  %v17477_v51 = vld [vmem:[%s24622_s4 + $0x10] ss:$24 sps:$4 sm:$0xff]  }
 0x452   : > { %12345 = vmatprep.subr.bf16.mxu0 %v17434_v61  ;;  %v21479_v61 = vcombine.high %v21275_v31, %v21275_v31 }
 0x453   : > { %12430 = vmatpush1.bf16.msra.mxu1 %v17435_v33  ;;  %v17485_v33 = vld [vmem:[%s24622_s4 + $0x44] ss:$24 sps:$4 sm:$0xff]  }
 0x454   : > { %12431 = vmatprep.subr.bf16.mxu1 %v17443_v46  ;;  %v17480_v46 = vld [vmem:[%s24622_s4 + $0x668] ss:$24 sps:$4 sm:$0xff]  }
 0x455   : > { %12346 = vmatpush1.bf16.msra.mxu0 %v17432_v21  ;;  %v17488_v21 = vld [vmem:[%s24622_s4 + $0x69c] ss:$24 sps:$4 sm:$0xff]  }
 0x456   : > { %12347 = vmatprep.subr.bf16.mxu0 %v17440_v39  ;;  %v17483_v39 = vld [vmem:[%s24622_s4 + $0x40] ss:$24 sps:$4 sm:$0xff]  }
 0x457   : > { %12432 = vmatpush1.bf16.msra.mxu1 %v17441_v3  ;;  %v17491_v3 = vld [vmem:[%s24622_s4 + $0x74] ss:$24 sps:$4 sm:$0xff]  }
 0x458   : > { %12433 = vmatprep.subr.bf16.mxu1 %v17449_v34  ;;  %v17486_v34 = vld [vmem:[%s24622_s4 + $0x698] ss:$24 sps:$4 sm:$0xff]  }
 0x459   : > { %12348 = vmatpush1.bf16.msra.mxu0 %v17438_v37  ;;  %v17494_v37 = vld [vmem:[%s24622_s4 + $0x6cc] ss:$24 sps:$4 sm:$0xff]  }
 0x45a   : > { %12349 = vmatprep.subr.bf16.mxu0 %v17446_v41  ;;  %v17497_v41 = vld [vmem:[%s24622_s4 + $0xa4] ss:$24 sps:$4 sm:$0xff]  }
 0x45b   : > { %12434 = vmatpush1.bf16.msra.mxu1 %v17447_v42  ;;  %v17492_v42 = vld [vmem:[%s24622_s4 + $0x6c8] ss:$24 sps:$4 sm:$0xff]  }
 0x45c   : > { %12435 = vmatprep.subr.bf16.mxu1 %v17455_v45  ;;  %v17500_v45 = vld [vmem:[%s24622_s4 + $0x6fc] ss:$24 sps:$4 sm:$0xff]  }
 0x45d   : > { %12350 = vmatpush1.bf16.msra.mxu0 %v17444_v4  ;;  %v17495_v4 = vld [vmem:[%s24622_s4 + $0xa0] ss:$24 sps:$4 sm:$0xff]  }
 0x45e   : > { %12351 = vmatprep.subr.bf16.mxu0 %v17452_v52  ;;  %v17503_v52 = vld [vmem:[%s24622_s4 + $0xd4] ss:$24 sps:$4 sm:$0xff]  }
 0x45f   : > { %12436 = vmatpush1.bf16.msra.mxu1 %v17453_v54  ;;  %v17498_v54 = vld [vmem:[%s24622_s4 + $0x6f8] ss:$24 sps:$4 sm:$0xff]  }
 0x460   : > { %12437 = vmatprep.subr.bf16.mxu1 %v17461_v13  ;;  %v17506_v13 = vld [vmem:[%s24622_s4 + $0x72c] ss:$24 sps:$4 sm:$0xff]  }
 0x461   : > { %12352 = vmatpush1.bf16.msra.mxu0 %v17450_v14  ;;  %v17501_v14 = vld [vmem:[%s24622_s4 + $0xd0] ss:$24 sps:$4 sm:$0xff]  }
 0x462   : > { %12353 = vmatprep.subr.bf16.mxu0 %v17458_v26  ;;  %v17509_v26 = vld [vmem:[%s24622_s4 + $0x104] ss:$24 sps:$4 sm:$0xff]  }
 0x463   : > { %12438 = vmatpush1.bf16.msra.mxu1 %v17459_v35  ;;  %v17504_v35 = vld [vmem:[%s24622_s4 + $0x728] ss:$24 sps:$4 sm:$0xff]  }
 0x464   : > { %12439 = vmatprep.subr.bf16.mxu1 %v17467_v22  ;;  %v17512_v22 = vld [vmem:[%s24622_s4 + $0x75c] ss:$24 sps:$4 sm:$0xff]  }
 0x465   : > { %12354 = vmatpush1.bf16.msra.mxu0 %v17456_v0  ;;  %v17507_v0 = vld [vmem:[%s24622_s4 + $0x100] ss:$24 sps:$4 sm:$0xff]  }
 0x466   : > { %12355 = vmatprep.subr.bf16.mxu0 %v17464_v43  ;;  %v17515_v43 = vld [vmem:[%s24622_s4 + $0x134] ss:$24 sps:$4 sm:$0xff]  }
 0x467   : > { %12440 = vmatpush1.bf16.msra.mxu1 %v17465_v32  ;;  %v17510_v32 = vld [vmem:[%s24622_s4 + $0x758] ss:$24 sps:$4 sm:$0xff]  }
 0x468   : > { %12450 = vmatprep.subr.bf16.mxu1 %v17473_v30  ;;  %v17518_v30 = vld [vmem:[%s24622_s4 + $0x78c] ss:$24 sps:$4 sm:$0xff]  }
 0x469   : > { %12356 = vmatpush1.bf16.msra.mxu0 %v17462_v9  ;;  %v17513_v9 = vld [vmem:[%s24622_s4 + $0x130] ss:$24 sps:$4 sm:$0xff]  }
 0x46a   : > { %12357 = vmatprep.subr.bf16.mxu0 %v17470_v28  ;;  %12442 = vmatmul.mubr.bf16.vlgmr.msra.gmra.mrb[76].mxu1 %v19979_v5  ;;  %v17521_v28 = vld [vmem:[%s24622_s4 + $0x164] ss:$24 sps:$4 sm:$0xff]  }
 0x46b   : > { %12451 = vmatpush1.bf16.msra.mxu1 %v17471_v29  ;;  %12482 = vmatprep.mubr.bf16.mxu1 %v19985_v7  ;;  %v17516_v29 = vld [vmem:[%s24622_s4 + $0x788] ss:$24 sps:$4 sm:$0xff]  }
 0x46c   : > { %12452 = vmatprep.subr.bf16.mxu1 %v17476_v50  ;;  %v17524_v50 = vld [vmem:[%s24622_s4 + $0x7bc] ss:$24 sps:$4 sm:$0xff]  }
 0x46d   : > { %12358 = vmatpush1.bf16.msra.mxu0 %v17468_v1  ;;  %v17519_v1 = vld [vmem:[%s24622_s4 + $0x160] ss:$24 sps:$4 sm:$0xff]  }
 0x46e   : > { %13024 = vmatprep.subr.bf16.mxu0 %v17479_v38  ;;  %v17527_v38 = vld [vmem:[%s24622_s4 + $0x194] ss:$24 sps:$4 sm:$0xff]  }
 0x46f   : > { %12453 = vmatpush1.bf16.msra.mxu1 %v17474_v24  ;;  %v17522_v24 = vld [vmem:[%s24622_s4 + $0x7b8] ss:$24 sps:$4 sm:$0xff]  }
 0x470   : > { %12360 = vmatmul.mubr.bf16.vlgmr.msra.gmra.mrb[56].mxu0 %v21479_v61  ;;  %12454 = vmatprep.subr.bf16.mxu1 %v17482_v25  ;;  %v17530_v25 = vld [vmem:[%s24622_s4 + $0x7ec] ss:$24 sps:$4 sm:$0xff]  }
 0x471   : > { %13025 = vmatpush1.bf16.msra.mxu0 %v17477_v51  ;;  %13056 = vmatprep.mubr.bf16.mxu0 %v19747_v48  ;;  %v17489_v48 = vld [vmem:[%s24622_s4 + $0x70] ss:$24 sps:$4 sm:$0xff]  }
 0x472   : > { %13026 = vmatprep.subr.bf16.mxu0 %v17485_v33  ;;  %v17525_v51 = vld [vmem:[%s24622_s4 + $0x190] ss:$24 sps:$4 sm:$0xff]   ;;  %v17533_v33 = vld [vmem:[%s24622_s4 + $0x1c4] ss:$24 sps:$4 sm:$0xff]  }
 0x473   : > { %12455 = vmatpush1.bf16.msra.mxu1 %v17480_v46  ;;  %v17528_v46 = vld [vmem:[%s24622_s4 + $0x7e8] ss:$24 sps:$4 sm:$0xff]  }
 0x474   : > { %12456 = vmatprep.subr.bf16.mxu1 %v17488_v21  ;;  %v17536_v21 = vld [vmem:[%s24622_s4 + $0x81c] ss:$24 sps:$4 sm:$0xff]  }
 0x475   : > { %13027 = vmatpush1.bf16.msra.mxu0 %v17483_v39  ;;  %v17531_v39 = vld [vmem:[%s24622_s4 + $0x1c0] ss:$24 sps:$4 sm:$0xff]  }
 0x476   : > { %13028 = vmatprep.subr.bf16.mxu0 %v17491_v3  ;;  %v17539_v3 = vld [vmem:[%s24622_s4 + $0x1f4] ss:$24 sps:$4 sm:$0xff]  }
 0x477   : > { %12457 = vmatpush1.bf16.msra.mxu1 %v17486_v34  ;;  %v17534_v34 = vld [vmem:[%s24622_s4 + $0x818] ss:$24 sps:$4 sm:$0xff]  }
 0x478   : > { %12458 = vmatprep.subr.bf16.mxu1 %v17494_v37  ;;  %v17542_v37 = vld [vmem:[%s24622_s4 + $0x84c] ss:$24 sps:$4 sm:$0xff]  }
 0x479   : > { %13029 = vmatpush1.bf16.msra.mxu0 %v17489_v48  ;;  %v17537_v48 = vld [vmem:[%s24622_s4 + $0x1f0] ss:$24 sps:$4 sm:$0xff]  }
 0x47a   : > { %13030 = vmatprep.subr.bf16.mxu0 %v17497_v41  ;;  %v17545_v41 = vld [vmem:[%s24622_s4 + $0x224] ss:$24 sps:$4 sm:$0xff]  }
 0x47b   : > { %12459 = vmatpush1.bf16.msra.mxu1 %v17492_v42  ;;  %v17540_v42 = vld [vmem:[%s24622_s4 + $0x848] ss:$24 sps:$4 sm:$0xff]  }
 0x47c   : > { %12460 = vmatprep.subr.bf16.mxu1 %v17500_v45  ;;  %v17548_v45 = vld [vmem:[%s24622_s4 + $0x87c] ss:$24 sps:$4 sm:$0xff]  }
 0x47d   : > { %13031 = vmatpush1.bf16.msra.mxu0 %v17495_v4  ;;  %v17543_v4 = vld [vmem:[%s24622_s4 + $0x220] ss:$24 sps:$4 sm:$0xff]  }
 0x47e   : > { %13032 = vmatprep.subr.bf16.mxu0 %v17503_v52  ;;  %v17551_v52 = vld [vmem:[%s24622_s4 + $0x254] ss:$24 sps:$4 sm:$0xff]  }
 0x47f   : > { %12461 = vmatpush1.bf16.msra.mxu1 %v17498_v54  ;;  %v17546_v54 = vld [vmem:[%s24622_s4 + $0x878] ss:$24 sps:$4 sm:$0xff]  }
 0x480   : > { %12462 = vmatprep.subr.bf16.mxu1 %v17506_v13  ;;  %v17554_v13 = vld [vmem:[%s24622_s4 + $0x8ac] ss:$24 sps:$4 sm:$0xff]  }
 0x481   : > { %13033 = vmatpush1.bf16.msra.mxu0 %v17501_v14  ;;  %v17549_v14 = vld [vmem:[%s24622_s4 + $0x250] ss:$24 sps:$4 sm:$0xff]  }
 0x482   : > { %13034 = vmatprep.subr.bf16.mxu0 %v17509_v26  ;;  %v17557_v26 = vld [vmem:[%s24622_s4 + $0x284] ss:$24 sps:$4 sm:$0xff]  }
 0x483   : > { %12463 = vmatpush1.bf16.msra.mxu1 %v17504_v35  ;;  %v17552_v35 = vld [vmem:[%s24622_s4 + $0x8a8] ss:$24 sps:$4 sm:$0xff]  }
 0x484   : > { %12464 = vmatprep.subr.bf16.mxu1 %v17512_v22  ;;  %v17560_v22 = vld [vmem:[%s24622_s4 + $0x8dc] ss:$24 sps:$4 sm:$0xff]  }
 0x485   : > { %13035 = vmatpush1.bf16.msra.mxu0 %v17507_v0  ;;  %v17555_v0 = vld [vmem:[%s24622_s4 + $0x280] ss:$24 sps:$4 sm:$0xff]  }
 0x486   : > { %13036 = vmatprep.subr.bf16.mxu0 %v17515_v43  ;;  %v17563_v43 = vld [vmem:[%s24622_s4 + $0x2b4] ss:$24 sps:$4 sm:$0xff]  }
 0x487   : > { %12465 = vmatpush1.bf16.msra.mxu1 %v17510_v32  ;;  %v17558_v32 = vld [vmem:[%s24622_s4 + $0x8d8] ss:$24 sps:$4 sm:$0xff]  }
 0x488   : > { %12466 = vmatprep.subr.bf16.mxu1 %v17518_v30  ;;  %v17566_v30 = vld [vmem:[%s24622_s4 + $0x90c] ss:$24 sps:$4 sm:$0xff]  }
 0x489   : > { %13037 = vmatpush1.bf16.msra.mxu0 %v17513_v9  ;;  %v17561_v9 = vld [vmem:[%s24622_s4 + $0x2b0] ss:$24 sps:$4 sm:$0xff]  }
 0x48a   : > { %13038 = vmatprep.subr.bf16.mxu0 %v17521_v28  ;;  %v17569_v28 = vld [vmem:[%s24622_s4 + $0x2e4] ss:$24 sps:$4 sm:$0xff]  }
 0x48b   : > { %12467 = vmatpush1.bf16.msra.mxu1 %v17516_v29  ;;  %v17564_v29 = vld [vmem:[%s24622_s4 + $0x908] ss:$24 sps:$4 sm:$0xff]  }
 0x48c   : > { %12468 = vmatprep.subr.bf16.mxu1 %v17524_v50  ;;  %v17572_v50 = vld [vmem:[%s24622_s4 + $0x93c] ss:$24 sps:$4 sm:$0xff]  }
 0x48d   : > { %13039 = vmatpush1.bf16.msra.mxu0 %v17519_v1  ;;  %v17567_v1 = vld [vmem:[%s24622_s4 + $0x2e0] ss:$24 sps:$4 sm:$0xff]  }
 0x48e   : > { %13040 = vmatprep.subr.bf16.mxu0 %v17527_v38  ;;  %v17575_v38 = vld [vmem:[%s24622_s4 + $0x314] ss:$24 sps:$4 sm:$0xff]  }
 0x48f   : > { %12469 = vmatpush1.bf16.msra.mxu1 %v17522_v24  ;;  %v17570_v24 = vld [vmem:[%s24622_s4 + $0x938] ss:$24 sps:$4 sm:$0xff]  }
 0x490   : > { %12470 = vmatprep.subr.bf16.mxu1 %v17530_v25  ;;  %v17578_v25 = vld [vmem:[%s24622_s4 + $0x96c] ss:$24 sps:$4 sm:$0xff]  }
 0x491   : > { %13041 = vmatpush1.bf16.msra.mxu0 %v17525_v51  ;;  %v17573_v51 = vld [vmem:[%s24622_s4 + $0x310] ss:$24 sps:$4 sm:$0xff]  }
 0x492   : > { %13042 = vmatprep.subr.bf16.mxu0 %v17533_v33  ;;  %v17581_v33 = vld [vmem:[%s24622_s4 + $0x344] ss:$24 sps:$4 sm:$0xff]  }
 0x493   : > { %12471 = vmatpush1.bf16.msra.mxu1 %v17528_v46  ;;  %v17576_v46 = vld [vmem:[%s24622_s4 + $0x968] ss:$24 sps:$4 sm:$0xff]  }
 0x494   : > { %12472 = vmatprep.subr.bf16.mxu1 %v17536_v21  ;;  %v17584_v21 = vld [vmem:[%s24622_s4 + $0x99c] ss:$24 sps:$4 sm:$0xff]  }
 0x495   : > { %13043 = vmatpush1.bf16.msra.mxu0 %v17531_v39  ;;  %v17579_v39 = vld [vmem:[%s24622_s4 + $0x340] ss:$24 sps:$4 sm:$0xff]  }
 0x496   : > { %13044 = vmatprep.subr.bf16.mxu0 %v17539_v3  ;;  %v17587_v3 = vld [vmem:[%s24622_s4 + $0x374] ss:$24 sps:$4 sm:$0xff]  }
 0x497   : > { %12473 = vmatpush1.bf16.msra.mxu1 %v17534_v34  ;;  %v17590_v34 = vld [vmem:[%s24622_s4 + $0x9cc] ss:$24 sps:$4 sm:$0xff]  }
 0x498   : > { %12474 = vmatprep.subr.bf16.mxu1 %v17542_v37  ;;  %v17593_v37 = vld [vmem:[%s24622_s4 + $0x3a4] ss:$24 sps:$4 sm:$0xff]  }
 0x499   : > { %13045 = vmatpush1.bf16.msra.mxu0 %v17537_v48  ;;  %v17588_v48 = vld [vmem:[%s24622_s4 + $0x9c8] ss:$24 sps:$4 sm:$0xff]  }
 0x49a   : > { %13046 = vmatprep.subr.bf16.mxu0 %v17545_v41  ;;  %v17596_v41 = vld [vmem:[%s24622_s4 + $0x9fc] ss:$24 sps:$4 sm:$0xff]  }
 0x49b   : > { %12475 = vmatpush1.bf16.msra.mxu1 %v17540_v42  ;;  %v17591_v42 = vld [vmem:[%s24622_s4 + $0x3a0] ss:$24 sps:$4 sm:$0xff]  }
 0x49c   : > { %12476 = vmatprep.subr.bf16.mxu1 %v17548_v45  ;;  %v17599_v45 = vld [vmem:[%s24622_s4 + $0x3d4] ss:$24 sps:$4 sm:$0xff]  }
 0x49d   : > { %13047 = vmatpush1.bf16.msra.mxu0 %v17543_v4  ;;  %v17594_v4 = vld [vmem:[%s24622_s4 + $0x9f8] ss:$24 sps:$4 sm:$0xff]  }
 0x49e   : > { %13048 = vmatprep.subr.bf16.mxu0 %v17551_v52  ;;  %v17602_v52 = vld [vmem:[%s24622_s4 + $0xa2c] ss:$24 sps:$4 sm:$0xff]  }
 0x49f   : > { %12477 = vmatpush1.bf16.msra.mxu1 %v17546_v54 }
 0x4a0   : > { %12478 = vmatprep.subr.bf16.mxu1 %v17554_v13  ;;  %v17597_v13 = vld [vmem:[%s24622_s4 + $0x3d0] ss:$24 sps:$4 sm:$0xff]  }
 0x4a1   : > { %13049 = vmatpush1.bf16.msra.mxu0 %v17549_v14 }
 0x4a2   : > { %13050 = vmatprep.subr.bf16.mxu0 %v17557_v26  ;;  %v17605_v26 = vld [vmem:[%s24622_s4 + $0x404] ss:$24 sps:$4 sm:$0xff]  }
 0x4a3   : > { %12479 = vmatpush1.bf16.msra.mxu1 %v17552_v35 }
 0x4a4   : > { %12480 = vmatprep.subr.bf16.mxu1 %v17560_v22  ;;  %v17600_v22 = vld [vmem:[%s24622_s4 + $0xa28] ss:$24 sps:$4 sm:$0xff]  }
 0x4a5   : > { %13051 = vmatpush1.bf16.msra.mxu0 %v17555_v0 }
 0x4a6   : > { %13052 = vmatprep.subr.bf16.mxu0 %v17563_v43  ;;  %v17608_v43 = vld [vmem:[%s24622_s4 + $0xa5c] ss:$24 sps:$4 sm:$0xff]  }
 0x4a7   : > { %12481 = vmatpush1.bf16.msra.mxu1 %v17558_v32  ;;  %v17603_v32 = vld [vmem:[%s24622_s4 + $0x400] ss:$24 sps:$4 sm:$0xff]  }
 0x4a8   : > { %12491 = vmatprep.subr.bf16.mxu1 %v17566_v30  ;;  %v17611_v30 = vld [vmem:[%s24622_s4 + $0x434] ss:$24 sps:$4 sm:$0xff]  }
 0x4a9   : > { %13053 = vmatpush1.bf16.msra.mxu0 %v17561_v9  ;;  %v17606_v9 = vld [vmem:[%s24622_s4 + $0xa58] ss:$24 sps:$4 sm:$0xff]  }
 0x4aa   : > { %12483 = vmatmul.mubr.bf16.vlgmr.msra.gmra.mrb[76].mxu1 %v20191_v11  ;;  %13054 = vmatprep.subr.bf16.mxu0 %v17569_v28  ;;  %v17614_v28 = vld [vmem:[%s24622_s4 + $0xa8c] ss:$24 sps:$4 sm:$0xff]  }
 0x4ab   : > { %12492 = vmatpush1.bf16.msra.mxu1 %v17564_v29  ;;  %12523 = vmatprep.mubr.bf16.mxu1 %v20201_v36  ;;  %v17609_v29 = vld [vmem:[%s24622_s4 + $0x430] ss:$24 sps:$4 sm:$0xff]  }
 0x4ac   : > { %12493 = vmatprep.subr.bf16.mxu1 %v17572_v50  ;;  %v17617_v50 = vld [vmem:[%s24622_s4 + $0x464] ss:$24 sps:$4 sm:$0xff]  }
 0x4ad   : > { %13055 = vmatpush1.bf16.msra.mxu0 %v17567_v1  ;;  %v17612_v1 = vld [vmem:[%s24622_s4 + $0xa88] ss:$24 sps:$4 sm:$0xff]  }
 0x4ae   : > { %13065 = vmatprep.subr.bf16.mxu0 %v17575_v38  ;;  %v17620_v38 = vld [vmem:[%s24622_s4 + $0xabc] ss:$24 sps:$4 sm:$0xff]  }
 0x4af   : > { %12494 = vmatpush1.bf16.msra.mxu1 %v17570_v24  ;;  %v17615_v24 = vld [vmem:[%s24622_s4 + $0x460] ss:$24 sps:$4 sm:$0xff]  }
 0x4b0   : > { %13057 = vmatmul.mubr.bf16.vlgmr.msra.gmra.mrb[60].mxu0 %v19744_v47  ;;  %12495 = vmatprep.subr.bf16.mxu1 %v17578_v25  ;;  %v17582_v47 = vld [vmem:[%s24622_s4 + $0x998] ss:$24 sps:$4 sm:$0xff]   ;;  %v17623_v25 = vld [vmem:[%s24622_s4 + $0x494] ss:$24 sps:$4 sm:$0xff]  }
 0x4b1   : > { %13066 = vmatpush1.bf16.msra.mxu0 %v17573_v51  ;;  %13097 = vmatprep.mubr.bf16.mxu0 %v19765_v53  ;;  %v17585_v53 = vld [vmem:[%s24622_s4 + $0x370] ss:$24 sps:$4 sm:$0xff]  }
 0x4b2   : > { %13067 = vmatprep.subr.bf16.mxu0 %v17581_v33  ;;  %v17618_v51 = vld [vmem:[%s24622_s4 + $0xab8] ss:$24 sps:$4 sm:$0xff]   ;;  %v17626_v33 = vld [vmem:[%s24622_s4 + $0xaec] ss:$24 sps:$4 sm:$0xff]  }
 0x4b3   : > { %12496 = vmatpush1.bf16.msra.mxu1 %v17576_v46  ;;  %v17621_v46 = vld [vmem:[%s24622_s4 + $0x490] ss:$24 sps:$4 sm:$0xff]  }
 0x4b4   : > { %12497 = vmatprep.subr.bf16.mxu1 %v17584_v21  ;;  %v17629_v21 = vld [vmem:[%s24622_s4 + $0x4c4] ss:$24 sps:$4 sm:$0xff]  }
 0x4b5   : > { %13068 = vmatpush1.bf16.msra.mxu0 %v17579_v39  ;;  %v17624_v39 = vld [vmem:[%s24622_s4 + $0xae8] ss:$24 sps:$4 sm:$0xff]  }
 0x4b6   : > { %13069 = vmatprep.subr.bf16.mxu0 %v17587_v3  ;;  %v17632_v3 = vld [vmem:[%s24622_s4 + $0xb1c] ss:$24 sps:$4 sm:$0xff]  }
 0x4b7   : > { %12498 = vmatpush1.bf16.msra.mxu1 %v17582_v47  ;;  %v17627_v47 = vld [vmem:[%s24622_s4 + $0x4c0] ss:$24 sps:$4 sm:$0xff]  }
 0x4b8   : > { %12499 = vmatprep.subr.bf16.mxu1 %v17590_v34  ;;  %v17635_v34 = vld [vmem:[%s24622_s4 + $0x4f4] ss:$24 sps:$4 sm:$0xff]  }
 0x4b9   : > { %13070 = vmatpush1.bf16.msra.mxu0 %v17585_v53  ;;  %v17630_v53 = vld [vmem:[%s24622_s4 + $0xb18] ss:$24 sps:$4 sm:$0xff]  }
 0x4ba   : > { %13071 = vmatprep.subr.bf16.mxu0 %v17593_v37  ;;  %v17638_v37 = vld [vmem:[%s24622_s4 + $0xb4c] ss:$24 sps:$4 sm:$0xff]  }
 0x4bb   : > { %12500 = vmatpush1.bf16.msra.mxu1 %v17588_v48  ;;  %v17633_v48 = vld [vmem:[%s24622_s4 + $0x4f0] ss:$24 sps:$4 sm:$0xff]  }
 0x4bc   : > { %12501 = vmatprep.subr.bf16.mxu1 %v17596_v41  ;;  %v17641_v41 = vld [vmem:[%s24622_s4 + $0x524] ss:$24 sps:$4 sm:$0xff]  }
 0x4bd   : > { %13072 = vmatpush1.bf16.msra.mxu0 %v17591_v42  ;;  %v21724_v54 = vpop.f32.mrb[72].mxu1  ;;  %v17636_v42 = vld [vmem:[%s24622_s4 + $0xb48] ss:$24 sps:$4 sm:$0xff]  }
 0x4be   : > { %v21729_v14 = vpop.f32.mrb[73].mxu1  ;;  %13073 = vmatprep.subr.bf16.mxu0 %v17599_v45  ;;  %v17644_v45 = vld [vmem:[%s24622_s4 + $0xb7c] ss:$24 sps:$4 sm:$0xff]  }
 0x4bf   : > { %v11996_v35 = vpop.f32.mrb[74].mxu1  ;;  %12502 = vmatpush1.bf16.msra.mxu1 %v17594_v4  ;;  %v17639_v4 = vld [vmem:[%s24622_s4 + $0x520] ss:$24 sps:$4 sm:$0xff]  }
 0x4c0   : > { %v11997_v0 = vpop.f32.mrb[75].mxu1  ;;  %12503 = vmatprep.subr.bf16.mxu1 %v17602_v52  ;;  %v17647_v52 = vld [vmem:[%s24622_s4 + $0x554] ss:$24 sps:$4 sm:$0xff]   ;;  %v17645_v35 = vld [vmem:[%s24622_s4 + $0x550] ss:$24 sps:$4 sm:$0xff]  }
 0x4c1   : > { %13074 = vmatpush1.bf16.msra.mxu0 %v17597_v13  ;;  %v17642_v13 = vld [vmem:[%s24622_s4 + $0xb78] ss:$24 sps:$4 sm:$0xff]   ;;  %v17648_v0 = vld [vmem:[%s24622_s4 + $0xba8] ss:$24 sps:$4 sm:$0xff]  }
 0x4c2   : > { %13075 = vmatprep.subr.bf16.mxu0 %v17605_v26  ;;  %v17650_v26 = vld [vmem:[%s24622_s4 + $0xbac] ss:$24 sps:$4 sm:$0xff]  }
 0x4c3   : > { %12504 = vmatpush1.bf16.msra.mxu1 %v17600_v22  ;;  %v17653_v22 = vld [vmem:[%s24622_s4 + $0x584] ss:$24 sps:$4 sm:$0xff]  }
 0x4c4   : > { %12505 = vmatprep.subr.bf16.mxu1 %v17608_v43  ;;  %v17656_v43 = vld [vmem:[%s24622_s4 + $0xbdc] ss:$24 sps:$4 sm:$0xff]  }
 0x4c5   : > { %13076 = vmatpush1.bf16.msra.mxu0 %v17603_v32  ;;  %v17651_v32 = vld [vmem:[%s24622_s4 + $0x580] ss:$24 sps:$4 sm:$0xff]  }
 0x4c6   : > { %13077 = vmatprep.subr.bf16.mxu0 %v17611_v30  ;;  %v17659_v30 = vld [vmem:[%s24622_s4 + $0x5b4] ss:$24 sps:$4 sm:$0xff]  }
 0x4c7   : > { %12506 = vmatpush1.bf16.msra.mxu1 %v17606_v9  ;;  %v17654_v9 = vld [vmem:[%s24622_s4 + $0xbd8] ss:$24 sps:$4 sm:$0xff]  }
 0x4c8   : > { %12507 = vmatprep.subr.bf16.mxu1 %v17614_v28  ;;  %v17662_v28 = vld [vmem:[%s24622_s4 + $0xc0c] ss:$24 sps:$4 sm:$0xff]  }
 0x4c9   : > { %13078 = vmatpush1.bf16.msra.mxu0 %v17609_v29  ;;  %v17657_v29 = vld [vmem:[%s24622_s4 + $0x5b0] ss:$24 sps:$4 sm:$0xff]  }
 0x4ca   : > { %13079 = vmatprep.subr.bf16.mxu0 %v17617_v50  ;;  %v17665_v50 = vld [vmem:[%s24622_s4 + $0x5e4] ss:$24 sps:$4 sm:$0xff]  }
 0x4cb   : > { %12508 = vmatpush1.bf16.msra.mxu1 %v17612_v1  ;;  %v17660_v1 = vld [vmem:[%s24622_s4 + $0xc08] ss:$24 sps:$4 sm:$0xff]  }
 0x4cc   : > { %12509 = vmatprep.subr.bf16.mxu1 %v17620_v38  ;;  %v17668_v38 = vld [vmem:[%s24622_s4 + $0xc3c] ss:$24 sps:$4 sm:$0xff]  }
 0x4cd   : > { %13080 = vmatpush1.bf16.msra.mxu0 %v17615_v24  ;;  %v17663_v24 = vld [vmem:[%s24622_s4 + $0x5e0] ss:$24 sps:$4 sm:$0xff]  }
 0x4ce   : > { %13081 = vmatprep.subr.bf16.mxu0 %v17623_v25  ;;  %v17671_v25 = vld [vmem:[%s24622_s4 + $0x614] ss:$24 sps:$4 sm:$0xff]  }
 0x4cf   : > { %12510 = vmatpush1.bf16.msra.mxu1 %v17618_v51  ;;  %v17666_v51 = vld [vmem:[%s24622_s4 + $0xc38] ss:$24 sps:$4 sm:$0xff]  }
 0x4d0   : > { %12511 = vmatprep.subr.bf16.mxu1 %v17626_v33  ;;  %v17674_v33 = vld [vmem:[%s24622_s4 + $0xc6c] ss:$24 sps:$4 sm:$0xff]  }
 0x4d1   : > { %13082 = vmatpush1.bf16.msra.mxu0 %v17621_v46  ;;  %v17669_v46 = vld [vmem:[%s24622_s4 + $0x610] ss:$24 sps:$4 sm:$0xff]  }
 0x4d2   : > { %13083 = vmatprep.subr.bf16.mxu0 %v17629_v21  ;;  %v17677_v21 = vld [vmem:[%s24622_s4 + $0x644] ss:$24 sps:$4 sm:$0xff]  }
 0x4d3   : > { %12512 = vmatpush1.bf16.msra.mxu1 %v17624_v39  ;;  %v17672_v39 = vld [vmem:[%s24622_s4 + $0xc68] ss:$24 sps:$4 sm:$0xff]  }
 0x4d4   : > { %12513 = vmatprep.subr.bf16.mxu1 %v17632_v3  ;;  %v17680_v3 = vld [vmem:[%s24622_s4 + $0xc9c] ss:$24 sps:$4 sm:$0xff]  }
 0x4d5   : > { %13084 = vmatpush1.bf16.msra.mxu0 %v17627_v47  ;;  %v17675_v47 = vld [vmem:[%s24622_s4 + $0x640] ss:$24 sps:$4 sm:$0xff]  }
 0x4d6   : > { %13085 = vmatprep.subr.bf16.mxu0 %v17635_v34  ;;  %v17683_v34 = vld [vmem:[%s24622_s4 + $0x674] ss:$24 sps:$4 sm:$0xff]  }
 0x4d7   : > { %12514 = vmatpush1.bf16.msra.mxu1 %v17630_v53  ;;  %v17686_v53 = vld [vmem:[%s24622_s4 + $0xccc] ss:$24 sps:$4 sm:$0xff]  }
 0x4d8   : > { %12515 = vmatprep.subr.bf16.mxu1 %v17638_v37  ;;  %v17689_v37 = vld [vmem:[%s24622_s4 + $0x6a4] ss:$24 sps:$4 sm:$0xff]  }
 0x4d9   : > { %13086 = vmatpush1.bf16.msra.mxu0 %v17633_v48  ;;  %v17684_v48 = vld [vmem:[%s24622_s4 + $0xcc8] ss:$24 sps:$4 sm:$0xff]  }
 0x4da   : > { %13087 = vmatprep.subr.bf16.mxu0 %v17641_v41  ;;  %v17692_v41 = vld [vmem:[%s24622_s4 + $0xcfc] ss:$24 sps:$4 sm:$0xff]  }
 0x4db   : > { %12516 = vmatpush1.bf16.msra.mxu1 %v17636_v42  ;;  %v17687_v42 = vld [vmem:[%s24622_s4 + $0x6a0] ss:$24 sps:$4 sm:$0xff]  }
 0x4dc   : > { %12517 = vmatprep.subr.bf16.mxu1 %v17644_v45  ;;  %v17695_v45 = vld [vmem:[%s24622_s4 + $0x6d4] ss:$24 sps:$4 sm:$0xff]  }
 0x4dd   : > { %13088 = vmatpush1.bf16.msra.mxu0 %v17639_v4  ;;  %v17690_v4 = vld [vmem:[%s24622_s4 + $0xcf8] ss:$24 sps:$4 sm:$0xff]  }
 0x4de   : > { %13089 = vmatprep.subr.bf16.mxu0 %v17647_v52  ;;  %v17698_v52 = vld [vmem:[%s24622_s4 + $0xd2c] ss:$24 sps:$4 sm:$0xff]  }
 0x4df   : > { %12518 = vmatpush1.bf16.msra.mxu1 %v17642_v13  ;;  %v17693_v13 = vld [vmem:[%s24622_s4 + $0x6d0] ss:$24 sps:$4 sm:$0xff]  }
 0x4e0   : > { %12519 = vmatprep.subr.bf16.mxu1 %v17650_v26  ;;  %v17701_v26 = vld [vmem:[%s24622_s4 + $0x704] ss:$24 sps:$4 sm:$0xff]  }
 0x4e1   : > { %13090 = vmatpush1.bf16.msra.mxu0 %v17645_v35  ;;  %v17696_v35 = vld [vmem:[%s24622_s4 + $0xd28] ss:$24 sps:$4 sm:$0xff]  }
 0x4e2   : > { %13091 = vmatprep.subr.bf16.mxu0 %v17653_v22  ;;  %v17704_v22 = vld [vmem:[%s24622_s4 + $0xd5c] ss:$24 sps:$4 sm:$0xff]  }
 0x4e3   : > { %12520 = vmatpush1.bf16.msra.mxu1 %v17648_v0  ;;  %v17699_v0 = vld [vmem:[%s24622_s4 + $0x700] ss:$24 sps:$4 sm:$0xff]  }
 0x4e4   : > { %12521 = vmatprep.subr.bf16.mxu1 %v17656_v43  ;;  %v17707_v43 = vld [vmem:[%s24622_s4 + $0x734] ss:$24 sps:$4 sm:$0xff]  }
 0x4e5   : > { %13092 = vmatpush1.bf16.msra.mxu0 %v17651_v32  ;;  %v17702_v32 = vld [vmem:[%s24622_s4 + $0xd58] ss:$24 sps:$4 sm:$0xff]  }
 0x4e6   : > { %13093 = vmatprep.subr.bf16.mxu0 %v17659_v30  ;;  %v17710_v30 = vld [vmem:[%s24622_s4 + $0xd8c] ss:$24 sps:$4 sm:$0xff]  }
 0x4e7   : > { %12522 = vmatpush1.bf16.msra.mxu1 %v17654_v9  ;;  %v17705_v9 = vld [vmem:[%s24622_s4 + $0x730] ss:$24 sps:$4 sm:$0xff]  }
 0x4e8   : > { %12532 = vmatprep.subr.bf16.mxu1 %v17662_v28  ;;  %v17713_v28 = vld [vmem:[%s24622_s4 + $0x764] ss:$24 sps:$4 sm:$0xff]  }
 0x4e9   : > { %13094 = vmatpush1.bf16.msra.mxu0 %v17657_v29  ;;  %v17708_v29 = vld [vmem:[%s24622_s4 + $0xd88] ss:$24 sps:$4 sm:$0xff]  }
 0x4ea   : > { %12524 = vmatmul.mubr.bf16.vlgmr.msra.gmra.mrb[76].mxu1 %v20405_v16  ;;  %13095 = vmatprep.subr.bf16.mxu0 %v17665_v50  ;;  %v17716_v50 = vld [vmem:[%s24622_s4 + $0xdbc] ss:$24 sps:$4 sm:$0xff]  }
 0x4eb   : > { %12533 = vmatpush1.bf16.msra.mxu1 %v17660_v1  ;;  %12564 = vmatprep.mubr.bf16.mxu1 %v20417_v59  ;;  %v17711_v1 = vld [vmem:[%s24622_s4 + $0x760] ss:$24 sps:$4 sm:$0xff]  }
 0x4ec   : > { %12534 = vmatprep.subr.bf16.mxu1 %v17668_v38  ;;  %v17719_v38 = vld [vmem:[%s24622_s4 + $0x794] ss:$24 sps:$4 sm:$0xff]  }
 0x4ed   : > { %13096 = vmatpush1.bf16.msra.mxu0 %v17663_v24  ;;  %v17714_v24 = vld [vmem:[%s24622_s4 + $0xdb8] ss:$24 sps:$4 sm:$0xff]  }
 0x4ee   : > { %13106 = vmatprep.subr.bf16.mxu0 %v17671_v25  ;;  %v17722_v25 = vld [vmem:[%s24622_s4 + $0xdec] ss:$24 sps:$4 sm:$0xff]  }
 0x4ef   : > { %12535 = vmatpush1.bf16.msra.mxu1 %v17666_v51  ;;  %v17717_v51 = vld [vmem:[%s24622_s4 + $0x790] ss:$24 sps:$4 sm:$0xff]  }
 0x4f0   : > { %13098 = vmatmul.mubr.bf16.vlgmr.msra.gmra.mrb[60].mxu0 %v19979_v5  ;;  %12536 = vmatprep.subr.bf16.mxu1 %v17674_v33  ;;  %v17678_v5 = vld [vmem:[%s24622_s4 + $0xc98] ss:$24 sps:$4 sm:$0xff]   ;;  %v17725_v33 = vld [vmem:[%s24622_s4 + $0x7c4] ss:$24 sps:$4 sm:$0xff]  }
 0x4f1   : > { %13107 = vmatpush1.bf16.msra.mxu0 %v17669_v46  ;;  %13138 = vmatprep.mubr.bf16.mxu0 %v19985_v7  ;;  %v17681_v7 = vld [vmem:[%s24622_s4 + $0x670] ss:$24 sps:$4 sm:$0xff]  }
 0x4f2   : > { %13108 = vmatprep.subr.bf16.mxu0 %v17677_v21  ;;  %v17720_v46 = vld [vmem:[%s24622_s4 + $0xde8] ss:$24 sps:$4 sm:$0xff]   ;;  %v17728_v21 = vld [vmem:[%s24622_s4 + $0xe1c] ss:$24 sps:$4 sm:$0xff]  }
 0x4f3   : > { %12537 = vmatpush1.bf16.msra.mxu1 %v17672_v39  ;;  %v17723_v39 = vld [vmem:[%s24622_s4 + $0x7c0] ss:$24 sps:$4 sm:$0xff]  }
 0x4f4   : > { %12538 = vmatprep.subr.bf16.mxu1 %v17680_v3  ;;  %v17731_v3 = vld [vmem:[%s24622_s4 + $0x7f4] ss:$24 sps:$4 sm:$0xff]  }
 0x4f5   : > { %13109 = vmatpush1.bf16.msra.mxu0 %v17675_v47  ;;  %v17726_v47 = vld [vmem:[%s24622_s4 + $0xe18] ss:$24 sps:$4 sm:$0xff]  }
 0x4f6   : > { %13110 = vmatprep.subr.bf16.mxu0 %v17683_v34  ;;  %v17734_v34 = vld [vmem:[%s24622_s4 + $0xe4c] ss:$24 sps:$4 sm:$0xff]  }
 0x4f7   : > { %12539 = vmatpush1.bf16.msra.mxu1 %v17678_v5  ;;  %v17729_v5 = vld [vmem:[%s24622_s4 + $0x7f0] ss:$24 sps:$4 sm:$0xff]  }
 0x4f8   : > { %12540 = vmatprep.subr.bf16.mxu1 %v17686_v53  ;;  %v17737_v53 = vld [vmem:[%s24622_s4 + $0x824] ss:$24 sps:$4 sm:$0xff]  }
 0x4f9   : > { %13111 = vmatpush1.bf16.msra.mxu0 %v17681_v7  ;;  %v17732_v7 = vld [vmem:[%s24622_s4 + $0xe48] ss:$24 sps:$4 sm:$0xff]  }
 0x4fa   : > { %13112 = vmatprep.subr.bf16.mxu0 %v17689_v37  ;;  %v17740_v37 = vld [vmem:[%s24622_s4 + $0xe7c] ss:$24 sps:$4 sm:$0xff]  }
 0x4fb   : > { %12541 = vmatpush1.bf16.msra.mxu1 %v17684_v48  ;;  %v17735_v48 = vld [vmem:[%s24622_s4 + $0x820] ss:$24 sps:$4 sm:$0xff]  }
 0x4fc   : > { %12542 = vmatprep.subr.bf16.mxu1 %v17692_v41  ;;  %v17743_v41 = vld [vmem:[%s24622_s4 + $0x854] ss:$24 sps:$4 sm:$0xff]  }
 0x4fd   : > { %13113 = vmatpush1.bf16.msra.mxu0 %v17687_v42  ;;  %v17738_v42 = vld [vmem:[%s24622_s4 + $0xe78] ss:$24 sps:$4 sm:$0xff]  }
 0x4fe   : > { %13114 = vmatprep.subr.bf16.mxu0 %v17695_v45  ;;  %v17746_v45 = vld [vmem:[%s24622_s4 + $0xeac] ss:$24 sps:$4 sm:$0xff]  }
 0x4ff   : > { %12543 = vmatpush1.bf16.msra.mxu1 %v17690_v4  ;;  %v17741_v4 = vld [vmem:[%s24622_s4 + $0x850] ss:$24 sps:$4 sm:$0xff]  }
 0x500   : > { %12544 = vmatprep.subr.bf16.mxu1 %v17698_v52  ;;  %v17749_v52 = vld [vmem:[%s24622_s4 + $0x884] ss:$24 sps:$4 sm:$0xff]  }
 0x501   : > { %13115 = vmatpush1.bf16.msra.mxu0 %v17693_v13  ;;  %v17744_v13 = vld [vmem:[%s24622_s4 + $0xea8] ss:$24 sps:$4 sm:$0xff]  }
 0x502   : > { %13116 = vmatprep.subr.bf16.mxu0 %v17701_v26  ;;  %v17752_v26 = vld [vmem:[%s24622_s4 + $0xedc] ss:$24 sps:$4 sm:$0xff]  }
 0x503   : > { %12545 = vmatpush1.bf16.msra.mxu1 %v17696_v35  ;;  %v17747_v35 = vld [vmem:[%s24622_s4 + $0x880] ss:$24 sps:$4 sm:$0xff]  }
 0x504   : > { %12546 = vmatprep.subr.bf16.mxu1 %v17704_v22  ;;  %v17755_v22 = vld [vmem:[%s24622_s4 + $0x8b4] ss:$24 sps:$4 sm:$0xff]  }
 0x505   : > { %13117 = vmatpush1.bf16.msra.mxu0 %v17699_v0  ;;  %v17750_v0 = vld [vmem:[%s24622_s4 + $0xed8] ss:$24 sps:$4 sm:$0xff]  }
 0x506   : > { %13118 = vmatprep.subr.bf16.mxu0 %v17707_v43  ;;  %v17758_v43 = vld [vmem:[%s24622_s4 + $0xf0c] ss:$24 sps:$4 sm:$0xff]  }
 0x507   : > { %12547 = vmatpush1.bf16.msra.mxu1 %v17702_v32  ;;  %v17753_v32 = vld [vmem:[%s24622_s4 + $0x8b0] ss:$24 sps:$4 sm:$0xff]  }
 0x508   : > { %12548 = vmatprep.subr.bf16.mxu1 %v17710_v30  ;;  %v17761_v30 = vld [vmem:[%s24622_s4 + $0x8e4] ss:$24 sps:$4 sm:$0xff]  }
 0x509   : > { %13119 = vmatpush1.bf16.msra.mxu0 %v17705_v9  ;;  %v17756_v9 = vld [vmem:[%s24622_s4 + $0xf08] ss:$24 sps:$4 sm:$0xff]  }
 0x50a   : > { %13120 = vmatprep.subr.bf16.mxu0 %v17713_v28  ;;  %v17764_v28 = vld [vmem:[%s24622_s4 + $0xf3c] ss:$24 sps:$4 sm:$0xff]  }
 0x50b   : > { %12549 = vmatpush1.bf16.msra.mxu1 %v17708_v29  ;;  %v17759_v29 = vld [vmem:[%s24622_s4 + $0x8e0] ss:$24 sps:$4 sm:$0xff]  }
 0x50c   : > { %12550 = vmatprep.subr.bf16.mxu1 %v17716_v50  ;;  %v17767_v50 = vld [vmem:[%s24622_s4 + $0x914] ss:$24 sps:$4 sm:$0xff]  }
 0x50d   : > { %13121 = vmatpush1.bf16.msra.mxu0 %v17711_v1  ;;  %v17762_v1 = vld [vmem:[%s24622_s4 + $0xf38] ss:$24 sps:$4 sm:$0xff]  }
 0x50e   : > { %13122 = vmatprep.subr.bf16.mxu0 %v17719_v38  ;;  %v17770_v38 = vld [vmem:[%s24622_s4 + $0xf6c] ss:$24 sps:$4 sm:$0xff]  }
 0x50f   : > { %12551 = vmatpush1.bf16.msra.mxu1 %v17714_v24  ;;  %v17765_v24 = vld [vmem:[%s24622_s4 + $0x910] ss:$24 sps:$4 sm:$0xff]  }
 0x510   : > { %12552 = vmatprep.subr.bf16.mxu1 %v17722_v25  ;;  %v17773_v25 = vld [vmem:[%s24622_s4 + $0x944] ss:$24 sps:$4 sm:$0xff]  }
 0x511   : > { %13123 = vmatpush1.bf16.msra.mxu0 %v17717_v51  ;;  %v17768_v51 = vld [vmem:[%s24622_s4 + $0xf68] ss:$24 sps:$4 sm:$0xff]  }
 0x512   : > { %13124 = vmatprep.subr.bf16.mxu0 %v17725_v33  ;;  %v17776_v33 = vld [vmem:[%s24622_s4 + $0xf9c] ss:$24 sps:$4 sm:$0xff]  }
 0x513   : > { %12553 = vmatpush1.bf16.msra.mxu1 %v17720_v46  ;;  %v17771_v46 = vld [vmem:[%s24622_s4 + $0x940] ss:$24 sps:$4 sm:$0xff]  }
 0x514   : > { %12554 = vmatprep.subr.bf16.mxu1 %v17728_v21  ;;  %v17779_v21 = vld [vmem:[%s24622_s4 + $0x974] ss:$24 sps:$4 sm:$0xff]  }
 0x515   : > { %13125 = vmatpush1.bf16.msra.mxu0 %v17723_v39  ;;  %v17782_v39 = vld [vmem:[%s24622_s4 + $0xfcc] ss:$24 sps:$4 sm:$0xff]  }
 0x516   : > { %13126 = vmatprep.subr.bf16.mxu0 %v17731_v3  ;;  %v17785_v3 = vld [vmem:[%s24622_s4 + $0x9a4] ss:$24 sps:$4 sm:$0xff]  }
 0x517   : > { %12555 = vmatpush1.bf16.msra.mxu1 %v17726_v47  ;;  %v17780_v47 = vld [vmem:[%s24622_s4 + $0xfc8] ss:$24 sps:$4 sm:$0xff]  }
 0x518   : > { %12556 = vmatprep.subr.bf16.mxu1 %v17734_v34  ;;  %v17788_v34 = vld [vmem:[%s24622_s4 + $0xffc] ss:$24 sps:$4 sm:$0xff]  }
 0x519   : > { %13127 = vmatpush1.bf16.msra.mxu0 %v17729_v5  ;;  %v17783_v5 = vld [vmem:[%s24622_s4 + $0x9a0] ss:$24 sps:$4 sm:$0xff]  }
 0x51a   : > { %13128 = vmatprep.subr.bf16.mxu0 %v17737_v53  ;;  %v3636_v53 = vsub.s32 0, %v19650_v44 }
 0x51b   : > { %12557 = vmatpush1.bf16.msra.mxu1 %v17732_v7  ;;  %v17791_v7 = vld [vmem:[%s24622_s4 + $0x9d4] ss:$24 sps:$4 sm:$0xff]  }
 0x51c   : > { %12558 = vmatprep.subr.bf16.mxu1 %v17740_v37  ;;  %v3632_v37 = vld [vmem:[%s24623_s5] sm:$0x3f] }
 0x51d   : > { %13129 = vmatpush1.bf16.msra.mxu0 %v17735_v48  ;;  %v3640_v48 = vsub.s32 1, %v19650_v44 }
 0x51e   : > { %13130 = vmatprep.subr.bf16.mxu0 %v17743_v41  ;;  %v17786_v41 = vld [vmem:[%s24622_s4 + $0xff8] ss:$24 sps:$4 sm:$0xff]  }
 0x51f   : > { %12559 = vmatpush1.bf16.msra.mxu1 %v17738_v42  ;;  %v17794_v42 = vld [vmem:[%s24622_s4 + $0x102c] ss:$24 sps:$4 sm:$0xff]  }
 0x520   : > { %12560 = vmatprep.subr.bf16.mxu1 %v17746_v45  ;;  %v17789_v45 = vld [vmem:[%s24622_s4 + $0x9d0] ss:$24 sps:$4 sm:$0xff]  }
 0x521   : > { %13131 = vmatpush1.bf16.msra.mxu0 %v17741_v4  ;;  %v3637_v4 = vrot.slane %v3632_v37, %v3636_v53  ;;  %v17822_v53 = vld [vmem:[%s24622_s4 + $0x1118] ss:$24 sps:$4 sm:$0xff]  }
 0x522   : > { %13132 = vmatprep.subr.bf16.mxu0 %v17749_v52  ;;  %v17797_v52 = vld [vmem:[%s24622_s4 + $0xa04] ss:$24 sps:$4 sm:$0xff]  }
 0x523   : > { %12561 = vmatpush1.bf16.msra.mxu1 %v17744_v13  ;;  %v3641_v13 = vrot.slane %v3632_v37, %v3640_v48  ;;  %v17825_v37 = vld [vmem:[%s24622_s4 + $0xaf0] ss:$24 sps:$4 sm:$0xff]   ;;  %v17833_v48 = vld [vmem:[%s24622_s4 + $0xb24] ss:$24 sps:$4 sm:$0xff]  }
 0x524   : > { %12562 = vmatprep.subr.bf16.mxu1 %v17752_v26  ;;  %v17792_v26 = vld [vmem:[%s24622_s4 + $0x1028] ss:$24 sps:$4 sm:$0xff]  }
 0x525   : > { %13133 = vmatpush1.bf16.msra.mxu0 %v17747_v35  ;;  %v17800_v35 = vld [vmem:[%s24622_s4 + $0x105c] ss:$24 sps:$4 sm:$0xff]  }
 0x526   : > { %13134 = vmatprep.subr.bf16.mxu0 %v17755_v22  ;;  %v17795_v22 = vld [vmem:[%s24622_s4 + $0xa00] ss:$24 sps:$4 sm:$0xff]  }
 0x527   : > { %12563 = vmatpush1.bf16.msra.mxu1 %v17750_v0  ;;  %v16236_v0 = vadd.f32 %v21724_v54, %v3637_v4  ;;  %v17806_v54 = vld [vmem:[%s24622_s4 + $0x108c] ss:$24 sps:$4 sm:$0xff]  }
 0x528   : > { %12573 = vmatprep.subr.bf16.mxu1 %v17758_v43  ;;  %v17803_v43 = vld [vmem:[%s24622_s4 + $0xa34] ss:$24 sps:$4 sm:$0xff]  }
 0x529   : > { %13135 = vmatpush1.bf16.msra.mxu0 %v17753_v32  ;;  %v16238_v32 = vadd.f32 %v21729_v14, %v3641_v13  ;;  %v17801_v14 = vld [vmem:[%s24622_s4 + $0xa30] ss:$24 sps:$4 sm:$0xff]   ;;  %v17839_v4 = vld [vmem:[%s24622_s4 + $0xb54] ss:$24 sps:$4 sm:$0xff]  }
 0x52a   : > { %12565 = vmatmul.mubr.bf16.vlgmr.msra.gmra.mrb[76].mxu1 %v20623_v18  ;;  %13136 = vmatprep.subr.bf16.mxu0 %v17761_v30  ;;  %v17842_v13 = vld [vmem:[%s24622_s4 + $0x11ac] ss:$24 sps:$4 sm:$0xff]  }
 0x52b   : > { %12574 = vmatpush1.bf16.msra.mxu1 %v17756_v9  ;;  %12605 = vmatprep.mubr.bf16.mxu1 %v20633_v2  ;;  %v17798_v9 = vld [vmem:[%s24622_s4 + $0x1058] ss:$24 sps:$4 sm:$0xff]  }
 0x52c   : > { %12575 = vmatprep.subr.bf16.mxu1 %v17764_v28 }
 0x52d   : > { %13137 = vmatpush1.bf16.msra.mxu0 %v17759_v29 }
 0x52e   : > { %13147 = vmatprep.subr.bf16.mxu0 %v17767_v50 }
 0x52f   : > { %12576 = vmatpush1.bf16.msra.mxu1 %v17762_v1 }
 0x530   : > { %13139 = vmatmul.mubr.bf16.vlgmr.msra.gmra.mrb[60].mxu0 %v20191_v11  ;;  %12577 = vmatprep.subr.bf16.mxu1 %v17770_v38  ;;  %v17774_v11 = vld [vmem:[%s24622_s4 + $0xf98] ss:$24 sps:$4 sm:$0xff]  }
 0x531   : > { %13148 = vmatpush1.bf16.msra.mxu0 %v17765_v24  ;;  %13179 = vmatprep.mubr.bf16.mxu0 %v20201_v36  ;;  %v17777_v36 = vld [vmem:[%s24622_s4 + $0x970] ss:$24 sps:$4 sm:$0xff]   ;;  %v17809_v24 = vld [vmem:[%s24622_s4 + $0xa64] ss:$24 sps:$4 sm:$0xff]  }
 0x532   : > { %13149 = vmatprep.subr.bf16.mxu0 %v17773_v25  ;;  %v17804_v25 = vld [vmem:[%s24622_s4 + $0x1088] ss:$24 sps:$4 sm:$0xff]  }
 0x533   : > { %12578 = vmatpush1.bf16.msra.mxu1 %v17768_v51  ;;  %v17812_v51 = vld [vmem:[%s24622_s4 + $0x10bc] ss:$24 sps:$4 sm:$0xff]  }
 0x534   : > { %12579 = vmatprep.subr.bf16.mxu1 %v17776_v33  ;;  %v17807_v33 = vld [vmem:[%s24622_s4 + $0xa60] ss:$24 sps:$4 sm:$0xff]  }
 0x535   : > { %13150 = vmatpush1.bf16.msra.mxu0 %v17771_v46  ;;  %v17815_v46 = vld [vmem:[%s24622_s4 + $0xa94] ss:$24 sps:$4 sm:$0xff]  }
 0x536   : > { %13151 = vmatprep.subr.bf16.mxu0 %v17779_v21  ;;  %v17810_v21 = vld [vmem:[%s24622_s4 + $0x10b8] ss:$24 sps:$4 sm:$0xff]  }
 0x537   : > { %12580 = vmatpush1.bf16.msra.mxu1 %v17774_v11  ;;  %v17818_v11 = vld [vmem:[%s24622_s4 + $0x10ec] ss:$24 sps:$4 sm:$0xff]  }
 0x538   : > { %12581 = vmatprep.subr.bf16.mxu1 %v17782_v39  ;;  %v17813_v39 = vld [vmem:[%s24622_s4 + $0xa90] ss:$24 sps:$4 sm:$0xff]  }
 0x539   : > { %13152 = vmatpush1.bf16.msra.mxu0 %v17777_v36  ;;  %v17821_v36 = vld [vmem:[%s24622_s4 + $0xac4] ss:$24 sps:$4 sm:$0xff]  }
 0x53a   : > { %13153 = vmatprep.subr.bf16.mxu0 %v17785_v3  ;;  %v17816_v3 = vld [vmem:[%s24622_s4 + $0x10e8] ss:$24 sps:$4 sm:$0xff]  }
 0x53b   : > { %12582 = vmatpush1.bf16.msra.mxu1 %v17780_v47  ;;  %v17824_v47 = vld [vmem:[%s24622_s4 + $0x111c] ss:$24 sps:$4 sm:$0xff]  }
 0x53c   : > { %12583 = vmatprep.subr.bf16.mxu1 %v17788_v34  ;;  %v17819_v34 = vld [vmem:[%s24622_s4 + $0xac0] ss:$24 sps:$4 sm:$0xff]  }
 0x53d   : > { %13154 = vmatpush1.bf16.msra.mxu0 %v17783_v5  ;;  %v17827_v5 = vld [vmem:[%s24622_s4 + $0xaf4] ss:$24 sps:$4 sm:$0xff]  }
 0x53e   : > { %13155 = vmatprep.subr.bf16.mxu0 %v17791_v7  ;;  %v17830_v7 = vld [vmem:[%s24622_s4 + $0x114c] ss:$24 sps:$4 sm:$0xff]  }
 0x53f   : > { %12584 = vmatpush1.bf16.msra.mxu1 %v17786_v41  ;;  %v17828_v41 = vld [vmem:[%s24622_s4 + $0x1148] ss:$24 sps:$4 sm:$0xff]  }
 0x540   : > { %12585 = vmatprep.subr.bf16.mxu1 %v17794_v42  ;;  %v17836_v42 = vld [vmem:[%s24622_s4 + $0x117c] ss:$24 sps:$4 sm:$0xff]  }
 0x541   : > { %13156 = vmatpush1.bf16.msra.mxu0 %v17789_v45  ;;  %v17831_v45 = vld [vmem:[%s24622_s4 + $0xb20] ss:$24 sps:$4 sm:$0xff]  }
 0x542   : > { %13157 = vmatprep.subr.bf16.mxu0 %v17797_v52  ;;  %v17834_v52 = vld [vmem:[%s24622_s4 + $0x1178] ss:$24 sps:$4 sm:$0xff]  }
 0x543   : > { %v12361_v30 = vpop.f32.mrb[56].mxu0  ;;  %12586 = vmatpush1.bf16.msra.mxu1 %v17792_v26  ;;  %v17837_v26 = vld [vmem:[%s24622_s4 + $0xb50] ss:$24 sps:$4 sm:$0xff]  }
 0x544   : > { %v22148_v28 = vadd.f32 %v16236_v0, %v12361_v30  ;;  %v12363_v29 = vpop.f32.mrb[57].mxu0  ;;  %12587 = vmatprep.subr.bf16.mxu1 %v17800_v35  ;;  %v17845_v35 = vld [vmem:[%s24622_s4 + $0xb84] ss:$24 sps:$4 sm:$0xff]   ;;  %v17846_v30 = vld [vmem:[%s24622_s4 + $0x11d8] ss:$24 sps:$4 sm:$0xff]  }
 0x545   : > { %v22153_v50 = vadd.f32 %v16238_v32, %v12363_v29  ;;  %v12365_v1 = vpop.f32.mrb[58].mxu0  ;;  %13158 = vmatpush1.bf16.msra.mxu0 %v17795_v22  ;;  %v17840_v22 = vld [vmem:[%s24622_s4 + $0x11a8] ss:$24 sps:$4 sm:$0xff]   ;;  %v17848_v0 = vld [vmem:[%s24622_s4 + $0x11dc] ss:$24 sps:$4 sm:$0xff]  }
 0x546   : > { %v12366_v38 = vpop.f32.mrb[59].mxu0  ;;  %13159 = vmatprep.subr.bf16.mxu0 %v17803_v43  ;;  %v17843_v43 = vld [vmem:[%s24622_s4 + $0xb80] ss:$24 sps:$4 sm:$0xff]   ;;  %v17851_v32 = vld [vmem:[%s24622_s4 + $0xbb4] ss:$24 sps:$4 sm:$0xff]  }
 0x547   : > { %12588 = vmatpush1.bf16.msra.mxu1 %v17798_v9  ;;  %v17854_v9 = vld [vmem:[%s24622_s4 + $0x120c] ss:$24 sps:$4 sm:$0xff]   ;;  %v17849_v29 = vld [vmem:[%s24622_s4 + $0xbb0] ss:$24 sps:$4 sm:$0xff]   ;;  %v17855_v38 = vld [vmem:[%s24622_s4 + $0xbe0] ss:$24 sps:$4 sm:$0xff]  }
 0x548   : > { %12589 = vmatprep.subr.bf16.mxu1 %v17806_v54  ;;  %v17857_v54 = vld [vmem:[%s24622_s4 + $0xbe4] ss:$24 sps:$4 sm:$0xff]   ;;  %v17852_v1 = vld [vmem:[%s24622_s4 + $0x1208] ss:$24 sps:$4 sm:$0xff]  }
 0x549   : > { %13160 = vmatpush1.bf16.msra.mxu0 %v17801_v14  ;;  %v17860_v14 = vld [vmem:[%s24622_s4 + $0x123c] ss:$24 sps:$4 sm:$0xff]  }
 0x54a   : > { %13161 = vmatprep.subr.bf16.mxu0 %v17809_v24  ;;  %v17863_v24 = vld [vmem:[%s24622_s4 + $0xc14] ss:$24 sps:$4 sm:$0xff]  }
 0x54b   : > { %12590 = vmatpush1.bf16.msra.mxu1 %v17804_v25  ;;  %v17858_v25 = vld [vmem:[%s24622_s4 + $0x1238] ss:$24 sps:$4 sm:$0xff]  }
 0x54c   : > { %12591 = vmatprep.subr.bf16.mxu1 %v17812_v51  ;;  %v17866_v51 = vld [vmem:[%s24622_s4 + $0x126c] ss:$24 sps:$4 sm:$0xff]  }
 0x54d   : > { %13162 = vmatpush1.bf16.msra.mxu0 %v17807_v33  ;;  %v17861_v33 = vld [vmem:[%s24622_s4 + $0xc10] ss:$24 sps:$4 sm:$0xff]  }
 0x54e   : > { %13163 = vmatprep.subr.bf16.mxu0 %v17815_v46  ;;  %v17869_v46 = vld [vmem:[%s24622_s4 + $0xc44] ss:$24 sps:$4 sm:$0xff]  }
 0x54f   : > { %12592 = vmatpush1.bf16.msra.mxu1 %v17810_v21  ;;  %v17864_v21 = vld [vmem:[%s24622_s4 + $0x1268] ss:$24 sps:$4 sm:$0xff]  }
 0x550   : > { %12593 = vmatprep.subr.bf16.mxu1 %v17818_v11  ;;  %v17872_v11 = vld [vmem:[%s24622_s4 + $0x129c] ss:$24 sps:$4 sm:$0xff]  }
 0x551   : > { %13164 = vmatpush1.bf16.msra.mxu0 %v17813_v39  ;;  %v17867_v39 = vld [vmem:[%s24622_s4 + $0xc40] ss:$24 sps:$4 sm:$0xff]  }
 0x552   : > { %13165 = vmatprep.subr.bf16.mxu0 %v17821_v36  ;;  %v17875_v36 = vld [vmem:[%s24622_s4 + $0xc74] ss:$24 sps:$4 sm:$0xff]  }
 0x553   : > { %12594 = vmatpush1.bf16.msra.mxu1 %v17816_v3  ;;  %v17878_v3 = vld [vmem:[%s24622_s4 + $0x12cc] ss:$24 sps:$4 sm:$0xff]  }
 0x554   : > { %12595 = vmatprep.subr.bf16.mxu1 %v17824_v47  ;;  %v17881_v47 = vld [vmem:[%s24622_s4 + $0xca4] ss:$24 sps:$4 sm:$0xff]  }
 0x555   : > { %13166 = vmatpush1.bf16.msra.mxu0 %v17819_v34  ;;  %v17876_v34 = vld [vmem:[%s24622_s4 + $0x12c8] ss:$24 sps:$4 sm:$0xff]  }
 0x556   : > { %13167 = vmatprep.subr.bf16.mxu0 %v17827_v5  ;;  %v17884_v5 = vld [vmem:[%s24622_s4 + $0x12fc] ss:$24 sps:$4 sm:$0xff]  }
 0x557   : > { %12596 = vmatpush1.bf16.msra.mxu1 %v17822_v53  ;;  %v17879_v53 = vld [vmem:[%s24622_s4 + $0xca0] ss:$24 sps:$4 sm:$0xff]  }
 0x558   : > { %12597 = vmatprep.subr.bf16.mxu1 %v17830_v7  ;;  %v17887_v7 = vld [vmem:[%s24622_s4 + $0xcd4] ss:$24 sps:$4 sm:$0xff]  }
 0x559   : > { %13168 = vmatpush1.bf16.msra.mxu0 %v17825_v37  ;;  %v17882_v37 = vld [vmem:[%s24622_s4 + $0x12f8] ss:$24 sps:$4 sm:$0xff]  }
 0x55a   : > { %13169 = vmatprep.subr.bf16.mxu0 %v17833_v48  ;;  %v17890_v48 = vld [vmem:[%s24622_s4 + $0x132c] ss:$24 sps:$4 sm:$0xff]  }
 0x55b   : > { %12598 = vmatpush1.bf16.msra.mxu1 %v17828_v41  ;;  %v17885_v41 = vld [vmem:[%s24622_s4 + $0xcd0] ss:$24 sps:$4 sm:$0xff]  }
 0x55c   : > { %12599 = vmatprep.subr.bf16.mxu1 %v17836_v42  ;;  %v17893_v42 = vld [vmem:[%s24622_s4 + $0xd04] ss:$24 sps:$4 sm:$0xff]  }
 0x55d   : > { %13170 = vmatpush1.bf16.msra.mxu0 %v17831_v45  ;;  %v17888_v45 = vld [vmem:[%s24622_s4 + $0x1328] ss:$24 sps:$4 sm:$0xff]  }
 0x55e   : > { %13171 = vmatprep.subr.bf16.mxu0 %v17839_v4  ;;  %v17896_v4 = vld [vmem:[%s24622_s4 + $0x135c] ss:$24 sps:$4 sm:$0xff]  }
 0x55f   : > { %12600 = vmatpush1.bf16.msra.mxu1 %v17834_v52  ;;  %v17891_v52 = vld [vmem:[%s24622_s4 + $0xd00] ss:$24 sps:$4 sm:$0xff]  }
 0x560   : > { %12601 = vmatprep.subr.bf16.mxu1 %v17842_v13  ;;  %v17899_v13 = vld [vmem:[%s24622_s4 + $0xd34] ss:$24 sps:$4 sm:$0xff]  }
 0x561   : > { %13172 = vmatpush1.bf16.msra.mxu0 %v17837_v26  ;;  %v17894_v26 = vld [vmem:[%s24622_s4 + $0x1358] ss:$24 sps:$4 sm:$0xff]  }
 0x562   : > { %13173 = vmatprep.subr.bf16.mxu0 %v17845_v35  ;;  %v17902_v35 = vld [vmem:[%s24622_s4 + $0x138c] ss:$24 sps:$4 sm:$0xff]  }
 0x563   : > { %12602 = vmatpush1.bf16.msra.mxu1 %v17840_v22  ;;  %v17897_v22 = vld [vmem:[%s24622_s4 + $0xd30] ss:$24 sps:$4 sm:$0xff]  }
 0x564   : > { %12603 = vmatprep.subr.bf16.mxu1 %v17848_v0  ;;  %v17905_v0 = vld [vmem:[%s24622_s4 + $0xd64] ss:$24 sps:$4 sm:$0xff]  }
 0x565   : > { %13174 = vmatpush1.bf16.msra.mxu0 %v17843_v43  ;;  %v17900_v43 = vld [vmem:[%s24622_s4 + $0x1388] ss:$24 sps:$4 sm:$0xff]  }
 0x566   : > { %13175 = vmatprep.subr.bf16.mxu0 %v17851_v32  ;;  %v17908_v32 = vld [vmem:[%s24622_s4 + $0x13bc] ss:$24 sps:$4 sm:$0xff]  }
 0x567   : > { %12604 = vmatpush1.bf16.msra.mxu1 %v17846_v30  ;;  %v17903_v30 = vld [vmem:[%s24622_s4 + $0xd60] ss:$24 sps:$4 sm:$0xff]  }
 0x568   : > { %12614 = vmatprep.subr.bf16.mxu1 %v17854_v9  ;;  %v17911_v9 = vld [vmem:[%s24622_s4 + $0xd94] ss:$24 sps:$4 sm:$0xff]  }
 0x569   : > { %13176 = vmatpush1.bf16.msra.mxu0 %v17849_v29  ;;  %v17906_v29 = vld [vmem:[%s24622_s4 + $0x13b8] ss:$24 sps:$4 sm:$0xff]  }
 0x56a   : > { %12606 = vmatmul.mubr.bf16.vlgmr.msra.gmra.mrb[76].mxu1 %v20837_v40  ;;  %13177 = vmatprep.subr.bf16.mxu0 %v17857_v54  ;;  %v17914_v54 = vld [vmem:[%s24622_s4 + $0x13ec] ss:$24 sps:$4 sm:$0xff]  }
 0x56b   : > { %12615 = vmatpush1.bf16.msra.mxu1 %v17852_v1  ;;  %12646 = vmatprep.mubr.bf16.mxu1 %v19774_v58  ;;  %v17909_v1 = vld [vmem:[%s24622_s4 + $0xd90] ss:$24 sps:$4 sm:$0xff]  }
 0x56c   : > { %12616 = vmatprep.subr.bf16.mxu1 %v17860_v14  ;;  %v17917_v14 = vld [vmem:[%s24622_s4 + $0xdc4] ss:$24 sps:$4 sm:$0xff]  }
 0x56d   : > { %13178 = vmatpush1.bf16.msra.mxu0 %v17855_v38  ;;  %v17912_v38 = vld [vmem:[%s24622_s4 + $0x13e8] ss:$24 sps:$4 sm:$0xff]  }
 0x56e   : > { %13188 = vmatprep.subr.bf16.mxu0 %v17863_v24  ;;  %v17920_v24 = vld [vmem:[%s24622_s4 + $0x141c] ss:$24 sps:$4 sm:$0xff]  }
 0x56f   : > { %12617 = vmatpush1.bf16.msra.mxu1 %v17858_v25  ;;  %v17915_v25 = vld [vmem:[%s24622_s4 + $0xdc0] ss:$24 sps:$4 sm:$0xff]  }
 0x570   : > { %13180 = vmatmul.mubr.bf16.vlgmr.msra.gmra.mrb[60].mxu0 %v20405_v16  ;;  %12618 = vmatprep.subr.bf16.mxu1 %v17866_v51  ;;  %v17870_v16 = vld [vmem:[%s24622_s4 + $0x1298] ss:$24 sps:$4 sm:$0xff]   ;;  %v17923_v51 = vld [vmem:[%s24622_s4 + $0xdf4] ss:$24 sps:$4 sm:$0xff]  }
 0x571   : > { %13189 = vmatpush1.bf16.msra.mxu0 %v17861_v33  ;;  %13220 = vmatprep.mubr.bf16.mxu0 %v20417_v59  ;;  %v17873_v59 = vld [vmem:[%s24622_s4 + $0xc70] ss:$24 sps:$4 sm:$0xff]  }
 0x572   : > { %13190 = vmatprep.subr.bf16.mxu0 %v17869_v46  ;;  %v17918_v33 = vld [vmem:[%s24622_s4 + $0x1418] ss:$24 sps:$4 sm:$0xff]   ;;  %v17926_v46 = vld [vmem:[%s24622_s4 + $0x144c] ss:$24 sps:$4 sm:$0xff]  }
 0x573   : > { %12619 = vmatpush1.bf16.msra.mxu1 %v17864_v21  ;;  %v17921_v21 = vld [vmem:[%s24622_s4 + $0xdf0] ss:$24 sps:$4 sm:$0xff]  }
 0x574   : > { %12620 = vmatprep.subr.bf16.mxu1 %v17872_v11  ;;  %v17929_v11 = vld [vmem:[%s24622_s4 + $0xe24] ss:$24 sps:$4 sm:$0xff]  }
 0x575   : > { %13191 = vmatpush1.bf16.msra.mxu0 %v17867_v39  ;;  %v17924_v39 = vld [vmem:[%s24622_s4 + $0x1448] ss:$24 sps:$4 sm:$0xff]  }
 0x576   : > { %13192 = vmatprep.subr.bf16.mxu0 %v17875_v36  ;;  %v17932_v36 = vld [vmem:[%s24622_s4 + $0x147c] ss:$24 sps:$4 sm:$0xff]  }
 0x577   : > { %12621 = vmatpush1.bf16.msra.mxu1 %v17870_v16  ;;  %v17927_v16 = vld [vmem:[%s24622_s4 + $0xe20] ss:$24 sps:$4 sm:$0xff]  }
 0x578   : > { %12622 = vmatprep.subr.bf16.mxu1 %v17878_v3  ;;  %v17935_v3 = vld [vmem:[%s24622_s4 + $0xe54] ss:$24 sps:$4 sm:$0xff]  }
 0x579   : > { %13193 = vmatpush1.bf16.msra.mxu0 %v17873_v59  ;;  %v17930_v59 = vld [vmem:[%s24622_s4 + $0x1478] ss:$24 sps:$4 sm:$0xff]  }
 0x57a   : > { %13194 = vmatprep.subr.bf16.mxu0 %v17881_v47  ;;  %v17938_v47 = vld [vmem:[%s24622_s4 + $0x14ac] ss:$24 sps:$4 sm:$0xff]  }
 0x57b   : > { %12623 = vmatpush1.bf16.msra.mxu1 %v17876_v34  ;;  %v17933_v34 = vld [vmem:[%s24622_s4 + $0xe50] ss:$24 sps:$4 sm:$0xff]  }
 0x57c   : > { %12624 = vmatprep.subr.bf16.mxu1 %v17884_v5  ;;  %v17941_v5 = vld [vmem:[%s24622_s4 + $0xe84] ss:$24 sps:$4 sm:$0xff]  }
 0x57d   : > { %13195 = vmatpush1.bf16.msra.mxu0 %v17879_v53  ;;  %v17936_v53 = vld [vmem:[%s24622_s4 + $0x14a8] ss:$24 sps:$4 sm:$0xff]  }
 0x57e   : > { %13196 = vmatprep.subr.bf16.mxu0 %v17887_v7  ;;  %v17944_v7 = vld [vmem:[%s24622_s4 + $0x14dc] ss:$24 sps:$4 sm:$0xff]  }
 0x57f   : > { %12625 = vmatpush1.bf16.msra.mxu1 %v17882_v37  ;;  %v17939_v37 = vld [vmem:[%s24622_s4 + $0xe80] ss:$24 sps:$4 sm:$0xff]  }
 0x580   : > { %12626 = vmatprep.subr.bf16.mxu1 %v17890_v48  ;;  %v17947_v48 = vld [vmem:[%s24622_s4 + $0xeb4] ss:$24 sps:$4 sm:$0xff]  }
 0x581   : > { %13197 = vmatpush1.bf16.msra.mxu0 %v17885_v41  ;;  %v17942_v41 = vld [vmem:[%s24622_s4 + $0x14d8] ss:$24 sps:$4 sm:$0xff]  }
 0x582   : > { %13198 = vmatprep.subr.bf16.mxu0 %v17893_v42  ;;  %v17950_v42 = vld [vmem:[%s24622_s4 + $0x150c] ss:$24 sps:$4 sm:$0xff]  }
 0x583   : > { %12627 = vmatpush1.bf16.msra.mxu1 %v17888_v45  ;;  %v17945_v45 = vld [vmem:[%s24622_s4 + $0xeb0] ss:$24 sps:$4 sm:$0xff]  }
 0x584   : > { %12628 = vmatprep.subr.bf16.mxu1 %v17896_v4  ;;  %v17953_v4 = vld [vmem:[%s24622_s4 + $0xee4] ss:$24 sps:$4 sm:$0xff]  }
 0x585   : > { %13199 = vmatpush1.bf16.msra.mxu0 %v17891_v52  ;;  %v17948_v52 = vld [vmem:[%s24622_s4 + $0x1508] ss:$24 sps:$4 sm:$0xff]  }
 0x586   : > { %13200 = vmatprep.subr.bf16.mxu0 %v17899_v13  ;;  %v17956_v13 = vld [vmem:[%s24622_s4 + $0x153c] ss:$24 sps:$4 sm:$0xff]  }
 0x587   : > { %12629 = vmatpush1.bf16.msra.mxu1 %v17894_v26  ;;  %v17951_v26 = vld [vmem:[%s24622_s4 + $0xee0] ss:$24 sps:$4 sm:$0xff]  }
 0x588   : > { %12630 = vmatprep.subr.bf16.mxu1 %v17902_v35  ;;  %v17959_v35 = vld [vmem:[%s24622_s4 + $0xf14] ss:$24 sps:$4 sm:$0xff]  }
 0x589   : > { %13201 = vmatpush1.bf16.msra.mxu0 %v17897_v22  ;;  %v17954_v22 = vld [vmem:[%s24622_s4 + $0x1538] ss:$24 sps:$4 sm:$0xff]  }
 0x58a   : > { %13202 = vmatprep.subr.bf16.mxu0 %v17905_v0  ;;  %v17962_v0 = vld [vmem:[%s24622_s4 + $0x156c] ss:$24 sps:$4 sm:$0xff]  }
 0x58b   : > { %12631 = vmatpush1.bf16.msra.mxu1 %v17900_v43  ;;  %v17957_v43 = vld [vmem:[%s24622_s4 + $0xf10] ss:$24 sps:$4 sm:$0xff]  }
 0x58c   : > { %12632 = vmatprep.subr.bf16.mxu1 %v17908_v32  ;;  %v17965_v32 = vld [vmem:[%s24622_s4 + $0xf44] ss:$24 sps:$4 sm:$0xff]  }
 0x58d   : > { %13203 = vmatpush1.bf16.msra.mxu0 %v17903_v30  ;;  %v17960_v30 = vld [vmem:[%s24622_s4 + $0x1568] ss:$24 sps:$4 sm:$0xff]  }
 0x58e   : > { %13204 = vmatprep.subr.bf16.mxu0 %v17911_v9  ;;  %v17968_v9 = vld [vmem:[%s24622_s4 + $0x159c] ss:$24 sps:$4 sm:$0xff]  }
 0x58f   : > { %12633 = vmatpush1.bf16.msra.mxu1 %v17906_v29  ;;  %v17963_v29 = vld [vmem:[%s24622_s4 + $0xf40] ss:$24 sps:$4 sm:$0xff]  }
 0x590   : > { %12634 = vmatprep.subr.bf16.mxu1 %v17914_v54  ;;  %v17971_v54 = vld [vmem:[%s24622_s4 + $0xf74] ss:$24 sps:$4 sm:$0xff]  }
 0x591   : > { %13205 = vmatpush1.bf16.msra.mxu0 %v17909_v1  ;;  %v17974_v1 = vld [vmem:[%s24622_s4 + $0x15cc] ss:$24 sps:$4 sm:$0xff]  }
 0x592   : > { %13206 = vmatprep.subr.bf16.mxu0 %v17917_v14  ;;  %v17977_v14 = vld [vmem:[%s24622_s4 + $0xfa4] ss:$24 sps:$4 sm:$0xff]  }
 0x593   : > { %12635 = vmatpush1.bf16.msra.mxu1 %v17912_v38  ;;  %v17972_v38 = vld [vmem:[%s24622_s4 + $0x15c8] ss:$24 sps:$4 sm:$0xff]  }
 0x594   : > { %12636 = vmatprep.subr.bf16.mxu1 %v17920_v24  ;;  %v17980_v24 = vld [vmem:[%s24622_s4 + $0x15fc] ss:$24 sps:$4 sm:$0xff]  }
 0x595   : > { %13207 = vmatpush1.bf16.msra.mxu0 %v17915_v25  ;;  %v17975_v25 = vld [vmem:[%s24622_s4 + $0xfa0] ss:$24 sps:$4 sm:$0xff]  }
 0x596   : > { %13208 = vmatprep.subr.bf16.mxu0 %v17923_v51  ;;  %v17983_v51 = vld [vmem:[%s24622_s4 + $0xfd4] ss:$24 sps:$4 sm:$0xff]  }
 0x597   : > { %12637 = vmatpush1.bf16.msra.mxu1 %v17918_v33  ;;  %v17978_v33 = vld [vmem:[%s24622_s4 + $0x15f8] ss:$24 sps:$4 sm:$0xff]  }
 0x598   : > { %12638 = vmatprep.subr.bf16.mxu1 %v17926_v46  ;;  %v17986_v46 = vld [vmem:[%s24622_s4 + $0x162c] ss:$24 sps:$4 sm:$0xff]  }
 0x599   : > { %13209 = vmatpush1.bf16.msra.mxu0 %v17921_v21  ;;  %v17981_v21 = vld [vmem:[%s24622_s4 + $0xfd0] ss:$24 sps:$4 sm:$0xff]  }
 0x59a   : > { %13210 = vmatprep.subr.bf16.mxu0 %v17929_v11  ;;  %v17989_v11 = vld [vmem:[%s24622_s4 + $0x1004] ss:$24 sps:$4 sm:$0xff]  }
 0x59b   : > { %12639 = vmatpush1.bf16.msra.mxu1 %v17924_v39  ;;  %v17984_v39 = vld [vmem:[%s24622_s4 + $0x1628] ss:$24 sps:$4 sm:$0xff]  }
 0x59c   : > { %12640 = vmatprep.subr.bf16.mxu1 %v17932_v36  ;;  %v17992_v36 = vld [vmem:[%s24622_s4 + $0x165c] ss:$24 sps:$4 sm:$0xff]  }
 0x59d   : > { %13211 = vmatpush1.bf16.msra.mxu0 %v17927_v16  ;;  %v17987_v16 = vld [vmem:[%s24622_s4 + $0x1000] ss:$24 sps:$4 sm:$0xff]  }
 0x59e   : > { %13212 = vmatprep.subr.bf16.mxu0 %v17935_v3  ;;  %v17995_v3 = vld [vmem:[%s24622_s4 + $0x1034] ss:$24 sps:$4 sm:$0xff]  }
 0x59f   : > { %12641 = vmatpush1.bf16.msra.mxu1 %v17930_v59  ;;  %v17990_v59 = vld [vmem:[%s24622_s4 + $0x1658] ss:$24 sps:$4 sm:$0xff]  }
 0x5a0   : > { %12642 = vmatprep.subr.bf16.mxu1 %v17938_v47  ;;  %v17998_v47 = vld [vmem:[%s24622_s4 + $0x168c] ss:$24 sps:$4 sm:$0xff]  }
 0x5a1   : > { %13213 = vmatpush1.bf16.msra.mxu0 %v17933_v34  ;;  %v17993_v34 = vld [vmem:[%s24622_s4 + $0x1030] ss:$24 sps:$4 sm:$0xff]  }
 0x5a2   : > { %13214 = vmatprep.subr.bf16.mxu0 %v17941_v5  ;;  %v18001_v5 = vld [vmem:[%s24622_s4 + $0x1064] ss:$24 sps:$4 sm:$0xff]  }
 0x5a3   : > { %12643 = vmatpush1.bf16.msra.mxu1 %v17936_v53  ;;  %v17996_v53 = vld [vmem:[%s24622_s4 + $0x1688] ss:$24 sps:$4 sm:$0xff]  }
 0x5a4   : > { %12644 = vmatprep.subr.bf16.mxu1 %v17944_v7  ;;  %v18004_v7 = vld [vmem:[%s24622_s4 + $0x16bc] ss:$24 sps:$4 sm:$0xff]  }
 0x5a5   : > { %13215 = vmatpush1.bf16.msra.mxu0 %v17939_v37  ;;  %v17999_v37 = vld [vmem:[%s24622_s4 + $0x1060] ss:$24 sps:$4 sm:$0xff]  }
 0x5a6   : > { %13216 = vmatprep.subr.bf16.mxu0 %v17947_v48  ;;  %v18007_v48 = vld [vmem:[%s24622_s4 + $0x1094] ss:$24 sps:$4 sm:$0xff]  }
 0x5a7   : > { %12645 = vmatpush1.bf16.msra.mxu1 %v17942_v41  ;;  %v18002_v41 = vld [vmem:[%s24622_s4 + $0x16b8] ss:$24 sps:$4 sm:$0xff]  }
 0x5a8   : > { %12655 = vmatprep.subr.bf16.mxu1 %v17950_v42  ;;  %v18010_v42 = vld [vmem:[%s24622_s4 + $0x16ec] ss:$24 sps:$4 sm:$0xff]  }
 0x5a9   : > { %13217 = vmatpush1.bf16.msra.mxu0 %v17945_v45  ;;  %v18005_v45 = vld [vmem:[%s24622_s4 + $0x1090] ss:$24 sps:$4 sm:$0xff]  }
 0x5aa   : > { %12647 = vmatmul.mubr.bf16.vlgmr.msra.gmra.mrb[76].mxu1 %v19771_v55  ;;  %13218 = vmatprep.subr.bf16.mxu0 %v17953_v4  ;;  %v18013_v4 = vld [vmem:[%s24622_s4 + $0x10c4] ss:$24 sps:$4 sm:$0xff]  }
 0x5ab   : > { %12656 = vmatpush1.bf16.msra.mxu1 %v17948_v52  ;;  %12687 = vmatprep.mubr.bf16.mxu1 %v19782_v6  ;;  %v18008_v52 = vld [vmem:[%s24622_s4 + $0x16e8] ss:$24 sps:$4 sm:$0xff]  }
 0x5ac   : > { %12657 = vmatprep.subr.bf16.mxu1 %v17956_v13  ;;  %v18016_v13 = vld [vmem:[%s24622_s4 + $0x171c] ss:$24 sps:$4 sm:$0xff]  }
 0x5ad   : > { %13219 = vmatpush1.bf16.msra.mxu0 %v17951_v26  ;;  %v18011_v26 = vld [vmem:[%s24622_s4 + $0x10c0] ss:$24 sps:$4 sm:$0xff]  }
 0x5ae   : > { %13229 = vmatprep.subr.bf16.mxu0 %v17959_v35  ;;  %v18019_v35 = vld [vmem:[%s24622_s4 + $0x10f4] ss:$24 sps:$4 sm:$0xff]  }
 0x5af   : > { %12658 = vmatpush1.bf16.msra.mxu1 %v17954_v22  ;;  %v18014_v22 = vld [vmem:[%s24622_s4 + $0x1718] ss:$24 sps:$4 sm:$0xff]  }
 0x5b0   : > { %13221 = vmatmul.mubr.bf16.vlgmr.msra.gmra.mrb[60].mxu0 %v20623_v18  ;;  %12659 = vmatprep.subr.bf16.mxu1 %v17962_v0  ;;  %v17966_v18 = vld [vmem:[%s24622_s4 + $0x1598] ss:$24 sps:$4 sm:$0xff]   ;;  %v18022_v0 = vld [vmem:[%s24622_s4 + $0x174c] ss:$24 sps:$4 sm:$0xff]  }
 0x5b1   : > { %13230 = vmatpush1.bf16.msra.mxu0 %v17957_v43  ;;  %13261 = vmatprep.mubr.bf16.mxu0 %v20633_v2  ;;  %v17969_v2 = vld [vmem:[%s24622_s4 + $0xf70] ss:$24 sps:$4 sm:$0xff]  }
 0x5b2   : > { %13231 = vmatprep.subr.bf16.mxu0 %v17965_v32  ;;  %v18017_v43 = vld [vmem:[%s24622_s4 + $0x10f0] ss:$24 sps:$4 sm:$0xff]   ;;  %v18025_v32 = vld [vmem:[%s24622_s4 + $0x1124] ss:$24 sps:$4 sm:$0xff]  }
 0x5b3   : > { %12660 = vmatpush1.bf16.msra.mxu1 %v17960_v30  ;;  %v18020_v30 = vld [vmem:[%s24622_s4 + $0x1748] ss:$24 sps:$4 sm:$0xff]  }
 0x5b4   : > { %12661 = vmatprep.subr.bf16.mxu1 %v17968_v9  ;;  %v18028_v9 = vld [vmem:[%s24622_s4 + $0x177c] ss:$24 sps:$4 sm:$0xff]  }
 0x5b5   : > { %13232 = vmatpush1.bf16.msra.mxu0 %v17963_v29  ;;  %v18023_v29 = vld [vmem:[%s24622_s4 + $0x1120] ss:$24 sps:$4 sm:$0xff]  }
 0x5b6   : > { %13233 = vmatprep.subr.bf16.mxu0 %v17971_v54  ;;  %v18031_v54 = vld [vmem:[%s24622_s4 + $0x1154] ss:$24 sps:$4 sm:$0xff]  }
 0x5b7   : > { %12662 = vmatpush1.bf16.msra.mxu1 %v17966_v18  ;;  %v18026_v18 = vld [vmem:[%s24622_s4 + $0x1778] ss:$24 sps:$4 sm:$0xff]  }
 0x5b8   : > { %12663 = vmatprep.subr.bf16.mxu1 %v17974_v1  ;;  %v18034_v1 = vld [vmem:[%s24622_s4 + $0x17ac] ss:$24 sps:$4 sm:$0xff]  }
 0x5b9   : > { %13234 = vmatpush1.bf16.msra.mxu0 %v17969_v2  ;;  %v18029_v2 = vld [vmem:[%s24622_s4 + $0x1150] ss:$24 sps:$4 sm:$0xff]  }
 0x5ba   : > { %13235 = vmatprep.subr.bf16.mxu0 %v17977_v14  ;;  %v18037_v14 = vld [vmem:[%s24622_s4 + $0x1184] ss:$24 sps:$4 sm:$0xff]  }
 0x5bb   : > { %12664 = vmatpush1.bf16.msra.mxu1 %v17972_v38  ;;  %v18032_v38 = vld [vmem:[%s24622_s4 + $0x17a8] ss:$24 sps:$4 sm:$0xff]  }
 0x5bc   : > { %12665 = vmatprep.subr.bf16.mxu1 %v17980_v24  ;;  %v18040_v24 = vld [vmem:[%s24622_s4 + $0x17dc] ss:$24 sps:$4 sm:$0xff]  }
 0x5bd   : > { %13236 = vmatpush1.bf16.msra.mxu0 %v17975_v25  ;;  %v18035_v25 = vld [vmem:[%s24622_s4 + $0x1180] ss:$24 sps:$4 sm:$0xff]  }
 0x5be   : > { %13237 = vmatprep.subr.bf16.mxu0 %v17983_v51  ;;  %v18043_v51 = vld [vmem:[%s24622_s4 + $0x11b4] ss:$24 sps:$4 sm:$0xff]  }
 0x5bf   : > { %12666 = vmatpush1.bf16.msra.mxu1 %v17978_v33  ;;  %v18038_v33 = vld [vmem:[%s24622_s4 + $0x17d8] ss:$24 sps:$4 sm:$0xff]  }
 0x5c0   : > { %12667 = vmatprep.subr.bf16.mxu1 %v17986_v46  ;;  %v18046_v46 = vld [vmem:[%s24622_s4 + $0x180c] ss:$24 sps:$4 sm:$0xff]  }
 0x5c1   : > { %13238 = vmatpush1.bf16.msra.mxu0 %v17981_v21  ;;  %v18041_v21 = vld [vmem:[%s24622_s4 + $0x11b0] ss:$24 sps:$4 sm:$0xff]  }
 0x5c2   : > { %13239 = vmatprep.subr.bf16.mxu0 %v17989_v11  ;;  %v18049_v11 = vld [vmem:[%s24622_s4 + $0x11e4] ss:$24 sps:$4 sm:$0xff]  }
 0x5c3   : > { %12668 = vmatpush1.bf16.msra.mxu1 %v17984_v39  ;;  %v18044_v39 = vld [vmem:[%s24622_s4 + $0x1808] ss:$24 sps:$4 sm:$0xff]  }
 0x5c4   : > { %12669 = vmatprep.subr.bf16.mxu1 %v17992_v36  ;;  %v18052_v36 = vld [vmem:[%s24622_s4 + $0x183c] ss:$24 sps:$4 sm:$0xff]  }
 0x5c5   : > { %13240 = vmatpush1.bf16.msra.mxu0 %v17987_v16  ;;  %v18047_v16 = vld [vmem:[%s24622_s4 + $0x11e0] ss:$24 sps:$4 sm:$0xff]  }
 0x5c6   : > { %13241 = vmatprep.subr.bf16.mxu0 %v17995_v3  ;;  %v18055_v3 = vld [vmem:[%s24622_s4 + $0x1214] ss:$24 sps:$4 sm:$0xff]  }
 0x5c7   : > { %12670 = vmatpush1.bf16.msra.mxu1 %v17990_v59  ;;  %v18050_v59 = vld [vmem:[%s24622_s4 + $0x1838] ss:$24 sps:$4 sm:$0xff]  }
 0x5c8   : > { %12671 = vmatprep.subr.bf16.mxu1 %v17998_v47  ;;  %v18058_v47 = vld [vmem:[%s24622_s4 + $0x186c] ss:$24 sps:$4 sm:$0xff]  }
 0x5c9   : > { %13242 = vmatpush1.bf16.msra.mxu0 %v17993_v34  ;;  %v18053_v34 = vld [vmem:[%s24622_s4 + $0x1210] ss:$24 sps:$4 sm:$0xff]  }
 0x5ca   : > { %13243 = vmatprep.subr.bf16.mxu0 %v18001_v5  ;;  %v18061_v5 = vld [vmem:[%s24622_s4 + $0x1244] ss:$24 sps:$4 sm:$0xff]  }
 0x5cb   : > { %12672 = vmatpush1.bf16.msra.mxu1 %v17996_v53  ;;  %v18056_v53 = vld [vmem:[%s24622_s4 + $0x1868] ss:$24 sps:$4 sm:$0xff]  }
 0x5cc   : > { %12673 = vmatprep.subr.bf16.mxu1 %v18004_v7  ;;  %v18064_v7 = vld [vmem:[%s24622_s4 + $0x189c] ss:$24 sps:$4 sm:$0xff]  }
 0x5cd   : > { %13244 = vmatpush1.bf16.msra.mxu0 %v17999_v37  ;;  %v18059_v37 = vld [vmem:[%s24622_s4 + $0x1240] ss:$24 sps:$4 sm:$0xff]  }
 0x5ce   : > { %13245 = vmatprep.subr.bf16.mxu0 %v18007_v48  ;;  %v18067_v48 = vld [vmem:[%s24622_s4 + $0x1274] ss:$24 sps:$4 sm:$0xff]  }
 0x5cf   : > { %12674 = vmatpush1.bf16.msra.mxu1 %v18002_v41  ;;  %v18070_v41 = vld [vmem:[%s24622_s4 + $0x18cc] ss:$24 sps:$4 sm:$0xff]  }
 0x5d0   : > { %12675 = vmatprep.subr.bf16.mxu1 %v18010_v42  ;;  %v18073_v42 = vld [vmem:[%s24622_s4 + $0x12a4] ss:$24 sps:$4 sm:$0xff]  }
 0x5d1   : > { %13246 = vmatpush1.bf16.msra.mxu0 %v18005_v45  ;;  %v18068_v45 = vld [vmem:[%s24622_s4 + $0x18c8] ss:$24 sps:$4 sm:$0xff]  }
 0x5d2   : > { %13247 = vmatprep.subr.bf16.mxu0 %v18013_v4  ;;  %v18076_v4 = vld [vmem:[%s24622_s4 + $0x18fc] ss:$24 sps:$4 sm:$0xff]  }
 0x5d3   : > { %12676 = vmatpush1.bf16.msra.mxu1 %v18008_v52  ;;  %v18071_v52 = vld [vmem:[%s24622_s4 + $0x12a0] ss:$24 sps:$4 sm:$0xff]  }
 0x5d4   : > { %12677 = vmatprep.subr.bf16.mxu1 %v18016_v13  ;;  %v18079_v13 = vld [vmem:[%s24622_s4 + $0x12d4] ss:$24 sps:$4 sm:$0xff]  }
 0x5d5   : > { %13248 = vmatpush1.bf16.msra.mxu0 %v18011_v26  ;;  %v18074_v26 = vld [vmem:[%s24622_s4 + $0x18f8] ss:$24 sps:$4 sm:$0xff]  }
 0x5d6   : > { %13249 = vmatprep.subr.bf16.mxu0 %v18019_v35  ;;  %v18082_v35 = vld [vmem:[%s24622_s4 + $0x192c] ss:$24 sps:$4 sm:$0xff]  }
 0x5d7   : > { %12678 = vmatpush1.bf16.msra.mxu1 %v18014_v22  ;;  %v18077_v22 = vld [vmem:[%s24622_s4 + $0x12d0] ss:$24 sps:$4 sm:$0xff]  }
 0x5d8   : > { %12679 = vmatprep.subr.bf16.mxu1 %v18022_v0  ;;  %v18085_v0 = vld [vmem:[%s24622_s4 + $0x1304] ss:$24 sps:$4 sm:$0xff]  }
 0x5d9   : > { %13250 = vmatpush1.bf16.msra.mxu0 %v18017_v43  ;;  %v18080_v43 = vld [vmem:[%s24622_s4 + $0x1928] ss:$24 sps:$4 sm:$0xff]  }
 0x5da   : > { %13251 = vmatprep.subr.bf16.mxu0 %v18025_v32  ;;  %v18088_v32 = vld [vmem:[%s24622_s4 + $0x195c] ss:$24 sps:$4 sm:$0xff]  }
 0x5db   : > { %12680 = vmatpush1.bf16.msra.mxu1 %v18020_v30  ;;  %v18083_v30 = vld [vmem:[%s24622_s4 + $0x1300] ss:$24 sps:$4 sm:$0xff]  }
 0x5dc   : > { %12681 = vmatprep.subr.bf16.mxu1 %v18028_v9  ;;  %v18091_v9 = vld [vmem:[%s24622_s4 + $0x1334] ss:$24 sps:$4 sm:$0xff]  }
 0x5dd   : > { %13252 = vmatpush1.bf16.msra.mxu0 %v18023_v29  ;;  %v18086_v29 = vld [vmem:[%s24622_s4 + $0x1958] ss:$24 sps:$4 sm:$0xff]  }
 0x5de   : > { %13253 = vmatprep.subr.bf16.mxu0 %v18031_v54  ;;  %v18094_v54 = vld [vmem:[%s24622_s4 + $0x198c] ss:$24 sps:$4 sm:$0xff]  }
 0x5df   : > { %12682 = vmatpush1.bf16.msra.mxu1 %v18026_v18  ;;  %v18089_v18 = vld [vmem:[%s24622_s4 + $0x1330] ss:$24 sps:$4 sm:$0xff]  }
 0x5e0   : > { %12683 = vmatprep.subr.bf16.mxu1 %v18034_v1  ;;  %v18097_v1 = vld [vmem:[%s24622_s4 + $0x1364] ss:$24 sps:$4 sm:$0xff]  }
 0x5e1   : > { %13254 = vmatpush1.bf16.msra.mxu0 %v18029_v2  ;;  %v18092_v2 = vld [vmem:[%s24622_s4 + $0x1988] ss:$24 sps:$4 sm:$0xff]  }
 0x5e2   : > { %13255 = vmatprep.subr.bf16.mxu0 %v18037_v14  ;;  %v18100_v14 = vld [vmem:[%s24622_s4 + $0x19bc] ss:$24 sps:$4 sm:$0xff]  }
 0x5e3   : > { %12684 = vmatpush1.bf16.msra.mxu1 %v18032_v38  ;;  %v18095_v38 = vld [vmem:[%s24622_s4 + $0x1360] ss:$24 sps:$4 sm:$0xff]  }
 0x5e4   : > { %12685 = vmatprep.subr.bf16.mxu1 %v18040_v24  ;;  %v18103_v24 = vld [vmem:[%s24622_s4 + $0x1394] ss:$24 sps:$4 sm:$0xff]  }
 0x5e5   : > { %13256 = vmatpush1.bf16.msra.mxu0 %v18035_v25  ;;  %v18098_v25 = vld [vmem:[%s24622_s4 + $0x19b8] ss:$24 sps:$4 sm:$0xff]  }
 0x5e6   : > { %13257 = vmatprep.subr.bf16.mxu0 %v18043_v51  ;;  %v18106_v51 = vld [vmem:[%s24622_s4 + $0x19ec] ss:$24 sps:$4 sm:$0xff]  }
 0x5e7   : > { %12686 = vmatpush1.bf16.msra.mxu1 %v18038_v33  ;;  %v18101_v33 = vld [vmem:[%s24622_s4 + $0x1390] ss:$24 sps:$4 sm:$0xff]  }
 0x5e8   : > { %12696 = vmatprep.subr.bf16.mxu1 %v18046_v46  ;;  %v18109_v46 = vld [vmem:[%s24622_s4 + $0x13c4] ss:$24 sps:$4 sm:$0xff]  }
 0x5e9   : > { %13258 = vmatpush1.bf16.msra.mxu0 %v18041_v21  ;;  %v18104_v21 = vld [vmem:[%s24622_s4 + $0x19e8] ss:$24 sps:$4 sm:$0xff]  }
 0x5ea   : > { %12688 = vmatmul.mubr.bf16.vlgmr.msra.gmra.mrb[76].mxu1 %v19789_v10  ;;  %13259 = vmatprep.subr.bf16.mxu0 %v18049_v11  ;;  %v18112_v11 = vld [vmem:[%s24622_s4 + $0x1a1c] ss:$24 sps:$4 sm:$0xff]  }
 0x5eb   : > { %12697 = vmatpush1.bf16.msra.mxu1 %v18044_v39  ;;  %12728 = vmatprep.mubr.bf16.mxu1 %v19796_v12  ;;  %v18107_v39 = vld [vmem:[%s24622_s4 + $0x13c0] ss:$24 sps:$4 sm:$0xff]  }
 0x5ec   : > { %12698 = vmatprep.subr.bf16.mxu1 %v18052_v36  ;;  %v18115_v36 = vld [vmem:[%s24622_s4 + $0x13f4] ss:$24 sps:$4 sm:$0xff]  }
 0x5ed   : > { %13260 = vmatpush1.bf16.msra.mxu0 %v18047_v16  ;;  %v18110_v16 = vld [vmem:[%s24622_s4 + $0x1a18] ss:$24 sps:$4 sm:$0xff]  }
 0x5ee   : > { %13270 = vmatprep.subr.bf16.mxu0 %v18055_v3  ;;  %v18118_v3 = vld [vmem:[%s24622_s4 + $0x1a4c] ss:$24 sps:$4 sm:$0xff]  }
 0x5ef   : > { %12699 = vmatpush1.bf16.msra.mxu1 %v18050_v59  ;;  %v18113_v59 = vld [vmem:[%s24622_s4 + $0x13f0] ss:$24 sps:$4 sm:$0xff]  }
 0x5f0   : > { %13262 = vmatmul.mubr.bf16.vlgmr.msra.gmra.mrb[60].mxu0 %v20837_v40  ;;  %12700 = vmatprep.subr.bf16.mxu1 %v18058_v47  ;;  %v18062_v40 = vld [vmem:[%s24622_s4 + $0x1898] ss:$24 sps:$4 sm:$0xff]   ;;  %v18121_v47 = vld [vmem:[%s24622_s4 + $0x1424] ss:$24 sps:$4 sm:$0xff]  }
 0x5f1   : > { %13271 = vmatpush1.bf16.msra.mxu0 %v18053_v34  ;;  %13302 = vmatprep.mubr.bf16.mxu0 %v19774_v58  ;;  %v18065_v58 = vld [vmem:[%s24622_s4 + $0x1270] ss:$24 sps:$4 sm:$0xff]  }
 0x5f2   : > { %13272 = vmatprep.subr.bf16.mxu0 %v18061_v5  ;;  %v18116_v34 = vld [vmem:[%s24622_s4 + $0x1a48] ss:$24 sps:$4 sm:$0xff]   ;;  %v18124_v5 = vld [vmem:[%s24622_s4 + $0x1a7c] ss:$24 sps:$4 sm:$0xff]  }
 0x5f3   : > { %12701 = vmatpush1.bf16.msra.mxu1 %v18056_v53  ;;  %v18119_v53 = vld [vmem:[%s24622_s4 + $0x1420] ss:$24 sps:$4 sm:$0xff]  }
 0x5f4   : > { %12702 = vmatprep.subr.bf16.mxu1 %v18064_v7  ;;  %v18127_v7 = vld [vmem:[%s24622_s4 + $0x1454] ss:$24 sps:$4 sm:$0xff]  }
 0x5f5   : > { %13273 = vmatpush1.bf16.msra.mxu0 %v18059_v37  ;;  %v18122_v37 = vld [vmem:[%s24622_s4 + $0x1a78] ss:$24 sps:$4 sm:$0xff]  }
 0x5f6   : > { %13274 = vmatprep.subr.bf16.mxu0 %v18067_v48  ;;  %v18130_v48 = vld [vmem:[%s24622_s4 + $0x1aac] ss:$24 sps:$4 sm:$0xff]  }
 0x5f7   : > { %12703 = vmatpush1.bf16.msra.mxu1 %v18062_v40  ;;  %v18125_v40 = vld [vmem:[%s24622_s4 + $0x1450] ss:$24 sps:$4 sm:$0xff]  }
 0x5f8   : > { %12704 = vmatprep.subr.bf16.mxu1 %v18070_v41  ;;  %v18133_v41 = vld [vmem:[%s24622_s4 + $0x1484] ss:$24 sps:$4 sm:$0xff]  }
 0x5f9   : > { %13275 = vmatpush1.bf16.msra.mxu0 %v18065_v58  ;;  %v18128_v58 = vld [vmem:[%s24622_s4 + $0x1aa8] ss:$24 sps:$4 sm:$0xff]  }
 0x5fa   : > { %13276 = vmatprep.subr.bf16.mxu0 %v18073_v42  ;;  %v18136_v42 = vld [vmem:[%s24622_s4 + $0x1adc] ss:$24 sps:$4 sm:$0xff]  }
 0x5fb   : > { %12705 = vmatpush1.bf16.msra.mxu1 %v18068_v45  ;;  %v18131_v45 = vld [vmem:[%s24622_s4 + $0x1480] ss:$24 sps:$4 sm:$0xff]  }
 0x5fc   : > { %12706 = vmatprep.subr.bf16.mxu1 %v18076_v4  ;;  %v18139_v4 = vld [vmem:[%s24622_s4 + $0x14b4] ss:$24 sps:$4 sm:$0xff]  }
 0x5fd   : > { %13277 = vmatpush1.bf16.msra.mxu0 %v18071_v52  ;;  %v18134_v52 = vld [vmem:[%s24622_s4 + $0x1ad8] ss:$24 sps:$4 sm:$0xff]  }
 0x5fe   : > { %13278 = vmatprep.subr.bf16.mxu0 %v18079_v13  ;;  %v18142_v13 = vld [vmem:[%s24622_s4 + $0x1b0c] ss:$24 sps:$4 sm:$0xff]  }
 0x5ff   : > { %12707 = vmatpush1.bf16.msra.mxu1 %v18074_v26  ;;  %v18137_v26 = vld [vmem:[%s24622_s4 + $0x14b0] ss:$24 sps:$4 sm:$0xff]  }
 0x600   : > { %12708 = vmatprep.subr.bf16.mxu1 %v18082_v35  ;;  %v18145_v35 = vld [vmem:[%s24622_s4 + $0x14e4] ss:$24 sps:$4 sm:$0xff]  }
 0x601   : > { %13279 = vmatpush1.bf16.msra.mxu0 %v18077_v22  ;;  %v18140_v22 = vld [vmem:[%s24622_s4 + $0x1b08] ss:$24 sps:$4 sm:$0xff]  }
 0x602   : > { %13280 = vmatprep.subr.bf16.mxu0 %v18085_v0  ;;  %v18148_v0 = vld [vmem:[%s24622_s4 + $0x1b3c] ss:$24 sps:$4 sm:$0xff]  }
 0x603   : > { %12709 = vmatpush1.bf16.msra.mxu1 %v18080_v43  ;;  %v18143_v43 = vld [vmem:[%s24622_s4 + $0x14e0] ss:$24 sps:$4 sm:$0xff]  }
 0x604   : > { %12710 = vmatprep.subr.bf16.mxu1 %v18088_v32  ;;  %v18151_v32 = vld [vmem:[%s24622_s4 + $0x1514] ss:$24 sps:$4 sm:$0xff]  }
 0x605   : > { %13281 = vmatpush1.bf16.msra.mxu0 %v18083_v30  ;;  %v18146_v30 = vld [vmem:[%s24622_s4 + $0x1b38] ss:$24 sps:$4 sm:$0xff]  }
 0x606   : > { %13282 = vmatprep.subr.bf16.mxu0 %v18091_v9  ;;  %v18154_v9 = vld [vmem:[%s24622_s4 + $0x1b6c] ss:$24 sps:$4 sm:$0xff]  }
 0x607   : > { %12711 = vmatpush1.bf16.msra.mxu1 %v18086_v29  ;;  %v18149_v29 = vld [vmem:[%s24622_s4 + $0x1510] ss:$24 sps:$4 sm:$0xff]  }
 0x608   : > { %12712 = vmatprep.subr.bf16.mxu1 %v18094_v54  ;;  %v18157_v54 = vld [vmem:[%s24622_s4 + $0x1544] ss:$24 sps:$4 sm:$0xff]  }
 0x609   : > { %13283 = vmatpush1.bf16.msra.mxu0 %v18089_v18  ;;  %v18152_v18 = vld [vmem:[%s24622_s4 + $0x1b68] ss:$24 sps:$4 sm:$0xff]  }
 0x60a   : > { %13284 = vmatprep.subr.bf16.mxu0 %v18097_v1  ;;  %v18160_v1 = vld [vmem:[%s24622_s4 + $0x1b9c] ss:$24 sps:$4 sm:$0xff]  }
 0x60b   : > { %12713 = vmatpush1.bf16.msra.mxu1 %v18092_v2  ;;  %v18155_v2 = vld [vmem:[%s24622_s4 + $0x1540] ss:$24 sps:$4 sm:$0xff]  }
 0x60c   : > { %12714 = vmatprep.subr.bf16.mxu1 %v18100_v14  ;;  %v18163_v14 = vld [vmem:[%s24622_s4 + $0x1574] ss:$24 sps:$4 sm:$0xff]  }
 0x60d   : > { %13285 = vmatpush1.bf16.msra.mxu0 %v18095_v38  ;;  %v18166_v38 = vld [vmem:[%s24622_s4 + $0x1bcc] ss:$24 sps:$4 sm:$0xff]  }
 0x60e   : > { %13286 = vmatprep.subr.bf16.mxu0 %v18103_v24  ;;  %v18169_v24 = vld [vmem:[%s24622_s4 + $0x15a4] ss:$24 sps:$4 sm:$0xff]  }
 0x60f   : > { %12715 = vmatpush1.bf16.msra.mxu1 %v18098_v25  ;;  %v18164_v25 = vld [vmem:[%s24622_s4 + $0x1bc8] ss:$24 sps:$4 sm:$0xff]  }
 0x610   : > { %12716 = vmatprep.subr.bf16.mxu1 %v18106_v51  ;;  %v18172_v51 = vld [vmem:[%s24622_s4 + $0x1bfc] ss:$24 sps:$4 sm:$0xff]  }
 0x611   : > { %13287 = vmatpush1.bf16.msra.mxu0 %v18101_v33  ;;  %v18167_v33 = vld [vmem:[%s24622_s4 + $0x15a0] ss:$24 sps:$4 sm:$0xff]  }
 0x612   : > { %13288 = vmatprep.subr.bf16.mxu0 %v18109_v46  ;;  %v18175_v46 = vld [vmem:[%s24622_s4 + $0x15d4] ss:$24 sps:$4 sm:$0xff]  }
 0x613   : > { %12717 = vmatpush1.bf16.msra.mxu1 %v18104_v21  ;;  %v18170_v21 = vld [vmem:[%s24622_s4 + $0x1bf8] ss:$24 sps:$4 sm:$0xff]  }
 0x614   : > { %12718 = vmatprep.subr.bf16.mxu1 %v18112_v11  ;;  %v18178_v11 = vld [vmem:[%s24622_s4 + $0x1c2c] ss:$24 sps:$4 sm:$0xff]  }
 0x615   : > { %13289 = vmatpush1.bf16.msra.mxu0 %v18107_v39  ;;  %v18173_v39 = vld [vmem:[%s24622_s4 + $0x15d0] ss:$24 sps:$4 sm:$0xff]  }
 0x616   : > { %13290 = vmatprep.subr.bf16.mxu0 %v18115_v36  ;;  %v18181_v36 = vld [vmem:[%s24622_s4 + $0x1604] ss:$24 sps:$4 sm:$0xff]  }
 0x617   : > { %12719 = vmatpush1.bf16.msra.mxu1 %v18110_v16  ;;  %v18176_v16 = vld [vmem:[%s24622_s4 + $0x1c28] ss:$24 sps:$4 sm:$0xff]  }
 0x618   : > { %12720 = vmatprep.subr.bf16.mxu1 %v18118_v3  ;;  %v18184_v3 = vld [vmem:[%s24622_s4 + $0x1c5c] ss:$24 sps:$4 sm:$0xff]  }
 0x619   : > { %13291 = vmatpush1.bf16.msra.mxu0 %v18113_v59  ;;  %v18179_v59 = vld [vmem:[%s24622_s4 + $0x1600] ss:$24 sps:$4 sm:$0xff]  }
 0x61a   : > { %13292 = vmatprep.subr.bf16.mxu0 %v18121_v47  ;;  %v18187_v47 = vld [vmem:[%s24622_s4 + $0x1634] ss:$24 sps:$4 sm:$0xff]  }
 0x61b   : > { %12721 = vmatpush1.bf16.msra.mxu1 %v18116_v34  ;;  %v18182_v34 = vld [vmem:[%s24622_s4 + $0x1c58] ss:$24 sps:$4 sm:$0xff]  }
 0x61c   : > { %12722 = vmatprep.subr.bf16.mxu1 %v18124_v5  ;;  %v18190_v5 = vld [vmem:[%s24622_s4 + $0x1c8c] ss:$24 sps:$4 sm:$0xff]  }
 0x61d   : > { %13293 = vmatpush1.bf16.msra.mxu0 %v18119_v53  ;;  %v18185_v53 = vld [vmem:[%s24622_s4 + $0x1630] ss:$24 sps:$4 sm:$0xff]  }
 0x61e   : > { %13294 = vmatprep.subr.bf16.mxu0 %v18127_v7  ;;  %v18193_v7 = vld [vmem:[%s24622_s4 + $0x1664] ss:$24 sps:$4 sm:$0xff]  }
 0x61f   : > { %12723 = vmatpush1.bf16.msra.mxu1 %v18122_v37  ;;  %v18188_v37 = vld [vmem:[%s24622_s4 + $0x1c88] ss:$24 sps:$4 sm:$0xff]  }
 0x620   : > { %12724 = vmatprep.subr.bf16.mxu1 %v18130_v48  ;;  %v18196_v48 = vld [vmem:[%s24622_s4 + $0x1cbc] ss:$24 sps:$4 sm:$0xff]  }
 0x621   : > { %13295 = vmatpush1.bf16.msra.mxu0 %v18125_v40  ;;  %v18191_v40 = vld [vmem:[%s24622_s4 + $0x1660] ss:$24 sps:$4 sm:$0xff]  }
 0x622   : > { %13296 = vmatprep.subr.bf16.mxu0 %v18133_v41  ;;  %v18199_v41 = vld [vmem:[%s24622_s4 + $0x1694] ss:$24 sps:$4 sm:$0xff]  }
 0x623   : > { %12725 = vmatpush1.bf16.msra.mxu1 %v18128_v58  ;;  %v18194_v58 = vld [vmem:[%s24622_s4 + $0x1cb8] ss:$24 sps:$4 sm:$0xff]  }
 0x624   : > { %12726 = vmatprep.subr.bf16.mxu1 %v18136_v42  ;;  %v18202_v42 = vld [vmem:[%s24622_s4 + $0x1cec] ss:$24 sps:$4 sm:$0xff]  }
 0x625   : > { %13297 = vmatpush1.bf16.msra.mxu0 %v18131_v45  ;;  %v18197_v45 = vld [vmem:[%s24622_s4 + $0x1690] ss:$24 sps:$4 sm:$0xff]  }
 0x626   : > { %13298 = vmatprep.subr.bf16.mxu0 %v18139_v4  ;;  %v18205_v4 = vld [vmem:[%s24622_s4 + $0x16c4] ss:$24 sps:$4 sm:$0xff]  }
 0x627   : > { %12727 = vmatpush1.bf16.msra.mxu1 %v18134_v52  ;;  %v18200_v52 = vld [vmem:[%s24622_s4 + $0x1ce8] ss:$24 sps:$4 sm:$0xff]  }
 0x628   : > { %12737 = vmatprep.subr.bf16.mxu1 %v18142_v13  ;;  %v18208_v13 = vld [vmem:[%s24622_s4 + $0x1d1c] ss:$24 sps:$4 sm:$0xff]  }
 0x629   : > { %13299 = vmatpush1.bf16.msra.mxu0 %v18137_v26  ;;  %v18203_v26 = vld [vmem:[%s24622_s4 + $0x16c0] ss:$24 sps:$4 sm:$0xff]  }
 0x62a   : > { %12729 = vmatmul.mubr.bf16.vlgmr.msra.gmra.mrb[76].mxu1 %v20011_v60  ;;  %13300 = vmatprep.subr.bf16.mxu0 %v18145_v35  ;;  %v18211_v35 = vld [vmem:[%s24622_s4 + $0x16f4] ss:$24 sps:$4 sm:$0xff]  }
 0x62b   : > { %12738 = vmatpush1.bf16.msra.mxu1 %v18140_v22  ;;  %12769 = vmatprep.mubr.bf16.mxu1 %v20015_v17  ;;  %v18206_v22 = vld [vmem:[%s24622_s4 + $0x1d18] ss:$24 sps:$4 sm:$0xff]  }
 0x62c   : > { %12739 = vmatprep.subr.bf16.mxu1 %v18148_v0  ;;  %v18214_v0 = vld [vmem:[%s24622_s4 + $0x1d4c] ss:$24 sps:$4 sm:$0xff]  }
 0x62d   : > { %13301 = vmatpush1.bf16.msra.mxu0 %v18143_v43  ;;  %v18209_v43 = vld [vmem:[%s24622_s4 + $0x16f0] ss:$24 sps:$4 sm:$0xff]  }
 0x62e   : > { %13311 = vmatprep.subr.bf16.mxu0 %v18151_v32  ;;  %v18217_v32 = vld [vmem:[%s24622_s4 + $0x1724] ss:$24 sps:$4 sm:$0xff]  }
 0x62f   : > { %12740 = vmatpush1.bf16.msra.mxu1 %v18146_v30  ;;  %v18212_v30 = vld [vmem:[%s24622_s4 + $0x1d48] ss:$24 sps:$4 sm:$0xff]  }
 0x630   : > { %13303 = vmatmul.mubr.bf16.vlgmr.msra.gmra.mrb[60].mxu0 %v19771_v55  ;;  %12741 = vmatprep.subr.bf16.mxu1 %v18154_v9  ;;  %v18158_v55 = vld [vmem:[%s24622_s4 + $0x1b98] ss:$24 sps:$4 sm:$0xff]   ;;  %v18220_v9 = vld [vmem:[%s24622_s4 + $0x1d7c] ss:$24 sps:$4 sm:$0xff]  }
 0x631   : > { %13312 = vmatpush1.bf16.msra.mxu0 %v18149_v29  ;;  %13343 = vmatprep.mubr.bf16.mxu0 %v19782_v6  ;;  %v18161_v6 = vld [vmem:[%s24622_s4 + $0x1570] ss:$24 sps:$4 sm:$0xff]   ;;  %v18215_v29 = vld [vmem:[%s24622_s4 + $0x1720] ss:$24 sps:$4 sm:$0xff]  }
 0x632   : > { %13313 = vmatprep.subr.bf16.mxu0 %v18157_v54  ;;  %v18223_v54 = vld [vmem:[%s24622_s4 + $0x1754] ss:$24 sps:$4 sm:$0xff]  }
 0x633   : > { %12742 = vmatpush1.bf16.msra.mxu1 %v18152_v18  ;;  %v18218_v18 = vld [vmem:[%s24622_s4 + $0x1d78] ss:$24 sps:$4 sm:$0xff]  }
 0x634   : > { %12743 = vmatprep.subr.bf16.mxu1 %v18160_v1  ;;  %v18226_v1 = vld [vmem:[%s24622_s4 + $0x1dac] ss:$24 sps:$4 sm:$0xff]  }
 0x635   : > { %13314 = vmatpush1.bf16.msra.mxu0 %v18155_v2  ;;  %v18221_v2 = vld [vmem:[%s24622_s4 + $0x1750] ss:$24 sps:$4 sm:$0xff]  }
 0x636   : > { %13315 = vmatprep.subr.bf16.mxu0 %v18163_v14  ;;  %v18229_v14 = vld [vmem:[%s24622_s4 + $0x1784] ss:$24 sps:$4 sm:$0xff]  }
 0x637   : > { %12744 = vmatpush1.bf16.msra.mxu1 %v18158_v55  ;;  %v18224_v55 = vld [vmem:[%s24622_s4 + $0x1da8] ss:$24 sps:$4 sm:$0xff]  }
 0x638   : > { %12745 = vmatprep.subr.bf16.mxu1 %v18166_v38  ;;  %v18232_v38 = vld [vmem:[%s24622_s4 + $0x1ddc] ss:$24 sps:$4 sm:$0xff]  }
 0x639   : > { %13316 = vmatpush1.bf16.msra.mxu0 %v18161_v6  ;;  %v18227_v6 = vld [vmem:[%s24622_s4 + $0x1780] ss:$24 sps:$4 sm:$0xff]  }
 0x63a   : > { %13317 = vmatprep.subr.bf16.mxu0 %v18169_v24  ;;  %v18235_v24 = vld [vmem:[%s24622_s4 + $0x17b4] ss:$24 sps:$4 sm:$0xff]  }
 0x63b   : > { %12746 = vmatpush1.bf16.msra.mxu1 %v18164_v25  ;;  %v18230_v25 = vld [vmem:[%s24622_s4 + $0x1dd8] ss:$24 sps:$4 sm:$0xff]  }
 0x63c   : > { %12747 = vmatprep.subr.bf16.mxu1 %v18172_v51  ;;  %v18238_v51 = vld [vmem:[%s24622_s4 + $0x1e0c] ss:$24 sps:$4 sm:$0xff]  }
 0x63d   : > { %13318 = vmatpush1.bf16.msra.mxu0 %v18167_v33  ;;  %v18233_v33 = vld [vmem:[%s24622_s4 + $0x17b0] ss:$24 sps:$4 sm:$0xff]  }
 0x63e   : > { %13319 = vmatprep.subr.bf16.mxu0 %v18175_v46  ;;  %v18241_v46 = vld [vmem:[%s24622_s4 + $0x17e4] ss:$24 sps:$4 sm:$0xff]  }
 0x63f   : > { %12748 = vmatpush1.bf16.msra.mxu1 %v18170_v21  ;;  %v18236_v21 = vld [vmem:[%s24622_s4 + $0x1e08] ss:$24 sps:$4 sm:$0xff]  }
 0x640   : > { %12749 = vmatprep.subr.bf16.mxu1 %v18178_v11  ;;  %v18244_v11 = vld [vmem:[%s24622_s4 + $0x1e3c] ss:$24 sps:$4 sm:$0xff]  }
 0x641   : > { %13320 = vmatpush1.bf16.msra.mxu0 %v18173_v39  ;;  %v18239_v39 = vld [vmem:[%s24622_s4 + $0x17e0] ss:$24 sps:$4 sm:$0xff]  }
 0x642   : > { %13321 = vmatprep.subr.bf16.mxu0 %v18181_v36  ;;  %v18247_v36 = vld [vmem:[%s24622_s4 + $0x1814] ss:$24 sps:$4 sm:$0xff]  }
 0x643   : > { %12750 = vmatpush1.bf16.msra.mxu1 %v18176_v16  ;;  %v18242_v16 = vld [vmem:[%s24622_s4 + $0x1e38] ss:$24 sps:$4 sm:$0xff]  }
 0x644   : > { %12751 = vmatprep.subr.bf16.mxu1 %v18184_v3  ;;  %v18250_v3 = vld [vmem:[%s24622_s4 + $0x1e6c] ss:$24 sps:$4 sm:$0xff]  }
 0x645   : > { %13322 = vmatpush1.bf16.msra.mxu0 %v18179_v59  ;;  %v18245_v59 = vld [vmem:[%s24622_s4 + $0x1810] ss:$24 sps:$4 sm:$0xff]  }
 0x646   : > { %13323 = vmatprep.subr.bf16.mxu0 %v18187_v47  ;;  %v18253_v47 = vld [vmem:[%s24622_s4 + $0x1844] ss:$24 sps:$4 sm:$0xff]  }
 0x647   : > { %12752 = vmatpush1.bf16.msra.mxu1 %v18182_v34  ;;  %v18248_v34 = vld [vmem:[%s24622_s4 + $0x1e68] ss:$24 sps:$4 sm:$0xff]  }
 0x648   : > { %12753 = vmatprep.subr.bf16.mxu1 %v18190_v5  ;;  %v18256_v5 = vld [vmem:[%s24622_s4 + $0x1e9c] ss:$24 sps:$4 sm:$0xff]  }
 0x649   : > { %13324 = vmatpush1.bf16.msra.mxu0 %v18185_v53  ;;  %v18251_v53 = vld [vmem:[%s24622_s4 + $0x1840] ss:$24 sps:$4 sm:$0xff]  }
 0x64a   : > { %13325 = vmatprep.subr.bf16.mxu0 %v18193_v7  ;;  %v18259_v7 = vld [vmem:[%s24622_s4 + $0x1874] ss:$24 sps:$4 sm:$0xff]  }
 0x64b   : > { %12754 = vmatpush1.bf16.msra.mxu1 %v18188_v37  ;;  %v18262_v37 = vld [vmem:[%s24622_s4 + $0x1ecc] ss:$24 sps:$4 sm:$0xff]  }
 0x64c   : > { %12755 = vmatprep.subr.bf16.mxu1 %v18196_v48  ;;  %v18265_v48 = vld [vmem:[%s24622_s4 + $0x18a4] ss:$24 sps:$4 sm:$0xff]  }
 0x64d   : > { %13326 = vmatpush1.bf16.msra.mxu0 %v18191_v40  ;;  %v18260_v40 = vld [vmem:[%s24622_s4 + $0x1ec8] ss:$24 sps:$4 sm:$0xff]  }
 0x64e   : > { %13327 = vmatprep.subr.bf16.mxu0 %v18199_v41  ;;  %v18268_v41 = vld [vmem:[%s24622_s4 + $0x1efc] ss:$24 sps:$4 sm:$0xff]  }
 0x64f   : > { %12756 = vmatpush1.bf16.msra.mxu1 %v18194_v58  ;;  %v18263_v58 = vld [vmem:[%s24622_s4 + $0x18a0] ss:$24 sps:$4 sm:$0xff]  }
 0x650   : > { %12757 = vmatprep.subr.bf16.mxu1 %v18202_v42  ;;  %v18271_v42 = vld [vmem:[%s24622_s4 + $0x18d4] ss:$24 sps:$4 sm:$0xff]  }
 0x651   : > { %13328 = vmatpush1.bf16.msra.mxu0 %v18197_v45  ;;  %v18266_v45 = vld [vmem:[%s24622_s4 + $0x1ef8] ss:$24 sps:$4 sm:$0xff]  }
 0x652   : > { %13329 = vmatprep.subr.bf16.mxu0 %v18205_v4  ;;  %v18274_v4 = vld [vmem:[%s24622_s4 + $0x1f2c] ss:$24 sps:$4 sm:$0xff]  }
 0x653   : > { %12758 = vmatpush1.bf16.msra.mxu1 %v18200_v52  ;;  %v18269_v52 = vld [vmem:[%s24622_s4 + $0x18d0] ss:$24 sps:$4 sm:$0xff]  }
 0x654   : > { %12759 = vmatprep.subr.bf16.mxu1 %v18208_v13  ;;  %v18277_v13 = vld [vmem:[%s24622_s4 + $0x1904] ss:$24 sps:$4 sm:$0xff]  }
 0x655   : > { %13330 = vmatpush1.bf16.msra.mxu0 %v18203_v26  ;;  %v18272_v26 = vld [vmem:[%s24622_s4 + $0x1f28] ss:$24 sps:$4 sm:$0xff]  }
 0x656   : > { %13331 = vmatprep.subr.bf16.mxu0 %v18211_v35  ;;  %v18280_v35 = vld [vmem:[%s24622_s4 + $0x1f5c] ss:$24 sps:$4 sm:$0xff]  }
 0x657   : > { %12760 = vmatpush1.bf16.msra.mxu1 %v18206_v22  ;;  %v18275_v22 = vld [vmem:[%s24622_s4 + $0x1900] ss:$24 sps:$4 sm:$0xff]  }
 0x658   : > { %12761 = vmatprep.subr.bf16.mxu1 %v18214_v0  ;;  %v18283_v0 = vld [vmem:[%s24622_s4 + $0x1934] ss:$24 sps:$4 sm:$0xff]  }
 0x659   : > { %13332 = vmatpush1.bf16.msra.mxu0 %v18209_v43  ;;  %v18278_v43 = vld [vmem:[%s24622_s4 + $0x1f58] ss:$24 sps:$4 sm:$0xff]  }
 0x65a   : > { %13333 = vmatprep.subr.bf16.mxu0 %v18217_v32  ;;  %v18286_v32 = vld [vmem:[%s24622_s4 + $0x1f8c] ss:$24 sps:$4 sm:$0xff]  }
 0x65b   : > { %12762 = vmatpush1.bf16.msra.mxu1 %v18212_v30  ;;  %v18281_v30 = vld [vmem:[%s24622_s4 + $0x1930] ss:$24 sps:$4 sm:$0xff]  }
 0x65c   : > { %12763 = vmatprep.subr.bf16.mxu1 %v18220_v9  ;;  %v18289_v9 = vld [vmem:[%s24622_s4 + $0x1964] ss:$24 sps:$4 sm:$0xff]  }
 0x65d   : > { %13334 = vmatpush1.bf16.msra.mxu0 %v18215_v29  ;;  %v18284_v29 = vld [vmem:[%s24622_s4 + $0x1f88] ss:$24 sps:$4 sm:$0xff]  }
 0x65e   : > { %13335 = vmatprep.subr.bf16.mxu0 %v18223_v54  ;;  %v18292_v54 = vld [vmem:[%s24622_s4 + $0x1fbc] ss:$24 sps:$4 sm:$0xff]  }
 0x65f   : > { %12764 = vmatpush1.bf16.msra.mxu1 %v18218_v18  ;;  %v18287_v18 = vld [vmem:[%s24622_s4 + $0x1960] ss:$24 sps:$4 sm:$0xff]  }
 0x660   : > { %12765 = vmatprep.subr.bf16.mxu1 %v18226_v1  ;;  %v18295_v1 = vld [vmem:[%s24622_s4 + $0x1994] ss:$24 sps:$4 sm:$0xff]  }
 0x661   : > { %13336 = vmatpush1.bf16.msra.mxu0 %v18221_v2  ;;  %v18290_v2 = vld [vmem:[%s24622_s4 + $0x1fb8] ss:$24 sps:$4 sm:$0xff]  }
 0x662   : > { %13337 = vmatprep.subr.bf16.mxu0 %v18229_v14  ;;  %v18298_v14 = vld [vmem:[%s24622_s4 + $0x1fec] ss:$24 sps:$4 sm:$0xff]  }
 0x663   : > { %12766 = vmatpush1.bf16.msra.mxu1 %v18224_v55  ;;  %v18293_v55 = vld [vmem:[%s24622_s4 + $0x1990] ss:$24 sps:$4 sm:$0xff]  }
 0x664   : > { %12767 = vmatprep.subr.bf16.mxu1 %v18232_v38  ;;  %v18301_v38 = vld [vmem:[%s24622_s4 + $0x19c4] ss:$24 sps:$4 sm:$0xff]  }
 0x665   : > { %13338 = vmatpush1.bf16.msra.mxu0 %v18227_v6  ;;  %v18296_v6 = vld [vmem:[%s24622_s4 + $0x1fe8] ss:$24 sps:$4 sm:$0xff]  }
 0x666   : > { %13339 = vmatprep.subr.bf16.mxu0 %v18235_v24  ;;  %v18304_v24 = vld [vmem:[%s24622_s4 + $0x201c] ss:$24 sps:$4 sm:$0xff]  }
 0x667   : > { %12768 = vmatpush1.bf16.msra.mxu1 %v18230_v25  ;;  %v18299_v25 = vld [vmem:[%s24622_s4 + $0x19c0] ss:$24 sps:$4 sm:$0xff]  }
 0x668   : > { %12778 = vmatprep.subr.bf16.mxu1 %v18238_v51  ;;  %v18307_v51 = vld [vmem:[%s24622_s4 + $0x19f4] ss:$24 sps:$4 sm:$0xff]  }
 0x669   : > { %13340 = vmatpush1.bf16.msra.mxu0 %v18233_v33  ;;  %v18302_v33 = vld [vmem:[%s24622_s4 + $0x2018] ss:$24 sps:$4 sm:$0xff]  }
 0x66a   : > { %12770 = vmatmul.mubr.bf16.vlgmr.msra.gmra.mrb[76].mxu1 %v20219_v15  ;;  %13341 = vmatprep.subr.bf16.mxu0 %v18241_v46  ;;  %v18310_v46 = vld [vmem:[%s24622_s4 + $0x204c] ss:$24 sps:$4 sm:$0xff]  }
 0x66b   : > { %12779 = vmatpush1.bf16.msra.mxu1 %v18236_v21  ;;  %12810 = vmatprep.mubr.bf16.mxu1 %v20228_v56  ;;  %v18305_v21 = vld [vmem:[%s24622_s4 + $0x19f0] ss:$24 sps:$4 sm:$0xff]  }
 0x66c   : > { %12780 = vmatprep.subr.bf16.mxu1 %v18244_v11  ;;  %v18313_v11 = vld [vmem:[%s24622_s4 + $0x1a24] ss:$24 sps:$4 sm:$0xff]  }
 0x66d   : > { %13342 = vmatpush1.bf16.msra.mxu0 %v18239_v39  ;;  %v18308_v39 = vld [vmem:[%s24622_s4 + $0x2048] ss:$24 sps:$4 sm:$0xff]  }
 0x66e   : > { %13352 = vmatprep.subr.bf16.mxu0 %v18247_v36  ;;  %v18316_v36 = vld [vmem:[%s24622_s4 + $0x207c] ss:$24 sps:$4 sm:$0xff]  }
 0x66f   : > { %12781 = vmatpush1.bf16.msra.mxu1 %v18242_v16  ;;  %v18311_v16 = vld [vmem:[%s24622_s4 + $0x1a20] ss:$24 sps:$4 sm:$0xff]  }
 0x670   : > { %13344 = vmatmul.mubr.bf16.vlgmr.msra.gmra.mrb[60].mxu0 %v19789_v10  ;;  %12782 = vmatprep.subr.bf16.mxu1 %v18250_v3  ;;  %v18254_v10 = vld [vmem:[%s24622_s4 + $0x1e98] ss:$24 sps:$4 sm:$0xff]   ;;  %v18319_v3 = vld [vmem:[%s24622_s4 + $0x1a54] ss:$24 sps:$4 sm:$0xff]  }
 0x671   : > { %13353 = vmatpush1.bf16.msra.mxu0 %v18245_v59  ;;  %13384 = vmatprep.mubr.bf16.mxu0 %v19796_v12  ;;  %v18257_v12 = vld [vmem:[%s24622_s4 + $0x1870] ss:$24 sps:$4 sm:$0xff]  }
 0x672   : > { %13354 = vmatprep.subr.bf16.mxu0 %v18253_v47  ;;  %v18314_v59 = vld [vmem:[%s24622_s4 + $0x2078] ss:$24 sps:$4 sm:$0xff]   ;;  %v18322_v47 = vld [vmem:[%s24622_s4 + $0x20ac] ss:$24 sps:$4 sm:$0xff]  }
 0x673   : > { %12783 = vmatpush1.bf16.msra.mxu1 %v18248_v34  ;;  %v18317_v34 = vld [vmem:[%s24622_s4 + $0x1a50] ss:$24 sps:$4 sm:$0xff]  }
 0x674   : > { %12784 = vmatprep.subr.bf16.mxu1 %v18256_v5  ;;  %v18325_v5 = vld [vmem:[%s24622_s4 + $0x1a84] ss:$24 sps:$4 sm:$0xff]  }
 0x675   : > { %13355 = vmatpush1.bf16.msra.mxu0 %v18251_v53  ;;  %v18320_v53 = vld [vmem:[%s24622_s4 + $0x20a8] ss:$24 sps:$4 sm:$0xff]  }
 0x676   : > { %13356 = vmatprep.subr.bf16.mxu0 %v18259_v7  ;;  %v18328_v7 = vld [vmem:[%s24622_s4 + $0x20dc] ss:$24 sps:$4 sm:$0xff]  }
 0x677   : > { %12785 = vmatpush1.bf16.msra.mxu1 %v18254_v10  ;;  %v18323_v10 = vld [vmem:[%s24622_s4 + $0x1a80] ss:$24 sps:$4 sm:$0xff]  }
 0x678   : > { %12786 = vmatprep.subr.bf16.mxu1 %v18262_v37  ;;  %v18331_v37 = vld [vmem:[%s24622_s4 + $0x1ab4] ss:$24 sps:$4 sm:$0xff]  }
 0x679   : > { %13357 = vmatpush1.bf16.msra.mxu0 %v18257_v12  ;;  %v18326_v12 = vld [vmem:[%s24622_s4 + $0x20d8] ss:$24 sps:$4 sm:$0xff]  }
 0x67a   : > { %13358 = vmatprep.subr.bf16.mxu0 %v18265_v48  ;;  %v18334_v48 = vld [vmem:[%s24622_s4 + $0x210c] ss:$24 sps:$4 sm:$0xff]  }
 0x67b   : > { %12787 = vmatpush1.bf16.msra.mxu1 %v18260_v40  ;;  %v18329_v40 = vld [vmem:[%s24622_s4 + $0x1ab0] ss:$24 sps:$4 sm:$0xff]  }
 0x67c   : > { %12788 = vmatprep.subr.bf16.mxu1 %v18268_v41  ;;  %v18337_v41 = vld [vmem:[%s24622_s4 + $0x1ae4] ss:$24 sps:$4 sm:$0xff]  }
 0x67d   : > { %13359 = vmatpush1.bf16.msra.mxu0 %v18263_v58  ;;  %v18332_v58 = vld [vmem:[%s24622_s4 + $0x2108] ss:$24 sps:$4 sm:$0xff]  }
 0x67e   : > { %13360 = vmatprep.subr.bf16.mxu0 %v18271_v42  ;;  %v18340_v42 = vld [vmem:[%s24622_s4 + $0x213c] ss:$24 sps:$4 sm:$0xff]  }
 0x67f   : > { %12789 = vmatpush1.bf16.msra.mxu1 %v18266_v45  ;;  %v18335_v45 = vld [vmem:[%s24622_s4 + $0x1ae0] ss:$24 sps:$4 sm:$0xff]  }
 0x680   : > { %12790 = vmatprep.subr.bf16.mxu1 %v18274_v4  ;;  %v18343_v4 = vld [vmem:[%s24622_s4 + $0x1b14] ss:$24 sps:$4 sm:$0xff]  }
 0x681   : > { %13361 = vmatpush1.bf16.msra.mxu0 %v18269_v52  ;;  %v18338_v52 = vld [vmem:[%s24622_s4 + $0x2138] ss:$24 sps:$4 sm:$0xff]  }
 0x682   : > { %13362 = vmatprep.subr.bf16.mxu0 %v18277_v13  ;;  %v18346_v13 = vld [vmem:[%s24622_s4 + $0x216c] ss:$24 sps:$4 sm:$0xff]  }
 0x683   : > { %12791 = vmatpush1.bf16.msra.mxu1 %v18272_v26  ;;  %v18341_v26 = vld [vmem:[%s24622_s4 + $0x1b10] ss:$24 sps:$4 sm:$0xff]  }
 0x684   : > { %12792 = vmatprep.subr.bf16.mxu1 %v18280_v35  ;;  %v18349_v35 = vld [vmem:[%s24622_s4 + $0x1b44] ss:$24 sps:$4 sm:$0xff]  }
 0x685   : > { %13363 = vmatpush1.bf16.msra.mxu0 %v18275_v22  ;;  %v18344_v22 = vld [vmem:[%s24622_s4 + $0x2168] ss:$24 sps:$4 sm:$0xff]  }
 0x686   : > { %13364 = vmatprep.subr.bf16.mxu0 %v18283_v0  ;;  %v18352_v0 = vld [vmem:[%s24622_s4 + $0x219c] ss:$24 sps:$4 sm:$0xff]  }
 0x687   : > { %12793 = vmatpush1.bf16.msra.mxu1 %v18278_v43  ;;  %v18347_v43 = vld [vmem:[%s24622_s4 + $0x1b40] ss:$24 sps:$4 sm:$0xff]  }
 0x688   : > { %12794 = vmatprep.subr.bf16.mxu1 %v18286_v32  ;;  %v18355_v32 = vld [vmem:[%s24622_s4 + $0x1b74] ss:$24 sps:$4 sm:$0xff]  }
 0x689   : > { %13365 = vmatpush1.bf16.msra.mxu0 %v18281_v30  ;;  %v18358_v30 = vld [vmem:[%s24622_s4 + $0x21cc] ss:$24 sps:$4 sm:$0xff]  }
 0x68a   : > { %13366 = vmatprep.subr.bf16.mxu0 %v18289_v9  ;;  %v18361_v9 = vld [vmem:[%s24622_s4 + $0x1ba4] ss:$24 sps:$4 sm:$0xff]  }
 0x68b   : > { %12795 = vmatpush1.bf16.msra.mxu1 %v18284_v29  ;;  %v18356_v29 = vld [vmem:[%s24622_s4 + $0x21c8] ss:$24 sps:$4 sm:$0xff]  }
 0x68c   : > { %12796 = vmatprep.subr.bf16.mxu1 %v18292_v54  ;;  %v18364_v54 = vld [vmem:[%s24622_s4 + $0x21fc] ss:$24 sps:$4 sm:$0xff]  }
 0x68d   : > { %13367 = vmatpush1.bf16.msra.mxu0 %v18287_v18  ;;  %v18359_v18 = vld [vmem:[%s24622_s4 + $0x1ba0] ss:$24 sps:$4 sm:$0xff]  }
 0x68e   : > { %13368 = vmatprep.subr.bf16.mxu0 %v18295_v1  ;;  %v18367_v1 = vld [vmem:[%s24622_s4 + $0x1bd4] ss:$24 sps:$4 sm:$0xff]  }
 0x68f   : > { %12797 = vmatpush1.bf16.msra.mxu1 %v18290_v2  ;;  %v18362_v2 = vld [vmem:[%s24622_s4 + $0x21f8] ss:$24 sps:$4 sm:$0xff]  }
 0x690   : > { %12798 = vmatprep.subr.bf16.mxu1 %v18298_v14  ;;  %v18370_v14 = vld [vmem:[%s24622_s4 + $0x222c] ss:$24 sps:$4 sm:$0xff]  }
 0x691   : > { %13369 = vmatpush1.bf16.msra.mxu0 %v18293_v55  ;;  %v18365_v55 = vld [vmem:[%s24622_s4 + $0x1bd0] ss:$24 sps:$4 sm:$0xff]  }
 0x692   : > { %13370 = vmatprep.subr.bf16.mxu0 %v18301_v38  ;;  %v18373_v38 = vld [vmem:[%s24622_s4 + $0x1c04] ss:$24 sps:$4 sm:$0xff]  }
 0x693   : > { %12799 = vmatpush1.bf16.msra.mxu1 %v18296_v6  ;;  %v18368_v6 = vld [vmem:[%s24622_s4 + $0x2228] ss:$24 sps:$4 sm:$0xff]  }
 0x694   : > { %12800 = vmatprep.subr.bf16.mxu1 %v18304_v24  ;;  %v18376_v24 = vld [vmem:[%s24622_s4 + $0x225c] ss:$24 sps:$4 sm:$0xff]  }
 0x695   : > { %13371 = vmatpush1.bf16.msra.mxu0 %v18299_v25  ;;  %v18371_v25 = vld [vmem:[%s24622_s4 + $0x1c00] ss:$24 sps:$4 sm:$0xff]  }
 0x696   : > { %13372 = vmatprep.subr.bf16.mxu0 %v18307_v51  ;;  %v18379_v51 = vld [vmem:[%s24622_s4 + $0x1c34] ss:$24 sps:$4 sm:$0xff]  }
 0x697   : > { %12801 = vmatpush1.bf16.msra.mxu1 %v18302_v33  ;;  %v18374_v33 = vld [vmem:[%s24622_s4 + $0x2258] ss:$24 sps:$4 sm:$0xff]  }
 0x698   : > { %12802 = vmatprep.subr.bf16.mxu1 %v18310_v46  ;;  %v18382_v46 = vld [vmem:[%s24622_s4 + $0x228c] ss:$24 sps:$4 sm:$0xff]  }
 0x699   : > { %13373 = vmatpush1.bf16.msra.mxu0 %v18305_v21  ;;  %v18377_v21 = vld [vmem:[%s24622_s4 + $0x1c30] ss:$24 sps:$4 sm:$0xff]  }
 0x69a   : > { %13374 = vmatprep.subr.bf16.mxu0 %v18313_v11  ;;  %v18385_v11 = vld [vmem:[%s24622_s4 + $0x1c64] ss:$24 sps:$4 sm:$0xff]  }
 0x69b   : > { %12803 = vmatpush1.bf16.msra.mxu1 %v18308_v39  ;;  %v18380_v39 = vld [vmem:[%s24622_s4 + $0x2288] ss:$24 sps:$4 sm:$0xff]  }
 0x69c   : > { %12804 = vmatprep.subr.bf16.mxu1 %v18316_v36  ;;  %v18388_v36 = vld [vmem:[%s24622_s4 + $0x22bc] ss:$24 sps:$4 sm:$0xff]  }
 0x69d   : > { %13375 = vmatpush1.bf16.msra.mxu0 %v18311_v16  ;;  %v18383_v16 = vld [vmem:[%s24622_s4 + $0x1c60] ss:$24 sps:$4 sm:$0xff]  }
 0x69e   : > { %13376 = vmatprep.subr.bf16.mxu0 %v18319_v3  ;;  %v18391_v3 = vld [vmem:[%s24622_s4 + $0x1c94] ss:$24 sps:$4 sm:$0xff]  }
 0x69f   : > { %12805 = vmatpush1.bf16.msra.mxu1 %v18314_v59  ;;  %v18386_v59 = vld [vmem:[%s24622_s4 + $0x22b8] ss:$24 sps:$4 sm:$0xff]  }
 0x6a0   : > { %12806 = vmatprep.subr.bf16.mxu1 %v18322_v47  ;;  %v18394_v47 = vld [vmem:[%s24622_s4 + $0x22ec] ss:$24 sps:$4 sm:$0xff]  }
 0x6a1   : > { %13377 = vmatpush1.bf16.msra.mxu0 %v18317_v34  ;;  %v18389_v34 = vld [vmem:[%s24622_s4 + $0x1c90] ss:$24 sps:$4 sm:$0xff]  }
 0x6a2   : > { %13378 = vmatprep.subr.bf16.mxu0 %v18325_v5  ;;  %v18397_v5 = vld [vmem:[%s24622_s4 + $0x1cc4] ss:$24 sps:$4 sm:$0xff]  }
 0x6a3   : > { %12807 = vmatpush1.bf16.msra.mxu1 %v18320_v53  ;;  %v18392_v53 = vld [vmem:[%s24622_s4 + $0x22e8] ss:$24 sps:$4 sm:$0xff]  }
 0x6a4   : > { %12808 = vmatprep.subr.bf16.mxu1 %v18328_v7  ;;  %v18400_v7 = vld [vmem:[%s24622_s4 + $0x231c] ss:$24 sps:$4 sm:$0xff]  }
 0x6a5   : > { %13379 = vmatpush1.bf16.msra.mxu0 %v18323_v10  ;;  %v18395_v10 = vld [vmem:[%s24622_s4 + $0x1cc0] ss:$24 sps:$4 sm:$0xff]  }
 0x6a6   : > { %13380 = vmatprep.subr.bf16.mxu0 %v18331_v37  ;;  %v18403_v37 = vld [vmem:[%s24622_s4 + $0x1cf4] ss:$24 sps:$4 sm:$0xff]  }
 0x6a7   : > { %12809 = vmatpush1.bf16.msra.mxu1 %v18326_v12  ;;  %v18398_v12 = vld [vmem:[%s24622_s4 + $0x2318] ss:$24 sps:$4 sm:$0xff]  }
 0x6a8   : > { %12819 = vmatprep.subr.bf16.mxu1 %v18334_v48  ;;  %v18406_v48 = vld [vmem:[%s24622_s4 + $0x234c] ss:$24 sps:$4 sm:$0xff]  }
 0x6a9   : > { %13381 = vmatpush1.bf16.msra.mxu0 %v18329_v40  ;;  %v18401_v40 = vld [vmem:[%s24622_s4 + $0x1cf0] ss:$24 sps:$4 sm:$0xff]  }
 0x6aa   : > { %12811 = vmatmul.mubr.bf16.vlgmr.msra.gmra.mrb[76].mxu1 %v20437_v19  ;;  %13382 = vmatprep.subr.bf16.mxu0 %v18337_v41  ;;  %v18409_v41 = vld [vmem:[%s24622_s4 + $0x1d24] ss:$24 sps:$4 sm:$0xff]  }
 0x6ab   : > { %12820 = vmatpush1.bf16.msra.mxu1 %v18332_v58  ;;  %12851 = vmatprep.mubr.bf16.mxu1 %v20444_v62  ;;  %v18404_v58 = vld [vmem:[%s24622_s4 + $0x2348] ss:$24 sps:$4 sm:$0xff]  }
 0x6ac   : > { %12821 = vmatprep.subr.bf16.mxu1 %v18340_v42  ;;  %v18412_v42 = vld [vmem:[%s24622_s4 + $0x237c] ss:$24 sps:$4 sm:$0xff]  }
 0x6ad   : > { %13383 = vmatpush1.bf16.msra.mxu0 %v18335_v45  ;;  %v18407_v45 = vld [vmem:[%s24622_s4 + $0x1d20] ss:$24 sps:$4 sm:$0xff]  }
 0x6ae   : > { %13393 = vmatprep.subr.bf16.mxu0 %v18343_v4  ;;  %v18415_v4 = vld [vmem:[%s24622_s4 + $0x1d54] ss:$24 sps:$4 sm:$0xff]  }
 0x6af   : > { %12822 = vmatpush1.bf16.msra.mxu1 %v18338_v52  ;;  %v18410_v52 = vld [vmem:[%s24622_s4 + $0x2378] ss:$24 sps:$4 sm:$0xff]  }
 0x6b0   : > { %13385 = vmatmul.mubr.bf16.vlgmr.msra.gmra.mrb[60].mxu0 %v20011_v60  ;;  %12823 = vmatprep.subr.bf16.mxu1 %v18346_v13  ;;  %v18350_v60 = vld [vmem:[%s24622_s4 + $0x2198] ss:$24 sps:$4 sm:$0xff]   ;;  %v18418_v13 = vld [vmem:[%s24622_s4 + $0x23ac] ss:$24 sps:$4 sm:$0xff]  }
 0x6b1   : > { %13394 = vmatpush1.bf16.msra.mxu0 %v18341_v26  ;;  %13425 = vmatprep.mubr.bf16.mxu0 %v20015_v17  ;;  %v18353_v17 = vld [vmem:[%s24622_s4 + $0x1b70] ss:$24 sps:$4 sm:$0xff]  }
 0x6b2   : > { %13395 = vmatprep.subr.bf16.mxu0 %v18349_v35  ;;  %v18413_v26 = vld [vmem:[%s24622_s4 + $0x1d50] ss:$24 sps:$4 sm:$0xff]   ;;  %v18421_v35 = vld [vmem:[%s24622_s4 + $0x1d84] ss:$24 sps:$4 sm:$0xff]  }
 0x6b3   : > { %12824 = vmatpush1.bf16.msra.mxu1 %v18344_v22  ;;  %v18416_v22 = vld [vmem:[%s24622_s4 + $0x23a8] ss:$24 sps:$4 sm:$0xff]  }
 0x6b4   : > { %12825 = vmatprep.subr.bf16.mxu1 %v18352_v0  ;;  %v18424_v0 = vld [vmem:[%s24622_s4 + $0x23dc] ss:$24 sps:$4 sm:$0xff]  }
 0x6b5   : > { %13396 = vmatpush1.bf16.msra.mxu0 %v18347_v43  ;;  %v18419_v43 = vld [vmem:[%s24622_s4 + $0x1d80] ss:$24 sps:$4 sm:$0xff]  }
 0x6b6   : > { %13397 = vmatprep.subr.bf16.mxu0 %v18355_v32  ;;  %v18427_v32 = vld [vmem:[%s24622_s4 + $0x1db4] ss:$24 sps:$4 sm:$0xff]  }
 0x6b7   : > { %12826 = vmatpush1.bf16.msra.mxu1 %v18350_v60  ;;  %v18422_v60 = vld [vmem:[%s24622_s4 + $0x23d8] ss:$24 sps:$4 sm:$0xff]  }
 0x6b8   : > { %12827 = vmatprep.subr.bf16.mxu1 %v18358_v30  ;;  %v18430_v30 = vld [vmem:[%s24622_s4 + $0x240c] ss:$24 sps:$4 sm:$0xff]  }
 0x6b9   : > { %13398 = vmatpush1.bf16.msra.mxu0 %v18353_v17  ;;  %v18425_v17 = vld [vmem:[%s24622_s4 + $0x1db0] ss:$24 sps:$4 sm:$0xff]  }
 0x6ba   : > { %13399 = vmatprep.subr.bf16.mxu0 %v18361_v9  ;;  %v18433_v9 = vld [vmem:[%s24622_s4 + $0x1de4] ss:$24 sps:$4 sm:$0xff]  }
 0x6bb   : > { %12828 = vmatpush1.bf16.msra.mxu1 %v18356_v29  ;;  %v18428_v29 = vld [vmem:[%s24622_s4 + $0x2408] ss:$24 sps:$4 sm:$0xff]  }
 0x6bc   : > { %12829 = vmatprep.subr.bf16.mxu1 %v18364_v54  ;;  %v18436_v54 = vld [vmem:[%s24622_s4 + $0x243c] ss:$24 sps:$4 sm:$0xff]  }
 0x6bd   : > { %13400 = vmatpush1.bf16.msra.mxu0 %v18359_v18  ;;  %v18431_v18 = vld [vmem:[%s24622_s4 + $0x1de0] ss:$24 sps:$4 sm:$0xff]  }
 0x6be   : > { %13401 = vmatprep.subr.bf16.mxu0 %v18367_v1  ;;  %v18439_v1 = vld [vmem:[%s24622_s4 + $0x1e14] ss:$24 sps:$4 sm:$0xff]  }
 0x6bf   : > { %12830 = vmatpush1.bf16.msra.mxu1 %v18362_v2  ;;  %v18434_v2 = vld [vmem:[%s24622_s4 + $0x2438] ss:$24 sps:$4 sm:$0xff]  }
 0x6c0   : > { %12831 = vmatprep.subr.bf16.mxu1 %v18370_v14  ;;  %v18442_v14 = vld [vmem:[%s24622_s4 + $0x246c] ss:$24 sps:$4 sm:$0xff]  }
 0x6c1   : > { %13402 = vmatpush1.bf16.msra.mxu0 %v18365_v55  ;;  %v18437_v55 = vld [vmem:[%s24622_s4 + $0x1e10] ss:$24 sps:$4 sm:$0xff]  }
 0x6c2   : > { %13403 = vmatprep.subr.bf16.mxu0 %v18373_v38  ;;  %v18445_v38 = vld [vmem:[%s24622_s4 + $0x1e44] ss:$24 sps:$4 sm:$0xff]  }
 0x6c3   : > { %12832 = vmatpush1.bf16.msra.mxu1 %v18368_v6  ;;  %v18440_v6 = vld [vmem:[%s24622_s4 + $0x2468] ss:$24 sps:$4 sm:$0xff]  }
 0x6c4   : > { %12833 = vmatprep.subr.bf16.mxu1 %v18376_v24  ;;  %v18448_v24 = vld [vmem:[%s24622_s4 + $0x249c] ss:$24 sps:$4 sm:$0xff]  }
 0x6c5   : > { %13404 = vmatpush1.bf16.msra.mxu0 %v18371_v25  ;;  %v18443_v25 = vld [vmem:[%s24622_s4 + $0x1e40] ss:$24 sps:$4 sm:$0xff]  }
 0x6c6   : > { %13405 = vmatprep.subr.bf16.mxu0 %v18379_v51  ;;  %v18451_v51 = vld [vmem:[%s24622_s4 + $0x1e74] ss:$24 sps:$4 sm:$0xff]  }
 0x6c7   : > { %12834 = vmatpush1.bf16.msra.mxu1 %v18374_v33  ;;  %v18454_v33 = vld [vmem:[%s24622_s4 + $0x24cc] ss:$24 sps:$4 sm:$0xff]  }
 0x6c8   : > { %12835 = vmatprep.subr.bf16.mxu1 %v18382_v46  ;;  %v18457_v46 = vld [vmem:[%s24622_s4 + $0x1ea4] ss:$24 sps:$4 sm:$0xff]  }
 0x6c9   : > { %13406 = vmatpush1.bf16.msra.mxu0 %v18377_v21  ;;  %v18452_v21 = vld [vmem:[%s24622_s4 + $0x24c8] ss:$24 sps:$4 sm:$0xff]  }
 0x6ca   : > { %13407 = vmatprep.subr.bf16.mxu0 %v18385_v11  ;;  %v18460_v11 = vld [vmem:[%s24622_s4 + $0x24fc] ss:$24 sps:$4 sm:$0xff]  }
 0x6cb   : > { %12836 = vmatpush1.bf16.msra.mxu1 %v18380_v39  ;;  %v18455_v39 = vld [vmem:[%s24622_s4 + $0x1ea0] ss:$24 sps:$4 sm:$0xff]  }
 0x6cc   : > { %12837 = vmatprep.subr.bf16.mxu1 %v18388_v36  ;;  %v18463_v36 = vld [vmem:[%s24622_s4 + $0x1ed4] ss:$24 sps:$4 sm:$0xff]  }
 0x6cd   : > { %13408 = vmatpush1.bf16.msra.mxu0 %v18383_v16  ;;  %v18458_v16 = vld [vmem:[%s24622_s4 + $0x24f8] ss:$24 sps:$4 sm:$0xff]  }
 0x6ce   : > { %13409 = vmatprep.subr.bf16.mxu0 %v18391_v3  ;;  %v18466_v3 = vld [vmem:[%s24622_s4 + $0x252c] ss:$24 sps:$4 sm:$0xff]  }
 0x6cf   : > { %12838 = vmatpush1.bf16.msra.mxu1 %v18386_v59  ;;  %v18461_v59 = vld [vmem:[%s24622_s4 + $0x1ed0] ss:$24 sps:$4 sm:$0xff]  }
 0x6d0   : > { %12839 = vmatprep.subr.bf16.mxu1 %v18394_v47  ;;  %v18469_v47 = vld [vmem:[%s24622_s4 + $0x1f04] ss:$24 sps:$4 sm:$0xff]  }
 0x6d1   : > { %13410 = vmatpush1.bf16.msra.mxu0 %v18389_v34  ;;  %v18464_v34 = vld [vmem:[%s24622_s4 + $0x2528] ss:$24 sps:$4 sm:$0xff]  }
 0x6d2   : > { %13411 = vmatprep.subr.bf16.mxu0 %v18397_v5  ;;  %v18472_v5 = vld [vmem:[%s24622_s4 + $0x255c] ss:$24 sps:$4 sm:$0xff]  }
 0x6d3   : > { %12840 = vmatpush1.bf16.msra.mxu1 %v18392_v53  ;;  %v18467_v53 = vld [vmem:[%s24622_s4 + $0x1f00] ss:$24 sps:$4 sm:$0xff]  }
 0x6d4   : > { %12841 = vmatprep.subr.bf16.mxu1 %v18400_v7  ;;  %v18475_v7 = vld [vmem:[%s24622_s4 + $0x1f34] ss:$24 sps:$4 sm:$0xff]  }
 0x6d5   : > { %13412 = vmatpush1.bf16.msra.mxu0 %v18395_v10  ;;  %v18470_v10 = vld [vmem:[%s24622_s4 + $0x2558] ss:$24 sps:$4 sm:$0xff]  }
 0x6d6   : > { %13413 = vmatprep.subr.bf16.mxu0 %v18403_v37  ;;  %v18478_v37 = vld [vmem:[%s24622_s4 + $0x258c] ss:$24 sps:$4 sm:$0xff]  }
 0x6d7   : > { %12842 = vmatpush1.bf16.msra.mxu1 %v18398_v12  ;;  %v18473_v12 = vld [vmem:[%s24622_s4 + $0x1f30] ss:$24 sps:$4 sm:$0xff]  }
 0x6d8   : > { %12843 = vmatprep.subr.bf16.mxu1 %v18406_v48  ;;  %v18481_v48 = vld [vmem:[%s24622_s4 + $0x1f64] ss:$24 sps:$4 sm:$0xff]  }
 0x6d9   : > { %13414 = vmatpush1.bf16.msra.mxu0 %v18401_v40  ;;  %v18476_v40 = vld [vmem:[%s24622_s4 + $0x2588] ss:$24 sps:$4 sm:$0xff]  }
 0x6da   : > { %13415 = vmatprep.subr.bf16.mxu0 %v18409_v41  ;;  %v18484_v41 = vld [vmem:[%s24622_s4 + $0x25bc] ss:$24 sps:$4 sm:$0xff]  }
 0x6db   : > { %12844 = vmatpush1.bf16.msra.mxu1 %v18404_v58  ;;  %v18479_v58 = vld [vmem:[%s24622_s4 + $0x1f60] ss:$24 sps:$4 sm:$0xff]  }
 0x6dc   : > { %12845 = vmatprep.subr.bf16.mxu1 %v18412_v42  ;;  %v18487_v42 = vld [vmem:[%s24622_s4 + $0x1f94] ss:$24 sps:$4 sm:$0xff]  }
 0x6dd   : > { %13416 = vmatpush1.bf16.msra.mxu0 %v18407_v45  ;;  %v18482_v45 = vld [vmem:[%s24622_s4 + $0x25b8] ss:$24 sps:$4 sm:$0xff]  }
 0x6de   : > { %13417 = vmatprep.subr.bf16.mxu0 %v18415_v4  ;;  %v18490_v4 = vld [vmem:[%s24622_s4 + $0x25ec] ss:$24 sps:$4 sm:$0xff]  }
 0x6df   : > { %12846 = vmatpush1.bf16.msra.mxu1 %v18410_v52  ;;  %v18485_v52 = vld [vmem:[%s24622_s4 + $0x1f90] ss:$24 sps:$4 sm:$0xff]  }
 0x6e0   : > { %12847 = vmatprep.subr.bf16.mxu1 %v18418_v13  ;;  %v18493_v13 = vld [vmem:[%s24622_s4 + $0x1fc4] ss:$24 sps:$4 sm:$0xff]  }
 0x6e1   : > { %13418 = vmatpush1.bf16.msra.mxu0 %v18413_v26  ;;  %v18488_v26 = vld [vmem:[%s24622_s4 + $0x25e8] ss:$24 sps:$4 sm:$0xff]  }
 0x6e2   : > { %13419 = vmatprep.subr.bf16.mxu0 %v18421_v35  ;;  %v18496_v35 = vld [vmem:[%s24622_s4 + $0x261c] ss:$24 sps:$4 sm:$0xff]  }
 0x6e3   : > { %12848 = vmatpush1.bf16.msra.mxu1 %v18416_v22  ;;  %v18491_v22 = vld [vmem:[%s24622_s4 + $0x1fc0] ss:$24 sps:$4 sm:$0xff]  }
 0x6e4   : > { %12849 = vmatprep.subr.bf16.mxu1 %v18424_v0  ;;  %v18499_v0 = vld [vmem:[%s24622_s4 + $0x1ff4] ss:$24 sps:$4 sm:$0xff]  }
 0x6e5   : > { %13420 = vmatpush1.bf16.msra.mxu0 %v18419_v43  ;;  %v18494_v43 = vld [vmem:[%s24622_s4 + $0x2618] ss:$24 sps:$4 sm:$0xff]  }
 0x6e6   : > { %13421 = vmatprep.subr.bf16.mxu0 %v18427_v32  ;;  %v18502_v32 = vld [vmem:[%s24622_s4 + $0x264c] ss:$24 sps:$4 sm:$0xff]  }
 0x6e7   : > { %12850 = vmatpush1.bf16.msra.mxu1 %v18422_v60  ;;  %v18497_v60 = vld [vmem:[%s24622_s4 + $0x1ff0] ss:$24 sps:$4 sm:$0xff]  }
 0x6e8   : > { %12860 = vmatprep.subr.bf16.mxu1 %v18430_v30  ;;  %v18505_v30 = vld [vmem:[%s24622_s4 + $0x2024] ss:$24 sps:$4 sm:$0xff]  }
 0x6e9   : > { %13422 = vmatpush1.bf16.msra.mxu0 %v18425_v17  ;;  %v18500_v17 = vld [vmem:[%s24622_s4 + $0x2648] ss:$24 sps:$4 sm:$0xff]  }
 0x6ea   : > { %12852 = vmatmul.mubr.bf16.vlgmr.msra.gmra.mrb[76].mxu1 %v20651_v20  ;;  %13423 = vmatprep.subr.bf16.mxu0 %v18433_v9  ;;  %v18508_v9 = vld [vmem:[%s24622_s4 + $0x267c] ss:$24 sps:$4 sm:$0xff]  }
 0x6eb   : > { %12861 = vmatpush1.bf16.msra.mxu1 %v18428_v29  ;;  %12892 = vmatprep.mubr.bf16.mxu1 %v20660_v23  ;;  %v18503_v29 = vld [vmem:[%s24622_s4 + $0x2020] ss:$24 sps:$4 sm:$0xff]  }
 0x6ec   : > { %12862 = vmatprep.subr.bf16.mxu1 %v18436_v54  ;;  %v18511_v54 = vld [vmem:[%s24622_s4 + $0x2054] ss:$24 sps:$4 sm:$0xff]  }
 0x6ed   : > { %13424 = vmatpush1.bf16.msra.mxu0 %v18431_v18  ;;  %v18506_v18 = vld [vmem:[%s24622_s4 + $0x2678] ss:$24 sps:$4 sm:$0xff]  }
 0x6ee   : > { %13434 = vmatprep.subr.bf16.mxu0 %v18439_v1  ;;  %v18514_v1 = vld [vmem:[%s24622_s4 + $0x26ac] ss:$24 sps:$4 sm:$0xff]  }
 0x6ef   : > { %12863 = vmatpush1.bf16.msra.mxu1 %v18434_v2  ;;  %v18509_v2 = vld [vmem:[%s24622_s4 + $0x2050] ss:$24 sps:$4 sm:$0xff]  }
 0x6f0   : > { %13426 = vmatmul.mubr.bf16.vlgmr.msra.gmra.mrb[60].mxu0 %v20219_v15  ;;  %12864 = vmatprep.subr.bf16.mxu1 %v18442_v14  ;;  %v18446_v15 = vld [vmem:[%s24622_s4 + $0x2498] ss:$24 sps:$4 sm:$0xff]   ;;  %v18517_v14 = vld [vmem:[%s24622_s4 + $0x2084] ss:$24 sps:$4 sm:$0xff]  }
 0x6f1   : > { %13435 = vmatpush1.bf16.msra.mxu0 %v18437_v55  ;;  %13466 = vmatprep.mubr.bf16.mxu0 %v20228_v56  ;;  %v18449_v56 = vld [vmem:[%s24622_s4 + $0x1e70] ss:$24 sps:$4 sm:$0xff]  }
 0x6f2   : > { %13436 = vmatprep.subr.bf16.mxu0 %v18445_v38  ;;  %v18512_v55 = vld [vmem:[%s24622_s4 + $0x26a8] ss:$24 sps:$4 sm:$0xff]   ;;  %v18520_v38 = vld [vmem:[%s24622_s4 + $0x26dc] ss:$24 sps:$4 sm:$0xff]  }
 0x6f3   : > { %12865 = vmatpush1.bf16.msra.mxu1 %v18440_v6  ;;  %v18515_v6 = vld [vmem:[%s24622_s4 + $0x2080] ss:$24 sps:$4 sm:$0xff]  }
 0x6f4   : > { %12866 = vmatprep.subr.bf16.mxu1 %v18448_v24  ;;  %v18523_v24 = vld [vmem:[%s24622_s4 + $0x20b4] ss:$24 sps:$4 sm:$0xff]  }
 0x6f5   : > { %13437 = vmatpush1.bf16.msra.mxu0 %v18443_v25  ;;  %v18518_v25 = vld [vmem:[%s24622_s4 + $0x26d8] ss:$24 sps:$4 sm:$0xff]  }
 0x6f6   : > { %13438 = vmatprep.subr.bf16.mxu0 %v18451_v51  ;;  %v18526_v51 = vld [vmem:[%s24622_s4 + $0x270c] ss:$24 sps:$4 sm:$0xff]  }
 0x6f7   : > { %12867 = vmatpush1.bf16.msra.mxu1 %v18446_v15  ;;  %v18521_v15 = vld [vmem:[%s24622_s4 + $0x20b0] ss:$24 sps:$4 sm:$0xff]  }
 0x6f8   : > { %12868 = vmatprep.subr.bf16.mxu1 %v18454_v33  ;;  %v18529_v33 = vld [vmem:[%s24622_s4 + $0x20e4] ss:$24 sps:$4 sm:$0xff]  }
 0x6f9   : > { %13439 = vmatpush1.bf16.msra.mxu0 %v18449_v56  ;;  %v18524_v56 = vld [vmem:[%s24622_s4 + $0x2708] ss:$24 sps:$4 sm:$0xff]  }
 0x6fa   : > { %13440 = vmatprep.subr.bf16.mxu0 %v18457_v46  ;;  %v18532_v46 = vld [vmem:[%s24622_s4 + $0x273c] ss:$24 sps:$4 sm:$0xff]  }
 0x6fb   : > { %12869 = vmatpush1.bf16.msra.mxu1 %v18452_v21  ;;  %v18527_v21 = vld [vmem:[%s24622_s4 + $0x20e0] ss:$24 sps:$4 sm:$0xff]  }
 0x6fc   : > { %12870 = vmatprep.subr.bf16.mxu1 %v18460_v11  ;;  %v18535_v11 = vld [vmem:[%s24622_s4 + $0x2114] ss:$24 sps:$4 sm:$0xff]  }
 0x6fd   : > { %13441 = vmatpush1.bf16.msra.mxu0 %v18455_v39  ;;  %v18530_v39 = vld [vmem:[%s24622_s4 + $0x2738] ss:$24 sps:$4 sm:$0xff]  }
 0x6fe   : > { %13442 = vmatprep.subr.bf16.mxu0 %v18463_v36  ;;  %v18538_v36 = vld [vmem:[%s24622_s4 + $0x276c] ss:$24 sps:$4 sm:$0xff]  }
 0x6ff   : > { %12871 = vmatpush1.bf16.msra.mxu1 %v18458_v16  ;;  %v18533_v16 = vld [vmem:[%s24622_s4 + $0x2110] ss:$24 sps:$4 sm:$0xff]  }
 0x700   : > { %12872 = vmatprep.subr.bf16.mxu1 %v18466_v3  ;;  %v18541_v3 = vld [vmem:[%s24622_s4 + $0x2144] ss:$24 sps:$4 sm:$0xff]  }
 0x701   : > { %13443 = vmatpush1.bf16.msra.mxu0 %v18461_v59  ;;  %v18536_v59 = vld [vmem:[%s24622_s4 + $0x2768] ss:$24 sps:$4 sm:$0xff]  }
 0x702   : > { %13444 = vmatprep.subr.bf16.mxu0 %v18469_v47  ;;  %v18544_v47 = vld [vmem:[%s24622_s4 + $0x279c] ss:$24 sps:$4 sm:$0xff]  }
 0x703   : > { %12873 = vmatpush1.bf16.msra.mxu1 %v18464_v34  ;;  %v18539_v34 = vld [vmem:[%s24622_s4 + $0x2140] ss:$24 sps:$4 sm:$0xff]  }
 0x704   : > { %12874 = vmatprep.subr.bf16.mxu1 %v18472_v5  ;;  %v18547_v5 = vld [vmem:[%s24622_s4 + $0x2174] ss:$24 sps:$4 sm:$0xff]  }
 0x705   : > { %13445 = vmatpush1.bf16.msra.mxu0 %v18467_v53  ;;  %v18550_v53 = vld [vmem:[%s24622_s4 + $0x27cc] ss:$24 sps:$4 sm:$0xff]  }
 0x706   : > { %13446 = vmatprep.subr.bf16.mxu0 %v18475_v7  ;;  %v18553_v7 = vld [vmem:[%s24622_s4 + $0x21a4] ss:$24 sps:$4 sm:$0xff]  }
 0x707   : > { %12875 = vmatpush1.bf16.msra.mxu1 %v18470_v10  ;;  %v18548_v10 = vld [vmem:[%s24622_s4 + $0x27c8] ss:$24 sps:$4 sm:$0xff]  }
 0x708   : > { %12876 = vmatprep.subr.bf16.mxu1 %v18478_v37  ;;  %v18556_v37 = vld [vmem:[%s24622_s4 + $0x27fc] ss:$24 sps:$4 sm:$0xff]  }
 0x709   : > { %13447 = vmatpush1.bf16.msra.mxu0 %v18473_v12  ;;  %v18551_v12 = vld [vmem:[%s24622_s4 + $0x21a0] ss:$24 sps:$4 sm:$0xff]  }
 0x70a   : > { %13448 = vmatprep.subr.bf16.mxu0 %v18481_v48  ;;  %v18559_v48 = vld [vmem:[%s24622_s4 + $0x21d4] ss:$24 sps:$4 sm:$0xff]  }
 0x70b   : > { %12877 = vmatpush1.bf16.msra.mxu1 %v18476_v40  ;;  %v18554_v40 = vld [vmem:[%s24622_s4 + $0x27f8] ss:$24 sps:$4 sm:$0xff]  }
 0x70c   : > { %12878 = vmatprep.subr.bf16.mxu1 %v18484_v41  ;;  %v18562_v41 = vld [vmem:[%s24622_s4 + $0x282c] ss:$24 sps:$4 sm:$0xff]  }
 0x70d   : > { %13449 = vmatpush1.bf16.msra.mxu0 %v18479_v58  ;;  %v18557_v58 = vld [vmem:[%s24622_s4 + $0x21d0] ss:$24 sps:$4 sm:$0xff]  }
 0x70e   : > { %13450 = vmatprep.subr.bf16.mxu0 %v18487_v42  ;;  %v18565_v42 = vld [vmem:[%s24622_s4 + $0x2204] ss:$24 sps:$4 sm:$0xff]  }
 0x70f   : > { %12879 = vmatpush1.bf16.msra.mxu1 %v18482_v45  ;;  %v18560_v45 = vld [vmem:[%s24622_s4 + $0x2828] ss:$24 sps:$4 sm:$0xff]  }
 0x710   : > { %12880 = vmatprep.subr.bf16.mxu1 %v18490_v4  ;;  %v18568_v4 = vld [vmem:[%s24622_s4 + $0x285c] ss:$24 sps:$4 sm:$0xff]  }
 0x711   : > { %13451 = vmatpush1.bf16.msra.mxu0 %v18485_v52  ;;  %v18563_v52 = vld [vmem:[%s24622_s4 + $0x2200] ss:$24 sps:$4 sm:$0xff]  }
 0x712   : > { %13452 = vmatprep.subr.bf16.mxu0 %v18493_v13  ;;  %v18571_v13 = vld [vmem:[%s24622_s4 + $0x2234] ss:$24 sps:$4 sm:$0xff]  }
 0x713   : > { %12881 = vmatpush1.bf16.msra.mxu1 %v18488_v26  ;;  %v18566_v26 = vld [vmem:[%s24622_s4 + $0x2858] ss:$24 sps:$4 sm:$0xff]  }
 0x714   : > { %12882 = vmatprep.subr.bf16.mxu1 %v18496_v35  ;;  %v18574_v35 = vld [vmem:[%s24622_s4 + $0x288c] ss:$24 sps:$4 sm:$0xff]  }
 0x715   : > { %13453 = vmatpush1.bf16.msra.mxu0 %v18491_v22  ;;  %v18569_v22 = vld [vmem:[%s24622_s4 + $0x2230] ss:$24 sps:$4 sm:$0xff]  }
 0x716   : > { %13454 = vmatprep.subr.bf16.mxu0 %v18499_v0  ;;  %v18577_v0 = vld [vmem:[%s24622_s4 + $0x2264] ss:$24 sps:$4 sm:$0xff]  }
 0x717   : > { %12883 = vmatpush1.bf16.msra.mxu1 %v18494_v43  ;;  %v18572_v43 = vld [vmem:[%s24622_s4 + $0x2888] ss:$24 sps:$4 sm:$0xff]  }
 0x718   : > { %12884 = vmatprep.subr.bf16.mxu1 %v18502_v32  ;;  %v18580_v32 = vld [vmem:[%s24622_s4 + $0x28bc] ss:$24 sps:$4 sm:$0xff]  }
 0x719   : > { %13455 = vmatpush1.bf16.msra.mxu0 %v18497_v60  ;;  %v18575_v60 = vld [vmem:[%s24622_s4 + $0x2260] ss:$24 sps:$4 sm:$0xff]  }
 0x71a   : > { %13456 = vmatprep.subr.bf16.mxu0 %v18505_v30  ;;  %v18583_v30 = vld [vmem:[%s24622_s4 + $0x2294] ss:$24 sps:$4 sm:$0xff]  }
 0x71b   : > { %12885 = vmatpush1.bf16.msra.mxu1 %v18500_v17  ;;  %v18578_v17 = vld [vmem:[%s24622_s4 + $0x28b8] ss:$24 sps:$4 sm:$0xff]  }
 0x71c   : > { %12886 = vmatprep.subr.bf16.mxu1 %v18508_v9  ;;  %v18586_v9 = vld [vmem:[%s24622_s4 + $0x28ec] ss:$24 sps:$4 sm:$0xff]  }
 0x71d   : > { %13457 = vmatpush1.bf16.msra.mxu0 %v18503_v29  ;;  %v18581_v29 = vld [vmem:[%s24622_s4 + $0x2290] ss:$24 sps:$4 sm:$0xff]  }
 0x71e   : > { %13458 = vmatprep.subr.bf16.mxu0 %v18511_v54  ;;  %v18589_v54 = vld [vmem:[%s24622_s4 + $0x22c4] ss:$24 sps:$4 sm:$0xff]  }
 0x71f   : > { %12887 = vmatpush1.bf16.msra.mxu1 %v18506_v18  ;;  %v18584_v18 = vld [vmem:[%s24622_s4 + $0x28e8] ss:$24 sps:$4 sm:$0xff]  }
 0x720   : > { %12888 = vmatprep.subr.bf16.mxu1 %v18514_v1  ;;  %v18592_v1 = vld [vmem:[%s24622_s4 + $0x291c] ss:$24 sps:$4 sm:$0xff]  }
 0x721   : > { %13459 = vmatpush1.bf16.msra.mxu0 %v18509_v2  ;;  %v18587_v2 = vld [vmem:[%s24622_s4 + $0x22c0] ss:$24 sps:$4 sm:$0xff]  }
 0x722   : > { %13460 = vmatprep.subr.bf16.mxu0 %v18517_v14  ;;  %v18595_v14 = vld [vmem:[%s24622_s4 + $0x22f4] ss:$24 sps:$4 sm:$0xff]  }
 0x723   : > { %12889 = vmatpush1.bf16.msra.mxu1 %v18512_v55  ;;  %v18590_v55 = vld [vmem:[%s24622_s4 + $0x2918] ss:$24 sps:$4 sm:$0xff]  }
 0x724   : > { %12890 = vmatprep.subr.bf16.mxu1 %v18520_v38  ;;  %v18598_v38 = vld [vmem:[%s24622_s4 + $0x294c] ss:$24 sps:$4 sm:$0xff]  }
 0x725   : > { %13461 = vmatpush1.bf16.msra.mxu0 %v18515_v6  ;;  %v18593_v6 = vld [vmem:[%s24622_s4 + $0x22f0] ss:$24 sps:$4 sm:$0xff]  }
 0x726   : > { %13462 = vmatprep.subr.bf16.mxu0 %v18523_v24  ;;  %v18601_v24 = vld [vmem:[%s24622_s4 + $0x2324] ss:$24 sps:$4 sm:$0xff]  }
 0x727   : > { %12891 = vmatpush1.bf16.msra.mxu1 %v18518_v25  ;;  %v18596_v25 = vld [vmem:[%s24622_s4 + $0x2948] ss:$24 sps:$4 sm:$0xff]  }
 0x728   : > { %12901 = vmatprep.subr.bf16.mxu1 %v18526_v51  ;;  %v18604_v51 = vld [vmem:[%s24622_s4 + $0x297c] ss:$24 sps:$4 sm:$0xff]  }
 0x729   : > { %13463 = vmatpush1.bf16.msra.mxu0 %v18521_v15  ;;  %v18599_v15 = vld [vmem:[%s24622_s4 + $0x2320] ss:$24 sps:$4 sm:$0xff]  }
 0x72a   : > { %12893 = vmatmul.mubr.bf16.vlgmr.msra.gmra.mrb[76].mxu1 %v20863_v57  ;;  %13464 = vmatprep.subr.bf16.mxu0 %v18529_v33  ;;  %v18607_v33 = vld [vmem:[%s24622_s4 + $0x2354] ss:$24 sps:$4 sm:$0xff]  }
 0x72b   : > { %12902 = vmatpush1.bf16.msra.mxu1 %v18524_v56  ;;  %12933 = vmatprep.mubr.bf16.mxu1 %v20870_v63  ;;  %v18602_v56 = vld [vmem:[%s24622_s4 + $0x2978] ss:$24 sps:$4 sm:$0xff]  }
 0x72c   : > { %12903 = vmatprep.subr.bf16.mxu1 %v18532_v46  ;;  %v18610_v46 = vld [vmem:[%s24622_s4 + $0x29ac] ss:$24 sps:$4 sm:$0xff]  }
 0x72d   : > { %13465 = vmatpush1.bf16.msra.mxu0 %v18527_v21  ;;  %v18605_v21 = vld [vmem:[%s24622_s4 + $0x2350] ss:$24 sps:$4 sm:$0xff]  }
 0x72e   : > { %13475 = vmatprep.subr.bf16.mxu0 %v18535_v11  ;;  %v18613_v11 = vld [vmem:[%s24622_s4 + $0x2384] ss:$24 sps:$4 sm:$0xff]  }
 0x72f   : > { %12904 = vmatpush1.bf16.msra.mxu1 %v18530_v39  ;;  %v18608_v39 = vld [vmem:[%s24622_s4 + $0x29a8] ss:$24 sps:$4 sm:$0xff]  }
 0x730   : > { %13467 = vmatmul.mubr.bf16.vlgmr.msra.gmra.mrb[60].mxu0 %v20437_v19  ;;  %12905 = vmatprep.subr.bf16.mxu1 %v18538_v36  ;;  %v18542_v19 = vld [vmem:[%s24622_s4 + $0x2798] ss:$24 sps:$4 sm:$0xff]   ;;  %v18616_v36 = vld [vmem:[%s24622_s4 + $0x29dc] ss:$24 sps:$4 sm:$0xff]  }
 0x731   : > { %13476 = vmatpush1.bf16.msra.mxu0 %v18533_v16  ;;  %13507 = vmatprep.mubr.bf16.mxu0 %v20444_v62  ;;  %v18545_v62 = vld [vmem:[%s24622_s4 + $0x2170] ss:$24 sps:$4 sm:$0xff]   ;;  %v18611_v16 = vld [vmem:[%s24622_s4 + $0x2380] ss:$24 sps:$4 sm:$0xff]  }
 0x732   : > { %13477 = vmatprep.subr.bf16.mxu0 %v18541_v3  ;;  %v18619_v3 = vld [vmem:[%s24622_s4 + $0x23b4] ss:$24 sps:$4 sm:$0xff]  }
 0x733   : > { %12906 = vmatpush1.bf16.msra.mxu1 %v18536_v59  ;;  %v18614_v59 = vld [vmem:[%s24622_s4 + $0x29d8] ss:$24 sps:$4 sm:$0xff]  }
 0x734   : > { %12907 = vmatprep.subr.bf16.mxu1 %v18544_v47  ;;  %v18622_v47 = vld [vmem:[%s24622_s4 + $0x2a0c] ss:$24 sps:$4 sm:$0xff]  }
 0x735   : > { %13478 = vmatpush1.bf16.msra.mxu0 %v18539_v34  ;;  %v18617_v34 = vld [vmem:[%s24622_s4 + $0x23b0] ss:$24 sps:$4 sm:$0xff]  }
 0x736   : > { %13479 = vmatprep.subr.bf16.mxu0 %v18547_v5  ;;  %v18625_v5 = vld [vmem:[%s24622_s4 + $0x23e4] ss:$24 sps:$4 sm:$0xff]  }
 0x737   : > { %12908 = vmatpush1.bf16.msra.mxu1 %v18542_v19  ;;  %v18620_v19 = vld [vmem:[%s24622_s4 + $0x2a08] ss:$24 sps:$4 sm:$0xff]  }
 0x738   : > { %12909 = vmatprep.subr.bf16.mxu1 %v18550_v53  ;;  %v18628_v53 = vld [vmem:[%s24622_s4 + $0x2a3c] ss:$24 sps:$4 sm:$0xff]  }
 0x739   : > { %13480 = vmatpush1.bf16.msra.mxu0 %v18545_v62  ;;  %v18623_v62 = vld [vmem:[%s24622_s4 + $0x23e0] ss:$24 sps:$4 sm:$0xff]  }
 0x73a   : > { %13481 = vmatprep.subr.bf16.mxu0 %v18553_v7  ;;  %v18631_v7 = vld [vmem:[%s24622_s4 + $0x2414] ss:$24 sps:$4 sm:$0xff]  }
 0x73b   : > { %12910 = vmatpush1.bf16.msra.mxu1 %v18548_v10  ;;  %v18626_v10 = vld [vmem:[%s24622_s4 + $0x2a38] ss:$24 sps:$4 sm:$0xff]  }
 0x73c   : > { %12911 = vmatprep.subr.bf16.mxu1 %v18556_v37  ;;  %v18634_v37 = vld [vmem:[%s24622_s4 + $0x2a6c] ss:$24 sps:$4 sm:$0xff]  }
 0x73d   : > { %13482 = vmatpush1.bf16.msra.mxu0 %v18551_v12  ;;  %v18629_v12 = vld [vmem:[%s24622_s4 + $0x2410] ss:$24 sps:$4 sm:$0xff]  }
 0x73e   : > { %13483 = vmatprep.subr.bf16.mxu0 %v18559_v48  ;;  %v18637_v48 = vld [vmem:[%s24622_s4 + $0x2444] ss:$24 sps:$4 sm:$0xff]  }
 0x73f   : > { %12912 = vmatpush1.bf16.msra.mxu1 %v18554_v40  ;;  %v18632_v40 = vld [vmem:[%s24622_s4 + $0x2a68] ss:$24 sps:$4 sm:$0xff]  }
 0x740   : > { %12913 = vmatprep.subr.bf16.mxu1 %v18562_v41  ;;  %v18640_v41 = vld [vmem:[%s24622_s4 + $0x2a9c] ss:$24 sps:$4 sm:$0xff]  }
 0x741   : > { %13484 = vmatpush1.bf16.msra.mxu0 %v18557_v58  ;;  %v18635_v58 = vld [vmem:[%s24622_s4 + $0x2440] ss:$24 sps:$4 sm:$0xff]  }
 0x742   : > { %13485 = vmatprep.subr.bf16.mxu0 %v18565_v42  ;;  %v18643_v42 = vld [vmem:[%s24622_s4 + $0x2474] ss:$24 sps:$4 sm:$0xff]  }
 0x743   : > { %12914 = vmatpush1.bf16.msra.mxu1 %v18560_v45  ;;  %v18646_v45 = vld [vmem:[%s24622_s4 + $0x2acc] ss:$24 sps:$4 sm:$0xff]  }
 0x744   : > { %12915 = vmatprep.subr.bf16.mxu1 %v18568_v4  ;;  %v18649_v4 = vld [vmem:[%s24622_s4 + $0x24a4] ss:$24 sps:$4 sm:$0xff]  }
 0x745   : > { %13486 = vmatpush1.bf16.msra.mxu0 %v18563_v52  ;;  %v18644_v52 = vld [vmem:[%s24622_s4 + $0x2ac8] ss:$24 sps:$4 sm:$0xff]  }
 0x746   : > { %13487 = vmatprep.subr.bf16.mxu0 %v18571_v13  ;;  %v18652_v13 = vld [vmem:[%s24622_s4 + $0x2afc] ss:$24 sps:$4 sm:$0xff]  }
 0x747   : > { %12916 = vmatpush1.bf16.msra.mxu1 %v18566_v26  ;;  %v18647_v26 = vld [vmem:[%s24622_s4 + $0x24a0] ss:$24 sps:$4 sm:$0xff]  }
 0x748   : > { %12917 = vmatprep.subr.bf16.mxu1 %v18574_v35  ;;  %v18655_v35 = vld [vmem:[%s24622_s4 + $0x24d4] ss:$24 sps:$4 sm:$0xff]  }
 0x749   : > { %13488 = vmatpush1.bf16.msra.mxu0 %v18569_v22  ;;  %v18650_v22 = vld [vmem:[%s24622_s4 + $0x2af8] ss:$24 sps:$4 sm:$0xff]  }
 0x74a   : > { %13489 = vmatprep.subr.bf16.mxu0 %v18577_v0  ;;  %v18658_v0 = vld [vmem:[%s24622_s4 + $0x2b2c] ss:$24 sps:$4 sm:$0xff]  }
 0x74b   : > { %12918 = vmatpush1.bf16.msra.mxu1 %v18572_v43  ;;  %v18653_v43 = vld [vmem:[%s24622_s4 + $0x24d0] ss:$24 sps:$4 sm:$0xff]  }
 0x74c   : > { %12919 = vmatprep.subr.bf16.mxu1 %v18580_v32  ;;  %v18661_v32 = vld [vmem:[%s24622_s4 + $0x2504] ss:$24 sps:$4 sm:$0xff]  }
 0x74d   : > { %13490 = vmatpush1.bf16.msra.mxu0 %v18575_v60  ;;  %v18656_v60 = vld [vmem:[%s24622_s4 + $0x2b28] ss:$24 sps:$4 sm:$0xff]  }
 0x74e   : > { %13491 = vmatprep.subr.bf16.mxu0 %v18583_v30  ;;  %v18664_v30 = vld [vmem:[%s24622_s4 + $0x2b5c] ss:$24 sps:$4 sm:$0xff]  }
 0x74f   : > { %12920 = vmatpush1.bf16.msra.mxu1 %v18578_v17  ;;  %v18659_v17 = vld [vmem:[%s24622_s4 + $0x2500] ss:$24 sps:$4 sm:$0xff]  }
 0x750   : > { %12921 = vmatprep.subr.bf16.mxu1 %v18586_v9  ;;  %v18667_v9 = vld [vmem:[%s24622_s4 + $0x2534] ss:$24 sps:$4 sm:$0xff]  }
 0x751   : > { %13492 = vmatpush1.bf16.msra.mxu0 %v18581_v29  ;;  %v18662_v29 = vld [vmem:[%s24622_s4 + $0x2b58] ss:$24 sps:$4 sm:$0xff]  }
 0x752   : > { %13493 = vmatprep.subr.bf16.mxu0 %v18589_v54  ;;  %v18670_v54 = vld [vmem:[%s24622_s4 + $0x2b8c] ss:$24 sps:$4 sm:$0xff]  }
 0x753   : > { %12922 = vmatpush1.bf16.msra.mxu1 %v18584_v18  ;;  %v18665_v18 = vld [vmem:[%s24622_s4 + $0x2530] ss:$24 sps:$4 sm:$0xff]  }
 0x754   : > { %12923 = vmatprep.subr.bf16.mxu1 %v18592_v1  ;;  %v18673_v1 = vld [vmem:[%s24622_s4 + $0x2564] ss:$24 sps:$4 sm:$0xff]  }
 0x755   : > { %13494 = vmatpush1.bf16.msra.mxu0 %v18587_v2  ;;  %v18668_v2 = vld [vmem:[%s24622_s4 + $0x2b88] ss:$24 sps:$4 sm:$0xff]  }
 0x756   : > { %13495 = vmatprep.subr.bf16.mxu0 %v18595_v14  ;;  %v18676_v14 = vld [vmem:[%s24622_s4 + $0x2bbc] ss:$24 sps:$4 sm:$0xff]  }
 0x757   : > { %12924 = vmatpush1.bf16.msra.mxu1 %v18590_v55  ;;  %v18671_v55 = vld [vmem:[%s24622_s4 + $0x2560] ss:$24 sps:$4 sm:$0xff]  }
 0x758   : > { %12925 = vmatprep.subr.bf16.mxu1 %v18598_v38  ;;  %v18679_v38 = vld [vmem:[%s24622_s4 + $0x2594] ss:$24 sps:$4 sm:$0xff]  }
 0x759   : > { %13496 = vmatpush1.bf16.msra.mxu0 %v18593_v6  ;;  %v18674_v6 = vld [vmem:[%s24622_s4 + $0x2bb8] ss:$24 sps:$4 sm:$0xff]  }
 0x75a   : > { %13497 = vmatprep.subr.bf16.mxu0 %v18601_v24  ;;  %v18682_v24 = vld [vmem:[%s24622_s4 + $0x2bec] ss:$24 sps:$4 sm:$0xff]  }
 0x75b   : > { %12926 = vmatpush1.bf16.msra.mxu1 %v18596_v25  ;;  %v18677_v25 = vld [vmem:[%s24622_s4 + $0x2590] ss:$24 sps:$4 sm:$0xff]  }
 0x75c   : > { %12927 = vmatprep.subr.bf16.mxu1 %v18604_v51  ;;  %v18685_v51 = vld [vmem:[%s24622_s4 + $0x25c4] ss:$24 sps:$4 sm:$0xff]  }
 0x75d   : > { %13498 = vmatpush1.bf16.msra.mxu0 %v18599_v15  ;;  %v18680_v15 = vld [vmem:[%s24622_s4 + $0x2be8] ss:$24 sps:$4 sm:$0xff]  }
 0x75e   : > { %13499 = vmatprep.subr.bf16.mxu0 %v18607_v33  ;;  %v18688_v33 = vld [vmem:[%s24622_s4 + $0x2c1c] ss:$24 sps:$4 sm:$0xff]  }
 0x75f   : > { %12928 = vmatpush1.bf16.msra.mxu1 %v18602_v56  ;;  %v18683_v56 = vld [vmem:[%s24622_s4 + $0x25c0] ss:$24 sps:$4 sm:$0xff]  }
 0x760   : > { %12929 = vmatprep.subr.bf16.mxu1 %v18610_v46  ;;  %v18691_v46 = vld [vmem:[%s24622_s4 + $0x25f4] ss:$24 sps:$4 sm:$0xff]  }
 0x761   : > { %13500 = vmatpush1.bf16.msra.mxu0 %v18605_v21  ;;  %v18686_v21 = vld [vmem:[%s24622_s4 + $0x2c18] ss:$24 sps:$4 sm:$0xff]  }
 0x762   : > { %13501 = vmatprep.subr.bf16.mxu0 %v18613_v11  ;;  %v18694_v11 = vld [vmem:[%s24622_s4 + $0x2c4c] ss:$24 sps:$4 sm:$0xff]  }
 0x763   : > { %12930 = vmatpush1.bf16.msra.mxu1 %v18608_v39  ;;  %v18689_v39 = vld [vmem:[%s24622_s4 + $0x25f0] ss:$24 sps:$4 sm:$0xff]  }
 0x764   : > { %12931 = vmatprep.subr.bf16.mxu1 %v18616_v36  ;;  %v18697_v36 = vld [vmem:[%s24622_s4 + $0x2624] ss:$24 sps:$4 sm:$0xff]  }
 0x765   : > { %13502 = vmatpush1.bf16.msra.mxu0 %v18611_v16  ;;  %v18692_v16 = vld [vmem:[%s24622_s4 + $0x2c48] ss:$24 sps:$4 sm:$0xff]  }
 0x766   : > { %13503 = vmatprep.subr.bf16.mxu0 %v18619_v3  ;;  %v18700_v3 = vld [vmem:[%s24622_s4 + $0x2c7c] ss:$24 sps:$4 sm:$0xff]  }
 0x767   : > { %12932 = vmatpush1.bf16.msra.mxu1 %v18614_v59  ;;  %v18695_v59 = vld [vmem:[%s24622_s4 + $0x2620] ss:$24 sps:$4 sm:$0xff]  }
 0x768   : > { %12942 = vmatprep.subr.bf16.mxu1 %v18622_v47  ;;  %v18703_v47 = vld [vmem:[%s24622_s4 + $0x2654] ss:$24 sps:$4 sm:$0xff]  }
 0x769   : > { %13504 = vmatpush1.bf16.msra.mxu0 %v18617_v34  ;;  %v18698_v34 = vld [vmem:[%s24622_s4 + $0x2c78] ss:$24 sps:$4 sm:$0xff]  }
 0x76a   : > { %12934 = vmatmul.mubr.bf16.vlgmr.msra.gmra.mrb[76].mxu1 %v21067_v8  ;;  %13505 = vmatprep.subr.bf16.mxu0 %v18625_v5  ;;  %v18706_v5 = vld [vmem:[%s24622_s4 + $0x2cac] ss:$24 sps:$4 sm:$0xff]  }
 0x76b   : > { %12943 = vmatpush1.bf16.msra.mxu1 %v18620_v19  ;;  %12974 = vmatprep.mubr.bf16.mxu1 %v21076_v49  ;;  %v18701_v19 = vld [vmem:[%s24622_s4 + $0x2650] ss:$24 sps:$4 sm:$0xff]  }
 0x76c   : > { %12944 = vmatprep.subr.bf16.mxu1 %v18628_v53  ;;  %v18709_v53 = vld [vmem:[%s24622_s4 + $0x2684] ss:$24 sps:$4 sm:$0xff]  }
 0x76d   : > { %13506 = vmatpush1.bf16.msra.mxu0 %v18623_v62  ;;  %v18704_v62 = vld [vmem:[%s24622_s4 + $0x2ca8] ss:$24 sps:$4 sm:$0xff]  }
 0x76e   : > { %13516 = vmatprep.subr.bf16.mxu0 %v18631_v7  ;;  %v18712_v7 = vld [vmem:[%s24622_s4 + $0x2cdc] ss:$24 sps:$4 sm:$0xff]  }
 0x76f   : > { %12945 = vmatpush1.bf16.msra.mxu1 %v18626_v10  ;;  %v18707_v10 = vld [vmem:[%s24622_s4 + $0x2680] ss:$24 sps:$4 sm:$0xff]  }
 0x770   : > { %13508 = vmatmul.mubr.bf16.vlgmr.msra.gmra.mrb[60].mxu0 %v20651_v20  ;;  %12946 = vmatprep.subr.bf16.mxu1 %v18634_v37  ;;  %v18638_v20 = vld [vmem:[%s24622_s4 + $0x2a98] ss:$24 sps:$4 sm:$0xff]   ;;  %v18715_v37 = vld [vmem:[%s24622_s4 + $0x26b4] ss:$24 sps:$4 sm:$0xff]  }
 0x771   : > { %13517 = vmatpush1.bf16.msra.mxu0 %v18629_v12  ;;  %13548 = vmatprep.mubr.bf16.mxu0 %v20660_v23  ;;  %v18641_v23 = vld [vmem:[%s24622_s4 + $0x2470] ss:$24 sps:$4 sm:$0xff]  }
 0x772   : > { %13518 = vmatprep.subr.bf16.mxu0 %v18637_v48  ;;  %v18710_v12 = vld [vmem:[%s24622_s4 + $0x2cd8] ss:$24 sps:$4 sm:$0xff]   ;;  %v18718_v48 = vld [vmem:[%s24622_s4 + $0x2d0c] ss:$24 sps:$4 sm:$0xff]  }
 0x773   : > { %12947 = vmatpush1.bf16.msra.mxu1 %v18632_v40  ;;  %v18713_v40 = vld [vmem:[%s24622_s4 + $0x26b0] ss:$24 sps:$4 sm:$0xff]  }
 0x774   : > { %12948 = vmatprep.subr.bf16.mxu1 %v18640_v41  ;;  %v18721_v41 = vld [vmem:[%s24622_s4 + $0x26e4] ss:$24 sps:$4 sm:$0xff]  }
 0x775   : > { %13519 = vmatpush1.bf16.msra.mxu0 %v18635_v58  ;;  %v18716_v58 = vld [vmem:[%s24622_s4 + $0x2d08] ss:$24 sps:$4 sm:$0xff]  }
 0x776   : > { %13520 = vmatprep.subr.bf16.mxu0 %v18643_v42  ;;  %v18724_v42 = vld [vmem:[%s24622_s4 + $0x2d3c] ss:$24 sps:$4 sm:$0xff]  }
 0x777   : > { %12949 = vmatpush1.bf16.msra.mxu1 %v18638_v20  ;;  %v18719_v20 = vld [vmem:[%s24622_s4 + $0x26e0] ss:$24 sps:$4 sm:$0xff]  }
 0x778   : > { %12950 = vmatprep.subr.bf16.mxu1 %v18646_v45  ;;  %v18727_v45 = vld [vmem:[%s24622_s4 + $0x2714] ss:$24 sps:$4 sm:$0xff]  }
 0x779   : > { %13521 = vmatpush1.bf16.msra.mxu0 %v18641_v23  ;;  %v18722_v23 = vld [vmem:[%s24622_s4 + $0x2d38] ss:$24 sps:$4 sm:$0xff]  }
 0x77a   : > { %13522 = vmatprep.subr.bf16.mxu0 %v18649_v4  ;;  %v18730_v4 = vld [vmem:[%s24622_s4 + $0x2d6c] ss:$24 sps:$4 sm:$0xff]  }
 0x77b   : > { %12951 = vmatpush1.bf16.msra.mxu1 %v18644_v52  ;;  %v18725_v52 = vld [vmem:[%s24622_s4 + $0x2710] ss:$24 sps:$4 sm:$0xff]  }
 0x77c   : > { %12952 = vmatprep.subr.bf16.mxu1 %v18652_v13  ;;  %v18733_v13 = vld [vmem:[%s24622_s4 + $0x2744] ss:$24 sps:$4 sm:$0xff]  }
 0x77d   : > { %13523 = vmatpush1.bf16.msra.mxu0 %v18647_v26  ;;  %v18728_v26 = vld [vmem:[%s24622_s4 + $0x2d68] ss:$24 sps:$4 sm:$0xff]  }
 0x77e   : > { %13524 = vmatprep.subr.bf16.mxu0 %v18655_v35  ;;  %v18736_v35 = vld [vmem:[%s24622_s4 + $0x2d9c] ss:$24 sps:$4 sm:$0xff]  }
 0x77f   : > { %12953 = vmatpush1.bf16.msra.mxu1 %v18650_v22  ;;  %v18731_v22 = vld [vmem:[%s24622_s4 + $0x2740] ss:$24 sps:$4 sm:$0xff]  }
 0x780   : > { %12954 = vmatprep.subr.bf16.mxu1 %v18658_v0  ;;  %v18739_v0 = vld [vmem:[%s24622_s4 + $0x2774] ss:$24 sps:$4 sm:$0xff]  }
 0x781   : > { %13525 = vmatpush1.bf16.msra.mxu0 %v18653_v43  ;;  %v18742_v43 = vld [vmem:[%s24622_s4 + $0x2dcc] ss:$24 sps:$4 sm:$0xff]  }
 0x782   : > { %13526 = vmatprep.subr.bf16.mxu0 %v18661_v32  ;;  %v18745_v32 = vld [vmem:[%s24622_s4 + $0x27a4] ss:$24 sps:$4 sm:$0xff]  }
 0x783   : > { %12955 = vmatpush1.bf16.msra.mxu1 %v18656_v60  ;;  %v18740_v60 = vld [vmem:[%s24622_s4 + $0x2dc8] ss:$24 sps:$4 sm:$0xff]  }
 0x784   : > { %12956 = vmatprep.subr.bf16.mxu1 %v18664_v30  ;;  %v18748_v30 = vld [vmem:[%s24622_s4 + $0x2dfc] ss:$24 sps:$4 sm:$0xff]  }
 0x785   : > { %13527 = vmatpush1.bf16.msra.mxu0 %v18659_v17  ;;  %v18743_v17 = vld [vmem:[%s24622_s4 + $0x27a0] ss:$24 sps:$4 sm:$0xff]  }
 0x786   : > { %13528 = vmatprep.subr.bf16.mxu0 %v18667_v9  ;;  %v18751_v9 = vld [vmem:[%s24622_s4 + $0x27d4] ss:$24 sps:$4 sm:$0xff]  }
 0x787   : > { %12957 = vmatpush1.bf16.msra.mxu1 %v18662_v29  ;;  %v18746_v29 = vld [vmem:[%s24622_s4 + $0x2df8] ss:$24 sps:$4 sm:$0xff]  }
 0x788   : > { %12958 = vmatprep.subr.bf16.mxu1 %v18670_v54  ;;  %v18754_v54 = vld [vmem:[%s24622_s4 + $0x2e2c] ss:$24 sps:$4 sm:$0xff]  }
 0x789   : > { %13529 = vmatpush1.bf16.msra.mxu0 %v18665_v18  ;;  %v18749_v18 = vld [vmem:[%s24622_s4 + $0x27d0] ss:$24 sps:$4 sm:$0xff]  }
 0x78a   : > { %13530 = vmatprep.subr.bf16.mxu0 %v18673_v1  ;;  %v18757_v1 = vld [vmem:[%s24622_s4 + $0x2804] ss:$24 sps:$4 sm:$0xff]  }
 0x78b   : > { %12959 = vmatpush1.bf16.msra.mxu1 %v18668_v2  ;;  %v18752_v2 = vld [vmem:[%s24622_s4 + $0x2e28] ss:$24 sps:$4 sm:$0xff]  }
 0x78c   : > { %12960 = vmatprep.subr.bf16.mxu1 %v18676_v14  ;;  %v18760_v14 = vld [vmem:[%s24622_s4 + $0x2e5c] ss:$24 sps:$4 sm:$0xff]  }
 0x78d   : > { %13531 = vmatpush1.bf16.msra.mxu0 %v18671_v55  ;;  %v18755_v55 = vld [vmem:[%s24622_s4 + $0x2800] ss:$24 sps:$4 sm:$0xff]  }
 0x78e   : > { %13532 = vmatprep.subr.bf16.mxu0 %v18679_v38  ;;  %v18763_v38 = vld [vmem:[%s24622_s4 + $0x2834] ss:$24 sps:$4 sm:$0xff]  }
 0x78f   : > { %12961 = vmatpush1.bf16.msra.mxu1 %v18674_v6  ;;  %v18758_v6 = vld [vmem:[%s24622_s4 + $0x2e58] ss:$24 sps:$4 sm:$0xff]  }
 0x790   : > { %12962 = vmatprep.subr.bf16.mxu1 %v18682_v24  ;;  %v18766_v24 = vld [vmem:[%s24622_s4 + $0x2e8c] ss:$24 sps:$4 sm:$0xff]  }
 0x791   : > { %13533 = vmatpush1.bf16.msra.mxu0 %v18677_v25  ;;  %v18761_v25 = vld [vmem:[%s24622_s4 + $0x2830] ss:$24 sps:$4 sm:$0xff]  }
 0x792   : > { %13534 = vmatprep.subr.bf16.mxu0 %v18685_v51  ;;  %v18769_v51 = vld [vmem:[%s24622_s4 + $0x2864] ss:$24 sps:$4 sm:$0xff]  }
 0x793   : > { %12963 = vmatpush1.bf16.msra.mxu1 %v18680_v15  ;;  %v18764_v15 = vld [vmem:[%s24622_s4 + $0x2e88] ss:$24 sps:$4 sm:$0xff]  }
 0x794   : > { %12964 = vmatprep.subr.bf16.mxu1 %v18688_v33  ;;  %v18772_v33 = vld [vmem:[%s24622_s4 + $0x2ebc] ss:$24 sps:$4 sm:$0xff]  }
 0x795   : > { %13535 = vmatpush1.bf16.msra.mxu0 %v18683_v56  ;;  %v18767_v56 = vld [vmem:[%s24622_s4 + $0x2860] ss:$24 sps:$4 sm:$0xff]  }
 0x796   : > { %13536 = vmatprep.subr.bf16.mxu0 %v18691_v46  ;;  %v18775_v46 = vld [vmem:[%s24622_s4 + $0x2894] ss:$24 sps:$4 sm:$0xff]  }
 0x797   : > { %12965 = vmatpush1.bf16.msra.mxu1 %v18686_v21  ;;  %v18770_v21 = vld [vmem:[%s24622_s4 + $0x2eb8] ss:$24 sps:$4 sm:$0xff]  }
 0x798   : > { %12966 = vmatprep.subr.bf16.mxu1 %v18694_v11  ;;  %v18778_v11 = vld [vmem:[%s24622_s4 + $0x2eec] ss:$24 sps:$4 sm:$0xff]  }
 0x799   : > { %13537 = vmatpush1.bf16.msra.mxu0 %v18689_v39  ;;  %v18773_v39 = vld [vmem:[%s24622_s4 + $0x2890] ss:$24 sps:$4 sm:$0xff]  }
 0x79a   : > { %13538 = vmatprep.subr.bf16.mxu0 %v18697_v36  ;;  %v18781_v36 = vld [vmem:[%s24622_s4 + $0x28c4] ss:$24 sps:$4 sm:$0xff]  }
 0x79b   : > { %12967 = vmatpush1.bf16.msra.mxu1 %v18692_v16  ;;  %v18776_v16 = vld [vmem:[%s24622_s4 + $0x2ee8] ss:$24 sps:$4 sm:$0xff]  }
 0x79c   : > { %12968 = vmatprep.subr.bf16.mxu1 %v18700_v3  ;;  %v18784_v3 = vld [vmem:[%s24622_s4 + $0x2f1c] ss:$24 sps:$4 sm:$0xff]  }
 0x79d   : > { %13539 = vmatpush1.bf16.msra.mxu0 %v18695_v59  ;;  %v18779_v59 = vld [vmem:[%s24622_s4 + $0x28c0] ss:$24 sps:$4 sm:$0xff]  }
 0x79e   : > { %13540 = vmatprep.subr.bf16.mxu0 %v18703_v47  ;;  %v18787_v47 = vld [vmem:[%s24622_s4 + $0x28f4] ss:$24 sps:$4 sm:$0xff]  }
 0x79f   : > { %12969 = vmatpush1.bf16.msra.mxu1 %v18698_v34  ;;  %v18782_v34 = vld [vmem:[%s24622_s4 + $0x2f18] ss:$24 sps:$4 sm:$0xff]  }
 0x7a0   : > { %12970 = vmatprep.subr.bf16.mxu1 %v18706_v5  ;;  %v18790_v5 = vld [vmem:[%s24622_s4 + $0x2f4c] ss:$24 sps:$4 sm:$0xff]  }
 0x7a1   : > { %13541 = vmatpush1.bf16.msra.mxu0 %v18701_v19  ;;  %v18785_v19 = vld [vmem:[%s24622_s4 + $0x28f0] ss:$24 sps:$4 sm:$0xff]  }
 0x7a2   : > { %13542 = vmatprep.subr.bf16.mxu0 %v18709_v53  ;;  %v18793_v53 = vld [vmem:[%s24622_s4 + $0x2924] ss:$24 sps:$4 sm:$0xff]  }
 0x7a3   : > { %12971 = vmatpush1.bf16.msra.mxu1 %v18704_v62  ;;  %v18788_v62 = vld [vmem:[%s24622_s4 + $0x2f48] ss:$24 sps:$4 sm:$0xff]  }
 0x7a4   : > { %12972 = vmatprep.subr.bf16.mxu1 %v18712_v7  ;;  %v18796_v7 = vld [vmem:[%s24622_s4 + $0x2f7c] ss:$24 sps:$4 sm:$0xff]  }
 0x7a5   : > { %13543 = vmatpush1.bf16.msra.mxu0 %v18707_v10  ;;  %v18791_v10 = vld [vmem:[%s24622_s4 + $0x2920] ss:$24 sps:$4 sm:$0xff]  }
 0x7a6   : > { %13544 = vmatprep.subr.bf16.mxu0 %v18715_v37  ;;  %v18799_v37 = vld [vmem:[%s24622_s4 + $0x2954] ss:$24 sps:$4 sm:$0xff]  }
 0x7a7   : > { %12973 = vmatpush1.bf16.msra.mxu1 %v18710_v12  ;;  %v18794_v12 = vld [vmem:[%s24622_s4 + $0x2f78] ss:$24 sps:$4 sm:$0xff]  }
 0x7a8   : > { %12983 = vmatprep.subr.bf16.mxu1 %v18718_v48  ;;  %v18802_v48 = vld [vmem:[%s24622_s4 + $0x2fac] ss:$24 sps:$4 sm:$0xff]  }
 0x7a9   : > { %13545 = vmatpush1.bf16.msra.mxu0 %v18713_v40  ;;  %v18797_v40 = vld [vmem:[%s24622_s4 + $0x2950] ss:$24 sps:$4 sm:$0xff]  }
 0x7aa   : > { %12975 = vmatmul.mubr.bf16.vlgmr.msra.gmra.mrb[76].mxu1 %v21275_v31  ;;  %13546 = vmatprep.subr.bf16.mxu0 %v18721_v41  ;;  %v18805_v41 = vld [vmem:[%s24622_s4 + $0x2984] ss:$24 sps:$4 sm:$0xff]  }
 0x7ab   : > { %12984 = vmatpush1.bf16.msra.mxu1 %v18716_v58  ;;  %13015 = vmatprep.mubr.bf16.mxu1 %v21282_v27  ;;  %v18800_v58 = vld [vmem:[%s24622_s4 + $0x2fa8] ss:$24 sps:$4 sm:$0xff]  }
 0x7ac   : > { %12985 = vmatprep.subr.bf16.mxu1 %v18724_v42  ;;  %v18808_v42 = vld [vmem:[%s24622_s4 + $0x2fdc] ss:$24 sps:$4 sm:$0xff]  }
 0x7ad   : > { %13547 = vmatpush1.bf16.msra.mxu0 %v18719_v20  ;;  %v18803_v20 = vld [vmem:[%s24622_s4 + $0x2980] ss:$24 sps:$4 sm:$0xff]  }
 0x7ae   : > { %13557 = vmatprep.subr.bf16.mxu0 %v18727_v45  ;;  %v18811_v45 = vld [vmem:[%s24622_s4 + $0x29b4] ss:$24 sps:$4 sm:$0xff]  }
 0x7af   : > { %12986 = vmatpush1.bf16.msra.mxu1 %v18722_v23  ;;  %v18806_v23 = vld [vmem:[%s24622_s4 + $0x2fd8] ss:$24 sps:$4 sm:$0xff]  }
 0x7b0   : > { %13549 = vmatmul.mubr.bf16.vlgmr.msra.gmra.mrb[60].mxu0 %v20863_v57  ;;  %12987 = vmatprep.subr.bf16.mxu1 %v18730_v4  ;;  %v18734_v57 = vld [vmem:[%s24622_s4 + $0x2d98] ss:$24 sps:$4 sm:$0xff]   ;;  %v18815_v4 = vld [vmem:[%s24624_s6 + $0x40] sm:$0xff]  }
 0x7b1   : > { %13558 = vmatpush1.bf16.msra.mxu0 %v18725_v52  ;;  %13589 = vmatprep.mubr.bf16.mxu0 %v20870_v63  ;;  %v18737_v63 = vld [vmem:[%s24622_s4 + $0x2770] ss:$24 sps:$4 sm:$0xff]   ;;  %v13681_v52 = vmax.f32 %v22153_v50, 0.0 }
 0x7b2   : > { %13559 = vmatprep.subr.bf16.mxu0 %v18733_v13  ;;  %v18809_v13 = vld [vmem:[%s24622_s4 + $0x29b0] ss:$24 sps:$4 sm:$0xff]  }
 0x7b3   : > { %12988 = vmatpush1.bf16.msra.mxu1 %v18728_v26  ;;  %v18814_v26 = vld [vmem:[%s24622_s4 + $0x29e4] ss:$24 sps:$4 sm:$0xff]   ;;  %v18820_v50 = vld [vmem:[%s24624_s6 + $0x48] sm:$0xff]  }
 0x7b4   : > { %12989 = vmatprep.subr.bf16.mxu1 %v18736_v35  ;;  %v18816_v35 = vld [vmem:[%s24624_s6] sm:$0xff]  }
 0x7b5   : > { %13560 = vmatpush1.bf16.msra.mxu0 %v18731_v22  ;;  %v13687_v22 = vpack.c.bf16 %v13681_v52, %v13681_v52  ;;  %v18872_v52 = vld [vmem:[%s24622_s4 + $0x2c84] ss:$24 sps:$4 sm:$0xff]  }
 0x7b6   : > { %13561 = vmatprep.subr.bf16.mxu0 %v18739_v0  ;;  %v18812_v0 = vld [vmem:[%s24622_s4 + $0x29e0] ss:$24 sps:$4 sm:$0xff]  }
 0x7b7   : > { %12990 = vmatpush1.bf16.msra.mxu1 %v18734_v57  ;;  %v18819_v57 = vld [vmem:[%s24622_s4 + $0x2a14] ss:$24 sps:$4 sm:$0xff]  }
 0x7b8   : > { %12991 = vmatprep.subr.bf16.mxu1 %v18742_v43  ;;  %v18821_v43 = vld [vmem:[%s24624_s6 + $0x8] sm:$0xff]  }
 0x7b9   : > { %13562 = vmatpush1.bf16.msra.mxu0 %v18737_v63  ;;  %v18825_v63 = vld [vmem:[%s24624_s6 + $0x50] sm:$0xff]  }
 0x7ba   : > { %13563 = vmatprep.subr.bf16.mxu0 %v18745_v32  ;;  %v18817_v32 = vld [vmem:[%s24622_s4 + $0x2a10] ss:$24 sps:$4 sm:$0xff]  }
 0x7bb   : > { %12992 = vmatpush1.bf16.msra.mxu1 %v18740_v60  ;;  %v18824_v60 = vld [vmem:[%s24622_s4 + $0x2a44] ss:$24 sps:$4 sm:$0xff]  }
 0x7bc   : > { %12993 = vmatprep.subr.bf16.mxu1 %v18748_v30  ;;  %v18826_v30 = vld [vmem:[%s24624_s6 + $0x10] sm:$0xff]  }
 0x7bd   : > { %13564 = vmatpush1.bf16.msra.mxu0 %v18743_v17  ;;  %v18830_v17 = vld [vmem:[%s24624_s6 + $0x58] sm:$0xff]  }
 0x7be   : > { %13565 = vmatprep.subr.bf16.mxu0 %v18751_v9  ;;  %v18822_v9 = vld [vmem:[%s24622_s4 + $0x2a40] ss:$24 sps:$4 sm:$0xff]  }
 0x7bf   : > { %12994 = vmatpush1.bf16.msra.mxu1 %v18746_v29  ;;  %v18829_v29 = vld [vmem:[%s24622_s4 + $0x2a74] ss:$24 sps:$4 sm:$0xff]  }
 0x7c0   : > { %12995 = vmatprep.subr.bf16.mxu1 %v18754_v54  ;;  %v18835_v54 = vld [vmem:[%s24624_s6 + $0x60] sm:$0xff]  }
 0x7c1   : > { %13566 = vmatpush1.bf16.msra.mxu0 %v18749_v18  ;;  %v18834_v18 = vld [vmem:[%s24622_s4 + $0x2aa4] ss:$24 sps:$4 sm:$0xff]  }
 0x7c2   : > { %13567 = vmatprep.subr.bf16.mxu0 %v18757_v1  ;;  %v18836_v1 = vld [vmem:[%s24624_s6 + $0x20] sm:$0xff]  }
 0x7c3   : > { %12996 = vmatpush1.bf16.msra.mxu1 %v18752_v2  ;;  %v18840_v2 = vld [vmem:[%s24624_s6 + $0x68] sm:$0xff]  }
 0x7c4   : > { %12997 = vmatprep.subr.bf16.mxu1 %v18760_v14  ;;  %v18832_v14 = vld [vmem:[%s24622_s4 + $0x2aa0] ss:$24 sps:$4 sm:$0xff]  }
 0x7c5   : > { %13568 = vmatpush1.bf16.msra.mxu0 %v18755_v55  ;;  %v18839_v55 = vld [vmem:[%s24622_s4 + $0x2ad4] ss:$24 sps:$4 sm:$0xff]  }
 0x7c6   : > { %13569 = vmatprep.subr.bf16.mxu0 %v18763_v38  ;;  %v18841_v38 = vld [vmem:[%s24624_s6 + $0x28] sm:$0xff]  }
 0x7c7   : > { %12998 = vmatpush1.bf16.msra.mxu1 %v18758_v6  ;;  %v18845_v6 = vld [vmem:[%s24624_s6 + $0x70] sm:$0xff]  }
 0x7c8   : > { %12999 = vmatprep.subr.bf16.mxu1 %v18766_v24  ;;  %v18837_v24 = vld [vmem:[%s24622_s4 + $0x2ad0] ss:$24 sps:$4 sm:$0xff]  }
 0x7c9   : > { %13570 = vmatpush1.bf16.msra.mxu0 %v18761_v25  ;;  %v18844_v25 = vld [vmem:[%s24622_s4 + $0x2b04] ss:$24 sps:$4 sm:$0xff]  }
 0x7ca   : > { %13571 = vmatprep.subr.bf16.mxu0 %v18769_v51  ;;  %v18846_v51 = vld [vmem:[%s24624_s6 + $0x30] sm:$0xff]  }
 0x7cb   : > { %13000 = vmatpush1.bf16.msra.mxu1 %v18764_v15  ;;  %v18850_v15 = vld [vmem:[%s24624_s6 + $0x78] sm:$0xff]  }
 0x7cc   : > { %13001 = vmatprep.subr.bf16.mxu1 %v18772_v33  ;;  %v18842_v33 = vld [vmem:[%s24622_s4 + $0x2b00] ss:$24 sps:$4 sm:$0xff]  }
 0x7cd   : > { %13572 = vmatpush1.bf16.msra.mxu0 %v18767_v56  ;;  %v18849_v56 = vld [vmem:[%s24622_s4 + $0x2b34] ss:$24 sps:$4 sm:$0xff]  }
 0x7ce   : > { %13573 = vmatprep.subr.bf16.mxu0 %v18775_v46  ;;  %v18851_v46 = vld [vmem:[%s24624_s6 + $0x38] sm:$0xff]  }
 0x7cf   : > { %13002 = vmatpush1.bf16.msra.mxu1 %v18770_v21  ;;  %v13680_v21 = vmax.f32 %v22148_v28, 0.0  ;;  %v18928_v28 = vld [vmem:[%s24624_s6 + $0x80] sm:$0xff]  }
 0x7d0   : > { %13003 = vmatprep.subr.bf16.mxu1 %v18778_v11  ;;  %v18927_v11 = vld [vmem:[%s24624_s6 + $0xc0] sm:$0xff]  }
 0x7d1   : > { %13574 = vmatpush1.bf16.msra.mxu0 %v18773_v39  ;;  %v18847_v39 = vld [vmem:[%s24622_s4 + $0x2b30] ss:$24 sps:$4 sm:$0xff]  }
 0x7d2   : > { %13575 = vmatprep.subr.bf16.mxu0 %v18781_v36  ;;  %v18854_v36 = vld [vmem:[%s24622_s4 + $0x2b64] ss:$24 sps:$4 sm:$0xff]  }
 0x7d3   : > { %13004 = vmatpush1.bf16.msra.mxu1 %v18776_v16  ;;  %v13686_v16 = vpack.c.bf16 %v13680_v21, %v13680_v21  ;;  %v18915_v21 = vld [vmem:[%s24622_s4 + $0x2f50] ss:$24 sps:$4 sm:$0xff]  }
 0x7d4   : > { %13005 = vmatprep.subr.bf16.mxu1 %v18784_v3  ;;  %v18929_v3 = vld [vmem:[%s24624_s6 + $0xc8] sm:$0xff]  }
 0x7d5   : > { %13576 = vmatpush1.bf16.msra.mxu0 %v18779_v59  ;;  %v18852_v59 = vld [vmem:[%s24622_s4 + $0x2b60] ss:$24 sps:$4 sm:$0xff]  }
 0x7d6   : > { %13577 = vmatprep.subr.bf16.mxu0 %v18787_v47  ;;  %v18857_v47 = vld [vmem:[%s24622_s4 + $0x2b94] ss:$24 sps:$4 sm:$0xff]  }
 0x7d7   : > { %13006 = vmatpush1.bf16.msra.mxu1 %v18782_v34  ;;  %v18930_v34 = vld [vmem:[%s24624_s6 + $0x88] sm:$0xff]  }
 0x7d8   : > { %13007 = vmatprep.subr.bf16.mxu1 %v18790_v5  ;;  %v18931_v5 = vld [vmem:[%s24624_s6 + $0xd0] sm:$0xff]  }
 0x7d9   : > { %13578 = vmatpush1.bf16.msra.mxu0 %v18785_v19  ;;  %v18855_v19 = vld [vmem:[%s24622_s4 + $0x2b90] ss:$24 sps:$4 sm:$0xff]  }
 0x7da   : > { %13579 = vmatprep.subr.bf16.mxu0 %v18793_v53  ;;  %v18860_v53 = vld [vmem:[%s24622_s4 + $0x2bc4] ss:$24 sps:$4 sm:$0xff]  }
 0x7db   : > { %13008 = vmatpush1.bf16.msra.mxu1 %v18788_v62  ;;  %v18932_v62 = vld [vmem:[%s24624_s6 + $0x90] sm:$0xff]  }
 0x7dc   : > { %13009 = vmatprep.subr.bf16.mxu1 %v18796_v7  ;;  %v18933_v7 = vld [vmem:[%s24624_s6 + $0xd8] sm:$0xff]  }
 0x7dd   : > { %13580 = vmatpush1.bf16.msra.mxu0 %v18791_v10  ;;  %v18858_v10 = vld [vmem:[%s24622_s4 + $0x2bc0] ss:$24 sps:$4 sm:$0xff]  }
 0x7de   : > { %13581 = vmatprep.subr.bf16.mxu0 %v18799_v37  ;;  %v18863_v37 = vld [vmem:[%s24622_s4 + $0x2bf4] ss:$24 sps:$4 sm:$0xff]  }
 0x7df   : > { %13010 = vmatpush1.bf16.msra.mxu1 %v18794_v12  ;;  %v18934_v12 = vld [vmem:[%s24624_s6 + $0x98] sm:$0xff]  }
 0x7e0   : > { %13011 = vmatprep.subr.bf16.mxu1 %v18802_v48  ;;  %v18935_v48 = vld [vmem:[%s24624_s6 + $0xe0] sm:$0xff]  }
 0x7e1   : > { %13582 = vmatpush1.bf16.msra.mxu0 %v18797_v40  ;;  %v18861_v40 = vld [vmem:[%s24622_s4 + $0x2bf0] ss:$24 sps:$4 sm:$0xff]  }
 0x7e2   : > { %13583 = vmatprep.subr.bf16.mxu0 %v18805_v41  ;;  %v18866_v41 = vld [vmem:[%s24622_s4 + $0x2c24] ss:$24 sps:$4 sm:$0xff]  }
 0x7e3   : > { %13012 = vmatpush1.bf16.msra.mxu1 %v18800_v58  ;;  %v18936_v58 = vld [vmem:[%s24624_s6 + $0xa0] sm:$0xff]  }
 0x7e4   : > { %13013 = vmatprep.subr.bf16.mxu1 %v18808_v42  ;;  %v18937_v42 = vld [vmem:[%s24624_s6 + $0xe8] sm:$0xff]  }
 0x7e5   : > { %13584 = vmatpush1.bf16.msra.mxu0 %v18803_v20  ;;  %v18864_v20 = vld [vmem:[%s24622_s4 + $0x2c20] ss:$24 sps:$4 sm:$0xff]  }
 0x7e6   : > { %13585 = vmatprep.subr.bf16.mxu0 %v18811_v45  ;;  %v18869_v45 = vld [vmem:[%s24622_s4 + $0x2c54] ss:$24 sps:$4 sm:$0xff]  }
 0x7e7   : > { %13014 = vmatpush1.bf16.msra.mxu1 %v18806_v23  ;;  %v18938_v23 = vld [vmem:[%s24624_s6 + $0xa8] sm:$0xff]  }
 0x7e8   : > { %16070 = vmatprep.subr.bf16.mxu1 %v18815_v4  ;;  %v18867_v4 = vld [vmem:[%s24622_s4 + $0x2c50] ss:$24 sps:$4 sm:$0xff]  }
 0x7e9   : > { %13586 = vmatpush1.bf16.msra.mxu0 %v18809_v13  ;;  %v18870_v13 = vld [vmem:[%s24622_s4 + $0x2c80] ss:$24 sps:$4 sm:$0xff]  }
 0x7ea   : > { %13016 = vmatmul.mubr.bf16.vlgmr.msra.gmra.mrb[76].mxu1 %v21479_v61  ;;  %13587 = vmatprep.subr.bf16.mxu0 %v18814_v26  ;;  %v18875_v26 = vld [vmem:[%s24622_s4 + $0x2cb4] ss:$24 sps:$4 sm:$0xff]  }
 0x7eb   : > { %16071 = vmatpush3.bf16.msra.mxu1 %v18816_v35  ;;  %14115 = vmatprep.mubr.bf16.mxu1 %v13687_v22  ;;  %v18873_v35 = vld [vmem:[%s24622_s4 + $0x2cb0] ss:$24 sps:$4 sm:$0xff]   ;;  %v18876_v22 = vld [vmem:[%s24622_s4 + $0x2ce0] ss:$24 sps:$4 sm:$0xff]  }
 0x7ec   : > { %16072 = vmatprep.subr.bf16.mxu1 %v18820_v50  ;;  %v18878_v50 = vld [vmem:[%s24622_s4 + $0x2ce4] ss:$24 sps:$4 sm:$0xff]  }
 0x7ed   : > { %13588 = vmatpush1.bf16.msra.mxu0 %v18812_v0  ;;  %v18881_v0 = vld [vmem:[%s24622_s4 + $0x2d14] ss:$24 sps:$4 sm:$0xff]  }
 0x7ee   : > { %13598 = vmatprep.subr.bf16.mxu0 %v18819_v57  ;;  %v18879_v57 = vld [vmem:[%s24622_s4 + $0x2d10] ss:$24 sps:$4 sm:$0xff]  }
 0x7ef   : > { %16073 = vmatpush3.bf16.msra.mxu1 %v18821_v43  ;;  %v18884_v43 = vld [vmem:[%s24622_s4 + $0x2d44] ss:$24 sps:$4 sm:$0xff]  }
 0x7f0   : > { %13590 = vmatmul.mubr.bf16.vlgmr.msra.gmra.mrb[60].mxu0 %v21067_v8  ;;  %16074 = vmatprep.subr.bf16.mxu1 %v18825_v63  ;;  %v18831_v8 = vld [vmem:[%s24624_s6 + $0x18] sm:$0xff]  }
 0x7f1   : > { %13599 = vmatpush1.bf16.msra.mxu0 %v18817_v32  ;;  %13630 = vmatprep.mubr.bf16.mxu0 %v21076_v49  ;;  %v18827_v49 = vld [vmem:[%s24622_s4 + $0x2a70] ss:$24 sps:$4 sm:$0xff]   ;;  %v18882_v63 = vld [vmem:[%s24622_s4 + $0x2d40] ss:$24 sps:$4 sm:$0xff]   ;;  %v18887_v32 = vld [vmem:[%s24622_s4 + $0x2d74] ss:$24 sps:$4 sm:$0xff]  }
 0x7f2   : > { %13600 = vmatprep.subr.bf16.mxu0 %v18824_v60  ;;  %v18885_v60 = vld [vmem:[%s24622_s4 + $0x2d70] ss:$24 sps:$4 sm:$0xff]  }
 0x7f3   : > { %16075 = vmatpush3.bf16.msra.mxu1 %v18826_v30  ;;  %v18893_v30 = vld [vmem:[%s24622_s4 + $0x2dd4] ss:$24 sps:$4 sm:$0xff]  }
 0x7f4   : > { %16076 = vmatprep.subr.bf16.mxu1 %v18830_v17  ;;  %v18891_v17 = vld [vmem:[%s24622_s4 + $0x2dd0] ss:$24 sps:$4 sm:$0xff]  }
 0x7f5   : > { %13601 = vmatpush1.bf16.msra.mxu0 %v18822_v9  ;;  %v18896_v9 = vld [vmem:[%s24622_s4 + $0x2e04] ss:$24 sps:$4 sm:$0xff]  }
 0x7f6   : > { %13602 = vmatprep.subr.bf16.mxu0 %v18829_v29  ;;  %v18894_v29 = vld [vmem:[%s24622_s4 + $0x2e00] ss:$24 sps:$4 sm:$0xff]  }
 0x7f7   : > { %16077 = vmatpush3.bf16.msra.mxu1 %v18831_v8  ;;  %v18899_v8 = vld [vmem:[%s24622_s4 + $0x2e34] ss:$24 sps:$4 sm:$0xff]  }
 0x7f8   : > { %16078 = vmatprep.subr.bf16.mxu1 %v18835_v54  ;;  %v18939_v54 = vld [vmem:[%s24624_s6 + $0xf0] sm:$0xff]  }
 0x7f9   : > { %13603 = vmatpush1.bf16.msra.mxu0 %v18827_v49  ;;  %v18940_v49 = vld [vmem:[%s24624_s6 + $0xb0] sm:$0xff]  }
 0x7fa   : > { %13604 = vmatprep.subr.bf16.mxu0 %v18834_v18  ;;  %v18941_v18 = vld [vmem:[%s24624_s6 + $0xf8] sm:$0xff]  }
 0x7fb   : > { %16079 = vmatpush3.bf16.msra.mxu1 %v18836_v1  ;;  %v18897_v1 = vld [vmem:[%s24622_s4 + $0x2e30] ss:$24 sps:$4 sm:$0xff]  }
 0x7fc   : > { %16080 = vmatprep.subr.bf16.mxu1 %v18840_v2  ;;  %v18902_v2 = vld [vmem:[%s24622_s4 + $0x2e64] ss:$24 sps:$4 sm:$0xff]  }
 0x7fd   : > { %13605 = vmatpush1.bf16.msra.mxu0 %v18832_v14  ;;  %v18942_v14 = vld [vmem:[%s24624_s6 + $0xb8] sm:$0xff]  }
 0x7fe   : > { %13606 = vmatprep.subr.bf16.mxu0 %v18839_v55  ;;  %v18900_v55 = vld [vmem:[%s24622_s4 + $0x2e60] ss:$24 sps:$4 sm:$0xff]  }
 0x7ff   : > { %16081 = vmatpush3.bf16.msra.mxu1 %v18841_v38  ;;  %v18905_v38 = vld [vmem:[%s24622_s4 + $0x2e94] ss:$24 sps:$4 sm:$0xff]  }
 0x800   : > { %16082 = vmatprep.subr.bf16.mxu1 %v18845_v6  ;;  %v18903_v6 = vld [vmem:[%s24622_s4 + $0x2e90] ss:$24 sps:$4 sm:$0xff]  }
 0x801   : > { %13607 = vmatpush1.bf16.msra.mxu0 %v18837_v24  ;;  %v18908_v24 = vld [vmem:[%s24622_s4 + $0x2ec4] ss:$24 sps:$4 sm:$0xff]  }
 0x802   : > { %13608 = vmatprep.subr.bf16.mxu0 %v18844_v25  ;;  %v18906_v25 = vld [vmem:[%s24622_s4 + $0x2ec0] ss:$24 sps:$4 sm:$0xff]  }
 0x803   : > { %16083 = vmatpush3.bf16.msra.mxu1 %v18846_v51  ;;  %v18911_v51 = vld [vmem:[%s24622_s4 + $0x2ef4] ss:$24 sps:$4 sm:$0xff]  }
 0x804   : > { %16084 = vmatprep.subr.bf16.mxu1 %v18850_v15  ;;  %v18909_v15 = vld [vmem:[%s24622_s4 + $0x2ef0] ss:$24 sps:$4 sm:$0xff]  }
 0x805   : > { %13609 = vmatpush1.bf16.msra.mxu0 %v18842_v33  ;;  %v18914_v33 = vld [vmem:[%s24622_s4 + $0x2f24] ss:$24 sps:$4 sm:$0xff]  }
 0x806   : > { %13610 = vmatprep.subr.bf16.mxu0 %v18849_v56  ;;  %v18912_v56 = vld [vmem:[%s24622_s4 + $0x2f20] ss:$24 sps:$4 sm:$0xff]  }
 0x807   : > { %16085 = vmatpush3.bf16.msra.mxu1 %v18851_v46  ;;  %v18917_v46 = vld [vmem:[%s24622_s4 + $0x2f54] ss:$24 sps:$4 sm:$0xff]  }
 0x808   : > { %16092 = vmatprep.subr.bf16.mxu1 %v18927_v11  ;;  %v18920_v11 = vld [vmem:[%s24622_s4 + $0x2f84] ss:$24 sps:$4 sm:$0xff]  }
 0x809   : > { %13611 = vmatpush1.bf16.msra.mxu0 %v18847_v39  ;;  %v18918_v39 = vld [vmem:[%s24622_s4 + $0x2f80] ss:$24 sps:$4 sm:$0xff]  }
 0x80a   : > { %13612 = vmatprep.subr.bf16.mxu0 %v18854_v36  ;;  %14116 = vmatmul.mubr.bf16.vlgmr.msra.gmra.mrb[80].mxu1 %v13686_v16  ;;  %v18943_v36 = vld [vmem:[%s24624_s6 + $0x140] sm:$0xff]   ;;  %v18921_v16 = vld [vmem:[%s24622_s4 + $0x2fb0] ss:$24 sps:$4 sm:$0xff]  }
 0x80b   : > { %16093 = vmatpush3.bf16.msra.mxu1 %v18928_v28  ;;  %v18923_v28 = vld [vmem:[%s24622_s4 + $0x2fb4] ss:$24 sps:$4 sm:$0xff]  }
 0x80c   : > { %16094 = vmatprep.subr.bf16.mxu1 %v18929_v3  ;;  %v18926_v3 = vld [vmem:[%s24622_s4 + $0x2fe4] ss:$24 sps:$4 sm:$0xff]  }
 0x80d   : > { %13613 = vmatpush1.bf16.msra.mxu0 %v18852_v59  ;;  %v18924_v59 = vld [vmem:[%s24622_s4 + $0x2fe0] ss:$24 sps:$4 sm:$0xff]  }
 0x80e   : > { %13614 = vmatprep.subr.bf16.mxu0 %v18857_v47  ;;  %v3644_v47 = vsub.s32 2, %v19650_v44 }
 0x80f   : > { %16095 = vmatpush3.bf16.msra.mxu1 %v18930_v34  ;;  %v3648_v34 = vsub.s32 3, %v19650_v44 }
 0x810   : > { %16096 = vmatprep.subr.bf16.mxu1 %v18931_v5  ;;  %v18959_v5 = vld [vmem:[%s24623_s5] sm:$0x3f] }
 0x811   : > { %13615 = vmatpush1.bf16.msra.mxu0 %v18855_v19  ;;  %v3645_v19 = vrot.slane %v18959_v5, %v3644_v47 }
 0x812   : > { %13616 = vmatprep.subr.bf16.mxu0 %v18860_v53  ;;  %v3649_v53 = vrot.slane %v18959_v5, %v3648_v34 }
 0x813   : > { %16097 = vmatpush3.bf16.msra.mxu1 %v18932_v62 }
 0x814   : > { %16098 = vmatprep.subr.bf16.mxu1 %v18933_v7 }
 0x815   : > { %13617 = vmatpush1.bf16.msra.mxu0 %v18858_v10 }
 0x816   : > { %13618 = vmatprep.subr.bf16.mxu0 %v18863_v37 }
 0x817   : > { %16099 = vmatpush3.bf16.msra.mxu1 %v18934_v12 }
 0x818   : > { %16100 = vmatprep.subr.bf16.mxu1 %v18935_v48 }
 0x819   : > { %13619 = vmatpush1.bf16.msra.mxu0 %v18861_v40 }
 0x81a   : > { %13620 = vmatprep.subr.bf16.mxu0 %v18866_v41 }
 0x81b   : > { %16101 = vmatpush3.bf16.msra.mxu1 %v18936_v58 }
 0x81c   : > { %16102 = vmatprep.subr.bf16.mxu1 %v18937_v42 }
 0x81d   : > { %13621 = vmatpush1.bf16.msra.mxu0 %v18864_v20  ;;  %v18945_v20 = vld [vmem:[%s24624_s6 + $0x148] sm:$0xff]  }
 0x81e   : > { %13622 = vmatprep.subr.bf16.mxu0 %v18869_v45  ;;  %v18946_v45 = vld [vmem:[%s24624_s6 + $0x108] sm:$0xff]  }
 0x81f   : > { %16103 = vmatpush3.bf16.msra.mxu1 %v18938_v23  ;;  %v18947_v23 = vld [vmem:[%s24624_s6 + $0x150] sm:$0xff]  }
 0x820   : > { %16104 = vmatprep.subr.bf16.mxu1 %v18939_v54 }
 0x821   : > { %13623 = vmatpush1.bf16.msra.mxu0 %v18867_v4  ;;  %v18948_v4 = vld [vmem:[%s24624_s6 + $0x110] sm:$0xff]  }
 0x822   : > { %13624 = vmatprep.subr.bf16.mxu0 %v18872_v52  ;;  %v18949_v52 = vld [vmem:[%s24624_s6 + $0x158] sm:$0xff]  }
 0x823   : > { %16105 = vmatpush3.bf16.msra.mxu1 %v18940_v49 }
 0x824   : > { %16106 = vmatprep.subr.bf16.mxu1 %v18941_v18 }
 0x825   : > { %13625 = vmatpush1.bf16.msra.mxu0 %v18870_v13  ;;  %v18950_v13 = vld [vmem:[%s24624_s6 + $0x118] sm:$0xff]  }
 0x826   : > { %13626 = vmatprep.subr.bf16.mxu0 %v18875_v26  ;;  %v18951_v26 = vld [vmem:[%s24624_s6 + $0x160] sm:$0xff]  }
 0x827   : > { %16107 = vmatpush3.bf16.msra.mxu1 %v18942_v14 }
 0x828   : > { %16114 = vmatprep.subr.bf16.mxu1 %v18943_v36 }
 0x829   : > { %13627 = vmatpush1.bf16.msra.mxu0 %v18873_v35  ;;  %v18952_v35 = vld [vmem:[%s24624_s6 + $0x120] sm:$0xff]  }
 0x82a   : > { %13628 = vmatprep.subr.bf16.mxu0 %v18878_v50  ;;  %v18953_v50 = vld [vmem:[%s24624_s6 + $0x168] sm:$0xff]  }
 0x82d   : > { %13629 = vmatpush1.bf16.msra.mxu0 %v18876_v22  ;;  %v18954_v22 = vld [vmem:[%s24624_s6 + $0x128] sm:$0xff]  }
 0x82e   : > { %13639 = vmatprep.subr.bf16.mxu0 %v18881_v0  ;;  %v18955_v0 = vld [vmem:[%s24624_s6 + $0x170] sm:$0xff]  }
 0x830   : > { %13631 = vmatmul.mubr.bf16.vlgmr.msra.gmra.mrb[60].mxu0 %v21275_v31  ;;  %v18890_v31 = vld [vmem:[%s24622_s4 + $0x2da4] ss:$24 sps:$4 sm:$0xff]  }
 0x831   : > { %13640 = vmatpush1.bf16.msra.mxu0 %v18879_v57  ;;  %13671 = vmatprep.mubr.bf16.mxu0 %v21282_v27  ;;  %v18888_v27 = vld [vmem:[%s24622_s4 + $0x2da0] ss:$24 sps:$4 sm:$0xff]   ;;  %v18956_v57 = vld [vmem:[%s24624_s6 + $0x130] sm:$0xff]  }
 0x832   : > { %13641 = vmatprep.subr.bf16.mxu0 %v18884_v43  ;;  %v18957_v43 = vld [vmem:[%s24624_s6 + $0x178] sm:$0xff]  }
 0x835   : > { %13642 = vmatpush1.bf16.msra.mxu0 %v18882_v63 }
 0x836   : > { %13643 = vmatprep.subr.bf16.mxu0 %v18887_v32 }
 0x839   : > { %13644 = vmatpush1.bf16.msra.mxu0 %v18885_v60 }
 0x83a   : > { %13645 = vmatprep.subr.bf16.mxu0 %v18890_v31 }
 0x83d   : > { %13646 = vmatpush1.bf16.msra.mxu0 %v18888_v27  ;;  %v18958_v27 = vld [vmem:[%s24624_s6 + $0x138] sm:$0xff]  }
 0x83e   : > { %13647 = vmatprep.subr.bf16.mxu0 %v18893_v30 }
 0x841   : > { %13648 = vmatpush1.bf16.msra.mxu0 %v18891_v17  ;;  %v3652_v17 = vsub.s32 4, %v19650_v44 }
 0x842   : > { %13649 = vmatprep.subr.bf16.mxu0 %v18896_v9  ;;  %v3656_v9 = vsub.s32 5, %v19650_v44  ;;  %v15967_v44 = vld [vmem:[%s24625_s7] ss:$0 sm:$0xff] }
 0x845   : > { %13650 = vmatpush1.bf16.msra.mxu0 %v18894_v29  ;;  %v3653_v29 = vrot.slane %v18959_v5, %v3652_v17 }
 0x846   : > { %13651 = vmatprep.subr.bf16.mxu0 %v18899_v8  ;;  %v3657_v8 = vrot.slane %v18959_v5, %v3656_v9 }
 0x849   : > { %13652 = vmatpush1.bf16.msra.mxu0 %v18897_v1 }
 0x84a   : > { %13653 = vmatprep.subr.bf16.mxu0 %v18902_v2 }
 0x84d   : > { %13654 = vmatpush1.bf16.msra.mxu0 %v18900_v55 }
 0x84e   : > { %13655 = vmatprep.subr.bf16.mxu0 %v18905_v38 }
 0x851   : > { %13656 = vmatpush1.bf16.msra.mxu0 %v18903_v6 }
 0x852   : > { %13657 = vmatprep.subr.bf16.mxu0 %v18908_v24 }
 0x855   : > { %13658 = vmatpush1.bf16.msra.mxu0 %v18906_v25 }
 0x856   : > { %13659 = vmatprep.subr.bf16.mxu0 %v18911_v51 }
 0x859   : > { %13660 = vmatpush1.bf16.msra.mxu0 %v18909_v15 }
 0x85a   : > { %13661 = vmatprep.subr.bf16.mxu0 %v18914_v33 }
 0x85d   : > { %13662 = vmatpush1.bf16.msra.mxu0 %v18912_v56 }
 0x85e   : > { %13663 = vmatprep.subr.bf16.mxu0 %v18917_v46 }
 0x861   : > { %13664 = vmatpush1.bf16.msra.mxu0 %v18915_v21 }
 0x862   : > { %13665 = vmatprep.subr.bf16.mxu0 %v18920_v11 }
 0x865   : > { %13666 = vmatpush1.bf16.msra.mxu0 %v18918_v39 }
 0x866   : > { %13667 = vmatprep.subr.bf16.mxu0 %v18923_v28 }
 0x869   : > { %13668 = vmatpush1.bf16.msra.mxu0 %v18921_v16 }
 0x86a   : > { %13669 = vmatprep.subr.bf16.mxu0 %v18926_v3 }
 0x86d   : > { %13670 = vmatpush1.bf16.msra.mxu0 %v18924_v59 }
 0x870   : > { %13672 = vmatmul.mubr.bf16.vlgmr.msra.gmra.mrb[60].mxu0 %v21479_v61  ;;  %v18944_v61 = vld [vmem:[%s24624_s6 + $0x100] sm:$0xff]  }
 0x8bd   : > { %v13017_v62 = vpop.f32.mrb[76].mxu1 }
 0x8be   : > { %v16240_v7 = vadd.f32 %v13017_v62, %v3645_v19  ;;  %v13019_v10 = vpop.f32.mrb[77].mxu1 }
 0x8bf   : > { %v16241_v37 = vadd.f32 %v13019_v10, %v3649_v53  ;;  %v13021_v12 = vpop.f32.mrb[78].mxu1 }
 0x8c0   : > { %v13682_v48 = vmax.f32 %v16240_v7, 0.0  ;;  %v13022_v40 = vpop.f32.mrb[79].mxu1 }
 0x8c1   : > { %v13683_v41 = vmax.f32 %v16241_v37, 0.0 }
 0x8c2   : > { %v13688_v42 = vpack.c.bf16 %v13682_v48, %v13682_v48 }
 0x8c3   : > { %v13689_v58 = vpack.c.bf16 %v13683_v41, %v13683_v41 }
 0x8c5   : > { %14155 = vmatprep.mubr.bf16.mxu1 %v13689_v58 }
 0x8c6   : > { %14156 = vmatmul.mubr.bf16.vlgmr.msra.gmra.mrb[84].mxu1 %v13688_v42 }
 0x8c7   : > { %16115 = vmatpush3.bf16.msra.mxu1 %v18944_v61 }
 0x8c8   : > { %16116 = vmatprep.subr.bf16.mxu1 %v18945_v20 }
 0x8cb   : > { %16117 = vmatpush3.bf16.msra.mxu1 %v18946_v45 }
 0x8cc   : > { %16118 = vmatprep.subr.bf16.mxu1 %v18947_v23 }
 0x8cf   : > { %16119 = vmatpush3.bf16.msra.mxu1 %v18948_v4 }
 0x8d0   : > { %16120 = vmatprep.subr.bf16.mxu1 %v18949_v52 }
 0x8d3   : > { %16121 = vmatpush3.bf16.msra.mxu1 %v18950_v13 }
 0x8d4   : > { %16122 = vmatprep.subr.bf16.mxu1 %v18951_v26 }
 0x8d7   : > { %16123 = vmatpush3.bf16.msra.mxu1 %v18952_v35 }
 0x8d8   : > { %16124 = vmatprep.subr.bf16.mxu1 %v18953_v50 }
 0x8db   : > { %16125 = vmatpush3.bf16.msra.mxu1 %v18954_v22 }
 0x8dc   : > { %16126 = vmatprep.subr.bf16.mxu1 %v18955_v0 }
 0x8dd   : > { %v16086_v63 = vpop.f32.mrb[80].mxu1 }
 0x8de   : > { %v16087_v32 = vpop.f32.mrb[81].mxu1 }
 0x8df   : > { %v16088_v60 = vadd.f32 %v16087_v32, %v16086_v63  ;;  %v16089_v31 = vpop.f32.mrb[82].mxu1  ;;  %16127 = vmatpush3.bf16.msra.mxu1 %v18956_v57 }
 0x8e0   : > { %v16090_v30 = vpop.f32.mrb[83].mxu1  ;;  %16128 = vmatprep.subr.bf16.mxu1 %v18957_v43 }
 0x8e1   : > { %v14118_v15 = vadd.f32 %v16088_v60, %v15967_v44 }
 0x8e3   : > { %16129 = vmatpush3.bf16.msra.mxu1 %v18958_v27 }
 0x943   : > { %v13673_v54 = vpop.f32.mrb[60].mxu0 }
 0x944   : > { %v16242_v49 = vadd.f32 %v13673_v54, %v3653_v29  ;;  %v13675_v18 = vpop.f32.mrb[61].mxu0 }
 0x945   : > { %v16243_v1 = vadd.f32 %v13675_v18, %v3657_v8  ;;  %v13677_v2 = vpop.f32.mrb[62].mxu0 }
 0x946   : > { %v13684_v14 = vmax.f32 %v16242_v49, 0.0  ;;  %v13678_v55 = vpop.f32.mrb[63].mxu0 }
 0x947   : > { %v13685_v38 = vmax.f32 %v16243_v1, 0.0 }
 0x948   : > { %v13690_v24 = vpack.c.bf16 %v13684_v14, %v13684_v14 }
 0x949   : > { %v13691_v6 = vpack.c.bf16 %v13685_v38, %v13685_v38 }
 0x94b   : > { %14195 = vmatprep.mubr.bf16.mxu1 %v13691_v6 }
 0x94c   : > { %14196 = vmatmul.mubr.bf16.vlgmr.msra.gmra.mrb[88].mxu1 %v13690_v24 }
 0x999   : > { %v16108_v25 = vpop.f32.mrb[84].mxu1 }
 0x99a   : > { %v16109_v51 = vpop.f32.mrb[85].mxu1 }
 0x99b   : > { %v16110_v33 = vadd.f32 %v16109_v51, %v16108_v25  ;;  %v16111_v56 = vpop.f32.mrb[86].mxu1 }
 0x99c   : > { %v16112_v46 = vpop.f32.mrb[87].mxu1 }
 0x99d   : > { %v14158_v21 = vadd.f32 %v16110_v33, %v14118_v15 }
 0xa1f   : > { %v16130_v11 = vpop.f32.mrb[88].mxu1 }
 0xa20   : > { %v16131_v39 = vpop.f32.mrb[89].mxu1 }
 0xa21   : > { %v16132_v36 = vadd.f32 %v16131_v39, %v16130_v11  ;;  %v16133_v28 = vpop.f32.mrb[90].mxu1 }
 0xa22   : > { %v16134_v16 = vpop.f32.mrb[91].mxu1 }
 0xa23   : > { %v14198_v3 = vadd.f32 %v16132_v36, %v14158_v21 }
 0xa25   : > { %14203 = vst [vmem:[%s301_s19] sm:$0xff] %v14198_v3 }
 0xa26   : > { %18973 = shalt.err (!%p18970_p3)
}
 0xa27   : > { %s18974_s12 = scalar_lea.hbm %s24576_s25, 128  ;;  %s18978_s18 = scalar_lea.hbm %s24626_s8, 256 }
 0xa28   : > { %p18975_p4 = scmp.ne.s32.totalorder %s24576_s25, %s18974_s12  ;;  %p18979_p9 = scmp.lt.u32.totalorder %s24576_s25, %s24626_s8 }
 0xa29   : > { %p18980_p10 = scmp.lt.u32.totalorder %s18978_s18, %s18974_s12  ;;  %p18982_p12 = scmp.lt.u32.totalorder %s18974_s12, %s24576_s25 }
 0xa2a   : > { %p18976_p7 = pnand %p18975_p4, %p19109_p5 }
 0xa2b   : > { %p18981_p11 = por %p18980_p10, %p18979_p9 }
 0xa2c   : > { %p18977_p8 = pneg %p18976_p7 }
 0xa2d   : > { %p18983_p13 = por %p18982_p12, %p18981_p11 }
 0xa2f   : > { %p18984_p0 = pnand %p18983_p13, %p18977_p8 }
 0xa31   : > { %18987 = shalt.err (!%p18984_p0)
}
 0xa32   : > { %16437 = dma.vmem_to_hbm [thread:$0]  (%p19109_p5), %s24578_s20, 128, %s24576_s25, %s14205_s23  }
 0xa33 PF: > { %p16443_p1 = scmp.ge.s32.totalorder %s19022_s30, 2  ;;  %s14230_s22 = sand.u32 1, %s19010_s27  }
 0xa34   : > { %s14231_s24 = scalar_lea.sflag [#allocation3], %s14230_s22 }
 0xa35   : > { %p16440_p2 = pnand %p16443_p1, %p19113_p6 }
 0xa37   : > { %19005 = dma.done.wait (!%p16440_p2), %s14231_s24, 128  }
 0xa38   : > { %19007 = vsyncadd (!%p16440_p2), %s14231_s24, 4294967168  ;;  %p18_p3 = scmp.ge.s32.totalorder %s19096_s11, 4   ;;  %s24629_s27 = smov %s19014_s28 }
 0xa39   : > { %s24630_s28 = smov %s19018_s29  ;;  %s24631_s29 = smov %s19107_s14 }
 0xa3a   : > { %s24632_s30 = smov %s19096_s11  ;;  %20 = sbr.rel (!%p18_p3) target bundleno = 3 (0x3), region = 87 }
 0xa41   :  { %14236 = vsyncpa [#allocation3], 1 }
 0xa42   :  { %14238 = vsyncpa [#allocation3 + $0x1], 1 }

</bundles_post_ra>
